<compile_context>
chip_gen: v5e
topology: v5e:2x2
jax: 0.10.0
libtpu: 0.0.40
codegen_flags: <defaults>
</compile_context>

<pallas_src>
import functools
import math

import jax
import jax.numpy as jnp
from jax import lax
from jax.experimental import pallas as pl
from jax.experimental.pallas import tpu as pltpu


_TRANS_B = (((1,), (1,)), ((), ()))   # contract last dims of both operands


# ---------------------------------------------------------------------------
# Pallas kernels
# ---------------------------------------------------------------------------

def _conv_relu_pool_kernel(x_ref, w_ref, b_ref, sel_ref, o_ref, hbuf_ref, *,
                           kh, kw, cinp, coutp, wconv, rows_per_chunk):
    """Fused VALID conv + bias + ReLU + 2x2/stride-2 max pool for one image.

    x_ref   : (Hin*cinp, Win)              bf16 -- rows packed (h, c), W on lanes
    w_ref   : (2*kw*coutp, (kh+1)*cinp)    bf16 -- two row-shifted weight copies
    b_ref   : (coutp, 1)                   f32
    sel_ref : (Win, Win//2)                bf16 -- even-column selector (0/1)
    o_ref   : (Hpool*coutp, Win//2)             -- pooled output, (h, c) packed
    hbuf_ref: (rows_per_chunk*coutp, Win)  bf16 -- per-chunk horizontal-max rows

    wconv = valid conv output width; columns >= wconv are masked to 0 before
    the selector matmul, so output lane padding is exactly zero.
    """
    win = x_ref.shape[-1]
    hpool = o_ref.shape[0] // coutp
    n_chunks = hpool // rows_per_chunk

    bias = b_ref[...]                                          # (coutp, 1)
    lane = lax.broadcasted_iota(jnp.int32, (coutp, win), 1)
    valid = lane < wconv                                       # mask wrapped taps

    def chunk_body(c, carry):
        base = c * rows_per_chunk

        def pair_body(r, carry2):
            p = base + r                                       # pool-row index
            start = pl.multiple_of(2 * p * cinp, 2 * cinp)
            xs = x_ref[pl.ds(start, (kh + 1) * cinp), :]       # ((kh+1)*cinp, W)
            # One MXU matmul yields the column-tap partial sums for BOTH conv
            # rows (2p, 2p+1) of this pool pair.
            prod = jnp.dot(w_ref[...], xs, preferred_element_type=jnp.float32)
            acc0 = prod[0:coutp, :]
            acc1 = prod[kw * coutp:(kw + 1) * coutp, :]
            for kj in range(1, kw):                            # realign taps (XLU)
                acc0 = acc0 + pltpu.roll(
                    prod[kj * coutp:(kj + 1) * coutp, :], win - kj, axis=1)
                acc1 = acc1 + pltpu.roll(
                    prod[(kw + kj) * coutp:(kw + kj + 1) * coutp, :],
                    win - kj, axis=1)
            v = jnp.maximum(jnp.maximum(acc0, acc1) + bias, 0.0)   # relu + vmax
            h = jnp.maximum(v, pltpu.roll(v, win - 1, axis=1))     # horiz. max
            h = jnp.where(valid, h, 0.0)
            dst = pl.multiple_of(r * coutp, coutp)
            hbuf_ref[pl.ds(dst, coutp), :] = h.astype(hbuf_ref.dtype)
            return carry2

        lax.fori_loop(0, rows_per_chunk, pair_body, 0)

        # One big even-column selector matmul per chunk (M = rows_per_chunk*coutp).
        pooled = jnp.dot(hbuf_ref[...], sel_ref[...],
                         preferred_element_type=jnp.float32)
        odst = pl.multiple_of(base * coutp, coutp)
        o_ref[pl.ds(odst, rows_per_chunk * coutp), :] = pooled.astype(o_ref.dtype)
        return carry

    lax.fori_loop(0, n_chunks, chunk_body, 0)


def _fc_fused_kernel(x_ref, w1_ref, b1_ref, w2_ref, b2_ref, w3_ref, b3_ref,
                     o_ref, acc_ref):
    """fc1 as a K-blocked reduction + fc2/fc3 fused in the last-step epilogue.

    x is lane-dense (N, K) bf16; fc1's weight streams in its native PyTorch
    (120, K) layout in bf16; all matmuls contract on the last dims (TRANS_B).
    """
    k = pl.program_id(0)

    @pl.when(k == 0)
    def _():
        acc_ref[...] = jnp.zeros_like(acc_ref)

    acc_ref[...] += lax.dot_general(x_ref[...], w1_ref[...], _TRANS_B,
                                    preferred_element_type=jnp.float32)

    @pl.when(k == pl.num_programs(0) - 1)
    def _():
        h1 = jnp.maximum(acc_ref[...] + b1_ref[...], 0.0)               # (N,120)
        h2 = jnp.maximum(
            lax.dot_general(h1, w2_ref[...], _TRANS_B,
                            preferred_element_type=jnp.float32)
            + b2_ref[...], 0.0)                                          # (N, 84)
        o_ref[...] = (lax.dot_general(h2, w3_ref[...], _TRANS_B,
                                      preferred_element_type=jnp.float32)
                      + b3_ref[...]).astype(o_ref.dtype)                 # (N, 5)


# ---------------------------------------------------------------------------
# pallas_call wrappers
# ---------------------------------------------------------------------------

def conv_relu_pool(x, wstack, bias, sel, *, kh, kw, cinp, coutp, wconv,
                   rows_per_chunk, out_dtype):
    """x: (N, Hin*cinp, Win) bf16  ->  (N, Hpool*coutp, Win//2)."""
    n, hc, win = x.shape
    assert hc % cinp == 0 and win % 2 == 0
    hin = hc // cinp
    hpool = (hin - kh + 1) // 2
    wpool = win // 2
    assert hpool % rows_per_chunk == 0
    kernel = functools.partial(_conv_relu_pool_kernel, kh=kh, kw=kw, cinp=cinp,
                               coutp=coutp, wconv=wconv,
                               rows_per_chunk=rows_per_chunk)
    return pl.pallas_call(
        kernel,
        out_shape=jax.ShapeDtypeStruct((n, hpool * coutp, wpool), out_dtype),
        grid_spec=pltpu.PrefetchScalarGridSpec(
            num_scalar_prefetch=0,
            grid=(n,),
            in_specs=[
                pl.BlockSpec((None, hc, win), lambda i: (i, 0, 0)),
                pl.BlockSpec(wstack.shape, lambda i: (0, 0)),
                pl.BlockSpec(bias.shape, lambda i: (0, 0)),
                pl.BlockSpec(sel.shape, lambda i: (0, 0)),
            ],
            out_specs=pl.BlockSpec((None, hpool * coutp, wpool),
                                   lambda i: (i, 0, 0)),
            scratch_shapes=[pltpu.VMEM((rows_per_chunk * coutp, win),
                                       jnp.bfloat16)],
        ),
        compiler_params=pltpu.CompilerParams(
            dimension_semantics=("parallel",)),
    )(x, wstack, bias, sel)


def fc_fused(x, w1, b1, w2, b2, w3, b3, *, tk=19200):
    """out = fc3(relu(fc2(relu(fc1(x)))));  x: (N, K), weights PyTorch-style."""
    n, kdim = x.shape
    f1, f2, f3 = w1.shape[0], w2.shape[0], w3.shape[0]
    assert kdim % tk == 0 and tk % 128 == 0
    return pl.pallas_call(
        _fc_fused_kernel,
        out_shape=jax.ShapeDtypeStruct((n, f3), jnp.float32),
        grid_spec=pltpu.PrefetchScalarGridSpec(
            num_scalar_prefetch=0,
            grid=(kdim // tk,),
            in_specs=[
                pl.BlockSpec((n, tk), lambda k: (0, k)),
                pl.BlockSpec((f1, tk), lambda k: (0, k)),
                pl.BlockSpec((1, f1), lambda k: (0, 0)),
                pl.BlockSpec((f2, f1), lambda k: (0, 0)),
                pl.BlockSpec((1, f2), lambda k: (0, 0)),
                pl.BlockSpec((f3, f2), lambda k: (0, 0)),
                pl.BlockSpec((1, f3), lambda k: (0, 0)),
            ],
            out_specs=pl.BlockSpec((n, f3), lambda k: (0, 0)),
            scratch_shapes=[pltpu.VMEM((n, f1), jnp.float32)],
        ),
        compiler_params=pltpu.CompilerParams(
            dimension_semantics=("arbitrary",),
            vmem_limit_bytes=32 * 1024 * 1024),
    )(x, w1, b1.reshape(1, f1), w2, b2.reshape(1, f2), w3, b3.reshape(1, f3))


# ---------------------------------------------------------------------------
# Glue (small XLA ops: layout packing, weight stacking, flatten)
# ---------------------------------------------------------------------------

def _stack_conv_weight(w, b, *, cinp, coutp):
    """(Cout,Cin,kh,kw) -> bf16 (2*kw*coutp, (kh+1)*cinp) matrix holding the
    weight twice (second copy shifted by one input row = cinp sublanes), so a
    single MXU matmul produces both conv rows of a 2x2 pool pair."""
    cout, cin, kh, kw = w.shape
    wt = w.transpose(3, 0, 2, 1)                        # (kw, cout, kh, cin)
    wt = jnp.pad(wt, ((0, 0), (0, coutp - cout), (0, 0), (0, cinp - cin)))
    base = wt.reshape(kw * coutp, kh * cinp)
    top = jnp.pad(base, ((0, 0), (0, cinp)))            # conv row 2p
    bot = jnp.pad(base, ((0, 0), (cinp, 0)))            # conv row 2p+1
    wstack = jnp.concatenate([top, bot], axis=0).astype(jnp.bfloat16)
    bp = jnp.pad(b, (0, coutp - cout)).reshape(coutp, 1).astype(jnp.float32)
    return wstack, bp


def _even_selector(win):
    """(win, win//2) bf16 0/1 matrix selecting even columns."""
    cols = jnp.arange(win)[:, None]
    sel = jnp.arange(win // 2)[None, :]
    return (cols == 2 * sel).astype(jnp.bfloat16)


def lenet_forward(x_nchw, p):
    n, cin, hin, win = x_nchw.shape                     # (N, 8, 256, 256)

    # NCHW -> (N, H*C, W) packed layout, bf16 for the conv MXU path.
    x_t = (x_nchw.transpose(0, 2, 1, 3)
           .reshape(n, hin * cin, win)
           .astype(jnp.bfloat16))

    # conv1 (8 -> 6, 9x9) + ReLU + 2x2 maxpool; Cout padded 6 -> 8.
    w1s, b1p = _stack_conv_weight(p["conv1_w"], p["conv1_b"], cinp=8, coutp=8)
    a1 = conv_relu_pool(x_t, w1s, b1p, _even_selector(win),
                        kh=9, kw=9, cinp=8, coutp=8,
                        wconv=win - 9 + 1, rows_per_chunk=31,
                        out_dtype=jnp.bfloat16)          # (N, 124*8, 128)

    # conv2 (6 -> 16, 5x5) + ReLU + 2x2 maxpool; Cin padded 6 -> 8.
    hp1 = (hin - 9 + 1) // 2                             # 124
    wp1 = (win - 9 + 1) // 2                             # 124 (valid width)
    w2s, b2p = _stack_conv_weight(p["conv2_w"], p["conv2_b"], cinp=8, coutp=16)
    a2 = conv_relu_pool(a1, w2s, b2p, _even_selector(win // 2),
                        kh=5, kw=5, cinp=8, coutp=16,
                        wconv=wp1 - 5 + 1, rows_per_chunk=15,
                        out_dtype=jnp.bfloat16)          # (N, 60*16, 64)

    # Flatten in PyTorch (C, H, W) order, dropping the (zeroed) lane padding.
    hp2 = (hp1 - 5 + 1) // 2                             # 60
    wv2 = (wp1 - 5 + 1) // 2                             # 60 (valid width)
    wpad2 = a2.shape[2]                                  # 64 (stored width)
    flat = (a2.reshape(n, hp2, 16, wpad2)[:, :, :, :wv2]
            .transpose(0, 2, 1, 3)
            .reshape(n, 16 * hp2 * wv2))                 # (N, 57600) bf16

    # fc1 weight streams in bf16 (astype is a no-op when pre-cast outside jit).
    return fc_fused(flat, p["fc1_w"].astype(jnp.bfloat16), p["fc1_b"],
                    p["fc2_w"], p["fc2_b"], p["fc3_w"], p["fc3_b"],
                    tk=19200)                            # (N, 5) f32


# ---------------------------------------------------------------------------
# Parameters + pure-JAX reference
# ---------------------------------------------------------------------------

def init_params(key):
    """Deterministic synthetic parameters, PyTorch-default-style init."""
    def dense(k, out_f, in_f):
        wk, bk = jax.random.split(k)
        s = 1.0 / math.sqrt(in_f)
        return (jax.random.uniform(wk, (out_f, in_f), jnp.float32, -s, s),
                jax.random.uniform(bk, (out_f,), jnp.float32, -s, s))

    def conv(k, cout, cin, ksz):
        wk, bk = jax.random.split(k)
        s = 1.0 / math.sqrt(cin * ksz * ksz)
        return (jax.random.uniform(wk, (cout, cin, ksz, ksz), jnp.float32, -s, s),
                jax.random.uniform(bk, (cout,), jnp.float32, -s, s))

    k1, k2, k3, k4, k5 = jax.random.split(key, 5)
    p = {}
    p["conv1_w"], p["conv1_b"] = conv(k1, 6, 8, 9)
    p["conv2_w"], p["conv2_b"] = conv(k2, 16, 6, 5)
    p["fc1_w"], p["fc1_b"] = dense(k3, 120, 16 * 60 * 60)
    p["fc2_w"], p["fc2_b"] = dense(k4, 84, 120)
    p["fc3_w"], p["fc3_b"] = dense(k5, 5, 84)
    return p


def lenet_ref(x, p):
    """Pure-JAX reference of the PyTorch forward (for correctness check)."""
    dn = ("NCHW", "OIHW", "NCHW")
    hp = lax.Precision.HIGHEST
    y = lax.conv_general_dilated(x, p["conv1_w"], (1, 1), "VALID",
                                 dimension_numbers=dn, precision=hp)
    y = jax.nn.relu(y + p["conv1_b"][None, :, None, None])
    y = lax.reduce_window(y, -jnp.inf, lax.max, (1, 1, 2, 2), (1, 1, 2, 2), "VALID")
    y = lax.conv_general_dilated(y, p["conv2_w"], (1, 1), "VALID",
                                 dimension_numbers=dn, precision=hp)
    y = jax.nn.relu(y + p["conv2_b"][None, :, None, None])
    y = lax.reduce_window(y, -jnp.inf, lax.max, (1, 1, 2, 2), (1, 1, 2, 2), "VALID")
    y = y.reshape(y.shape[0], -1)
    y = jax.nn.relu(jnp.dot(y, p["fc1_w"].T, precision=hp) + p["fc1_b"])
    y = jax.nn.relu(jnp.dot(y, p["fc2_w"].T, precision=hp) + p["fc2_b"])
    return jnp.dot(y, p["fc3_w"].T, precision=hp) + p["fc3_b"]


if __name__ == "__main__":
    key = jax.random.PRNGKey(0)
    pkey, xkey = jax.random.split(key)
    params = init_params(pkey)

    # Spatial size 256 is what the forward implies:
    # 256 -(conv 9x9)-> 248 -(pool)-> 124 -(conv 5x5)-> 120 -(pool)-> 60,
    # and fc1 expects exactly 16*60*60 input features.
    x = jax.random.normal(xkey, (2, 8, 256, 256), jnp.float32)

    # Cast fc1's streamed weight to bf16 ONCE, outside the jitted forward.
    params_dev = dict(params)
    params_dev["fc1_w"] = params["fc1_w"].astype(jnp.bfloat16)

    fwd = jax.jit(lenet_forward)
    out = jax.block_until_ready(fwd(x, params_dev))
    assert out.shape == (2, 5) and out.dtype == jnp.float32

    ref = jax.block_until_ready(jax.jit(lenet_ref)(x, params))
    assert jnp.allclose(out, ref, rtol=1e-2, atol=1e-2), (out, ref)

    print("KERNEL_OK")
</pallas_src>

<mosaic_0001>
module attributes {stable_mosaic.version = 11 : i64} {
  func.func @_conv_relu_pool_kernel(%arg0: i32, %arg1: memref<1x2048x256xbf16, #tpu.memory_space<vmem>>, %arg2: memref<144x80xbf16, #tpu.memory_space<vmem>>, %arg3: memref<8x1xf32, #tpu.memory_space<vmem>>, %arg4: memref<256x128xbf16, #tpu.memory_space<vmem>>, %arg5: memref<1x992x128xbf16, #tpu.memory_space<vmem>>, %arg6: memref<248x256xbf16, #tpu.memory_space<vmem>>) attributes {dimension_semantics = [#tpu.dimension_semantics<parallel>], iteration_bounds = array<i64: 2>, scalar_prefetch = 0 : i64, scratch_operands = 1 : i64, tpu.core_type = #tpu.core_type<tc>, window_params = [{transform_indices = @transform_0, window_bounds = array<i64: 1, 2048, 256>}, {pipeline_mode = #tpu.pipeline_mode<synchronous>, transform_indices = @transform_1, window_bounds = array<i64: 144, 80>}, {pipeline_mode = #tpu.pipeline_mode<synchronous>, transform_indices = @transform_2, window_bounds = array<i64: 8, 1>}, {pipeline_mode = #tpu.pipeline_mode<synchronous>, transform_indices = @transform_3, window_bounds = array<i64: 256, 128>}, {transform_indices = @transform_4, window_bounds = array<i64: 1, 992, 128>}]} {
    %c0 = arith.constant 0 : index
    %c0_0 = arith.constant 0 : index
    %0 = vector.load %arg3[%c0, %c0_0] : memref<8x1xf32, #tpu.memory_space<vmem>>, vector<8x1xf32>
    %1 = tpu.iota {dimensions = array<i32: 1>} : vector<8x256xi32>
    %c248_i32 = arith.constant 248 : i32
    %2 = vector.broadcast %c248_i32 : i32 to vector<8x256xi32>
    %3 = arith.cmpi slt, %1, %2 : vector<8x256xi32>
    %c0_i32 = arith.constant 0 : i32
    %c4_i32 = arith.constant 4 : i32
    %4 = arith.addi %c0_i32, %c4_i32 : i32
    %c1_i32 = arith.constant 1 : i32
    scf.for %arg7 = %c0_i32 to %4 step %c1_i32  : i32 {
      %c31_i32 = arith.constant 31 : i32
      %5 = arith.muli %arg7, %c31_i32 : i32
      %c0_i32_2 = arith.constant 0 : i32
      %c31_i32_3 = arith.constant 31 : i32
      %6 = arith.addi %c0_i32_2, %c31_i32_3 : i32
      %c1_i32_4 = arith.constant 1 : i32
      scf.for %arg8 = %c0_i32_2 to %6 step %c1_i32_4  : i32 {
        %17 = arith.addi %5, %arg8 : i32
        %c2_i32 = arith.constant 2 : i32
        %18 = arith.muli %c2_i32, %17 : i32
        %c8_i32_12 = arith.constant 8 : i32
        %19 = arith.muli %18, %c8_i32_12 : i32
        %20 = tpu.assume_multiple %19, 16 : i32
        %c0_13 = arith.constant 0 : index
        %21 = arith.index_cast %20 : i32 to index
        %c0_14 = arith.constant 0 : index
        %22 = vector.load %arg1[%c0_13, %21, %c0_14] : memref<1x2048x256xbf16, #tpu.memory_space<vmem>>, vector<1x80x256xbf16>
        %23 = vector.shape_cast %22 : vector<1x80x256xbf16> to vector<80x256xbf16>
        %c0_15 = arith.constant 0 : index
        %c0_16 = arith.constant 0 : index
        %24 = vector.load %arg2[%c0_15, %c0_16] : memref<144x80xbf16, #tpu.memory_space<vmem>>, vector<144x80xbf16>
        %cst_17 = arith.constant dense<0.000000e+00> : vector<144x256xf32>
        %25 = tpu.matmul %24, %23, %cst_17 {dimension_numbers = #tpu.dot_dimension_numbers<[1], [0], [0], [1], [0, 0, 1, 1], [], []>} : vector<144x80xbf16>, vector<80x256xbf16>, vector<144x256xf32> -> vector<144x256xf32>
        %26 = vector.extract_strided_slice %25 {offsets = [0, 0], sizes = [8, 256], strides = [1, 1]} : vector<144x256xf32> to vector<8x256xf32>
        %27 = vector.extract_strided_slice %25 {offsets = [72, 0], sizes = [8, 256], strides = [1, 1]} : vector<144x256xf32> to vector<8x256xf32>
        %28 = vector.extract_strided_slice %25 {offsets = [8, 0], sizes = [8, 256], strides = [1, 1]} : vector<144x256xf32> to vector<8x256xf32>
        %c255_i32 = arith.constant 255 : i32
        %29 = tpu.dynamic_rotate %28 by %c255_i32 dim 1 : vector<8x256xf32>, i32 -> vector<8x256xf32>
        %30 = arith.addf %26, %29 : vector<8x256xf32>
        %31 = vector.extract_strided_slice %25 {offsets = [80, 0], sizes = [8, 256], strides = [1, 1]} : vector<144x256xf32> to vector<8x256xf32>
        %c255_i32_18 = arith.constant 255 : i32
        %32 = tpu.dynamic_rotate %31 by %c255_i32_18 dim 1 : vector<8x256xf32>, i32 -> vector<8x256xf32>
        %33 = arith.addf %27, %32 : vector<8x256xf32>
        %34 = vector.extract_strided_slice %25 {offsets = [16, 0], sizes = [8, 256], strides = [1, 1]} : vector<144x256xf32> to vector<8x256xf32>
        %c254_i32 = arith.constant 254 : i32
        %35 = tpu.dynamic_rotate %34 by %c254_i32 dim 1 : vector<8x256xf32>, i32 -> vector<8x256xf32>
        %36 = arith.addf %30, %35 : vector<8x256xf32>
        %37 = vector.extract_strided_slice %25 {offsets = [88, 0], sizes = [8, 256], strides = [1, 1]} : vector<144x256xf32> to vector<8x256xf32>
        %c254_i32_19 = arith.constant 254 : i32
        %38 = tpu.dynamic_rotate %37 by %c254_i32_19 dim 1 : vector<8x256xf32>, i32 -> vector<8x256xf32>
        %39 = arith.addf %33, %38 : vector<8x256xf32>
        %40 = vector.extract_strided_slice %25 {offsets = [24, 0], sizes = [8, 256], strides = [1, 1]} : vector<144x256xf32> to vector<8x256xf32>
        %c253_i32 = arith.constant 253 : i32
        %41 = tpu.dynamic_rotate %40 by %c253_i32 dim 1 : vector<8x256xf32>, i32 -> vector<8x256xf32>
        %42 = arith.addf %36, %41 : vector<8x256xf32>
        %43 = vector.extract_strided_slice %25 {offsets = [96, 0], sizes = [8, 256], strides = [1, 1]} : vector<144x256xf32> to vector<8x256xf32>
        %c253_i32_20 = arith.constant 253 : i32
        %44 = tpu.dynamic_rotate %43 by %c253_i32_20 dim 1 : vector<8x256xf32>, i32 -> vector<8x256xf32>
        %45 = arith.addf %39, %44 : vector<8x256xf32>
        %46 = vector.extract_strided_slice %25 {offsets = [32, 0], sizes = [8, 256], strides = [1, 1]} : vector<144x256xf32> to vector<8x256xf32>
        %c252_i32 = arith.constant 252 : i32
        %47 = tpu.dynamic_rotate %46 by %c252_i32 dim 1 : vector<8x256xf32>, i32 -> vector<8x256xf32>
        %48 = arith.addf %42, %47 : vector<8x256xf32>
        %49 = vector.extract_strided_slice %25 {offsets = [104, 0], sizes = [8, 256], strides = [1, 1]} : vector<144x256xf32> to vector<8x256xf32>
        %c252_i32_21 = arith.constant 252 : i32
        %50 = tpu.dynamic_rotate %49 by %c252_i32_21 dim 1 : vector<8x256xf32>, i32 -> vector<8x256xf32>
        %51 = arith.addf %45, %50 : vector<8x256xf32>
        %52 = vector.extract_strided_slice %25 {offsets = [40, 0], sizes = [8, 256], strides = [1, 1]} : vector<144x256xf32> to vector<8x256xf32>
        %c251_i32 = arith.constant 251 : i32
        %53 = tpu.dynamic_rotate %52 by %c251_i32 dim 1 : vector<8x256xf32>, i32 -> vector<8x256xf32>
        %54 = arith.addf %48, %53 : vector<8x256xf32>
        %55 = vector.extract_strided_slice %25 {offsets = [112, 0], sizes = [8, 256], strides = [1, 1]} : vector<144x256xf32> to vector<8x256xf32>
        %c251_i32_22 = arith.constant 251 : i32
        %56 = tpu.dynamic_rotate %55 by %c251_i32_22 dim 1 : vector<8x256xf32>, i32 -> vector<8x256xf32>
        %57 = arith.addf %51, %56 : vector<8x256xf32>
        %58 = vector.extract_strided_slice %25 {offsets = [48, 0], sizes = [8, 256], strides = [1, 1]} : vector<144x256xf32> to vector<8x256xf32>
        %c250_i32 = arith.constant 250 : i32
        %59 = tpu.dynamic_rotate %58 by %c250_i32 dim 1 : vector<8x256xf32>, i32 -> vector<8x256xf32>
        %60 = arith.addf %54, %59 : vector<8x256xf32>
        %61 = vector.extract_strided_slice %25 {offsets = [120, 0], sizes = [8, 256], strides = [1, 1]} : vector<144x256xf32> to vector<8x256xf32>
        %c250_i32_23 = arith.constant 250 : i32
        %62 = tpu.dynamic_rotate %61 by %c250_i32_23 dim 1 : vector<8x256xf32>, i32 -> vector<8x256xf32>
        %63 = arith.addf %57, %62 : vector<8x256xf32>
        %64 = vector.extract_strided_slice %25 {offsets = [56, 0], sizes = [8, 256], strides = [1, 1]} : vector<144x256xf32> to vector<8x256xf32>
        %c249_i32 = arith.constant 249 : i32
        %65 = tpu.dynamic_rotate %64 by %c249_i32 dim 1 : vector<8x256xf32>, i32 -> vector<8x256xf32>
        %66 = arith.addf %60, %65 : vector<8x256xf32>
        %67 = vector.extract_strided_slice %25 {offsets = [128, 0], sizes = [8, 256], strides = [1, 1]} : vector<144x256xf32> to vector<8x256xf32>
        %c249_i32_24 = arith.constant 249 : i32
        %68 = tpu.dynamic_rotate %67 by %c249_i32_24 dim 1 : vector<8x256xf32>, i32 -> vector<8x256xf32>
        %69 = arith.addf %63, %68 : vector<8x256xf32>
        %70 = vector.extract_strided_slice %25 {offsets = [64, 0], sizes = [8, 256], strides = [1, 1]} : vector<144x256xf32> to vector<8x256xf32>
        %c248_i32_25 = arith.constant 248 : i32
        %71 = tpu.dynamic_rotate %70 by %c248_i32_25 dim 1 : vector<8x256xf32>, i32 -> vector<8x256xf32>
        %72 = arith.addf %66, %71 : vector<8x256xf32>
        %73 = vector.extract_strided_slice %25 {offsets = [136, 0], sizes = [8, 256], strides = [1, 1]} : vector<144x256xf32> to vector<8x256xf32>
        %c248_i32_26 = arith.constant 248 : i32
        %74 = tpu.dynamic_rotate %73 by %c248_i32_26 dim 1 : vector<8x256xf32>, i32 -> vector<8x256xf32>
        %75 = arith.addf %69, %74 : vector<8x256xf32>
        %76 = arith.maximumf %72, %75 : vector<8x256xf32>
        %77 = vector.broadcast %0 : vector<8x1xf32> to vector<8x256xf32>
        %78 = arith.addf %76, %77 : vector<8x256xf32>
        %cst_27 = arith.constant 0.000000e+00 : f32
        %79 = vector.broadcast %cst_27 : f32 to vector<8x256xf32>
        %80 = arith.maximumf %78, %79 : vector<8x256xf32>
        %c255_i32_28 = arith.constant 255 : i32
        %81 = tpu.dynamic_rotate %80 by %c255_i32_28 dim 1 : vector<8x256xf32>, i32 -> vector<8x256xf32>
        %82 = arith.maximumf %80, %81 : vector<8x256xf32>
        %cst_29 = arith.constant 0.000000e+00 : f32
        %83 = vector.broadcast %cst_29 : f32 to vector<8x256xf32>
        %84 = arith.select %3, %82, %83 : vector<8x256xi1>, vector<8x256xf32>
        %c8_i32_30 = arith.constant 8 : i32
        %85 = arith.muli %arg8, %c8_i32_30 : i32
        %86 = tpu.assume_multiple %85, 8 : i32
        %87 = arith.truncf %84 : vector<8x256xf32> to vector<8x256xbf16>
        %88 = arith.index_cast %86 : i32 to index
        %c0_31 = arith.constant 0 : index
        %89 = vector.load %arg6[%88, %c0_31] : memref<248x256xbf16, #tpu.memory_space<vmem>>, vector<8x256xbf16>
        tpu.vector_store %arg6[%88, %c0_31], %87 {strides = array<i32>} : memref<248x256xbf16, #tpu.memory_space<vmem>>, vector<8x256xbf16>,
      }
      %c31_i32_5 = arith.constant 31 : i32
      %c0_6 = arith.constant 0 : index
      %c0_7 = arith.constant 0 : index
      %7 = vector.load %arg6[%c0_6, %c0_7] : memref<248x256xbf16, #tpu.memory_space<vmem>>, vector<248x256xbf16>
      %c0_8 = arith.constant 0 : index
      %c0_9 = arith.constant 0 : index
      %8 = vector.load %arg4[%c0_8, %c0_9] : memref<256x128xbf16, #tpu.memory_space<vmem>>, vector<256x128xbf16>
      %cst = arith.constant dense<0.000000e+00> : vector<248x128xf32>
      %9 = tpu.matmul %7, %8, %cst {dimension_numbers = #tpu.dot_dimension_numbers<[1], [0], [0], [1], [0, 0, 1, 1], [], []>} : vector<248x256xbf16>, vector<256x128xbf16>, vector<248x128xf32> -> vector<248x128xf32>
      %c8_i32 = arith.constant 8 : i32
      %10 = arith.muli %5, %c8_i32 : i32
      %11 = tpu.assume_multiple %10, 8 : i32
      %12 = arith.truncf %9 : vector<248x128xf32> to vector<248x128xbf16>
      %c0_10 = arith.constant 0 : index
      %13 = arith.index_cast %11 : i32 to index
      %c0_11 = arith.constant 0 : index
      %14 = vector.load %arg5[%c0_10, %13, %c0_11] : memref<1x992x128xbf16, #tpu.memory_space<vmem>>, vector<1x248x128xbf16>
      %15 = vector.shape_cast %14 : vector<1x248x128xbf16> to vector<248x128xbf16>
      %16 = vector.shape_cast %12 : vector<248x128xbf16> to vector<1x248x128xbf16>
      tpu.vector_store %arg5[%c0_10, %13, %c0_11], %16 {strides = array<i32>} : memref<1x992x128xbf16, #tpu.memory_space<vmem>>, vector<1x248x128xbf16>,
    }
    %c4_i32_1 = arith.constant 4 : i32
    return
  }
  func.func @transform_0(%arg0: i32) -> (i32, i32, i32) {
    %c0_i32 = arith.constant 0 : i32
    %c0_i32_0 = arith.constant 0 : i32
    %c0_i32_1 = arith.constant 0 : i32
    return %arg0, %c0_i32, %c0_i32_0 : i32, i32, i32
  }
  func.func @transform_1(%arg0: i32) -> (i32, i32) {
    %c0_i32 = arith.constant 0 : i32
    %c0_i32_0 = arith.constant 0 : i32
    %c0_i32_1 = arith.constant 0 : i32
    return %c0_i32, %c0_i32_0 : i32, i32
  }
  func.func @transform_2(%arg0: i32) -> (i32, i32) {
    %c0_i32 = arith.constant 0 : i32
    %c0_i32_0 = arith.constant 0 : i32
    %c0_i32_1 = arith.constant 0 : i32
    return %c0_i32, %c0_i32_0 : i32, i32
  }
  func.func @transform_3(%arg0: i32) -> (i32, i32) {
    %c0_i32 = arith.constant 0 : i32
    %c0_i32_0 = arith.constant 0 : i32
    %c0_i32_1 = arith.constant 0 : i32
    return %c0_i32, %c0_i32_0 : i32, i32
  }
  func.func @transform_4(%arg0: i32) -> (i32, i32, i32) {
    %c0_i32 = arith.constant 0 : i32
    %c0_i32_0 = arith.constant 0 : i32
    %c0_i32_1 = arith.constant 0 : i32
    return %arg0, %c0_i32, %c0_i32_0 : i32, i32, i32
  }
}

module attributes {stable_mosaic.version = 11 : i64} {
  func.func @_conv_relu_pool_kernel(%arg0: i32, %arg1: memref<1x992x128xbf16, #tpu.memory_space<vmem>>, %arg2: memref<160x48xbf16, #tpu.memory_space<vmem>>, %arg3: memref<16x1xf32, #tpu.memory_space<vmem>>, %arg4: memref<128x64xbf16, #tpu.memory_space<vmem>>, %arg5: memref<1x960x64xbf16, #tpu.memory_space<vmem>>, %arg6: memref<240x128xbf16, #tpu.memory_space<vmem>>) attributes {dimension_semantics = [#tpu.dimension_semantics<parallel>], iteration_bounds = array<i64: 2>, scalar_prefetch = 0 : i64, scratch_operands = 1 : i64, tpu.core_type = #tpu.core_type<tc>, window_params = [{transform_indices = @transform_0, window_bounds = array<i64: 1, 992, 128>}, {pipeline_mode = #tpu.pipeline_mode<synchronous>, transform_indices = @transform_1, window_bounds = array<i64: 160, 48>}, {pipeline_mode = #tpu.pipeline_mode<synchronous>, transform_indices = @transform_2, window_bounds = array<i64: 16, 1>}, {pipeline_mode = #tpu.pipeline_mode<synchronous>, transform_indices = @transform_3, window_bounds = array<i64: 128, 64>}, {transform_indices = @transform_4, window_bounds = array<i64: 1, 960, 64>}]} {
    %c0 = arith.constant 0 : index
    %c0_0 = arith.constant 0 : index
    %0 = vector.load %arg3[%c0, %c0_0] : memref<16x1xf32, #tpu.memory_space<vmem>>, vector<16x1xf32>
    %1 = tpu.iota {dimensions = array<i32: 1>} : vector<16x128xi32>
    %c120_i32 = arith.constant 120 : i32
    %2 = vector.broadcast %c120_i32 : i32 to vector<16x128xi32>
    %3 = arith.cmpi slt, %1, %2 : vector<16x128xi32>
    %c0_i32 = arith.constant 0 : i32
    %c4_i32 = arith.constant 4 : i32
    %4 = arith.addi %c0_i32, %c4_i32 : i32
    %c1_i32 = arith.constant 1 : i32
    scf.for %arg7 = %c0_i32 to %4 step %c1_i32  : i32 {
      %c15_i32 = arith.constant 15 : i32
      %5 = arith.muli %arg7, %c15_i32 : i32
      %c0_i32_2 = arith.constant 0 : i32
      %c15_i32_3 = arith.constant 15 : i32
      %6 = arith.addi %c0_i32_2, %c15_i32_3 : i32
      %c1_i32_4 = arith.constant 1 : i32
      scf.for %arg8 = %c0_i32_2 to %6 step %c1_i32_4  : i32 {
        %17 = arith.addi %5, %arg8 : i32
        %c2_i32 = arith.constant 2 : i32
        %18 = arith.muli %c2_i32, %17 : i32
        %c8_i32 = arith.constant 8 : i32
        %19 = arith.muli %18, %c8_i32 : i32
        %20 = tpu.assume_multiple %19, 16 : i32
        %c0_12 = arith.constant 0 : index
        %21 = arith.index_cast %20 : i32 to index
        %c0_13 = arith.constant 0 : index
        %22 = vector.load %arg1[%c0_12, %21, %c0_13] : memref<1x992x128xbf16, #tpu.memory_space<vmem>>, vector<1x48x128xbf16>
        %23 = vector.shape_cast %22 : vector<1x48x128xbf16> to vector<48x128xbf16>
        %c0_14 = arith.constant 0 : index
        %c0_15 = arith.constant 0 : index
        %24 = vector.load %arg2[%c0_14, %c0_15] : memref<160x48xbf16, #tpu.memory_space<vmem>>, vector<160x48xbf16>
        %cst_16 = arith.constant dense<0.000000e+00> : vector<160x128xf32>
        %25 = tpu.matmul %24, %23, %cst_16 {dimension_numbers = #tpu.dot_dimension_numbers<[1], [0], [0], [1], [0, 0, 1, 1], [], []>} : vector<160x48xbf16>, vector<48x128xbf16>, vector<160x128xf32> -> vector<160x128xf32>
        %26 = vector.extract_strided_slice %25 {offsets = [0, 0], sizes = [16, 128], strides = [1, 1]} : vector<160x128xf32> to vector<16x128xf32>
        %27 = vector.extract_strided_slice %25 {offsets = [80, 0], sizes = [16, 128], strides = [1, 1]} : vector<160x128xf32> to vector<16x128xf32>
        %28 = vector.extract_strided_slice %25 {offsets = [16, 0], sizes = [16, 128], strides = [1, 1]} : vector<160x128xf32> to vector<16x128xf32>
        %c127_i32 = arith.constant 127 : i32
        %29 = tpu.dynamic_rotate %28 by %c127_i32 dim 1 : vector<16x128xf32>, i32 -> vector<16x128xf32>
        %30 = arith.addf %26, %29 : vector<16x128xf32>
        %31 = vector.extract_strided_slice %25 {offsets = [96, 0], sizes = [16, 128], strides = [1, 1]} : vector<160x128xf32> to vector<16x128xf32>
        %c127_i32_17 = arith.constant 127 : i32
        %32 = tpu.dynamic_rotate %31 by %c127_i32_17 dim 1 : vector<16x128xf32>, i32 -> vector<16x128xf32>
        %33 = arith.addf %27, %32 : vector<16x128xf32>
        %34 = vector.extract_strided_slice %25 {offsets = [32, 0], sizes = [16, 128], strides = [1, 1]} : vector<160x128xf32> to vector<16x128xf32>
        %c126_i32 = arith.constant 126 : i32
        %35 = tpu.dynamic_rotate %34 by %c126_i32 dim 1 : vector<16x128xf32>, i32 -> vector<16x128xf32>
        %36 = arith.addf %30, %35 : vector<16x128xf32>
        %37 = vector.extract_strided_slice %25 {offsets = [112, 0], sizes = [16, 128], strides = [1, 1]} : vector<160x128xf32> to vector<16x128xf32>
        %c126_i32_18 = arith.constant 126 : i32
        %38 = tpu.dynamic_rotate %37 by %c126_i32_18 dim 1 : vector<16x128xf32>, i32 -> vector<16x128xf32>
        %39 = arith.addf %33, %38 : vector<16x128xf32>
        %40 = vector.extract_strided_slice %25 {offsets = [48, 0], sizes = [16, 128], strides = [1, 1]} : vector<160x128xf32> to vector<16x128xf32>
        %c125_i32 = arith.constant 125 : i32
        %41 = tpu.dynamic_rotate %40 by %c125_i32 dim 1 : vector<16x128xf32>, i32 -> vector<16x128xf32>
        %42 = arith.addf %36, %41 : vector<16x128xf32>
        %43 = vector.extract_strided_slice %25 {offsets = [128, 0], sizes = [16, 128], strides = [1, 1]} : vector<160x128xf32> to vector<16x128xf32>
        %c125_i32_19 = arith.constant 125 : i32
        %44 = tpu.dynamic_rotate %43 by %c125_i32_19 dim 1 : vector<16x128xf32>, i32 -> vector<16x128xf32>
        %45 = arith.addf %39, %44 : vector<16x128xf32>
        %46 = vector.extract_strided_slice %25 {offsets = [64, 0], sizes = [16, 128], strides = [1, 1]} : vector<160x128xf32> to vector<16x128xf32>
        %c124_i32 = arith.constant 124 : i32
        %47 = tpu.dynamic_rotate %46 by %c124_i32 dim 1 : vector<16x128xf32>, i32 -> vector<16x128xf32>
        %48 = arith.addf %42, %47 : vector<16x128xf32>
        %49 = vector.extract_strided_slice %25 {offsets = [144, 0], sizes = [16, 128], strides = [1, 1]} : vector<160x128xf32> to vector<16x128xf32>
        %c124_i32_20 = arith.constant 124 : i32
        %50 = tpu.dynamic_rotate %49 by %c124_i32_20 dim 1 : vector<16x128xf32>, i32 -> vector<16x128xf32>
        %51 = arith.addf %45, %50 : vector<16x128xf32>
        %52 = arith.maximumf %48, %51 : vector<16x128xf32>
        %53 = vector.broadcast %0 : vector<16x1xf32> to vector<16x128xf32>
        %54 = arith.addf %52, %53 : vector<16x128xf32>
        %cst_21 = arith.constant 0.000000e+00 : f32
        %55 = vector.broadcast %cst_21 : f32 to vector<16x128xf32>
        %56 = arith.maximumf %54, %55 : vector<16x128xf32>
        %c127_i32_22 = arith.constant 127 : i32
        %57 = tpu.dynamic_rotate %56 by %c127_i32_22 dim 1 : vector<16x128xf32>, i32 -> vector<16x128xf32>
        %58 = arith.maximumf %56, %57 : vector<16x128xf32>
        %cst_23 = arith.constant 0.000000e+00 : f32
        %59 = vector.broadcast %cst_23 : f32 to vector<16x128xf32>
        %60 = arith.select %3, %58, %59 : vector<16x128xi1>, vector<16x128xf32>
        %c16_i32_24 = arith.constant 16 : i32
        %61 = arith.muli %arg8, %c16_i32_24 : i32
        %62 = tpu.assume_multiple %61, 16 : i32
        %63 = arith.truncf %60 : vector<16x128xf32> to vector<16x128xbf16>
        %64 = arith.index_cast %62 : i32 to index
        %c0_25 = arith.constant 0 : index
        %65 = vector.load %arg6[%64, %c0_25] : memref<240x128xbf16, #tpu.memory_space<vmem>>, vector<16x128xbf16>
        tpu.vector_store %arg6[%64, %c0_25], %63 {strides = array<i32>} : memref<240x128xbf16, #tpu.memory_space<vmem>>, vector<16x128xbf16>,
      }
      %c15_i32_5 = arith.constant 15 : i32
      %c0_6 = arith.constant 0 : index
      %c0_7 = arith.constant 0 : index
      %7 = vector.load %arg6[%c0_6, %c0_7] : memref<240x128xbf16, #tpu.memory_space<vmem>>, vector<240x128xbf16>
      %c0_8 = arith.constant 0 : index
      %c0_9 = arith.constant 0 : index
      %8 = vector.load %arg4[%c0_8, %c0_9] : memref<128x64xbf16, #tpu.memory_space<vmem>>, vector<128x64xbf16>
      %cst = arith.constant dense<0.000000e+00> : vector<240x64xf32>
      %9 = tpu.matmul %7, %8, %cst {dimension_numbers = #tpu.dot_dimension_numbers<[1], [0], [0], [1], [0, 0, 1, 1], [], []>} : vector<240x128xbf16>, vector<128x64xbf16>, vector<240x64xf32> -> vector<240x64xf32>
      %c16_i32 = arith.constant 16 : i32
      %10 = arith.muli %5, %c16_i32 : i32
      %11 = tpu.assume_multiple %10, 16 : i32
      %12 = arith.truncf %9 : vector<240x64xf32> to vector<240x64xbf16>
      %c0_10 = arith.constant 0 : index
      %13 = arith.index_cast %11 : i32 to index
      %c0_11 = arith.constant 0 : index
      %14 = vector.load %arg5[%c0_10, %13, %c0_11] : memref<1x960x64xbf16, #tpu.memory_space<vmem>>, vector<1x240x64xbf16>
      %15 = vector.shape_cast %14 : vector<1x240x64xbf16> to vector<240x64xbf16>
      %16 = vector.shape_cast %12 : vector<240x64xbf16> to vector<1x240x64xbf16>
      tpu.vector_store %arg5[%c0_10, %13, %c0_11], %16 {strides = array<i32>} : memref<1x960x64xbf16, #tpu.memory_space<vmem>>, vector<1x240x64xbf16>,
    }
    %c4_i32_1 = arith.constant 4 : i32
    return
  }
  func.func @transform_0(%arg0: i32) -> (i32, i32, i32) {
    %c0_i32 = arith.constant 0 : i32
    %c0_i32_0 = arith.constant 0 : i32
    %c0_i32_1 = arith.constant 0 : i32
    return %arg0, %c0_i32, %c0_i32_0 : i32, i32, i32
  }
  func.func @transform_1(%arg0: i32) -> (i32, i32) {
    %c0_i32 = arith.constant 0 : i32
    %c0_i32_0 = arith.constant 0 : i32
    %c0_i32_1 = arith.constant 0 : i32
    return %c0_i32, %c0_i32_0 : i32, i32
  }
  func.func @transform_2(%arg0: i32) -> (i32, i32) {
    %c0_i32 = arith.constant 0 : i32
    %c0_i32_0 = arith.constant 0 : i32
    %c0_i32_1 = arith.constant 0 : i32
    return %c0_i32, %c0_i32_0 : i32, i32
  }
  func.func @transform_3(%arg0: i32) -> (i32, i32) {
    %c0_i32 = arith.constant 0 : i32
    %c0_i32_0 = arith.constant 0 : i32
    %c0_i32_1 = arith.constant 0 : i32
    return %c0_i32, %c0_i32_0 : i32, i32
  }
  func.func @transform_4(%arg0: i32) -> (i32, i32, i32) {
    %c0_i32 = arith.constant 0 : i32
    %c0_i32_0 = arith.constant 0 : i32
    %c0_i32_1 = arith.constant 0 : i32
    return %arg0, %c0_i32, %c0_i32_0 : i32, i32, i32
  }
}

module attributes {stable_mosaic.version = 11 : i64} {
  func.func @_fc_fused_kernel(%arg0: i32, %arg1: memref<2x19200xbf16, #tpu.memory_space<vmem>>, %arg2: memref<120x19200xbf16, #tpu.memory_space<vmem>>, %arg3: memref<1x120xf32, #tpu.memory_space<vmem>>, %arg4: memref<84x120xf32, #tpu.memory_space<vmem>>, %arg5: memref<1x84xf32, #tpu.memory_space<vmem>>, %arg6: memref<5x84xf32, #tpu.memory_space<vmem>>, %arg7: memref<1x5xf32, #tpu.memory_space<vmem>>, %arg8: memref<2x5xf32, #tpu.memory_space<vmem>>, %arg9: memref<2x120xf32, #tpu.memory_space<vmem>>) attributes {dimension_semantics = [#tpu.dimension_semantics<arbitrary>], iteration_bounds = array<i64: 3>, scalar_prefetch = 0 : i64, scratch_operands = 1 : i64, tpu.core_type = #tpu.core_type<tc>, window_params = [{transform_indices = @transform_0, window_bounds = array<i64: 2, 19200>}, {transform_indices = @transform_1, window_bounds = array<i64: 120, 19200>}, {pipeline_mode = #tpu.pipeline_mode<synchronous>, transform_indices = @transform_2, window_bounds = array<i64: 1, 120>}, {pipeline_mode = #tpu.pipeline_mode<synchronous>, transform_indices = @transform_3, window_bounds = array<i64: 84, 120>}, {pipeline_mode = #tpu.pipeline_mode<synchronous>, transform_indices = @transform_4, window_bounds = array<i64: 1, 84>}, {pipeline_mode = #tpu.pipeline_mode<synchronous>, transform_indices = @transform_5, window_bounds = array<i64: 5, 84>}, {pipeline_mode = #tpu.pipeline_mode<synchronous>, transform_indices = @transform_6, window_bounds = array<i64: 1, 5>}, {pipeline_mode = #tpu.pipeline_mode<synchronous>, transform_indices = @transform_7, window_bounds = array<i64: 2, 5>}]} {
    %c0_i32 = arith.constant 0 : i32
    %0 = arith.cmpi eq, %arg0, %c0_i32 : i32
    %1 = arith.extui %0 : i1 to i32
    %c0_i32_0 = arith.constant 0 : i32
    %2 = arith.cmpi ne, %1, %c0_i32_0 : i32
    scf.if %2 {
      %cst_9 = arith.constant 0.000000e+00 : f32
      %12 = vector.broadcast %cst_9 : f32 to vector<2x120xf32>
      %c0_10 = arith.constant 0 : index
      %c0_11 = arith.constant 0 : index
      %13 = vector.load %arg9[%c0_10, %c0_11] : memref<2x120xf32, #tpu.memory_space<vmem>>, vector<2x120xf32>
      tpu.vector_store %arg9[%c0_10, %c0_11], %12 {strides = array<i32>} : memref<2x120xf32, #tpu.memory_space<vmem>>, vector<2x120xf32>,
    } else {
    }
    %c0 = arith.constant 0 : index
    %c0_1 = arith.constant 0 : index
    %3 = vector.load %arg9[%c0, %c0_1] : memref<2x120xf32, #tpu.memory_space<vmem>>, vector<2x120xf32>
    %c0_2 = arith.constant 0 : index
    %c0_3 = arith.constant 0 : index
    %4 = vector.load %arg1[%c0_2, %c0_3] : memref<2x19200xbf16, #tpu.memory_space<vmem>>, vector<2x19200xbf16>
    %c0_4 = arith.constant 0 : index
    %c0_5 = arith.constant 0 : index
    %5 = vector.load %arg2[%c0_4, %c0_5] : memref<120x19200xbf16, #tpu.memory_space<vmem>>, vector<120x19200xbf16>
    %cst = arith.constant dense<0.000000e+00> : vector<2x120xf32>
    %6 = tpu.matmul %4, %5, %cst {dimension_numbers = #tpu.dot_dimension_numbers<[1], [1], [0], [0], [0, 0, 1, 0], [], []>} : vector<2x19200xbf16>, vector<120x19200xbf16>, vector<2x120xf32> -> vector<2x120xf32>
    %7 = arith.addf %3, %6 : vector<2x120xf32>
    %c0_6 = arith.constant 0 : index
    %c0_7 = arith.constant 0 : index
    %8 = vector.load %arg9[%c0_6, %c0_7] : memref<2x120xf32, #tpu.memory_space<vmem>>, vector<2x120xf32>
    tpu.vector_store %arg9[%c0_6, %c0_7], %7 {strides = array<i32>} : memref<2x120xf32, #tpu.memory_space<vmem>>, vector<2x120xf32>,
    %c2_i32 = arith.constant 2 : i32
    %9 = arith.cmpi eq, %arg0, %c2_i32 : i32
    %10 = arith.extui %9 : i1 to i32
    %c0_i32_8 = arith.constant 0 : i32
    %11 = arith.cmpi ne, %10, %c0_i32_8 : i32
    scf.if %11 {
      %c0_9 = arith.constant 0 : index
      %c0_10 = arith.constant 0 : index
      %12 = vector.load %arg9[%c0_9, %c0_10] : memref<2x120xf32, #tpu.memory_space<vmem>>, vector<2x120xf32>
      %c0_11 = arith.constant 0 : index
      %c0_12 = arith.constant 0 : index
      %13 = vector.load %arg3[%c0_11, %c0_12] : memref<1x120xf32, #tpu.memory_space<vmem>>, vector<1x120xf32>
      %14 = vector.broadcast %13 : vector<1x120xf32> to vector<2x120xf32>
      %15 = arith.addf %12, %14 : vector<2x120xf32>
      %cst_13 = arith.constant 0.000000e+00 : f32
      %16 = vector.broadcast %cst_13 : f32 to vector<2x120xf32>
      %17 = arith.maximumf %15, %16 : vector<2x120xf32>
      %c0_14 = arith.constant 0 : index
      %c0_15 = arith.constant 0 : index
      %18 = vector.load %arg4[%c0_14, %c0_15] : memref<84x120xf32, #tpu.memory_space<vmem>>, vector<84x120xf32>
      %cst_16 = arith.constant dense<0.000000e+00> : vector<2x84xf32>
      %19 = tpu.matmul %17, %18, %cst_16 {dimension_numbers = #tpu.dot_dimension_numbers<[1], [1], [0], [0], [0, 0, 1, 0], [], []>} : vector<2x120xf32>, vector<84x120xf32>, vector<2x84xf32> -> vector<2x84xf32>
      %c0_17 = arith.constant 0 : index
      %c0_18 = arith.constant 0 : index
      %20 = vector.load %arg5[%c0_17, %c0_18] : memref<1x84xf32, #tpu.memory_space<vmem>>, vector<1x84xf32>
      %21 = vector.broadcast %20 : vector<1x84xf32> to vector<2x84xf32>
      %22 = arith.addf %19, %21 : vector<2x84xf32>
      %cst_19 = arith.constant 0.000000e+00 : f32
      %23 = vector.broadcast %cst_19 : f32 to vector<2x84xf32>
      %24 = arith.maximumf %22, %23 : vector<2x84xf32>
      %c0_20 = arith.constant 0 : index
      %c0_21 = arith.constant 0 : index
      %25 = vector.load %arg6[%c0_20, %c0_21] : memref<5x84xf32, #tpu.memory_space<vmem>>, vector<5x84xf32>
      %cst_22 = arith.constant dense<0.000000e+00> : vector<2x5xf32>
      %26 = tpu.matmul %24, %25, %cst_22 {dimension_numbers = #tpu.dot_dimension_numbers<[1], [1], [0], [0], [0, 0, 1, 0], [], []>} : vector<2x84xf32>, vector<5x84xf32>, vector<2x5xf32> -> vector<2x5xf32>
      %c0_23 = arith.constant 0 : index
      %c0_24 = arith.constant 0 : index
      %27 = vector.load %arg7[%c0_23, %c0_24] : memref<1x5xf32, #tpu.memory_space<vmem>>, vector<1x5xf32>
      %28 = vector.broadcast %27 : vector<1x5xf32> to vector<2x5xf32>
      %29 = arith.addf %26, %28 : vector<2x5xf32>
      %c0_25 = arith.constant 0 : index
      %c0_26 = arith.constant 0 : index
      %30 = vector.load %arg8[%c0_25, %c0_26] : memref<2x5xf32, #tpu.memory_space<vmem>>, vector<2x5xf32>
      tpu.vector_store %arg8[%c0_25, %c0_26], %29 {strides = array<i32>} : memref<2x5xf32, #tpu.memory_space<vmem>>, vector<2x5xf32>,
    } else {
    }
    return
  }
  func.func @transform_0(%arg0: i32) -> (i32, i32) {
    %c0_i32 = arith.constant 0 : i32
    %c0_i32_0 = arith.constant 0 : i32
    return %c0_i32, %arg0 : i32, i32
  }
  func.func @transform_1(%arg0: i32) -> (i32, i32) {
    %c0_i32 = arith.constant 0 : i32
    %c0_i32_0 = arith.constant 0 : i32
    return %c0_i32, %arg0 : i32, i32
  }
  func.func @transform_2(%arg0: i32) -> (i32, i32) {
    %c0_i32 = arith.constant 0 : i32
    %c0_i32_0 = arith.constant 0 : i32
    %c0_i32_1 = arith.constant 0 : i32
    return %c0_i32, %c0_i32_0 : i32, i32
  }
  func.func @transform_3(%arg0: i32) -> (i32, i32) {
    %c0_i32 = arith.constant 0 : i32
    %c0_i32_0 = arith.constant 0 : i32
    %c0_i32_1 = arith.constant 0 : i32
    return %c0_i32, %c0_i32_0 : i32, i32
  }
  func.func @transform_4(%arg0: i32) -> (i32, i32) {
    %c0_i32 = arith.constant 0 : i32
    %c0_i32_0 = arith.constant 0 : i32
    %c0_i32_1 = arith.constant 0 : i32
    return %c0_i32, %c0_i32_0 : i32, i32
  }
  func.func @transform_5(%arg0: i32) -> (i32, i32) {
    %c0_i32 = arith.constant 0 : i32
    %c0_i32_0 = arith.constant 0 : i32
    %c0_i32_1 = arith.constant 0 : i32
    return %c0_i32, %c0_i32_0 : i32, i32
  }
  func.func @transform_6(%arg0: i32) -> (i32, i32) {
    %c0_i32 = arith.constant 0 : i32
    %c0_i32_0 = arith.constant 0 : i32
    %c0_i32_1 = arith.constant 0 : i32
    return %c0_i32, %c0_i32_0 : i32, i32
  }
  func.func @transform_7(%arg0: i32) -> (i32, i32) {
    %c0_i32 = arith.constant 0 : i32
    %c0_i32_0 = arith.constant 0 : i32
    %c0_i32_1 = arith.constant 0 : i32
    return %c0_i32, %c0_i32_0 : i32, i32
  }
}

</mosaic_0001>

<bundles_post_ra>
// kernel: lenet_forward.3
= control target key start
LH: loop header
LB: loop body
LE: loop exit
PB: predicated region body
PF: predicated region fallthrough
CT: control target
= control target key end

     0   :  { %s1856_s15 = smov 0   ;;  %s2119_s0 = inlined_call_operand.vmem [shape: bf16[2,2048,256], index: 0, kind: input, shape index: {}]   ;;  %s2120_s1 = inlined_call_operand.vmem [shape: bf16[144,80], index: 1, kind: input, shape index: {}]   ;;  %s2121_s2 = inlined_call_operand.vmem [shape: f32[8,1], index: 2, kind: input, shape index: {}]   ;;  %s2122_s3 = inlined_call_operand.vmem [shape: bf16[256,128], index: 3, kind: input, shape index: {}]   ;;  %s2123_s4 = inlined_call_operand.vmem [shape: bf16[2,992,128], index: 4, kind: output, shape index: {}]  }
   0x1 LB: > { %s1279_s16 = sadd.s32 4294967295, %s1812_s15   ;;  %p1283_p0 = scmp.ge.s32.totalorder %s1812_s15, 1  ;;  %s1812_s15 = sphi %s1856_s15, %s14_s15  }
   0x2   : > { %p162_p1 = scmp.lt.s32.totalorder %s1812_s15, 3 }
   0x4   : > { %p163_p2 = pnand %p1283_p0, %p162_p1 }
   0x5   : > { %p188_p3 = scmp.lt.s32.totalorder (!%p163_p2), %s1279_s16, 1  ;;  %s1885_s27 = smov (!%p163_p2), 0  }
   0x6   : > { %166 = sbr.rel (%p163_p2) target bundleno = 772 (0x304), region = 36 }
   0xb   : > { %v1867_v0 = vld [vmem:[%s2121_s2] sm:$0xff]  ;;  %v200_v1 = vlaneseq  ;;  %s2125_s16 = smov (!%p188_p3, %s1279_s16), 1 }
   0xc   : > { %s1574_s19 = sshll.u32 %s2125_s16, 11  ;;  %s1757_s20 = smul.u32 496, %s2125_s16 }
   0xd   : > { %v1869_v2 = vand.u32 127, %v200_v1  ;;  %s1877_s23 = scalar_lea.vmem %s2119_s0, %s1574_s19 }
   0xe   : > { %s1882_s26 = scalar_lea.vmem %s2123_s4, %s1757_s20 }
   0xf   : > { %v1872_v3 = vadd.s32 128, %v1869_v2 }
  0x11   : > { %vm204_vm0 = vcmp.lt.s32.totalorder %v1872_v3, 248 }
  0x12 LB: >> { %s211_s28 = smul.u32 31, %s1816_s27  ;;  %s1891_s29 = smov 0   ;;  %s1816_s27 = sphi %s1885_s27, %s210_s27  }
  0x13 LB: >>> { %v1586_v34 = vld [vmem:[%s2120_s1] sm:$0xff]  ;;  %v1591_v35 = vld [vmem:[%s2120_s1 + $0x28] sm:$0xff]  ;;  %vm348_vm1 = vcmask 654336   ;;  %v1592_v37 = vld [vmem:[%s2120_s1 + $0x30] sm:$0xff]  ;;  %s1824_s7 = smov 125   ;;  %s1825_s8 = smov 124   ;;  %s1820_s29 = sphi %s1891_s29, %s217_s29  }
  0x14   : >>> { %s218_s30 = sadd.s32 %s1820_s29, %s211_s28  ;;  %v1587_v36 = vld [vmem:[%s2120_s1 + $0x8] sm:$0xff]  ;;  %v1588_v38 = vld [vmem:[%s2120_s1 + $0x10] sm:$0xff]  ;;  %v1593_v39 = vld [vmem:[%s2120_s1 + $0x38] sm:$0xff]  ;;  %s1826_s9 = smov 123   ;;  %vm488_vm2 = vcmp.lt.s32.totalorder %v1869_v2, 127  ;;  %vm505_vm3 = vcmp.lt.s32.totalorder %v1869_v2, 126 }
  0x15   : >>> { %s1287_s5 = sshll.u32 %s218_s30, 4  ;;  %v1589_v40 = vld [vmem:[%s2120_s1 + $0x18] sm:$0xff]  ;;  %v1594_v41 = vld [vmem:[%s2120_s1 + $0x40] sm:$0xff]  ;;  %s1827_s10 = smov 122   ;;  %vm522_vm4 = vcmp.lt.s32.totalorder %v1869_v2, 125  ;;  %vm539_vm5 = vcmp.lt.s32.totalorder %v1869_v2, 124 }
  0x16   : >>> { %s1900_s6 = scalar_lea.vmem %s1877_s23, %s1287_s5  ;;  %v1590_v42 = vld [vmem:[%s2120_s1 + $0x20] sm:$0xff]  ;;  %s1822_s5 = smov 127   ;;  %vm556_vm6 = vcmp.lt.s32.totalorder %v1869_v2, 123  ;;  %vm573_vm7 = vcmp.lt.s32.totalorder %v1869_v2, 122  ;;  %vm590_vm8 = vcmp.lt.s32.totalorder %v1869_v2, 121  ;;  %vm607_vm9 = vcmp.lt.s32.totalorder %v1869_v2, 120 }
  0x17   : >>> { %v1360_v4 = vld [vmem:[%s1900_s6 + $0x40] sm:$0xf]  ;;  %v1585_v5 = vld [vmem:[%s1900_s6 + $0x44] sm:$0xf0]  ;;  %v1584_v6 = vld [vmem:[%s1900_s6 + $0x44] sm:$0xf] }
  0x18   : >>> { %v1361_v7 = vor.u32 %v1585_v5, %v1360_v4  ;;  %v1362_v8 = vld [vmem:[%s1900_s6 + $0x48] sm:$0xf0]  ;;  %v1352_v9 = vld [vmem:[%s1900_s6 + $0x30] sm:$0xf]  ;;  %v1583_v10 = vld [vmem:[%s1900_s6 + $0x34] sm:$0xf0] }
  0x19   : >>> { %v1365_v11 = vor.u32 %v1584_v6, %v1362_v8  ;;  %v1582_v12 = vld [vmem:[%s1900_s6 + $0x34] sm:$0xf]  ;;  %v1354_v13 = vld [vmem:[%s1900_s6 + $0x38] sm:$0xf0]  ;;  %v1353_v14 = vor.u32 %v1583_v10, %v1352_v9  ;;  %v1344_v16 = vld [vmem:[%s1900_s6 + $0x20] sm:$0xf] }
  0x1a   : >>> { %379 = vmatpush.bf16.msra.mxu0 %v1361_v7  ;;  %1731 = vmatpush.bf16.msra.mxu2 %v1361_v7  ;;  %v1357_v15 = vor.u32 %v1582_v12, %v1354_v13  ;;  %v1581_v17 = vld [vmem:[%s1900_s6 + $0x24] sm:$0xf0]  ;;  %v1580_v18 = vld [vmem:[%s1900_s6 + $0x24] sm:$0xf]  ;;  %v1346_v19 = vld [vmem:[%s1900_s6 + $0x28] sm:$0xf0] }
  0x1b   : >>> { %433 = vmatpush.bf16.msra.mxu1 %v1365_v11  ;;  %1736 = vmatpush.bf16.msra.mxu3 %v1365_v11  ;;  %v1345_v20 = vor.u32 %v1581_v17, %v1344_v16  ;;  %v1349_v21 = vor.u32 %v1580_v18, %v1346_v19  ;;  %v1336_v22 = vld [vmem:[%s1900_s6 + $0x10] sm:$0xf]  ;;  %v1579_v23 = vld [vmem:[%s1900_s6 + $0x14] sm:$0xf0]  ;;  %v1578_v24 = vld [vmem:[%s1900_s6 + $0x14] sm:$0xf] }
  0x1c   : >>> { %v1338_v25 = vld [vmem:[%s1900_s6 + $0x18] sm:$0xf0]  ;;  %v1337_v26 = vor.u32 %v1579_v23, %v1336_v22  ;;  %v1328_v28 = vld [vmem:[%s1900_s6] sm:$0xf]  ;;  %v1577_v29 = vld [vmem:[%s1900_s6 + $0x4] sm:$0xf0] }
  0x1d   : >>> { %v1341_v27 = vor.u32 %v1578_v24, %v1338_v25  ;;  %v1576_v30 = vld [vmem:[%s1900_s6 + $0x4] sm:$0xf]  ;;  %v1330_v31 = vld [vmem:[%s1900_s6 + $0x8] sm:$0xf0]  ;;  %v1329_v32 = vor.u32 %v1577_v29, %v1328_v28  ;;  %s1823_s6 = smov 126   ;;  %s1828_s11 = smov 121  }
  0x1e   : >>> { %380 = vmatpush.bf16.msra.mxu0 %v1353_v14  ;;  %1732 = vmatpush.bf16.msra.mxu2 %v1353_v14  ;;  %v1333_v33 = vor.u32 %v1576_v30, %v1330_v31  ;;  %s1829_s12 = smov 120   ;;  %v1830_v13 = vmov 0   ;;  %s1384_s13 = sshll.u32 %s1820_s29, 3 }
  0x1f   : >>> { %434 = vmatpush.bf16.msra.mxu1 %v1357_v15  ;;  %1737 = vmatpush.bf16.msra.mxu3 %v1357_v15  ;;  %s647_s14 = scalar_lea.vmem [#allocation2], %s1384_s13  ;;  %s217_s29 = sadd.s32 1, %s1820_s29  }
  0x20   : >>> { %1791 = vset.pattern.permute.xlu2 %v1830_v13  ;;  %1797 = vset.pattern.permute.xlu0 %v1830_v13  ;;  %p214_p4 = scmp.ge.s32.totalorder %s217_s29, 31  }
  0x21   : >> { %s1141_s25 = smul.u32 (%p214_p4), 248, %s1816_s27  ;;  %s210_s27 = sadd.s32 (%p214_p4), 1, %s1816_s27  }
  0x22   : >>> { %381 = vmatpush.bf16.msra.mxu0 %v1345_v20  ;;  %1733 = vmatpush.bf16.msra.mxu2 %v1345_v20  ;;  %p207_p5 = scmp.ge.s32.totalorder (%p214_p4), %s210_s27, 4  }
  0x23   : >>> { %435 = vmatpush.bf16.msra.mxu1 %v1349_v21  ;;  %1738 = vmatpush.bf16.msra.mxu3 %v1349_v21  ;;  %s1173_s30 = sshra.s32 (%p214_p4), %s1141_s25, 3 }
  0x26   : >>> { %382 = vmatpush.bf16.msra.mxu0 %v1337_v26  ;;  %1734 = vmatpush.bf16.msra.mxu2 %v1337_v26 }
  0x27   : >>> { %436 = vmatpush.bf16.msra.mxu1 %v1341_v27  ;;  %1739 = vmatpush.bf16.msra.mxu3 %v1341_v27 }
  0x2a   : >>> { %383 = vmatpush.bf16.msra.mxu0 %v1329_v32  ;;  %1735 = vmatpush.bf16.msra.mxu2 %v1329_v32 }
  0x2b   : >>> { %437 = vmatpush.bf16.msra.mxu1 %v1333_v33  ;;  %1740 = vmatpush.bf16.msra.mxu3 %v1333_v33 }
  0x2d   : >>> { %1366 = vmatmul.msk.bf16.vlgmr.msra.gmra.mxu0 %vm348_vm1, %v1586_v34  ;;  %1371 = vmatmul.msk.bf16.vlgmr.msra.gmra.mxu2 %vm348_vm1, %v1591_v35 }
  0x2e   : >>> { %1375 = vmatmul.msk.bf16.vlgmr.msra.gmra.mxu1 %vm348_vm1, %v1586_v34  ;;  %1380 = vmatmul.msk.bf16.vlgmr.msra.gmra.mxu3 %vm348_vm1, %v1591_v35 }
  0x3d   : >>> { %1367 = vmatmul.msk.bf16.gmra.mxu0 %vm348_vm1, %v1587_v36  ;;  %1372 = vmatmul.msk.bf16.gmra.mxu2 %vm348_vm1, %v1592_v37 }
  0x3e   : >>> { %1376 = vmatmul.msk.bf16.gmra.mxu1 %vm348_vm1, %v1587_v36  ;;  %1381 = vmatmul.msk.bf16.gmra.mxu3 %vm348_vm1, %v1592_v37 }
  0x4d   : >>> { %1368 = vmatmul.msk.bf16.gmra.mxu0 %vm348_vm1, %v1588_v38  ;;  %1373 = vmatmul.msk.bf16.gmra.mxu2 %vm348_vm1, %v1593_v39 }
  0x4e   : >>> { %1377 = vmatmul.msk.bf16.gmra.mxu1 %vm348_vm1, %v1588_v38  ;;  %1382 = vmatmul.msk.bf16.gmra.mxu3 %vm348_vm1, %v1593_v39 }
  0x5d   : >>> { %1369 = vmatmul.msk.bf16.gmra.mxu0 %vm348_vm1, %v1589_v40  ;;  %1374 = vmatmul.msk.bf16.gmra.mxu2 %vm348_vm1, %v1594_v41 }
  0x5e   : >>> { %1378 = vmatmul.msk.bf16.gmra.mxu1 %vm348_vm1, %v1589_v40  ;;  %1383 = vmatmul.msk.bf16.gmra.mxu3 %vm348_vm1, %v1594_v41 }
  0x6d   : >>> { %1370 = vmatmul.msk.bf16.gmra.mxu0 %vm348_vm1, %v1590_v42 }
  0x6e   : >>> { %1379 = vmatmul.msk.bf16.gmra.mxu1 %vm348_vm1, %v1590_v42 }
  0xaa   : >>> { %v1967_v43 = vpop.f32.mrf.mxu0 }
  0xab   : >>> { %v1969_v44 = vpop.f32.mrf.mxu1 }
  0xb0   : >>> { %v410_v45 = vpop.f32.mrf.mxu2 }
  0xb1   : >>> { %493 = vrot.lane.b32.xlu1 %v410_v45, %s1822_s5  ;;  %v464_v46 = vpop.f32.mrf.mxu3 }
  0xb2   : >>> { %v387_v47 = vpop.f32.mrf.mxu0 }
  0xb3   : >>> { %v441_v48 = vpop.f32.mrf.mxu1  ;;  %484 = vrot.lane.b32.xlu0 %v387_v47, %s1822_s5 }
  0xb8   : >>> { %v412_v52 = vpop.f32.mrf.mxu2 }
  0xb9   : >>> { %495 = vrot.lane.b32.xlu1 %v464_v46, %s1822_s5  ;;  %v466_v50 = vpop.f32.mrf.mxu3 }
  0xba   : >>> { %v390_v49 = vpop.f32.mrf.mxu0 }
  0xbb   : >>> { %501 = vrot.lane.b32.xlu2 %v390_v49, %s1823_s6  ;;  %486 = vrot.lane.b32.xlu0 %v441_v48, %s1822_s5  ;;  %v444_v51 = vpop.f32.mrf.mxu1 }
  0xc0   : >>> { %v415_v56 = vpop.f32.mrf.mxu2 }
  0xc1   : >>> { %512 = vrot.lane.b32.xlu1 %v466_v50, %s1823_s6  ;;  %v469_v53 = vpop.f32.mrf.mxu3 }
  0xc2   : >>> { %v392_v55 = vpop.f32.mrf.mxu0 }
  0xc3   : >>> { %510 = vrot.lane.b32.xlu0 %v412_v52, %s1823_s6  ;;  %503 = vrot.lane.b32.xlu2 %v444_v51, %s1823_s6  ;;  %v446_v54 = vpop.f32.mrf.mxu1 }
  0xc8   : >>> { %v417_v60 = vpop.f32.mrf.mxu2 }
  0xc9   : >>> { %527 = vrot.lane.b32.xlu1 %v415_v56, %s1824_s7  ;;  %v471_v57 = vpop.f32.mrf.mxu3 }
  0xca   : >>> { %v395_v59 = vpop.f32.mrf.mxu0 }
  0xcb   : >>> { %529 = vrot.lane.b32.xlu2 %v469_v53, %s1824_s7  ;;  %520 = vrot.lane.b32.xlu0 %v446_v54, %s1824_s7  ;;  %v449_v58 = vpop.f32.mrf.mxu1 }
  0xd0   : >>> { %v420_v1 = vpop.f32.mrf.mxu2 }
  0xd1   : >>> { %537 = vrot.lane.b32.xlu1 %v449_v58, %s1825_s8  ;;  %v474_v61 = vpop.f32.mrf.mxu3 }
  0xd2   : >>> { %v397_v62 = vpop.f32.mrf.mxu0 }
  0xd3   : >>> { %518 = vrot.lane.b32.xlu2 %v392_v55, %s1824_s7  ;;  %546 = vrot.lane.b32.xlu0 %v471_v57, %s1825_s8  ;;  %v451_v63 = vpop.f32.mrf.mxu1 }
  0xd8   : >>> { %v422_v6 = vpop.f32.mrf.mxu2 }
  0xd9   : >>> { %563 = vrot.lane.b32.xlu1 %v474_v61, %s1826_s9  ;;  %v476_v7 = vpop.f32.mrf.mxu3 }
  0xda   : >>> { %v400_v4 = vpop.f32.mrf.mxu0 }
  0xdb   : >>> { %544 = vrot.lane.b32.xlu2 %v417_v60, %s1825_s8  ;;  %535 = vrot.lane.b32.xlu0 %v395_v59, %s1825_s8  ;;  %v454_v5 = vpop.f32.mrf.mxu1 }
  0xe0   : >>> { %v425_v12 = vpop.f32.mrf.mxu2 }
  0xe1   : >>> { %552 = vrot.lane.b32.xlu1 %v397_v62, %s1826_s9  ;;  %v479_v10 = vpop.f32.mrf.mxu3 }
  0xe2   : >>> { %v402_v8 = vpop.f32.mrf.mxu0 }
  0xe3   : >>> { %561 = vrot.lane.b32.xlu0 %v420_v1, %s1826_s9  ;;  %554 = vrot.lane.b32.xlu2 %v451_v63, %s1826_s9  ;;  %v456_v9 = vpop.f32.mrf.mxu1 }
  0xe8   : >>> { %v427_v15 = vpop.f32.mrf.mxu2 }
  0xe9   : >>> { %578 = vrot.lane.b32.xlu1 %v422_v6, %s1827_s10  ;;  %v481_v14 = vpop.f32.mrf.mxu3 }
  0xea   : >>> { %v405_v11 = vpop.f32.mrf.mxu0 }
  0xeb   : >>> { %580 = vrot.lane.b32.xlu2 %v476_v7, %s1827_s10  ;;  %571 = vrot.lane.b32.xlu0 %v454_v5, %s1827_s10  ;;  %v459_v16 = vpop.f32.mrf.mxu1 }
  0xf1   : >>> { %588 = vrot.lane.b32.xlu1 %v456_v9, %s1828_s11 }
  0xf2   : >>> { %v407_v51 = vpop.f32.mrf.mxu0 }
  0xf3   : >>> { %569 = vrot.lane.b32.xlu2 %v400_v4, %s1827_s10  ;;  %597 = vrot.lane.b32.xlu0 %v479_v10, %s1828_s11  ;;  %v461_v54 = vpop.f32.mrf.mxu1 }
  0xf9   : >>> { %603 = vrot.lane.b32.xlu1 %v405_v11, %s1829_s12 }
  0xfb   : >>> { %595 = vrot.lane.b32.xlu2 %v425_v12, %s1828_s11  ;;  %586 = vrot.lane.b32.xlu0 %v402_v8, %s1828_s11 }
 0x101   : >>> { %614 = vrot.lane.b32.xlu1 %v481_v14, %s1829_s12 }
 0x103   : >>> { %612 = vrot.lane.b32.xlu0 %v427_v15, %s1829_s12  ;;  %605 = vrot.lane.b32.xlu2 %v459_v16, %s1829_s12 }
 0x10b   : >>> { %624 = vperm.xlu2 %1791, %v1867_v0  }
 0x115   : >>> { %v502_v17 = vpop.permute.xlu2 %501 }
 0x11d   : >>> { %v504_v18 = vpop.permute.xlu2 %503 }
 0x11e   : >>> { %v506_v52 = vsel %vm505_vm3, %v502_v17, %v504_v18  ;;  %v507_v55 = vsel %vm505_vm3, %v504_v18, %v502_v17 }
 0x123   : >>> { %v494_v19 = vpop.permute.xlu1 %493 }
 0x125   : >>> { %v485_v20 = vpop.permute.xlu0 %484  ;;  %v530_v22 = vpop.permute.xlu2 %529 }
 0x12b   : >>> { %v496_v21 = vpop.permute.xlu1 %495 }
 0x12c   : >>> { %v497_v46 = vsel %vm488_vm2, %v494_v19, %v496_v21  ;;  %v498_v47 = vsel %vm488_vm2, %v496_v21, %v494_v19 }
 0x12d   : >>> { %v487_v23 = vpop.permute.xlu0 %486  ;;  %v519_v26 = vpop.permute.xlu2 %518  ;;  %v499_v56 = vadd.f32 %v497_v46, %v407_v51  ;;  %v500_v58 = vadd.f32 %v498_v47, %v461_v54 }
 0x12e   : >>> { %v489_v41 = vsel %vm488_vm2, %v485_v20, %v487_v23  ;;  %v490_v42 = vsel %vm488_vm2, %v487_v23, %v485_v20 }
 0x12f   : >>> { %v491_v48 = vadd.f32 %v489_v41, %v1967_v43  ;;  %v492_v49 = vadd.f32 %v490_v42, %v1969_v44 }
 0x131   : >>> { %v508_v62 = vadd.f32 %v506_v52, %v491_v48  ;;  %v509_v63 = vadd.f32 %v507_v55, %v492_v49 }
 0x133   : >>> { %v513_v24 = vpop.permute.xlu1 %512 }
 0x135   : >>> { %v511_v25 = vpop.permute.xlu0 %510  ;;  %v545_v29 = vpop.permute.xlu2 %544 }
 0x136   : >>> { %v514_v53 = vsel %vm505_vm3, %v511_v25, %v513_v24  ;;  %v515_v57 = vsel %vm505_vm3, %v513_v24, %v511_v25 }
 0x137   : >>> { %v516_v61 = vadd.f32 %v514_v53, %v499_v56  ;;  %v517_v1 = vadd.f32 %v515_v57, %v500_v58 }
 0x13b   : >>> { %v528_v27 = vpop.permute.xlu1 %527 }
 0x13c   : >>> { %v531_v59 = vsel %vm522_vm4, %v528_v27, %v530_v22  ;;  %v532_v4 = vsel %vm522_vm4, %v530_v22, %v528_v27 }
 0x13d   : >>> { %v521_v28 = vpop.permute.xlu0 %520  ;;  %v555_v32 = vpop.permute.xlu2 %554  ;;  %v533_v7 = vadd.f32 %v531_v59, %v516_v61  ;;  %v534_v15 = vadd.f32 %v532_v4, %v517_v1 }
 0x13e   : >>> { %v523_v43 = vsel %vm522_vm4, %v519_v26, %v521_v28  ;;  %v524_v44 = vsel %vm522_vm4, %v521_v28, %v519_v26 }
 0x13f   : >>> { %v525_v8 = vadd.f32 %v523_v43, %v508_v62  ;;  %v526_v9 = vadd.f32 %v524_v44, %v509_v63 }
 0x143   : >>> { %v538_v30 = vpop.permute.xlu1 %537 }
 0x145   : >>> { %v547_v31 = vpop.permute.xlu0 %546  ;;  %v581_v36 = vpop.permute.xlu2 %580 }
 0x146   : >>> { %v548_v11 = vsel %vm539_vm5, %v545_v29, %v547_v31  ;;  %v549_v12 = vsel %vm539_vm5, %v547_v31, %v545_v29 }
 0x147   : >>> { %v550_v23 = vadd.f32 %v548_v11, %v533_v7  ;;  %v551_v24 = vadd.f32 %v549_v12, %v534_v15  ;;  %v1641_v11 = vld [vmem:[%s2122_s3 + $0x78] sm:$0xff] (%p214_p4)  ;;  %v1632_v12 = vld [vmem:[%s2122_s3 + $0x30] sm:$0xff] (%p214_p4)  ;;  %v1639_v15 = vld [vmem:[%s2122_s3 + $0x68] sm:$0xff] (%p214_p4) }
 0x148   : >> { %1053 = vmatpush.bf16.msra.mxu1 (%p214_p4), %v1641_v11  ;;  %1749 = vmatpush.bf16.msra.mxu3 (%p214_p4), %v1641_v11 }
 0x14b   : >>> { %v564_v33 = vpop.permute.xlu1 %563 }
 0x14d   : >>> { %v536_v34 = vpop.permute.xlu0 %535  ;;  %v570_v40 = vpop.permute.xlu2 %569 }
 0x14e   : >>> { %v540_v5 = vsel %vm539_vm5, %v536_v34, %v538_v30  ;;  %v541_v6 = vsel %vm539_vm5, %v538_v30, %v536_v34 }
 0x14f   : >>> { %v542_v16 = vadd.f32 %v540_v5, %v525_v8  ;;  %v543_v17 = vadd.f32 %v541_v6, %v526_v9 }
 0x153   : >>> { %v553_v35 = vpop.permute.xlu1 %552 }
 0x154   : >>> { %v557_v13 = vsel %vm556_vm6, %v553_v35, %v555_v32  ;;  %v558_v14 = vsel %vm556_vm6, %v555_v32, %v553_v35 }
 0x155   : >>> { %v562_v37 = vpop.permute.xlu0 %561  ;;  %v596_v60 = vpop.permute.xlu2 %595  ;;  %v559_v25 = vadd.f32 %v557_v13, %v542_v16  ;;  %v560_v26 = vadd.f32 %v558_v14, %v543_v17  ;;  %v1640_v13 = vld [vmem:[%s2122_s3 + $0x70] sm:$0xff] (%p214_p4)  ;;  %v1631_v14 = vld [vmem:[%s2122_s3 + $0x28] sm:$0xff] (%p214_p4)  ;;  %v1630_v16 = vld [vmem:[%s2122_s3 + $0x20] sm:$0xff] (%p214_p4) }
 0x156   : >>> { %v565_v19 = vsel %vm556_vm6, %v562_v37, %v564_v33  ;;  %v566_v20 = vsel %vm556_vm6, %v564_v33, %v562_v37  ;;  %1054 = vmatpush.bf16.msra.mxu1 (%p214_p4), %v1640_v13  ;;  %1750 = vmatpush.bf16.msra.mxu3 (%p214_p4), %v1640_v13  ;;  %v1638_v17 = vld [vmem:[%s2122_s3 + $0x60] sm:$0xff] (%p214_p4) }
 0x157   : >>> { %v567_v32 = vadd.f32 %v565_v19, %v550_v23  ;;  %v568_v33 = vadd.f32 %v566_v20, %v551_v24  ;;  %v1637_v19 = vld [vmem:[%s2122_s3 + $0x58] sm:$0xff] (%p214_p4)  ;;  %v1628_v20 = vld [vmem:[%s2122_s3 + $0x10] sm:$0xff] (%p214_p4)  ;;  %v1635_v23 = vld [vmem:[%s2122_s3 + $0x48] sm:$0xff] (%p214_p4) }
 0x158   : >> { %v1626_v24 = vld [vmem:[%s2122_s3] sm:$0xff] (%p214_p4) }
 0x15a   : >> { %1055 = vmatpush.bf16.msra.mxu1 (%p214_p4), %v1639_v15  ;;  %1751 = vmatpush.bf16.msra.mxu3 (%p214_p4), %v1639_v15 }
 0x15b   : >>> { %v579_v38 = vpop.permute.xlu1 %578 }
 0x15c   : >>> { %v582_v27 = vsel %vm573_vm7, %v579_v38, %v581_v36  ;;  %v583_v28 = vsel %vm573_vm7, %v581_v36, %v579_v38 }
 0x15d   : >>> { %v572_v39 = vpop.permute.xlu0 %571  ;;  %v606_v31 = vpop.permute.xlu2 %605  ;;  %v584_v36 = vadd.f32 %v582_v27, %v567_v32  ;;  %v585_v38 = vadd.f32 %v583_v28, %v568_v33 }
 0x15e   : >>> { %v574_v21 = vsel %vm573_vm7, %v570_v40, %v572_v39  ;;  %v575_v22 = vsel %vm573_vm7, %v572_v39, %v570_v40  ;;  %1056 = vmatpush.bf16.msra.mxu1 (%p214_p4), %v1638_v17  ;;  %1752 = vmatpush.bf16.msra.mxu3 (%p214_p4), %v1638_v17 }
 0x15f   : >>> { %v576_v34 = vadd.f32 %v574_v21, %v559_v25  ;;  %v577_v35 = vadd.f32 %v575_v22, %v560_v26  ;;  %v1636_v21 = vld [vmem:[%s2122_s3 + $0x50] sm:$0xff] (%p214_p4)  ;;  %v1627_v22 = vld [vmem:[%s2122_s3 + $0x8] sm:$0xff] (%p214_p4)  ;;  %v1634_v25 = vld [vmem:[%s2122_s3 + $0x40] sm:$0xff] (%p214_p4) }
 0x162   : >> { %1057 = vmatpush.bf16.msra.mxu1 (%p214_p4), %v1637_v19  ;;  %1753 = vmatpush.bf16.msra.mxu3 (%p214_p4), %v1637_v19 }
 0x163   : >>> { %v589_v45 = vpop.permute.xlu1 %588 }
 0x165   : >>> { %v598_v50 = vpop.permute.xlu0 %597 }
 0x166   : >>> { %v599_v37 = vsel %vm590_vm8, %v596_v60, %v598_v50  ;;  %v600_v39 = vsel %vm590_vm8, %v598_v50, %v596_v60  ;;  %v625_v50 = vpop.permute.xlu2 %624  ;;  %1058 = vmatpush.bf16.msra.mxu1 (%p214_p4), %v1636_v21  ;;  %1754 = vmatpush.bf16.msra.mxu3 (%p214_p4), %v1636_v21 }
 0x167   : >>> { %v601_v42 = vadd.f32 %v599_v37, %v584_v36  ;;  %v602_v46 = vadd.f32 %v600_v39, %v585_v38 }
 0x16a   : >> { %1059 = vmatpush.bf16.msra.mxu1 (%p214_p4), %v1635_v23  ;;  %1755 = vmatpush.bf16.msra.mxu3 (%p214_p4), %v1635_v23 }
 0x16b   : >>> { %v604_v10 = vpop.permute.xlu1 %603 }
 0x16c   : >>> { %v608_v48 = vsel %vm607_vm9, %v604_v10, %v606_v31  ;;  %v609_v49 = vsel %vm607_vm9, %v606_v31, %v604_v10  ;;  %v1633_v10 = vld [vmem:[%s2122_s3 + $0x38] sm:$0xff] (%p214_p4) }
 0x16d   : >>> { %v587_v18 = vpop.permute.xlu0 %586  ;;  %965 = vmatpush.bf16.msra.mxu0 (%p214_p4), %v1633_v10  ;;  %1741 = vmatpush.bf16.msra.mxu2 (%p214_p4), %v1633_v10 }
 0x16e   : >>> { %v591_v29 = vsel %vm590_vm8, %v587_v18, %v589_v45  ;;  %v592_v30 = vsel %vm590_vm8, %v589_v45, %v587_v18  ;;  %v1629_v18 = vld [vmem:[%s2122_s3 + $0x18] sm:$0xff] (%p214_p4)  ;;  %1060 = vmatpush.bf16.msra.mxu1 (%p214_p4), %v1634_v25  ;;  %1756 = vmatpush.bf16.msra.mxu3 (%p214_p4), %v1634_v25 }
 0x16f   : >>> { %v593_v40 = vadd.f32 %v591_v29, %v576_v34  ;;  %v594_v41 = vadd.f32 %v592_v30, %v577_v35 }
 0x171   : >>> { %v610_v53 = vadd.f32 %v608_v48, %v593_v40  ;;  %v611_v54 = vadd.f32 %v609_v49, %v594_v41  ;;  %966 = vmatpush.bf16.msra.mxu0 (%p214_p4), %v1632_v12  ;;  %1742 = vmatpush.bf16.msra.mxu2 (%p214_p4), %v1632_v12 }
 0x173   : >>> { %v615_v45 = vpop.permute.xlu1 %614 }
 0x175   : >>> { %v613_v47 = vpop.permute.xlu0 %612  ;;  %967 = vmatpush.bf16.msra.mxu0 (%p214_p4), %v1631_v14  ;;  %1743 = vmatpush.bf16.msra.mxu2 (%p214_p4), %v1631_v14 }
 0x176   : >>> { %v616_v51 = vsel %vm607_vm9, %v613_v47, %v615_v45  ;;  %v617_v52 = vsel %vm607_vm9, %v615_v45, %v613_v47 }
 0x177   : >>> { %v618_v55 = vadd.f32 %v616_v51, %v601_v42  ;;  %v619_v56 = vadd.f32 %v617_v52, %v602_v46 }
 0x179   : >>> { %v620_v57 = vmax.f32 %v610_v53, %v618_v55  ;;  %v621_v58 = vmax.f32 %v611_v54, %v619_v56  ;;  %968 = vmatpush.bf16.msra.mxu0 (%p214_p4), %v1630_v16  ;;  %1744 = vmatpush.bf16.msra.mxu2 (%p214_p4), %v1630_v16 }
 0x17b   : >>> { %v627_v59 = vadd.f32 %v625_v50, %v620_v57  ;;  %v628_v43 = vadd.f32 %v625_v50, %v621_v58 }
 0x17d   : >>> { %v629_v44 = vmax.f32 %v627_v59, 0.0  ;;  %v630_v60 = vmax.f32 %v628_v43, 0.0  ;;  %969 = vmatpush.bf16.msra.mxu0 (%p214_p4), %v1629_v18  ;;  %1745 = vmatpush.bf16.msra.mxu2 (%p214_p4), %v1629_v18 }
 0x17f   : >>> { %v1792_v61 = vpack.i.bf16 %v630_v60, %v629_v44 }
 0x181   : >>> { %1793 = vrot.lane.b32.xlu0 %v1792_v61, %s1822_s5  ;;  %970 = vmatpush.bf16.msra.mxu0 (%p214_p4), %v1628_v20  ;;  %s1571_s5 = sshll.u32 (%p214_p4), %s1173_s30, 2 }
 0x182   : >> { %1746 = vmatpush.bf16.msra.mxu2 (%p214_p4), %v1628_v20  ;;  %s2095_s6 = scalar_lea.vmem (%p214_p4), %s1882_s26, %s1571_s5 }
 0x185   : >> { %971 = vmatpush.bf16.msra.mxu0 (%p214_p4), %v1627_v22 }
 0x186   : >> { %1747 = vmatpush.bf16.msra.mxu2 (%p214_p4), %v1627_v22 }
 0x189   : >> { %972 = vmatpush.bf16.msra.mxu0 (%p214_p4), %v1626_v24 }
 0x18a   : >> { %1748 = vmatpush.bf16.msra.mxu2 (%p214_p4), %v1626_v24 }
 0x1f3   : >>> { %v1794_v62 = vpop.permute.xlu0 %1793 }
 0x1f4   : >>> { %v1796_v63 = vunpack.i.h.bf16 %v1794_v62  ;;  %v1795_v1 = vunpack.i.l.bf16 %v1794_v62 }
 0x1f6   : >>> { %v635_v4 = vsel %vm488_vm2, %v1795_v1, %v1796_v63  ;;  %v636_v5 = vsel %vm488_vm2, %v1796_v63, %v1795_v1 }
 0x1f7   : >>> { %v637_v6 = vmax.f32 %v629_v44, %v635_v4  ;;  %v638_v7 = vmax.f32 %v630_v60, %v636_v5 }
 0x1f8   : >> { %216 = sbr.rel (!%p214_p4) target bundleno = 19 (0x13), region = 83 }
 0x1f9   : >>> { %v640_v8 = vsel %vm204_vm0, %v638_v7, 0.0 }
 0x1fa   : >>> { %v642_v9 = vpack.c.bf16 %v640_v8, %v637_v6 }
 0x1fc   : >>> { %648 = vst [vmem:[%s647_s14] sm:$0xff] %v642_v9 }
 0x203   : >> { %v1389_v26 = vld [vmem:[#allocation2] sm:$0xf]  ;;  %v1597_v27 = vld [vmem:[#allocation2 + $0x4] sm:$0xf0]  ;;  %v1596_v30 = vld [vmem:[#allocation2 + $0x4] sm:$0xf] }
 0x204   : >> { %v1453_v28 = vld [vmem:[#allocation2 + $0x80] sm:$0xf]  ;;  %v1613_v29 = vld [vmem:[#allocation2 + $0x84] sm:$0xf0]  ;;  %v1391_v31 = vld [vmem:[#allocation2 + $0x8] sm:$0xf0]  ;;  %v1390_v34 = vor.u32 %v1597_v27, %v1389_v26 }
 0x205   : >> { %v1612_v32 = vld [vmem:[#allocation2 + $0x84] sm:$0xf]  ;;  %v1455_v33 = vld [vmem:[#allocation2 + $0x88] sm:$0xf0]  ;;  %v1454_v35 = vor.u32 %v1613_v29, %v1453_v28  ;;  %v1394_v37 = vor.u32 %v1596_v30, %v1391_v31  ;;  %v1397_v36 = vld [vmem:[#allocation2 + $0x10] sm:$0xf] }
 0x206   : >> { %v1458_v39 = vor.u32 %v1612_v32, %v1455_v33  ;;  %973 = vmatmul.bf16.vlgmr.msra.gmra.mxu0 %v1390_v34  ;;  %v1599_v38 = vld [vmem:[#allocation2 + $0x14] sm:$0xf0]  ;;  %v1461_v40 = vld [vmem:[#allocation2 + $0x90] sm:$0xf]  ;;  %v1598_v42 = vld [vmem:[#allocation2 + $0x14] sm:$0xf] }
 0x207   : >> { %1013 = vmatmul.bf16.vlgmr.msra.gmra.mxu2 %v1454_v35  ;;  %1061 = vmatmul.bf16.vlgmr.msra.gmra.mxu1 %v1394_v37  ;;  %v1615_v41 = vld [vmem:[#allocation2 + $0x94] sm:$0xf0]  ;;  %v1399_v46 = vld [vmem:[#allocation2 + $0x18] sm:$0xf0]  ;;  %v1614_v45 = vld [vmem:[#allocation2 + $0x94] sm:$0xf]  ;;  %v1398_v48 = vor.u32 %v1599_v38, %v1397_v36 }
 0x208   : >> { %1101 = vmatmul.bf16.vlgmr.msra.gmra.mxu3 %v1458_v39  ;;  %v1463_v47 = vld [vmem:[#allocation2 + $0x98] sm:$0xf0]  ;;  %v1462_v49 = vor.u32 %v1615_v41, %v1461_v40  ;;  %v1402_v51 = vor.u32 %v1598_v42, %v1399_v46  ;;  %v1405_v53 = vld [vmem:[#allocation2 + $0x20] sm:$0xf]  ;;  %v1601_v54 = vld [vmem:[#allocation2 + $0x24] sm:$0xf0] }
 0x209   : >> { %v1466_v52 = vor.u32 %v1614_v45, %v1463_v47  ;;  %v1469_v55 = vld [vmem:[#allocation2 + $0xa0] sm:$0xf]  ;;  %v1617_v56 = vld [vmem:[#allocation2 + $0xa4] sm:$0xf0]  ;;  %v1600_v50 = vld [vmem:[#allocation2 + $0x24] sm:$0xf]  ;;  %v1406_v43 = vor.u32 %v1601_v54, %v1405_v53 }
 0x20a   : >> { %v1407_v57 = vld [vmem:[#allocation2 + $0x28] sm:$0xf0]  ;;  %v1616_v58 = vld [vmem:[#allocation2 + $0xa4] sm:$0xf]  ;;  %v1470_v44 = vor.u32 %v1617_v56, %v1469_v55  ;;  %v1413_v62 = vld [vmem:[#allocation2 + $0x30] sm:$0xf] }
 0x20b   : >> { %v1471_v59 = vld [vmem:[#allocation2 + $0xa8] sm:$0xf0]  ;;  %v1410_v60 = vor.u32 %v1600_v50, %v1407_v57  ;;  %v1603_v63 = vld [vmem:[#allocation2 + $0x34] sm:$0xf0]  ;;  %v1477_v1 = vld [vmem:[#allocation2 + $0xb0] sm:$0xf] }
 0x20c   : >> { %v1474_v61 = vor.u32 %v1616_v58, %v1471_v59  ;;  %v1619_v4 = vld [vmem:[#allocation2 + $0xb4] sm:$0xf0]  ;;  %v1602_v5 = vld [vmem:[#allocation2 + $0x34] sm:$0xf]  ;;  %v1415_v6 = vld [vmem:[#allocation2 + $0x38] sm:$0xf0]  ;;  %v1414_v9 = vor.u32 %v1603_v63, %v1413_v62 }
 0x20d   : >> { %v1618_v7 = vld [vmem:[#allocation2 + $0xb4] sm:$0xf]  ;;  %v1479_v8 = vld [vmem:[#allocation2 + $0xb8] sm:$0xf0]  ;;  %v1478_v10 = vor.u32 %v1619_v4, %v1477_v1  ;;  %v1418_v11 = vor.u32 %v1602_v5, %v1415_v6  ;;  %v1421_v13 = vld [vmem:[#allocation2 + $0x40] sm:$0xf] }
 0x20e   : >> { %v1482_v12 = vor.u32 %v1618_v7, %v1479_v8  ;;  %v1605_v14 = vld [vmem:[#allocation2 + $0x44] sm:$0xf0]  ;;  %v1485_v15 = vld [vmem:[#allocation2 + $0xc0] sm:$0xf]  ;;  %v1604_v17 = vld [vmem:[#allocation2 + $0x44] sm:$0xf] }
 0x20f   : >> { %v1621_v16 = vld [vmem:[#allocation2 + $0xc4] sm:$0xf0]  ;;  %v1423_v18 = vld [vmem:[#allocation2 + $0x48] sm:$0xf0]  ;;  %v1620_v19 = vld [vmem:[#allocation2 + $0xc4] sm:$0xf]  ;;  %v1422_v21 = vor.u32 %v1605_v14, %v1421_v13 }
 0x210   : >> { %v1487_v20 = vld [vmem:[#allocation2 + $0xc8] sm:$0xf0]  ;;  %v1486_v22 = vor.u32 %v1621_v16, %v1485_v15  ;;  %v1426_v23 = vor.u32 %v1604_v17, %v1423_v18  ;;  %v1429_v25 = vld [vmem:[#allocation2 + $0x50] sm:$0xf]  ;;  %v1607_v26 = vld [vmem:[#allocation2 + $0x54] sm:$0xf0] }
 0x211   : >> { %v1490_v24 = vor.u32 %v1620_v19, %v1487_v20  ;;  %v1493_v27 = vld [vmem:[#allocation2 + $0xd0] sm:$0xf]  ;;  %v1623_v28 = vld [vmem:[#allocation2 + $0xd4] sm:$0xf0]  ;;  %v1606_v29 = vld [vmem:[#allocation2 + $0x54] sm:$0xf]  ;;  %v1430_v33 = vor.u32 %v1607_v26, %v1429_v25 }
 0x212   : >> { %v1431_v30 = vld [vmem:[#allocation2 + $0x58] sm:$0xf0]  ;;  %v1622_v31 = vld [vmem:[#allocation2 + $0xd4] sm:$0xf]  ;;  %v1494_v34 = vor.u32 %v1623_v28, %v1493_v27  ;;  %v1437_v39 = vld [vmem:[#allocation2 + $0x60] sm:$0xf] }
 0x213   : >> { %v1495_v32 = vld [vmem:[#allocation2 + $0xd8] sm:$0xf0]  ;;  %v1434_v35 = vor.u32 %v1606_v29, %v1431_v30  ;;  %v1609_v36 = vld [vmem:[#allocation2 + $0x64] sm:$0xf0]  ;;  %v1501_v38 = vld [vmem:[#allocation2 + $0xe0] sm:$0xf] }
 0x214   : >> { %v1498_v37 = vor.u32 %v1622_v31, %v1495_v32  ;;  %v1625_v40 = vld [vmem:[#allocation2 + $0xe4] sm:$0xf0]  ;;  %v1608_v41 = vld [vmem:[#allocation2 + $0x64] sm:$0xf]  ;;  %v1439_v42 = vld [vmem:[#allocation2 + $0x68] sm:$0xf0]  ;;  %v1438_v47 = vor.u32 %v1609_v36, %v1437_v39 }
 0x215   : >> { %v1624_v46 = vld [vmem:[#allocation2 + $0xe4] sm:$0xf]  ;;  %v1503_v45 = vld [vmem:[#allocation2 + $0xe8] sm:$0xf0]  ;;  %v1445_v54 = vld [vmem:[#allocation2 + $0x70] sm:$0xf] }
 0x216   : >> { %978 = vmatmul.bf16.gmra.mxu0 %v1398_v48  ;;  %v1502_v48 = vor.u32 %v1625_v40, %v1501_v38  ;;  %v1611_v55 = vld [vmem:[#allocation2 + $0x74] sm:$0xf0]  ;;  %v1610_v50 = vld [vmem:[#allocation2 + $0x74] sm:$0xf]  ;;  %v1447_v57 = vld [vmem:[#allocation2 + $0x78] sm:$0xf0] }
 0x217   : >> { %1018 = vmatmul.bf16.gmra.mxu2 %v1462_v49  ;;  %1066 = vmatmul.bf16.gmra.mxu1 %v1402_v51  ;;  %v1442_v49 = vor.u32 %v1608_v41, %v1439_v42  ;;  %v1506_v51 = vor.u32 %v1624_v46, %v1503_v45  ;;  %v1446_v58 = vor.u32 %v1611_v55, %v1445_v54 }
 0x218   : >> { %1106 = vmatmul.bf16.gmra.mxu3 %v1466_v52  ;;  %v679_v52 = vld [vmem:[#allocation2 + $0xf0] sm:$0xff] }
 0x219   : >> { %v803_v53 = vunpack.c.l.b16 %v679_v52  ;;  %v804_v56 = vunpack.c.h.b16 %v679_v52 }
 0x21b   : >> { %v835_v59 = vpack.c.b16 %v803_v53, %v803_v53 }
 0x226   : >> { %983 = vmatmul.bf16.gmra.mxu0 %v1406_v43  ;;  %v1450_v43 = vor.u32 %v1610_v50, %v1447_v57 }
 0x227   : >> { %1023 = vmatmul.bf16.gmra.mxu2 %v1470_v44  ;;  %1071 = vmatmul.bf16.gmra.mxu1 %v1410_v60  ;;  %v836_v44 = vpack.c.b16 %v804_v56, %v804_v56 }
 0x228   : >> { %1111 = vmatmul.bf16.gmra.mxu3 %v1474_v61 }
 0x236   : >> { %988 = vmatmul.bf16.gmra.mxu0 %v1414_v9 }
 0x237   : >> { %1028 = vmatmul.bf16.gmra.mxu2 %v1478_v10  ;;  %1076 = vmatmul.bf16.gmra.mxu1 %v1418_v11 }
 0x238   : >> { %1116 = vmatmul.bf16.gmra.mxu3 %v1482_v12 }
 0x246   : >> { %993 = vmatmul.bf16.gmra.mxu0 %v1422_v21 }
 0x247   : >> { %1033 = vmatmul.bf16.gmra.mxu2 %v1486_v22  ;;  %1081 = vmatmul.bf16.gmra.mxu1 %v1426_v23 }
 0x248   : >> { %1121 = vmatmul.bf16.gmra.mxu3 %v1490_v24 }
 0x256   : >> { %998 = vmatmul.bf16.gmra.mxu0 %v1430_v33 }
 0x257   : >> { %1038 = vmatmul.bf16.gmra.mxu2 %v1494_v34  ;;  %1086 = vmatmul.bf16.gmra.mxu1 %v1434_v35 }
 0x258   : >> { %1126 = vmatmul.bf16.gmra.mxu3 %v1498_v37 }
 0x266   : >> { %1003 = vmatmul.bf16.gmra.mxu0 %v1438_v47 }
 0x267   : >> { %1043 = vmatmul.bf16.gmra.mxu2 %v1502_v48  ;;  %1091 = vmatmul.bf16.gmra.mxu1 %v1442_v49 }
 0x268   : >> { %1131 = vmatmul.bf16.gmra.mxu3 %v1506_v51 }
 0x276   : >> { %1008 = vmatmul.bf16.gmra.mxu0 %v1446_v58 }
 0x277   : >> { %1048 = vmatmul.bf16.gmra.mxu2 %v835_v59  ;;  %1096 = vmatmul.bf16.gmra.mxu1 %v1450_v43 }
 0x278   : >> { %1136 = vmatmul.bf16.gmra.mxu3 %v836_v44 }
 0x283   : >> { %v974_v60 = vpop.f32.mrf.mxu0 }
 0x284   : >> { %v1062_v61 = vpop.f32.mrf.mxu1 }
 0x285   : >> { %v1063_v5 = vadd.f32 %v1062_v61, %v974_v60 }
 0x28a   : >> { %v1014_v62 = vpop.f32.mrf.mxu2 }
 0x28b   : >> { %v1102_v63 = vpop.f32.mrf.mxu3  ;;  %v976_v1 = vpop.f32.mrf.mxu0 }
 0x28c   : >> { %v1064_v4 = vpop.f32.mrf.mxu1  ;;  %v1103_v10 = vadd.f32 %v1102_v63, %v1014_v62 }
 0x28d   : >> { %v1065_v6 = vadd.f32 %v1064_v4, %v976_v1 }
 0x28f   : >> { %v1645_v7 = vpack.c.bf16 %v1065_v6, %v1063_v5 }
 0x291   : >> { %1646 = vst [vmem:[%s2095_s6] sm:$0xff] %v1645_v7  }
 0x292   : >> { %v1016_v8 = vpop.f32.mrf.mxu2 }
 0x293   : >> { %v1104_v9 = vpop.f32.mrf.mxu3  ;;  %v979_v12 = vpop.f32.mrf.mxu0 }
 0x294   : >> { %v1105_v11 = vadd.f32 %v1104_v9, %v1016_v8  ;;  %v1067_v13 = vpop.f32.mrf.mxu1 }
 0x295   : >> { %v1068_v19 = vadd.f32 %v1067_v13, %v979_v12 }
 0x296   : >> { %v1685_v14 = vpack.c.bf16 %v1105_v11, %v1103_v10 }
 0x298   : >> { %1724 = vst [vmem:[%s2095_s6 + $0x40] sm:$0xff] %v1685_v14  }
 0x29a   : >> { %v1019_v15 = vpop.f32.mrf.mxu2 }
 0x29b   : >> { %v1107_v16 = vpop.f32.mrf.mxu3  ;;  %v981_v17 = vpop.f32.mrf.mxu0 }
 0x29c   : >> { %v1069_v18 = vpop.f32.mrf.mxu1  ;;  %v1108_v24 = vadd.f32 %v1107_v16, %v1019_v15 }
 0x29d   : >> { %v1070_v20 = vadd.f32 %v1069_v18, %v981_v17 }
 0x29f   : >> { %v1650_v21 = vpack.c.bf16 %v1070_v20, %v1068_v19 }
 0x2a1   : >> { %1717 = vst [vmem:[%s2095_s6 + $0x8] sm:$0xff] %v1650_v21  }
 0x2a2   : >> { %v1021_v22 = vpop.f32.mrf.mxu2 }
 0x2a3   : >> { %v1109_v23 = vpop.f32.mrf.mxu3  ;;  %v984_v26 = vpop.f32.mrf.mxu0 }
 0x2a4   : >> { %v1110_v25 = vadd.f32 %v1109_v23, %v1021_v22  ;;  %v1072_v27 = vpop.f32.mrf.mxu1 }
 0x2a5   : >> { %v1073_v33 = vadd.f32 %v1072_v27, %v984_v26 }
 0x2a6   : >> { %v1690_v28 = vpack.c.bf16 %v1110_v25, %v1108_v24 }
 0x2a8   : >> { %1725 = vst [vmem:[%s2095_s6 + $0x48] sm:$0xff] %v1690_v28  }
 0x2aa   : >> { %v1024_v29 = vpop.f32.mrf.mxu2 }
 0x2ab   : >> { %v1112_v30 = vpop.f32.mrf.mxu3  ;;  %v986_v31 = vpop.f32.mrf.mxu0 }
 0x2ac   : >> { %v1074_v32 = vpop.f32.mrf.mxu1  ;;  %v1113_v36 = vadd.f32 %v1112_v30, %v1024_v29 }
 0x2ad   : >> { %v1075_v34 = vadd.f32 %v1074_v32, %v986_v31 }
 0x2af   : >> { %v1655_v35 = vpack.c.bf16 %v1075_v34, %v1073_v33 }
 0x2b1   : >> { %1718 = vst [vmem:[%s2095_s6 + $0x10] sm:$0xff] %v1655_v35  }
 0x2b2   : >> { %v1026_v37 = vpop.f32.mrf.mxu2 }
 0x2b3   : >> { %v1114_v39 = vpop.f32.mrf.mxu3  ;;  %v989_v40 = vpop.f32.mrf.mxu0 }
 0x2b4   : >> { %v1115_v38 = vadd.f32 %v1114_v39, %v1026_v37  ;;  %v1077_v41 = vpop.f32.mrf.mxu1 }
 0x2b5   : >> { %v1078_v49 = vadd.f32 %v1077_v41, %v989_v40 }
 0x2b6   : >> { %v1695_v42 = vpack.c.bf16 %v1115_v38, %v1113_v36 }
 0x2b8   : >> { %1726 = vst [vmem:[%s2095_s6 + $0x50] sm:$0xff] %v1695_v42  }
 0x2ba   : >> { %v1029_v46 = vpop.f32.mrf.mxu2 }
 0x2bb   : >> { %v1117_v45 = vpop.f32.mrf.mxu3  ;;  %v991_v47 = vpop.f32.mrf.mxu0 }
 0x2bc   : >> { %v1079_v48 = vpop.f32.mrf.mxu1  ;;  %v1118_v55 = vadd.f32 %v1117_v45, %v1029_v46 }
 0x2bd   : >> { %v1080_v51 = vadd.f32 %v1079_v48, %v991_v47 }
 0x2bf   : >> { %v1660_v52 = vpack.c.bf16 %v1080_v51, %v1078_v49 }
 0x2c1   : >> { %1719 = vst [vmem:[%s2095_s6 + $0x18] sm:$0xff] %v1660_v52  }
 0x2c2   : >> { %v1031_v53 = vpop.f32.mrf.mxu2 }
 0x2c3   : >> { %v1119_v54 = vpop.f32.mrf.mxu3  ;;  %v994_v50 = vpop.f32.mrf.mxu0 }
 0x2c4   : >> { %v1120_v56 = vadd.f32 %v1119_v54, %v1031_v53  ;;  %v1082_v57 = vpop.f32.mrf.mxu1 }
 0x2c5   : >> { %v1083_v61 = vadd.f32 %v1082_v57, %v994_v50 }
 0x2c6   : >> { %v1700_v58 = vpack.c.bf16 %v1120_v56, %v1118_v55 }
 0x2c8   : >> { %1727 = vst [vmem:[%s2095_s6 + $0x58] sm:$0xff] %v1700_v58  }
 0x2ca   : >> { %v1034_v59 = vpop.f32.mrf.mxu2 }
 0x2cb   : >> { %v1122_v43 = vpop.f32.mrf.mxu3  ;;  %v996_v44 = vpop.f32.mrf.mxu0 }
 0x2cc   : >> { %v1084_v60 = vpop.f32.mrf.mxu1  ;;  %v1123_v5 = vadd.f32 %v1122_v43, %v1034_v59 }
 0x2cd   : >> { %v1085_v62 = vadd.f32 %v1084_v60, %v996_v44 }
 0x2cf   : >> { %v1665_v63 = vpack.c.bf16 %v1085_v62, %v1083_v61 }
 0x2d1   : >> { %1720 = vst [vmem:[%s2095_s6 + $0x20] sm:$0xff] %v1665_v63  }
 0x2d2   : >> { %v1036_v1 = vpop.f32.mrf.mxu2 }
 0x2d3   : >> { %v1124_v4 = vpop.f32.mrf.mxu3  ;;  %v999_v7 = vpop.f32.mrf.mxu0 }
 0x2d4   : >> { %v1125_v6 = vadd.f32 %v1124_v4, %v1036_v1  ;;  %v1087_v8 = vpop.f32.mrf.mxu1 }
 0x2d5   : >> { %v1088_v14 = vadd.f32 %v1087_v8, %v999_v7 }
 0x2d6   : >> { %v1705_v9 = vpack.c.bf16 %v1125_v6, %v1123_v5 }
 0x2d8   : >> { %1728 = vst [vmem:[%s2095_s6 + $0x60] sm:$0xff] %v1705_v9  }
 0x2da   : >> { %v1039_v10 = vpop.f32.mrf.mxu2 }
 0x2db   : >> { %v1127_v11 = vpop.f32.mrf.mxu3  ;;  %v1001_v12 = vpop.f32.mrf.mxu0 }
 0x2dc   : >> { %v1089_v13 = vpop.f32.mrf.mxu1  ;;  %v1128_v19 = vadd.f32 %v1127_v11, %v1039_v10 }
 0x2dd   : >> { %v1090_v15 = vadd.f32 %v1089_v13, %v1001_v12 }
 0x2df   : >> { %v1670_v16 = vpack.c.bf16 %v1090_v15, %v1088_v14 }
 0x2e1   : >> { %1721 = vst [vmem:[%s2095_s6 + $0x28] sm:$0xff] %v1670_v16  }
 0x2e2   : >> { %v1041_v17 = vpop.f32.mrf.mxu2 }
 0x2e3   : >> { %v1129_v18 = vpop.f32.mrf.mxu3  ;;  %v1004_v21 = vpop.f32.mrf.mxu0 }
 0x2e4   : >> { %v1130_v20 = vadd.f32 %v1129_v18, %v1041_v17  ;;  %v1092_v22 = vpop.f32.mrf.mxu1 }
 0x2e5   : >> { %v1093_v28 = vadd.f32 %v1092_v22, %v1004_v21 }
 0x2e6   : >> { %v1710_v23 = vpack.c.bf16 %v1130_v20, %v1128_v19 }
 0x2e8   : >> { %1729 = vst [vmem:[%s2095_s6 + $0x68] sm:$0xff] %v1710_v23  }
 0x2ea   : >> { %v1044_v24 = vpop.f32.mrf.mxu2 }
 0x2eb   : >> { %v1132_v25 = vpop.f32.mrf.mxu3  ;;  %v1006_v26 = vpop.f32.mrf.mxu0 }
 0x2ec   : >> { %v1094_v27 = vpop.f32.mrf.mxu1  ;;  %v1133_v33 = vadd.f32 %v1132_v25, %v1044_v24 }
 0x2ed   : >> { %v1095_v29 = vadd.f32 %v1094_v27, %v1006_v26 }
 0x2ef   : >> { %v1675_v30 = vpack.c.bf16 %v1095_v29, %v1093_v28 }
 0x2f1   : >> { %1722 = vst [vmem:[%s2095_s6 + $0x30] sm:$0xff] %v1675_v30  }
 0x2f2   : >> { %v1046_v31 = vpop.f32.mrf.mxu2 }
 0x2f3   : >> { %v1134_v32 = vpop.f32.mrf.mxu3  ;;  %v1009_v35 = vpop.f32.mrf.mxu0 }
 0x2f4   : >> { %v1135_v34 = vadd.f32 %v1134_v32, %v1046_v31  ;;  %v1097_v37 = vpop.f32.mrf.mxu1 }
 0x2f5   : >> { %v1098_v46 = vadd.f32 %v1097_v37, %v1009_v35 }
 0x2f6   : >> { %v1715_v39 = vpack.c.bf16 %v1135_v34, %v1133_v33 }
 0x2f8   : >> { %1730 = vst [vmem:[%s2095_s6 + $0x70] sm:$0xff] %v1715_v39  }
 0x2fa   : >> { %v1049_v36 = vpop.f32.mrf.mxu2 }
 0x2fb   : >> { %v1137_v38 = vpop.f32.mrf.mxu3  ;;  %v1011_v41 = vpop.f32.mrf.mxu0 }
 0x2fc   : >> { %v1138_v40 = vadd.f32 %v1137_v38, %v1049_v36  ;;  %v1099_v42 = vpop.f32.mrf.mxu1 }
 0x2fd   : >> { %v1100_v47 = vadd.f32 %v1099_v42, %v1011_v41 }
 0x2fe   : >> { %v1172_v45 = vpack.c.bf16 %v1138_v40, %v1138_v40 }
 0x2ff   : >> { %v1680_v48 = vpack.c.bf16 %v1100_v47, %v1098_v46  ;;  %209 = sbr.rel (!%p207_p5) target bundleno = 18 (0x12), region = 94 }
 0x300   : >> { %1207 = vst [vmem:[%s2095_s6 + $0x78] sm:$0xf] %v1172_v45 }
 0x301   : >> { %1723 = vst [vmem:[%s2095_s6 + $0x38] sm:$0xff] %v1680_v48  }
 0x302   : >> { %v1051_v49 = vpop.f32.mrf.mxu2 }
 0x303   : >> { %v1139_v51 = vpop.f32.mrf.mxu3 }
 0x304 PF: > { %s14_s15 = sadd.s32 1, %s1812_s15  }
 0x305   : > { %p11_p6 = scmp.ge.s32.totalorder %s14_s15, 4  }
 0x307   :  { %13 = sbr.rel (!%p11_p6) target bundleno = 1 (0x1), region = 105 }

// kernel: lenet_forward.4
= control target key start
LH: loop header
LB: loop body
LE: loop exit
PB: predicated region body
PF: predicated region fallthrough
CT: control target
= control target key end

     0   :  { %s1228_s15 = smov 0   ;;  %s1427_s0 = inlined_call_operand.vmem [shape: bf16[2,992,128], index: 0, kind: input, shape index: {}]   ;;  %s1428_s1 = inlined_call_operand.vmem [shape: bf16[160,48], index: 1, kind: input, shape index: {}]   ;;  %s1429_s2 = inlined_call_operand.vmem [shape: f32[16,1], index: 2, kind: input, shape index: {}]   ;;  %s1430_s3 = inlined_call_operand.vmem [shape: bf16[128,64], index: 3, kind: input, shape index: {}]   ;;  %s1431_s4 = inlined_call_operand.vmem [shape: bf16[2,960,64], index: 4, kind: output, shape index: {}]  }
   0x1 LB: > { %s893_s16 = sadd.s32 4294967295, %s1188_s15   ;;  %p897_p0 = scmp.ge.s32.totalorder %s1188_s15, 1  ;;  %s1188_s15 = sphi %s1228_s15, %s14_s15  }
   0x2   : > { %p162_p1 = scmp.lt.s32.totalorder %s1188_s15, 3 }
   0x4   : > { %p163_p2 = pnand %p897_p0, %p162_p1 }
   0x5   : > { %p188_p3 = scmp.lt.s32.totalorder (!%p163_p2), %s893_s16, 1  ;;  %s1259_s29 = smov (!%p163_p2), 0  }
   0x6   : > { %166 = sbr.rel (%p163_p2) target bundleno = 657 (0x291), region = 36 }
   0xb   : > { %v1239_v0 = vld [vmem:[%s1429_s2] sm:$0xff]  ;;  %v1244_v1 = vld [vmem:[%s1429_s2 + $0x8] sm:$0xff]  ;;  %v201_v2 = vlaneseq  ;;  %s1433_s16 = smov (!%p188_p3, %s893_s16), 1 }
   0xc   : > { %s1135_s21 = smul.u32 496, %s1433_s16 }
   0xd   : > { %v1246_v3 = vand.u32 127, %v201_v2  ;;  %s1136_s22 = smul.u32 480, %s1433_s16 }
   0xe   : > { %s1252_s25 = scalar_lea.vmem %s1427_s0, %s1135_s21 }
   0xf   : > { %vm203_vm0 = vcmp.lt.s32.totalorder %v1246_v3, 120  ;;  %s1257_s28 = scalar_lea.vmem %s1431_s4, %s1136_s22 }
  0x10 LB: >> { %s210_s30 = smul.u32 15, %s1192_s29  ;;  %s1265_s5 = smov 0   ;;  %s1192_s29 = sphi %s1259_s29, %s209_s29  }
  0x11 LB: >>> { %v1064_v7 = vld [vmem:[%s1428_s1] sm:$0xff]  ;;  %v1067_v8 = vld [vmem:[%s1428_s1 + $0x18] sm:$0xff]  ;;  %vm317_vm1 = vcmask 392192   ;;  %v1070_v9 = vld [vmem:[%s1428_s1 + $0x30] sm:$0xff]  ;;  %s1198_s11 = smov 125   ;;  %s1199_s12 = smov 126   ;;  %s1196_s5 = sphi %s1265_s5, %s216_s5  }
  0x12   : >>> { %s217_s6 = sadd.s32 %s1196_s5, %s210_s30  ;;  %v1071_v10 = vld [vmem:[%s1428_s1 + $0x38] sm:$0xff]  ;;  %v1065_v11 = vld [vmem:[%s1428_s1 + $0x8] sm:$0xff]  ;;  %v1068_v12 = vld [vmem:[%s1428_s1 + $0x20] sm:$0xff]  ;;  %s1200_s13 = smov 127   ;;  %v1201_v22 = vmov 0  }
  0x13   : >>> { %s900_s7 = sshll.u32 %s217_s6, 4  ;;  %v1072_v13 = vld [vmem:[%s1428_s1 + $0x40] sm:$0xff]  ;;  %v1066_v14 = vld [vmem:[%s1428_s1 + $0x10] sm:$0xff]  ;;  %v1069_v15 = vld [vmem:[%s1428_s1 + $0x28] sm:$0xff]  ;;  %1166 = vset.pattern.permute.xlu1 %v1201_v22  ;;  %1167 = vset.pattern.permute.xlu2 %v1201_v22  ;;  %s1202_s14 = smov 124  }
  0x14   : >>> { %s219_s8 = sshra.s32 %s900_s7, 3  ;;  %v1073_v16 = vld [vmem:[%s1428_s1 + $0x48] sm:$0xff]  ;;  %1173 = vset.pattern.permute.xlu0 %v1201_v22  ;;  %s964_s16 = sshll.u32 %s1196_s5, 4 }
  0x15   : >>> { %s901_s9 = sshll.u32 %s219_s8, 2  ;;  %s482_s17 = sshra.s32 %s964_s16, 3 }
  0x16   : >>> { %s222_s10 = scalar_lea.vmem %s1252_s25, %s901_s9  ;;  %s965_s18 = sshll.u32 %s482_s17, 2 }
  0x17   : >>> { %v1063_v4 = vld [vmem:[%s222_s10 + $0x10] sm:$0xff]  ;;  %v1062_v5 = vld [vmem:[%s222_s10 + $0x8] sm:$0xff]  ;;  %v1061_v6 = vld [vmem:[%s222_s10] sm:$0xff]  ;;  %s485_s19 = scalar_lea.vmem [#allocation2], %s965_s18  ;;  %s216_s5 = sadd.s32 1, %s1196_s5  }
  0x18   : >>> { %353 = vmatpush.bf16.msra.mxu0 %v1063_v4  ;;  %1102 = vmatpush.bf16.msra.mxu1 %v1063_v4  ;;  %p213_p4 = scmp.ge.s32.totalorder %s216_s5, 15  }
  0x19   : >>> { %1103 = vmatpush.bf16.msra.mxu2 %v1063_v4  ;;  %1104 = vmatpush.bf16.msra.mxu3 %v1063_v4  ;;  %vm791_vm2 = vcmask (%p213_p4), 519168  }
  0x1c   : >>> { %354 = vmatpush.bf16.msra.mxu0 %v1062_v5  ;;  %1105 = vmatpush.bf16.msra.mxu1 %v1062_v5 }
  0x1d   : >>> { %1106 = vmatpush.bf16.msra.mxu2 %v1062_v5  ;;  %1107 = vmatpush.bf16.msra.mxu3 %v1062_v5 }
  0x20   : >>> { %355 = vmatpush.bf16.msra.mxu0 %v1061_v6  ;;  %1108 = vmatpush.bf16.msra.mxu1 %v1061_v6 }
  0x21   : >>> { %1109 = vmatpush.bf16.msra.mxu2 %v1061_v6  ;;  %1110 = vmatpush.bf16.msra.mxu3 %v1061_v6 }
  0x23   : >>> { %954 = vmatmul.msk.bf16.vlgmr.msra.gmra.mxu0 %vm317_vm1, %v1064_v7  ;;  %957 = vmatmul.msk.bf16.vlgmr.msra.gmra.mxu1 %vm317_vm1, %v1067_v8 }
  0x24   : >>> { %960 = vmatmul.msk.bf16.vlgmr.msra.gmra.mxu2 %vm317_vm1, %v1070_v9  ;;  %961 = vmatmul.msk.bf16.vlgmr.msra.gmra.mxu3 %vm317_vm1, %v1071_v10 }
  0x33   : >>> { %955 = vmatmul.msk.bf16.gmra.mxu0 %vm317_vm1, %v1065_v11  ;;  %958 = vmatmul.msk.bf16.gmra.mxu1 %vm317_vm1, %v1068_v12 }
  0x34   : >>> { %962 = vmatmul.msk.bf16.gmra.mxu3 %vm317_vm1, %v1072_v13 }
  0x43   : >>> { %956 = vmatmul.msk.bf16.gmra.mxu0 %vm317_vm1, %v1066_v14  ;;  %959 = vmatmul.msk.bf16.gmra.mxu1 %vm317_vm1, %v1069_v15 }
  0x44   : >>> { %963 = vmatmul.msk.bf16.gmra.mxu3 %vm317_vm1, %v1073_v16 }
  0xa0   : >>> { %v357_v17 = vpop.f32.mrf.mxu0  ;;  %v372_v18 = vpop.f32.mrf.mxu1 }
  0xa1   : >>> { %431 = vrot.lane.b32.xlu2 %v372_v18, %s1198_s11 }
  0xa7   : >>> { %v387_v19 = vpop.f32.mrf.mxu2  ;;  %v392_v20 = vpop.f32.mrf.mxu3 }
  0xa8   : >>> { %425 = vrot.lane.b32.xlu0 %v392_v20, %s1199_s12  ;;  %413 = vrot.lane.b32.xlu1 %v387_v19, %s1200_s13  ;;  %v359_v21 = vpop.f32.mrf.mxu0  ;;  %v374_v23 = vpop.f32.mrf.mxu1 }
  0xaf   : >>> { %v389_v24 = vpop.f32.mrf.mxu2  ;;  %v394_v25 = vpop.f32.mrf.mxu3 }
  0xb0   : >>> { %415 = vrot.lane.b32.xlu1 %v389_v24, %s1200_s13  ;;  %433 = vrot.lane.b32.xlu0 %v374_v23, %s1198_s11  ;;  %v362_v26 = vpop.f32.mrf.mxu0  ;;  %v377_v28 = vpop.f32.mrf.mxu1 }
  0xb7   : >>> { %v397_v27 = vpop.f32.mrf.mxu3 }
  0xb8   : >>> { %427 = vrot.lane.b32.xlu1 %v394_v25, %s1199_s12  ;;  %407 = vrot.lane.b32.xlu0 %v362_v26, %s1200_s13  ;;  %v364_v29 = vpop.f32.mrf.mxu0  ;;  %v379_v32 = vpop.f32.mrf.mxu1  ;;  %v1096_v26 = vld [vmem:[%s1430_s3 + $0x38] sm:$0xff] (%p213_p4) }
  0xb9   : >> { %1111 = vmatpush.bf16.msra.mxu1 (%p213_p4), %v1096_v26  ;;  %1112 = vmatpush.bf16.msra.mxu2 (%p213_p4), %v1096_v26 }
  0xba   : >> { %1113 = vmatpush.bf16.msra.mxu3 (%p213_p4), %v1096_v26  ;;  %672 = vmatpush.bf16.msra.mxu0 (%p213_p4), %v1096_v26 }
  0xbf   : >>> { %v399_v30 = vpop.f32.mrf.mxu3 }
  0xc0   : >>> { %437 = vrot.lane.b32.xlu1 %v397_v27, %s1198_s11  ;;  %439 = vrot.lane.b32.xlu2 %v399_v30, %s1198_s11  ;;  %v367_v31 = vpop.f32.mrf.mxu0  ;;  %v382_v45 = vpop.f32.mrf.mxu1  ;;  %v1095_v27 = vld [vmem:[%s1430_s3 + $0x30] sm:$0xff] (%p213_p4)  ;;  %v1092_v30 = vld [vmem:[%s1430_s3 + $0x18] sm:$0xff] (%p213_p4) }
  0xc1   : >>> { %443 = vrot.lane.b32.xlu0 %v377_v28, %s1202_s14  ;;  %1114 = vmatpush.bf16.msra.mxu1 (%p213_p4), %v1095_v27  ;;  %v1094_v28 = vld [vmem:[%s1430_s3 + $0x28] sm:$0xff] (%p213_p4) }
  0xc2   : >> { %1115 = vmatpush.bf16.msra.mxu2 (%p213_p4), %v1095_v27  ;;  %1116 = vmatpush.bf16.msra.mxu3 (%p213_p4), %v1095_v27 }
  0xc3   : >> { %673 = vmatpush.bf16.msra.mxu0 (%p213_p4), %v1095_v27 }
  0xc5   : >> { %1117 = vmatpush.bf16.msra.mxu1 (%p213_p4), %v1094_v28 }
  0xc6   : >> { %1118 = vmatpush.bf16.msra.mxu2 (%p213_p4), %v1094_v28  ;;  %1119 = vmatpush.bf16.msra.mxu3 (%p213_p4), %v1094_v28 }
  0xc7   : >>> { %v402_v33 = vpop.f32.mrf.mxu3  ;;  %674 = vmatpush.bf16.msra.mxu0 (%p213_p4), %v1094_v28 }
  0xc8   : >>> { %445 = vrot.lane.b32.xlu1 %v379_v32, %s1202_s14  ;;  %419 = vrot.lane.b32.xlu2 %v367_v31, %s1199_s12  ;;  %v369_v35 = vpop.f32.mrf.mxu0  ;;  %v384_v51 = vpop.f32.mrf.mxu1  ;;  %v1091_v31 = vld [vmem:[%s1430_s3 + $0x10] sm:$0xff] (%p213_p4)  ;;  %v1090_v32 = vld [vmem:[%s1430_s3 + $0x8] sm:$0xff] (%p213_p4) }
  0xc9   : >>> { %409 = vrot.lane.b32.xlu0 %v364_v29, %s1200_s13  ;;  %v1093_v29 = vld [vmem:[%s1430_s3 + $0x20] sm:$0xff] (%p213_p4) }
  0xca   : >> { %1120 = vmatpush.bf16.msra.mxu1 (%p213_p4), %v1093_v29  ;;  %1121 = vmatpush.bf16.msra.mxu2 (%p213_p4), %v1093_v29 }
  0xcb   : >> { %1122 = vmatpush.bf16.msra.mxu3 (%p213_p4), %v1093_v29  ;;  %675 = vmatpush.bf16.msra.mxu0 (%p213_p4), %v1093_v29 }
  0xce   : >> { %1123 = vmatpush.bf16.msra.mxu1 (%p213_p4), %v1092_v30  ;;  %1124 = vmatpush.bf16.msra.mxu2 (%p213_p4), %v1092_v30 }
  0xcf   : >>> { %v404_v34 = vpop.f32.mrf.mxu3  ;;  %1125 = vmatpush.bf16.msra.mxu3 (%p213_p4), %v1092_v30  ;;  %676 = vmatpush.bf16.msra.mxu0 (%p213_p4), %v1092_v30 }
  0xd0   : >>> { %459 = vperm.xlu1 %1166, %v1239_v0   ;;  %449 = vrot.lane.b32.xlu2 %v402_v33, %s1202_s14  ;;  %v1089_v33 = vld [vmem:[%s1430_s3] sm:$0xff] (%p213_p4) }
  0xd1   : >>> { %451 = vrot.lane.b32.xlu0 %v404_v34, %s1202_s14 }
  0xd2   : >> { %1126 = vmatpush.bf16.msra.mxu1 (%p213_p4), %v1091_v31  ;;  %1127 = vmatpush.bf16.msra.mxu2 (%p213_p4), %v1091_v31 }
  0xd3   : >> { %1128 = vmatpush.bf16.msra.mxu3 (%p213_p4), %v1091_v31  ;;  %677 = vmatpush.bf16.msra.mxu0 (%p213_p4), %v1091_v31 }
  0xd6   : >> { %1129 = vmatpush.bf16.msra.mxu1 (%p213_p4), %v1090_v32  ;;  %1130 = vmatpush.bf16.msra.mxu2 (%p213_p4), %v1090_v32 }
  0xd7   : >> { %1131 = vmatpush.bf16.msra.mxu3 (%p213_p4), %v1090_v32  ;;  %678 = vmatpush.bf16.msra.mxu0 (%p213_p4), %v1090_v32 }
  0xd8   : >>> { %421 = vrot.lane.b32.xlu2 %v369_v35, %s1199_s12 }
  0xda   : >> { %1132 = vmatpush.bf16.msra.mxu1 (%p213_p4), %v1089_v33  ;;  %1133 = vmatpush.bf16.msra.mxu2 (%p213_p4), %v1089_v33 }
  0xdb   : >> { %1134 = vmatpush.bf16.msra.mxu3 (%p213_p4), %v1089_v33  ;;  %679 = vmatpush.bf16.msra.mxu0 (%p213_p4), %v1089_v33 }
  0xe0   : >>> { %464 = vperm.xlu2 %1167, %v1244_v1  }
  0xfb   : >>> { %v432_v36 = vpop.permute.xlu2 %431 }
 0x11a   : >>> { %v426_v37 = vpop.permute.xlu0 %425  ;;  %v414_v38 = vpop.permute.xlu1 %413 }
 0x11b   : >>> { %v440_v39 = vpop.permute.xlu2 %439  ;;  %v417_v49 = vadd.f32 %v414_v38, %v382_v45 }
 0x11d   : >>> { %v429_v52 = vadd.f32 %v426_v37, %v417_v49 }
 0x122   : >>> { %v416_v40 = vpop.permute.xlu1 %415  ;;  %v434_v41 = vpop.permute.xlu0 %433 }
 0x123   : >>> { %v420_v42 = vpop.permute.xlu2 %419  ;;  %v418_v55 = vadd.f32 %v416_v40, %v384_v51 }
 0x12a   : >>> { %v428_v43 = vpop.permute.xlu1 %427  ;;  %v408_v44 = vpop.permute.xlu0 %407 }
 0x12b   : >>> { %v450_v47 = vpop.permute.xlu2 %449  ;;  %v411_v50 = vadd.f32 %v408_v44, %v357_v17  ;;  %v430_v60 = vadd.f32 %v428_v43, %v418_v55 }
 0x12d   : >>> { %v423_v56 = vadd.f32 %v420_v42, %v411_v50  ;;  %v442_v5 = vadd.f32 %v440_v39, %v430_v60 }
 0x12f   : >>> { %v435_v63 = vadd.f32 %v432_v36, %v423_v56 }
 0x132   : >>> { %v438_v46 = vpop.permute.xlu1 %437 }
 0x133   : >>> { %v444_v48 = vpop.permute.xlu0 %443  ;;  %v441_v57 = vadd.f32 %v438_v46, %v429_v52  ;;  %v422_v59 = vpop.permute.xlu2 %421 }
 0x134   : >>> { %v447_v4 = vadd.f32 %v444_v48, %v435_v63 }
 0x135   : >>> { %v453_v62 = vadd.f32 %v450_v47, %v441_v57 }
 0x137   : >>> { %v455_v8 = vmax.f32 %v447_v4, %v453_v62 }
 0x13a   : >>> { %v446_v53 = vpop.permute.xlu1 %445 }
 0x13b   : >>> { %v410_v54 = vpop.permute.xlu0 %409  ;;  %v465_v11 = vpop.permute.xlu2 %464 }
 0x13c   : >>> { %v412_v58 = vadd.f32 %v410_v54, %v359_v21 }
 0x13e   : >>> { %v424_v61 = vadd.f32 %v422_v59, %v412_v58 }
 0x140   : >>> { %v436_v2 = vadd.f32 %v434_v41, %v424_v61 }
 0x142   : >>> { %v460_v6 = vpop.permute.xlu1 %459  ;;  %v448_v10 = vadd.f32 %v446_v53, %v436_v2 }
 0x143   : >>> { %v452_v7 = vpop.permute.xlu0 %451  ;;  %v467_v12 = vadd.f32 %v460_v6, %v455_v8 }
 0x144   : >>> { %v454_v9 = vadd.f32 %v452_v7, %v442_v5 }
 0x145   : >>> { %v469_v15 = vmax.f32 %v467_v12, 0.0 }
 0x146   : >>> { %v456_v13 = vmax.f32 %v448_v10, %v454_v9 }
 0x148   : >>> { %v468_v14 = vadd.f32 %v465_v11, %v456_v13 }
 0x14a   : >>> { %v470_v16 = vmax.f32 %v468_v14, 0.0 }
 0x14c   : >>> { %v1168_v17 = vpack.i.bf16 %v470_v16, %v469_v15 }
 0x14e   : >>> { %1169 = vrot.lane.b32.xlu0 %v1168_v17, %s1200_s13  ;;  %s756_s13 = smul.u32 (%p213_p4), 240, %s1192_s29  ;;  %s209_s29 = sadd.s32 (%p213_p4), 1, %s1192_s29  }
 0x14f   : >> { %p206_p5 = scmp.ge.s32.totalorder (%p213_p4), %s209_s29, 4  }
 0x150   : >> { %s787_s14 = sshra.s32 (%p213_p4), %s756_s13, 3 }
 0x151   : >> { %s1058_s16 = sshll.u32 (%p213_p4), %s787_s14, 2 }
 0x152   : >> { %s1359_s17 = scalar_lea.vmem (%p213_p4), %s1257_s28, %s1058_s16 }
 0x1c0   : >>> { %v1170_v18 = vpop.permute.xlu0 %1169 }
 0x1c1   : >>> { %v1172_v19 = vunpack.i.h.bf16 %v1170_v18  ;;  %v1171_v20 = vunpack.i.l.bf16 %v1170_v18 }
 0x1c3   : >>> { %v476_v21 = vmax.f32 %v470_v16, %v1172_v19  ;;  %v475_v22 = vmax.f32 %v469_v15, %v1171_v20 }
 0x1c4   : >> { %215 = sbr.rel (!%p213_p4) target bundleno = 17 (0x11), region = 83 }
 0x1c5   : >>> { %v478_v23 = vsel %vm203_vm0, %v476_v21, 0.0  ;;  %v477_v24 = vsel %vm203_vm0, %v475_v22, 0.0 }
 0x1c6   : >>> { %v1100_v25 = vpack.c.bf16 %v478_v23, %v477_v24 }
 0x1c8   : >>> { %1101 = vst [vmem:[%s485_s19] sm:$0xff] %v1100_v25  }
 0x1cf   : >> { %v1077_v34 = vld [vmem:[#allocation2 + $0x18] sm:$0xff]  ;;  %v1074_v37 = vld [vmem:[#allocation2] sm:$0xff]  ;;  %v1075_v41 = vld [vmem:[#allocation2 + $0x8] sm:$0xff] }
 0x1d0   : >> { %v1081_v35 = vld [vmem:[#allocation2 + $0x38] sm:$0xff]  ;;  %695 = vmatmul.bf16.vlgmr.msra.gmra.mxu1 %v1077_v34  ;;  %680 = vmatmul.bf16.vlgmr.msra.gmra.mxu0 %v1074_v37  ;;  %v1078_v38 = vld [vmem:[#allocation2 + $0x20] sm:$0xff]  ;;  %v1079_v42 = vld [vmem:[#allocation2 + $0x28] sm:$0xff] }
 0x1d1   : >> { %v1085_v36 = vld [vmem:[#allocation2 + $0x58] sm:$0xff]  ;;  %715 = vmatmul.bf16.vlgmr.msra.gmra.mxu2 %v1081_v35  ;;  %v1082_v39 = vld [vmem:[#allocation2 + $0x40] sm:$0xff]  ;;  %v1083_v43 = vld [vmem:[#allocation2 + $0x48] sm:$0xff] }
 0x1d2   : >> { %735 = vmatmul.bf16.vlgmr.msra.gmra.mxu3 %v1085_v36  ;;  %v1086_v40 = vld [vmem:[#allocation2 + $0x60] sm:$0xff]  ;;  %v1087_v44 = vld [vmem:[#allocation2 + $0x68] sm:$0xff]  ;;  %v1076_v45 = vld [vmem:[#allocation2 + $0x10] sm:$0xff] }
 0x1d3   : >> { %v1080_v46 = vld [vmem:[#allocation2 + $0x30] sm:$0xff] }
 0x1d4   : >> { %v1084_v47 = vld [vmem:[#allocation2 + $0x50] sm:$0xff] }
 0x1d5   : >> { %v1088_v48 = vld [vmem:[#allocation2 + $0x70] sm:$0xff] }
 0x1e0   : >> { %700 = vmatmul.bf16.gmra.mxu1 %v1078_v38  ;;  %685 = vmatmul.bf16.gmra.mxu0 %v1075_v41 }
 0x1e1   : >> { %720 = vmatmul.bf16.gmra.mxu2 %v1082_v39 }
 0x1e2   : >> { %740 = vmatmul.bf16.gmra.mxu3 %v1086_v40 }
 0x1f0   : >> { %705 = vmatmul.bf16.gmra.mxu1 %v1079_v42  ;;  %690 = vmatmul.bf16.gmra.mxu0 %v1076_v45 }
 0x1f1   : >> { %725 = vmatmul.bf16.gmra.mxu2 %v1083_v43 }
 0x1f2   : >> { %745 = vmatmul.bf16.gmra.mxu3 %v1087_v44 }
 0x200   : >> { %710 = vmatmul.bf16.gmra.mxu1 %v1080_v46 }
 0x201   : >> { %730 = vmatmul.bf16.gmra.mxu2 %v1084_v47 }
 0x202   : >> { %750 = vmatmul.bf16.gmra.mxu3 %v1088_v48 }
 0x24d   : >> { %v696_v49 = vpop.f32.mrf.mxu1  ;;  %v681_v51 = vpop.f32.mrf.mxu0 }
 0x24e   : >> { %v763_v50 = vpack.c.bf16 %v696_v49, %v696_v49  ;;  %v757_v52 = vpack.c.bf16 %v681_v51, %v681_v51 }
 0x250   : >> { %798 = vst.msk [vmem:[%s1359_s17 + $0x18] sm:$0xf] %vm791_vm2, %v763_v50 }
 0x251   : >> { %792 = vst.msk [vmem:[%s1359_s17] sm:$0xf] %vm791_vm2, %v757_v52 }
 0x254   : >> { %v716_v53 = vpop.f32.mrf.mxu2 }
 0x255   : >> { %v771_v54 = vpack.c.bf16 %v716_v53, %v716_v53  ;;  %v736_v55 = vpop.f32.mrf.mxu3  ;;  %v698_v57 = vpop.f32.mrf.mxu1 }
 0x256   : >> { %v779_v56 = vpack.c.bf16 %v736_v55, %v736_v55  ;;  %v764_v58 = vpack.c.bf16 %v698_v57, %v698_v57  ;;  %v683_v59 = vpop.f32.mrf.mxu0 }
 0x257   : >> { %806 = vst.msk [vmem:[%s1359_s17 + $0x38] sm:$0xf] %vm791_vm2, %v771_v54  ;;  %v758_v60 = vpack.c.bf16 %v683_v59, %v683_v59 }
 0x258   : >> { %814 = vst.msk [vmem:[%s1359_s17 + $0x58] sm:$0xf] %vm791_vm2, %v779_v56 }
 0x259   : >> { %799 = vst.msk [vmem:[%s1359_s17 + $0x1c] sm:$0xf] %vm791_vm2, %v764_v58 }
 0x25a   : >> { %793 = vst.msk [vmem:[%s1359_s17 + $0x4] sm:$0xf] %vm791_vm2, %v758_v60 }
 0x25c   : >> { %v718_v61 = vpop.f32.mrf.mxu2 }
 0x25d   : >> { %v772_v62 = vpack.c.bf16 %v718_v61, %v718_v61  ;;  %v738_v63 = vpop.f32.mrf.mxu3  ;;  %v701_v4 = vpop.f32.mrf.mxu1 }
 0x25e   : >> { %v780_v2 = vpack.c.bf16 %v738_v63, %v738_v63  ;;  %v765_v5 = vpack.c.bf16 %v701_v4, %v701_v4  ;;  %v686_v6 = vpop.f32.mrf.mxu0 }
 0x25f   : >> { %807 = vst.msk [vmem:[%s1359_s17 + $0x3c] sm:$0xf] %vm791_vm2, %v772_v62  ;;  %v759_v7 = vpack.c.bf16 %v686_v6, %v686_v6 }
 0x260   : >> { %815 = vst.msk [vmem:[%s1359_s17 + $0x5c] sm:$0xf] %vm791_vm2, %v780_v2 }
 0x261   : >> { %800 = vst.msk [vmem:[%s1359_s17 + $0x20] sm:$0xf] %vm791_vm2, %v765_v5 }
 0x262   : >> { %794 = vst.msk [vmem:[%s1359_s17 + $0x8] sm:$0xf] %vm791_vm2, %v759_v7 }
 0x264   : >> { %v721_v8 = vpop.f32.mrf.mxu2 }
 0x265   : >> { %v773_v9 = vpack.c.bf16 %v721_v8, %v721_v8  ;;  %v741_v10 = vpop.f32.mrf.mxu3  ;;  %v703_v12 = vpop.f32.mrf.mxu1 }
 0x266   : >> { %v781_v11 = vpack.c.bf16 %v741_v10, %v741_v10  ;;  %v766_v13 = vpack.c.bf16 %v703_v12, %v703_v12  ;;  %v688_v14 = vpop.f32.mrf.mxu0 }
 0x267   : >> { %808 = vst.msk [vmem:[%s1359_s17 + $0x40] sm:$0xf] %vm791_vm2, %v773_v9  ;;  %v760_v15 = vpack.c.bf16 %v688_v14, %v688_v14 }
 0x268   : >> { %816 = vst.msk [vmem:[%s1359_s17 + $0x60] sm:$0xf] %vm791_vm2, %v781_v11 }
 0x269   : >> { %801 = vst.msk [vmem:[%s1359_s17 + $0x24] sm:$0xf] %vm791_vm2, %v766_v13 }
 0x26a   : >> { %795 = vst.msk [vmem:[%s1359_s17 + $0xc] sm:$0xf] %vm791_vm2, %v760_v15 }
 0x26c   : >> { %v723_v16 = vpop.f32.mrf.mxu2 }
 0x26d   : >> { %v774_v17 = vpack.c.bf16 %v723_v16, %v723_v16  ;;  %v743_v18 = vpop.f32.mrf.mxu3  ;;  %v706_v20 = vpop.f32.mrf.mxu1 }
 0x26e   : >> { %v782_v19 = vpack.c.bf16 %v743_v18, %v743_v18  ;;  %v767_v21 = vpack.c.bf16 %v706_v20, %v706_v20  ;;  %v691_v22 = vpop.f32.mrf.mxu0 }
 0x26f   : >> { %809 = vst.msk [vmem:[%s1359_s17 + $0x44] sm:$0xf] %vm791_vm2, %v774_v17  ;;  %v761_v23 = vpack.c.bf16 %v691_v22, %v691_v22 }
 0x270   : >> { %817 = vst.msk [vmem:[%s1359_s17 + $0x64] sm:$0xf] %vm791_vm2, %v782_v19 }
 0x271   : >> { %802 = vst.msk [vmem:[%s1359_s17 + $0x28] sm:$0xf] %vm791_vm2, %v767_v21 }
 0x272   : >> { %796 = vst.msk [vmem:[%s1359_s17 + $0x10] sm:$0xf] %vm791_vm2, %v761_v23 }
 0x274   : >> { %v726_v24 = vpop.f32.mrf.mxu2 }
 0x275   : >> { %v775_v25 = vpack.c.bf16 %v726_v24, %v726_v24  ;;  %v746_v26 = vpop.f32.mrf.mxu3  ;;  %v708_v28 = vpop.f32.mrf.mxu1 }
 0x276   : >> { %v783_v27 = vpack.c.bf16 %v746_v26, %v746_v26  ;;  %v768_v29 = vpack.c.bf16 %v708_v28, %v708_v28  ;;  %v693_v30 = vpop.f32.mrf.mxu0 }
 0x277   : >> { %810 = vst.msk [vmem:[%s1359_s17 + $0x48] sm:$0xf] %vm791_vm2, %v775_v25  ;;  %v762_v31 = vpack.c.bf16 %v693_v30, %v693_v30 }
 0x278   : >> { %818 = vst.msk [vmem:[%s1359_s17 + $0x68] sm:$0xf] %vm791_vm2, %v783_v27 }
 0x279   : >> { %803 = vst.msk [vmem:[%s1359_s17 + $0x2c] sm:$0xf] %vm791_vm2, %v768_v29 }
 0x27a   : >> { %797 = vst.msk [vmem:[%s1359_s17 + $0x14] sm:$0xf] %vm791_vm2, %v762_v31 }
 0x27c   : >> { %v728_v32 = vpop.f32.mrf.mxu2 }
 0x27d   : >> { %v776_v33 = vpack.c.bf16 %v728_v32, %v728_v32  ;;  %v748_v34 = vpop.f32.mrf.mxu3  ;;  %v711_v36 = vpop.f32.mrf.mxu1 }
 0x27e   : >> { %v784_v35 = vpack.c.bf16 %v748_v34, %v748_v34  ;;  %v769_v37 = vpack.c.bf16 %v711_v36, %v711_v36 }
 0x27f   : >> { %811 = vst.msk [vmem:[%s1359_s17 + $0x4c] sm:$0xf] %vm791_vm2, %v776_v33 }
 0x280   : >> { %819 = vst.msk [vmem:[%s1359_s17 + $0x6c] sm:$0xf] %vm791_vm2, %v784_v35 }
 0x281   : >> { %804 = vst.msk [vmem:[%s1359_s17 + $0x30] sm:$0xf] %vm791_vm2, %v769_v37 }
 0x284   : >> { %v731_v38 = vpop.f32.mrf.mxu2 }
 0x285   : >> { %v777_v39 = vpack.c.bf16 %v731_v38, %v731_v38  ;;  %v751_v40 = vpop.f32.mrf.mxu3  ;;  %v713_v42 = vpop.f32.mrf.mxu1 }
 0x286   : >> { %v785_v41 = vpack.c.bf16 %v751_v40, %v751_v40  ;;  %v770_v43 = vpack.c.bf16 %v713_v42, %v713_v42 }
 0x287   : >> { %812 = vst.msk [vmem:[%s1359_s17 + $0x50] sm:$0xf] %vm791_vm2, %v777_v39 }
 0x288   : >> { %820 = vst.msk [vmem:[%s1359_s17 + $0x70] sm:$0xf] %vm791_vm2, %v785_v41 }
 0x289   : >> { %805 = vst.msk [vmem:[%s1359_s17 + $0x34] sm:$0xf] %vm791_vm2, %v770_v43 }
 0x28c   : >> { %v733_v44 = vpop.f32.mrf.mxu2  ;;  %208 = sbr.rel (!%p206_p5) target bundleno = 16 (0x10), region = 94 }
 0x28d   : >> { %v778_v45 = vpack.c.bf16 %v733_v44, %v733_v44  ;;  %v753_v46 = vpop.f32.mrf.mxu3 }
 0x28e   : >> { %v786_v47 = vpack.c.bf16 %v753_v46, %v753_v46 }
 0x28f   : >> { %813 = vst.msk [vmem:[%s1359_s17 + $0x54] sm:$0xf] %vm791_vm2, %v778_v45 }
 0x290   : >> { %821 = vst.msk [vmem:[%s1359_s17 + $0x74] sm:$0xf] %vm791_vm2, %v786_v47 }
 0x291 PF: > { %s14_s15 = sadd.s32 1, %s1188_s15  }
 0x292   : > { %p11_p6 = scmp.ge.s32.totalorder %s14_s15, 4  }
 0x294   :  { %13 = sbr.rel (!%p11_p6) target bundleno = 1 (0x1), region = 105 }

// kernel: lenet_forward.5
= control target key start
LH: loop header
LB: loop body
LE: loop exit
PB: predicated region body
PF: predicated region fallthrough
CT: control target
= control target key end

     0   :  { %12 = vsyncpa [#allocation4], 0  ;;  %s17630_s0 = inlined_call_operand.vmem [shape: bf16[2,57600], index: 0, kind: input, shape index: {}]   ;;  %s17631_s1 = inlined_call_operand.hbm [shape: bf16[120,57600], index: 1, kind: input, shape index: {}]   ;;  %s17632_s2 = inlined_call_operand.vmem [shape: f32[1,120], index: 2, kind: input, shape index: {}]   ;;  %s17633_s3 = inlined_call_operand.vmem [shape: f32[84,120], index: 3, kind: input, shape index: {}]   ;;  %s17634_s4 = inlined_call_operand.vmem [shape: f32[1,84], index: 4, kind: input, shape index: {}]   ;;  %s17635_s5 = inlined_call_operand.vmem [shape: f32[5,84], index: 5, kind: input, shape index: {}]   ;;  %s17636_s6 = inlined_call_operand.vmem [shape: f32[1,5], index: 6, kind: input, shape index: {}]   ;;  %s17637_s7 = inlined_call_operand.hbm [shape: f32[2,5], index: 7, kind: output, shape index: {}]  }
   0x1   :  { %14 = vsyncpa [#allocation4 + $0x1], 0 }
   0x2   :  { %15 = vsyncpa [#allocation5], 0  ;;  %s15184_s24 = smov 0   ;;  %s15186_s25 = smov 0  }
   0x3   :  { %s15188_s26 = smov 0   ;;  %s15190_s27 = smov 0  }
   0x4 LB: > { %s15203_s28 = sadd.s32 4294967295, %s15137_s27   ;;  %s15206_s29 = sadd.s32 1, %s15137_s27   ;;  %s15137_s27 = sphi %s15190_s27, %s17643_s27   ;;  %s15133_s26 = sphi %s15188_s26, %s17642_s26   ;;  %s15129_s25 = sphi %s15186_s25, %s17641_s25   ;;  %s15125_s24 = sphi %s15184_s24, %s17640_s24  }
   0x5   : > { %s51_s30 = ssub.s32 %s15137_s27, %s15206_s29  ;;  %s54_s8 = sadd.s32 1, %s15133_s26 }
   0x6   : > { %p52_p0 = scmp.eq.s32.totalorder %s51_s30, 0  ;;  %p61_p1 = scmp.ne.s32.totalorder %s15133_s26, %s15129_s25 }
   0x7   : > { %p62_p2 = scmp.eq.s32.totalorder %s15137_s27, 0  ;;  %p67_p3 = scmp.ne.s32.totalorder %s15129_s25, %s15125_s24 }
   0x8   : > { %s15216_s9 = scalar_select %p52_p0, %s15133_s26, %s54_s8  }
   0x9   : > { %p63_p4 = por %p62_p2, %p61_p1  ;;  %p68_p5 = scmp.eq.s32.totalorder %s15203_s28, 0 }
   0xa   : > { %p14998_p6 = scmp.lt.s32.totalorder %s15137_s27, 3  ;;  %s240_s11 = sand.u32 1, %s15133_s26  }
   0xb   : > { %p15220_p7 = por %p68_p5, %p67_p3  ;;  %s14986_s12 = smul.u32 9000, %s240_s11 }
   0xc   : > { %s13935_s13 = smul.u32 600, %s15137_s27  ;;  %p15226_p8 = pnand %p14998_p6, %p63_p4 }
   0xd   : > { %s244_s18 = scalar_lea.vmem [#allocation3], %s14986_s12  ;;  %s241_s21 = scalar_lea.sflag [#allocation4], %s240_s11 }
   0xe   : > { %s249_s17 = scalar_lea.hbm %s17631_s1, %s13935_s13  ;;  %s252_s19 = sshll.u32 %s244_s18, 4  ;;  %s253_s19 = int_to_ptr.vmem [resolvable:$true] %s252_s19 }
   0xf   : > { %s250_s20 = sshll.u32 %s249_s17, 4  ;;  %p15045_p10 = pneg %p15226_p8  ;;  %s251_s20 = int_to_ptr.hbm [resolvable:$true] %s250_s20 }
  0x10   : > { %s15041_s22 = sshra.s32 %s251_s20, 4  ;;  %s15048_s8 = scalar_lea.hbm %s17631_s1, 27000  ;;  %s15042_s22 = int_to_ptr.hbm [resolvable:$true] %s15041_s22 }
  0x11   : > { %s15043_s23 = scalar_lea.hbm %s15042_s22, 9000  ;;  %p15049_p13 = scmp.lt.s32.totalorder %s15042_s22, %s17631_s1 }
  0x12   : > { %p15044_p9 = scmp.ne.s32.totalorder %s15042_s22, %s15043_s23  ;;  %p15050_p0 = scmp.lt.s32.totalorder %s15048_s8, %s15043_s23 }
  0x14   : > { %p15046_p11 = pnand %p15045_p10, %p15044_p9  ;;  %p15051_p1 = por %p15050_p0, %p15049_p13 }
  0x16   : > { %p15047_p12 = pneg %p15046_p11 }
  0x18   : > { %p15052_p2 = pnand %p15051_p1, %p15047_p12 }
  0x1a   : > { %15055 = shalt.err (!%p15052_p2)
}
  0x1b   : > { %s15139_s11 = smov 28800   ;;  %s15140_s12 = smov 9600  }
  0x1c   : > { %s15141_s16 = smov 600   ;;  %p9714_p3 = scmp.ge.s32.totalorder %s15137_s27, 1 }
  0x1d   : > { %14997 = dma.hbm_to_vmem [thread:$0]  (!%p15226_p8), %s251_s20, 144000, %s253_s19, %s241_s21, %s15139_s11, %s15140_s12, %s15141_s16  }
  0x1e   : > { %p260_p4 = scmp.lt.s32.totalorder %s15137_s27, 4 }
  0x20   : > { %p261_p5 = pnand %p9714_p3, %p260_p4 }
  0x21   : > { %s266_s17 = sand.u32 (!%p261_p5), 1, %s15129_s25  }
  0x22   : > { %264 = sbr.rel (%p261_p5) target bundleno = 2927 (0xb6f), region = 48  ;;  %s267_s22 = scalar_lea.sflag (!%p261_p5), [#allocation4], %s266_s17 }
  0x23   : > { %s14987_s18 = smul.u32 (!%p261_p5), 9000, %s266_s17 }
  0x25   : > { %s15246_s23 = scalar_lea.vmem (!%p261_p5), [#allocation3], %s14987_s18 }
  0x27   : > { %15116 = dma.done.wait (%p15220_p7), %s267_s22, 144000  }
  0x28   : > { %15118 = vsyncadd (%p15220_p7), %s267_s22, 4294823296  ;;  %s301_s24 = smul.u32 150, %s15203_s28  ;;  %p9715_p8 = scmp.ne.s32.totalorder %s15203_s28, 0 }
  0x2a   : > { %p302_p6 = scmp.lt.s32.totalorder %s301_s24, 449  ;;  %310 = sbr.rel (%p9715_p8) target bundleno = 49 (0x31), region = 56 }
  0x2c   : > { %s17645_s24 = smov (!%p302_p6, %s301_s24), 449 }
  0x2d   : > { %s15256_s19 = scalar_lea.vmem %s17630_s0, %s17645_s24 }
  0x2f   : > { %vm311_vm0 = vcmask 975872   ;;  %v15142_v0 = vmov 0.0  }
  0x30   : > { %312 = vst.msk [vmem:[#allocation2] sm:$0x3] %vm311_vm0, %v15142_v0 }
  0x31 PF: > { %v1383_v1 = vld [vmem:[%s15246_s23 + $0x20d0] sm:$0xff]  ;;  %v1384_v2 = vld [vmem:[%s15246_s23 + $0x20d8] sm:$0xff]  ;;  %v13318_v11 = vld [vmem:[%s15246_s23 + $0x1c20] sm:$0xf]  ;;  %vm9522_vm1 = vcmask 975872   ;;  %p13916_p7 = scmp.ne.s32.totalorder %s15203_s28, 2 }
  0x32   : > { %v5021_v3 = vunpack.c.l.b16 %v1383_v1  ;;  %v5022_v4 = vunpack.c.h.b16 %v1383_v1  ;;  %v5023_v5 = vunpack.c.l.b16 %v1384_v2  ;;  %v5024_v6 = vunpack.c.h.b16 %v1384_v2  ;;  %v14911_v12 = vld [vmem:[%s15246_s23 + $0x1e74] sm:$0xf0]  ;;  %v14836_v13 = vld [vmem:[%s15246_s23 + $0x1c24] sm:$0xf]  ;;  %v13320_v14 = vld [vmem:[%s15246_s23 + $0x1e78] sm:$0xf0] }
  0x33   : > { %v13326_v15 = vld [vmem:[%s15246_s23 + $0x1c28] sm:$0xf]  ;;  %v14912_v16 = vld [vmem:[%s15246_s23 + $0x1e7c] sm:$0xf0]  ;;  %v14837_v17 = vld [vmem:[%s15246_s23 + $0x1c2c] sm:$0xf]  ;;  %v13319_v19 = vor.u32 %v14911_v12, %v13318_v11  ;;  %v13323_v20 = vor.u32 %v14836_v13, %v13320_v14 }
  0x34   : > { %v6221_v7 = vpack.c.b16 %v5021_v3, %v5021_v3  ;;  %v6222_v8 = vpack.c.b16 %v5022_v4, %v5022_v4  ;;  %v6223_v9 = vpack.c.b16 %v5023_v5, %v5023_v5  ;;  %v6224_v10 = vpack.c.b16 %v5024_v6, %v5024_v6  ;;  %v13328_v18 = vld [vmem:[%s15246_s23 + $0x1e80] sm:$0xf0]  ;;  %v12718_v23 = vld [vmem:[%s15246_s23 + $0x1770] sm:$0xf]  ;;  %v14761_v24 = vld [vmem:[%s15246_s23 + $0x19c4] sm:$0xf0] }
  0x35   : > { %v13327_v21 = vor.u32 %v14912_v16, %v13326_v15  ;;  %v13331_v22 = vor.u32 %v14837_v17, %v13328_v18  ;;  %v14686_v25 = vld [vmem:[%s15246_s23 + $0x1774] sm:$0xf]  ;;  %v12720_v26 = vld [vmem:[%s15246_s23 + $0x19c8] sm:$0xf0]  ;;  %v12726_v27 = vld [vmem:[%s15246_s23 + $0x1778] sm:$0xf]  ;;  %v12719_v31 = vor.u32 %v14761_v24, %v12718_v23 }
  0x36   : > { %7571 = vmatpush.bf16.xpose.msra.mxu0 %v6221_v7  ;;  %7584 = vmatpush.bf16.xpose.msra.mxu1 %v6222_v8  ;;  %v14762_v28 = vld [vmem:[%s15246_s23 + $0x19cc] sm:$0xf0]  ;;  %v14687_v29 = vld [vmem:[%s15246_s23 + $0x177c] sm:$0xf]  ;;  %v12728_v30 = vld [vmem:[%s15246_s23 + $0x19d0] sm:$0xf0]  ;;  %v12723_v32 = vor.u32 %v14686_v25, %v12720_v26 }
  0x37   : > { %7597 = vmatpush.bf16.xpose.msra.mxu2 %v6223_v9  ;;  %7610 = vmatpush.bf16.xpose.msra.mxu3 %v6224_v10  ;;  %v12727_v33 = vor.u32 %v14762_v28, %v12726_v27  ;;  %v12731_v34 = vor.u32 %v14687_v29, %v12728_v30  ;;  %v12118_v35 = vld [vmem:[%s15246_s23 + $0x12c0] sm:$0xf]  ;;  %v14611_v36 = vld [vmem:[%s15246_s23 + $0x1514] sm:$0xf0]  ;;  %v14536_v37 = vld [vmem:[%s15246_s23 + $0x12c4] sm:$0xf] }
  0x38   : > { %v12120_v38 = vld [vmem:[%s15246_s23 + $0x1518] sm:$0xf0]  ;;  %v12126_v39 = vld [vmem:[%s15246_s23 + $0x12c8] sm:$0xf]  ;;  %v14612_v40 = vld [vmem:[%s15246_s23 + $0x151c] sm:$0xf0]  ;;  %v12119_v43 = vor.u32 %v14611_v36, %v12118_v35 }
  0x39   : > { %v14537_v41 = vld [vmem:[%s15246_s23 + $0x12cc] sm:$0xf]  ;;  %v12128_v42 = vld [vmem:[%s15246_s23 + $0x1520] sm:$0xf0]  ;;  %v12123_v44 = vor.u32 %v14536_v37, %v12120_v38  ;;  %v12127_v45 = vor.u32 %v14612_v40, %v12126_v39  ;;  %v11518_v47 = vld [vmem:[%s15246_s23 + $0xe10] sm:$0xf] }
  0x3a   : > { %v12131_v46 = vor.u32 %v14537_v41, %v12128_v42  ;;  %v14461_v48 = vld [vmem:[%s15246_s23 + $0x1064] sm:$0xf0]  ;;  %v14386_v49 = vld [vmem:[%s15246_s23 + $0xe14] sm:$0xf]  ;;  %v11520_v50 = vld [vmem:[%s15246_s23 + $0x1068] sm:$0xf0] }
  0x3b   : > { %v11526_v51 = vld [vmem:[%s15246_s23 + $0xe18] sm:$0xf]  ;;  %v14462_v52 = vld [vmem:[%s15246_s23 + $0x106c] sm:$0xf0]  ;;  %v14387_v53 = vld [vmem:[%s15246_s23 + $0xe1c] sm:$0xf]  ;;  %v11519_v55 = vor.u32 %v14461_v48, %v11518_v47  ;;  %v11523_v56 = vor.u32 %v14386_v49, %v11520_v50 }
  0x3c   : > { %v11528_v54 = vld [vmem:[%s15246_s23 + $0x1070] sm:$0xf0]  ;;  %v11527_v57 = vor.u32 %v14462_v52, %v11526_v51  ;;  %v10918_v59 = vld [vmem:[%s15246_s23 + $0x960] sm:$0xf]  ;;  %v14311_v60 = vld [vmem:[%s15246_s23 + $0xbb4] sm:$0xf0] }
  0x3d   : > { %v11531_v58 = vor.u32 %v14387_v53, %v11528_v54  ;;  %v14236_v61 = vld [vmem:[%s15246_s23 + $0x964] sm:$0xf]  ;;  %v10920_v62 = vld [vmem:[%s15246_s23 + $0xbb8] sm:$0xf0]  ;;  %v10926_v63 = vld [vmem:[%s15246_s23 + $0x968] sm:$0xf]  ;;  %v10919_v3 = vor.u32 %v14311_v60, %v10918_v59 }
  0x3e   : > { %7572 = vmatpush.bf16.xpose.msra.mxu0 %v13319_v19  ;;  %7585 = vmatpush.bf16.xpose.msra.mxu1 %v13323_v20  ;;  %v14312_v0 = vld [vmem:[%s15246_s23 + $0xbbc] sm:$0xf0]  ;;  %v14237_v1 = vld [vmem:[%s15246_s23 + $0x96c] sm:$0xf]  ;;  %v10928_v2 = vld [vmem:[%s15246_s23 + $0xbc0] sm:$0xf0]  ;;  %v10923_v4 = vor.u32 %v14236_v61, %v10920_v62 }
  0x3f   : > { %7598 = vmatpush.bf16.xpose.msra.mxu2 %v13327_v21  ;;  %7611 = vmatpush.bf16.xpose.msra.mxu3 %v13331_v22  ;;  %v10927_v5 = vor.u32 %v14312_v0, %v10926_v63  ;;  %v10931_v6 = vor.u32 %v14237_v1, %v10928_v2  ;;  %v10318_v7 = vld [vmem:[%s15246_s23 + $0x4b0] sm:$0xf]  ;;  %v14161_v8 = vld [vmem:[%s15246_s23 + $0x704] sm:$0xf0]  ;;  %v14086_v9 = vld [vmem:[%s15246_s23 + $0x4b4] sm:$0xf] }
  0x40   : > { %v10320_v10 = vld [vmem:[%s15246_s23 + $0x708] sm:$0xf0]  ;;  %v10326_v11 = vld [vmem:[%s15246_s23 + $0x4b8] sm:$0xf]  ;;  %v14162_v12 = vld [vmem:[%s15246_s23 + $0x70c] sm:$0xf0]  ;;  %v10319_v15 = vor.u32 %v14161_v8, %v10318_v7 }
  0x41   : > { %v14087_v13 = vld [vmem:[%s15246_s23 + $0x4bc] sm:$0xf]  ;;  %v10328_v14 = vld [vmem:[%s15246_s23 + $0x710] sm:$0xf0]  ;;  %v10323_v16 = vor.u32 %v14086_v9, %v10320_v10  ;;  %v10327_v17 = vor.u32 %v14162_v12, %v10326_v11  ;;  %v1385_v19 = vld [vmem:[%s15246_s23 + $0x20e0] sm:$0xff] }
  0x42   : > { %v10331_v18 = vor.u32 %v14087_v13, %v10328_v14  ;;  %v1386_v20 = vld [vmem:[%s15246_s23 + $0x20e8] sm:$0xff]  ;;  %v9718_v21 = vld [vmem:[%s15246_s23] sm:$0xf]  ;;  %v14011_v22 = vld [vmem:[%s15246_s23 + $0x254] sm:$0xf0]  ;;  %v5025_v25 = vunpack.c.l.b16 %v1385_v19  ;;  %v5026_v28 = vunpack.c.h.b16 %v1385_v19 }
  0x43   : > { %v13936_v23 = vld [vmem:[%s15246_s23 + $0x4] sm:$0xf]  ;;  %v9720_v24 = vld [vmem:[%s15246_s23 + $0x258] sm:$0xf0]  ;;  %v9726_v26 = vld [vmem:[%s15246_s23 + $0x8] sm:$0xf]  ;;  %v5027_v29 = vunpack.c.l.b16 %v1386_v20  ;;  %v9719_v30 = vor.u32 %v14011_v22, %v9718_v21 }
  0x44   : > { %v14012_v27 = vld [vmem:[%s15246_s23 + $0x25c] sm:$0xf0]  ;;  %v6225_v36 = vpack.c.b16 %v5025_v25, %v5025_v25  ;;  %v6226_v37 = vpack.c.b16 %v5026_v28, %v5026_v28  ;;  %v13334_v41 = vld [vmem:[%s15246_s23 + $0x1c30] sm:$0xf]  ;;  %v14913_v42 = vld [vmem:[%s15246_s23 + $0x1e84] sm:$0xf0] }
  0x45   : > { %v9727_v35 = vor.u32 %v14012_v27, %v9726_v26  ;;  %v6227_v38 = vpack.c.b16 %v5027_v29, %v5027_v29  ;;  %v13335_v47 = vor.u32 %v14913_v42, %v13334_v41  ;;  %v14839_v48 = vld [vmem:[%s15246_s23 + $0x1c3c] sm:$0xf]  ;;  %v13344_v49 = vld [vmem:[%s15246_s23 + $0x1e90] sm:$0xf0]  ;;  %v12734_v54 = vld [vmem:[%s15246_s23 + $0x1780] sm:$0xf] }
  0x46   : > { %7573 = vmatpush.bf16.xpose.msra.mxu0 %v12719_v31  ;;  %7586 = vmatpush.bf16.xpose.msra.mxu1 %v12723_v32  ;;  %v9723_v31 = vor.u32 %v13936_v23, %v9720_v24  ;;  %v13937_v32 = vld [vmem:[%s15246_s23 + $0xc] sm:$0xf]  ;;  %v13347_v52 = vor.u32 %v14839_v48, %v13344_v49  ;;  %v14764_v59 = vld [vmem:[%s15246_s23 + $0x19dc] sm:$0xf0]  ;;  %v12744_v62 = vld [vmem:[%s15246_s23 + $0x19e0] sm:$0xf0] }
  0x47   : > { %7599 = vmatpush.bf16.xpose.msra.mxu2 %v12727_v33  ;;  %7612 = vmatpush.bf16.xpose.msra.mxu3 %v12731_v34  ;;  %v9728_v33 = vld [vmem:[%s15246_s23 + $0x260] sm:$0xf0]  ;;  %v5028_v34 = vunpack.c.h.b16 %v1386_v20  ;;  %v314_v53 = vld [vmem:[%s15256_s19] sm:$0xff]  ;;  %v11542_v22 = vld [vmem:[%s15246_s23 + $0xe28] sm:$0xf] }
  0x48   : > { %v9731_v39 = vor.u32 %v13937_v32, %v9728_v33  ;;  %1459 = vst [vmem:[#allocation1] ss:$9 sm:$0xff] %v314_v53  ;;  %v14689_v61 = vld [vmem:[%s15246_s23 + $0x178c] sm:$0xf]  ;;  %v12142_v10 = vld [vmem:[%s15246_s23 + $0x12d8] sm:$0xf] }
  0x49   : > { %v6228_v40 = vpack.c.b16 %v5028_v34, %v5028_v34  ;;  %v12747_v1 = vor.u32 %v14689_v61, %v12744_v62  ;;  %v12136_v9 = vld [vmem:[%s15246_s23 + $0x1528] sm:$0xf0]  ;;  %v14614_v11 = vld [vmem:[%s15246_s23 + $0x152c] sm:$0xf0]  ;;  %v14539_v13 = vld [vmem:[%s15246_s23 + $0x12dc] sm:$0xf] }
  0x4a   : > { %v12144_v14 = vld [vmem:[%s15246_s23 + $0x1530] sm:$0xf0]  ;;  %v14463_v19 = vld [vmem:[%s15246_s23 + $0x1074] sm:$0xf0]  ;;  %v14388_v20 = vld [vmem:[%s15246_s23 + $0xe24] sm:$0xf] }
  0x4b   : > { %v11536_v21 = vld [vmem:[%s15246_s23 + $0x1078] sm:$0xf0]  ;;  %v14464_v23 = vld [vmem:[%s15246_s23 + $0x107c] sm:$0xf0]  ;;  %v14389_v25 = vld [vmem:[%s15246_s23 + $0xe2c] sm:$0xf] }
  0x4c   : > { %v11544_v26 = vld [vmem:[%s15246_s23 + $0x1080] sm:$0xf0]  ;;  %v11539_v27 = vor.u32 %v14388_v20, %v11536_v21  ;;  %v11543_v28 = vor.u32 %v14464_v23, %v11542_v22  ;;  %v14238_v32 = vld [vmem:[%s15246_s23 + $0x974] sm:$0xf]  ;;  %v10936_v33 = vld [vmem:[%s15246_s23 + $0xbc8] sm:$0xf0] }
  0x4d   : > { %v11547_v29 = vor.u32 %v14389_v25, %v11544_v26  ;;  %v10942_v34 = vld [vmem:[%s15246_s23 + $0x978] sm:$0xf]  ;;  %v10334_v42 = vld [vmem:[%s15246_s23 + $0x4c0] sm:$0xf]  ;;  %v14089_v49 = vld [vmem:[%s15246_s23 + $0x4cc] sm:$0xf] }
  0x4e   : > { %7574 = vmatpush.bf16.xpose.msra.mxu0 %v12119_v43  ;;  %7587 = vmatpush.bf16.xpose.msra.mxu1 %v12123_v44  ;;  %v14838_v43 = vld [vmem:[%s15246_s23 + $0x1c34] sm:$0xf]  ;;  %v13336_v44 = vld [vmem:[%s15246_s23 + $0x1e88] sm:$0xf0]  ;;  %v14014_v61 = vld [vmem:[%s15246_s23 + $0x26c] sm:$0xf0] }
  0x4f   : > { %7600 = vmatpush.bf16.xpose.msra.mxu2 %v12127_v45  ;;  %7613 = vmatpush.bf16.xpose.msra.mxu3 %v12131_v46  ;;  %v13342_v45 = vld [vmem:[%s15246_s23 + $0x1c38] sm:$0xf]  ;;  %v14914_v46 = vld [vmem:[%s15246_s23 + $0x1e8c] sm:$0xf0]  ;;  %v13339_v50 = vor.u32 %v14838_v43, %v13336_v44  ;;  %v14088_v44 = vld [vmem:[%s15246_s23 + $0x4c4] sm:$0xf] }
  0x50   : > { %v13343_v51 = vor.u32 %v14914_v46, %v13342_v45  ;;  %v1460_v2 = vld [vmem:[#allocation1] sm:$0xff]  ;;  %v1461_v7 = vld [vmem:[#allocation1 + $0x9] sm:$0xff]  ;;  %v10342_v46 = vld [vmem:[%s15246_s23 + $0x4c8] sm:$0xf] }
  0x51   : > { %v1463_v8 = vld [vmem:[#allocation1 + $0x1b] sm:$0xff]  ;;  %v10336_v45 = vld [vmem:[%s15246_s23 + $0x718] sm:$0xf0]  ;;  %v13360_v22 = vld [vmem:[%s15246_s23 + $0x1ea0] sm:$0xf0] }
  0x52   : > { %v14163_v43 = vld [vmem:[%s15246_s23 + $0x714] sm:$0xf0]  ;;  %v14841_v21 = vld [vmem:[%s15246_s23 + $0x1c4c] sm:$0xf] }
  0x53   : > { %v10335_v48 = vor.u32 %v14163_v43, %v10334_v42  ;;  %v1465_v20 = vld [vmem:[#allocation1 + $0x2d] sm:$0xff] }
  0x54   : > { %v14540_v42 = vld [vmem:[%s15246_s23 + $0x12e4] sm:$0xf]  ;;  %v12152_v43 = vld [vmem:[%s15246_s23 + $0x1538] sm:$0xf0] }
  0x56   : > { %7575 = vmatpush.bf16.xpose.msra.mxu0 %v11519_v55  ;;  %7588 = vmatpush.bf16.xpose.msra.mxu1 %v11523_v56  ;;  %v14763_v55 = vld [vmem:[%s15246_s23 + $0x19d4] sm:$0xf0]  ;;  %v14688_v56 = vld [vmem:[%s15246_s23 + $0x1784] sm:$0xf] }
  0x57   : > { %7601 = vmatpush.bf16.xpose.msra.mxu2 %v11527_v57  ;;  %7614 = vmatpush.bf16.xpose.msra.mxu3 %v11531_v58  ;;  %v12736_v57 = vld [vmem:[%s15246_s23 + $0x19d8] sm:$0xf0]  ;;  %v12742_v58 = vld [vmem:[%s15246_s23 + $0x1788] sm:$0xf]  ;;  %v12735_v60 = vor.u32 %v14763_v55, %v12734_v54  ;;  %v1387_v54 = vld [vmem:[%s15246_s23 + $0x20f0] sm:$0xff] }
  0x58   : > { %v12739_v63 = vor.u32 %v14688_v56, %v12736_v57  ;;  %v12743_v0 = vor.u32 %v14764_v59, %v12742_v58  ;;  %v1388_v55 = vld [vmem:[%s15246_s23 + $0x20f8] sm:$0xff]  ;;  %v9734_v56 = vld [vmem:[%s15246_s23 + $0x10] sm:$0xf]  ;;  %v14013_v57 = vld [vmem:[%s15246_s23 + $0x264] sm:$0xf0]  ;;  %v5029_v62 = vunpack.c.l.b16 %v1387_v54 }
  0x59   : > { %v13938_v58 = vld [vmem:[%s15246_s23 + $0x14] sm:$0xf]  ;;  %v9736_v59 = vld [vmem:[%s15246_s23 + $0x268] sm:$0xf0] }
  0x5e   : > { %7576 = vmatpush.bf16.xpose.msra.mxu0 %v10919_v3  ;;  %7589 = vmatpush.bf16.xpose.msra.mxu1 %v10923_v4  ;;  %v1462_v3 = vld [vmem:[#allocation1 + $0x12] sm:$0xff]  ;;  %v12134_v4 = vld [vmem:[%s15246_s23 + $0x12d0] sm:$0xf] }
  0x5f   : > { %7602 = vmatpush.bf16.xpose.msra.mxu2 %v10927_v5  ;;  %7615 = vmatpush.bf16.xpose.msra.mxu3 %v10931_v6  ;;  %v14613_v5 = vld [vmem:[%s15246_s23 + $0x1524] sm:$0xf0]  ;;  %v14538_v6 = vld [vmem:[%s15246_s23 + $0x12d4] sm:$0xf] }
  0x60   : > { %v12135_v12 = vor.u32 %v14613_v5, %v12134_v4  ;;  %v5032_v4 = vunpack.c.h.b16 %v1388_v55  ;;  %v9739_v5 = vor.u32 %v13938_v58, %v9736_v59  ;;  %v14466_v58 = vld [vmem:[%s15246_s23 + $0x108c] sm:$0xf0]  ;;  %v14391_v59 = vld [vmem:[%s15246_s23 + $0xe3c] sm:$0xf] }
  0x66   : > { %7577 = vmatpush.bf16.xpose.msra.mxu0 %v10319_v15  ;;  %7590 = vmatpush.bf16.xpose.msra.mxu1 %v10323_v16  ;;  %v12139_v15 = vor.u32 %v14538_v6, %v12136_v9  ;;  %v12143_v16 = vor.u32 %v14614_v11, %v12142_v10  ;;  %v6232_v11 = vpack.c.b16 %v5032_v4, %v5032_v4  ;;  %v10952_v4 = vld [vmem:[%s15246_s23 + $0xbd8] sm:$0xf0] }
  0x67   : > { %7603 = vmatpush.bf16.xpose.msra.mxu2 %v10327_v17  ;;  %7616 = vmatpush.bf16.xpose.msra.mxu3 %v10331_v18  ;;  %v12147_v17 = vor.u32 %v14539_v13, %v12144_v14  ;;  %v11534_v18 = vld [vmem:[%s15246_s23 + $0xe20] sm:$0xf]  ;;  %v1466_v13 = vld [vmem:[#allocation1 + $0x36] sm:$0xff] }
  0x68   : > { %v11535_v24 = vor.u32 %v14463_v19, %v11534_v18  ;;  %v13350_v14 = vld [vmem:[%s15246_s23 + $0x1c40] sm:$0xf]  ;;  %v13358_v18 = vld [vmem:[%s15246_s23 + $0x1c48] sm:$0xf] }
  0x69   : > { %v14916_v19 = vld [vmem:[%s15246_s23 + $0x1e9c] sm:$0xf0] }
  0x6a   : > { %v13359_v26 = vor.u32 %v14916_v19, %v13358_v18  ;;  %v14166_v18 = vld [vmem:[%s15246_s23 + $0x72c] sm:$0xf0]  ;;  %v14091_v19 = vld [vmem:[%s15246_s23 + $0x4dc] sm:$0xf] }
  0x6e   : > { %7578 = vmatpush.bf16.xpose.msra.mxu0 %v9719_v30  ;;  %7591 = vmatpush.bf16.xpose.msra.mxu1 %v9723_v31  ;;  %v10934_v30 = vld [vmem:[%s15246_s23 + $0x970] sm:$0xf]  ;;  %v14313_v31 = vld [vmem:[%s15246_s23 + $0xbc4] sm:$0xf0] }
  0x6f   : > { %7604 = vmatpush.bf16.xpose.msra.mxu2 %v9727_v35  ;;  %7617 = vmatpush.bf16.xpose.msra.mxu3 %v9731_v39  ;;  %v14314_v35 = vld [vmem:[%s15246_s23 + $0xbcc] sm:$0xf0]  ;;  %v10939_v39 = vor.u32 %v14238_v32, %v10936_v33  ;;  %v12758_v32 = vld [vmem:[%s15246_s23 + $0x1798] sm:$0xf] }
  0x70   : > { %v14766_v33 = vld [vmem:[%s15246_s23 + $0x19ec] sm:$0xf0] }
  0x75   : > { %7579 = vmatmul.bf16.vlgmr.msra.gmra.mxu0 %v1460_v2  ;;  %7592 = vmatmul.bf16.vlgmr.msra.gmra.mxu1 %v1461_v7  ;;  %v13939_v2 = vld [vmem:[%s15246_s23 + $0x1c] sm:$0xf]  ;;  %v6229_v7 = vpack.c.b16 %v5029_v62, %v5029_v62 }
  0x76   : > { %7623 = vmatpush.bf16.xpose.msrb.mxu0 %v6225_v36  ;;  %7636 = vmatpush.bf16.xpose.msrb.mxu1 %v6226_v37  ;;  %v10935_v36 = vor.u32 %v14313_v31, %v10934_v30  ;;  %v14239_v37 = vld [vmem:[%s15246_s23 + $0x97c] sm:$0xf]  ;;  %v14690_v30 = vld [vmem:[%s15246_s23 + $0x1794] sm:$0xf]  ;;  %v12752_v31 = vld [vmem:[%s15246_s23 + $0x19e8] sm:$0xf0] }
  0x77   : > { %7649 = vmatpush.bf16.xpose.msrb.mxu2 %v6227_v38  ;;  %7662 = vmatpush.bf16.xpose.msrb.mxu3 %v6228_v40  ;;  %v10944_v38 = vld [vmem:[%s15246_s23 + $0xbd0] sm:$0xf0]  ;;  %v10943_v40 = vor.u32 %v14314_v35, %v10942_v34  ;;  %v14691_v34 = vld [vmem:[%s15246_s23 + $0x179c] sm:$0xf] }
  0x78   : > { %7605 = vmatmul.bf16.vlgmr.msra.gmra.mxu2 %v1462_v3  ;;  %7618 = vmatmul.bf16.vlgmr.msra.gmra.mxu3 %v1463_v8  ;;  %v10947_v41 = vor.u32 %v14239_v37, %v10944_v38  ;;  %v9744_v3 = vld [vmem:[%s15246_s23 + $0x270] sm:$0xf0]  ;;  %v12755_v37 = vor.u32 %v14690_v30, %v12752_v31  ;;  %v12759_v38 = vor.u32 %v14766_v33, %v12758_v32  ;;  %v9752_v30 = vld [vmem:[%s15246_s23 + $0x278] sm:$0xf0]  ;;  %v9758_v31 = vld [vmem:[%s15246_s23 + $0x28] sm:$0xf] }
  0x79   : > { %v9747_v10 = vor.u32 %v13939_v2, %v9744_v3  ;;  %v12760_v35 = vld [vmem:[%s15246_s23 + $0x19f0] sm:$0xf0]  ;;  %v14315_v2 = vld [vmem:[%s15246_s23 + $0xbd4] sm:$0xf0]  ;;  %v14240_v3 = vld [vmem:[%s15246_s23 + $0x984] sm:$0xf] }
  0x7a   : > { %v14016_v32 = vld [vmem:[%s15246_s23 + $0x27c] sm:$0xf0] }
  0x7e   : > { %7624 = vmatpush.bf16.xpose.msrb.mxu0 %v13335_v47  ;;  %7637 = vmatpush.bf16.xpose.msrb.mxu1 %v13339_v50  ;;  %v14164_v47 = vld [vmem:[%s15246_s23 + $0x71c] sm:$0xf0]  ;;  %v10344_v50 = vld [vmem:[%s15246_s23 + $0x720] sm:$0xf0] }
  0x7f   : > { %7650 = vmatpush.bf16.xpose.msrb.mxu2 %v13343_v51  ;;  %7663 = vmatpush.bf16.xpose.msrb.mxu3 %v13347_v52  ;;  %v10339_v51 = vor.u32 %v14088_v44, %v10336_v45  ;;  %v10343_v52 = vor.u32 %v14164_v47, %v10342_v46  ;;  %v10347_v53 = vor.u32 %v14089_v49, %v10344_v50  ;;  %v12158_v44 = vld [vmem:[%s15246_s23 + $0x12e8] sm:$0xf]  ;;  %v14616_v45 = vld [vmem:[%s15246_s23 + $0x153c] sm:$0xf0]  ;;  %v14541_v46 = vld [vmem:[%s15246_s23 + $0x12ec] sm:$0xf] }
  0x80   : > { %v12160_v47 = vld [vmem:[%s15246_s23 + $0x1540] sm:$0xf0]  ;;  %v12155_v49 = vor.u32 %v14540_v42, %v12152_v43  ;;  %v12159_v50 = vor.u32 %v14616_v45, %v12158_v44 }
  0x86   : > { %7625 = vmatpush.bf16.xpose.msrb.mxu0 %v12735_v60  ;;  %7638 = vmatpush.bf16.xpose.msrb.mxu1 %v12739_v63  ;;  %v9742_v60 = vld [vmem:[%s15246_s23 + $0x18] sm:$0xf]  ;;  %v5030_v63 = vunpack.c.h.b16 %v1387_v54  ;;  %v14465_v54 = vld [vmem:[%s15246_s23 + $0x1084] sm:$0xf0] }
  0x87   : > { %7651 = vmatpush.bf16.xpose.msrb.mxu2 %v12743_v0  ;;  %7664 = vmatpush.bf16.xpose.msrb.mxu3 %v12747_v1  ;;  %v5031_v0 = vunpack.c.l.b16 %v1388_v55  ;;  %v9735_v1 = vor.u32 %v14013_v57, %v9734_v56  ;;  %v9743_v6 = vor.u32 %v14014_v61, %v9742_v60  ;;  %v14390_v55 = vld [vmem:[%s15246_s23 + $0xe34] sm:$0xf]  ;;  %v11552_v56 = vld [vmem:[%s15246_s23 + $0x1088] sm:$0xf0]  ;;  %v11558_v57 = vld [vmem:[%s15246_s23 + $0xe38] sm:$0xf] }
  0x88   : > { %v6230_v8 = vpack.c.b16 %v5030_v63, %v5030_v63  ;;  %v11560_v60 = vld [vmem:[%s15246_s23 + $0x1090] sm:$0xf0]  ;;  %v11555_v62 = vor.u32 %v14390_v55, %v11552_v56  ;;  %v11559_v63 = vor.u32 %v14466_v58, %v11558_v57  ;;  %v14843_v56 = vld [vmem:[%s15246_s23 + $0x1c5c] sm:$0xf] }
  0x89   : > { %v6231_v9 = vpack.c.b16 %v5031_v0, %v5031_v0  ;;  %v11563_v0 = vor.u32 %v14391_v59, %v11560_v60  ;;  %v13376_v57 = vld [vmem:[%s15246_s23 + $0x1eb0] sm:$0xf0] }
  0x8e   : > { %7626 = vmatpush.bf16.xpose.msrb.mxu0 %v12135_v12  ;;  %7639 = vmatpush.bf16.xpose.msrb.mxu1 %v12139_v15  ;;  %v1464_v12 = vld [vmem:[#allocation1 + $0x24] sm:$0xff] }
  0x8f   : > { %7652 = vmatpush.bf16.xpose.msrb.mxu2 %v12143_v16  ;;  %7665 = vmatpush.bf16.xpose.msrb.mxu3 %v12147_v17  ;;  %v14915_v15 = vld [vmem:[%s15246_s23 + $0x1e94] sm:$0xf0]  ;;  %v14840_v16 = vld [vmem:[%s15246_s23 + $0x1c44] sm:$0xf]  ;;  %v13352_v17 = vld [vmem:[%s15246_s23 + $0x1e98] sm:$0xf0] }
  0x90   : > { %v13351_v23 = vor.u32 %v14915_v15, %v13350_v14  ;;  %v13355_v25 = vor.u32 %v14840_v16, %v13352_v17  ;;  %v14165_v14 = vld [vmem:[%s15246_s23 + $0x724] sm:$0xf0]  ;;  %v14090_v15 = vld [vmem:[%s15246_s23 + $0x4d4] sm:$0xf]  ;;  %v10352_v16 = vld [vmem:[%s15246_s23 + $0x728] sm:$0xf0] }
  0x91   : > { %v10358_v17 = vld [vmem:[%s15246_s23 + $0x4d8] sm:$0xf] }
  0x96   : > { %7627 = vmatpush.bf16.xpose.msrb.mxu0 %v11535_v24  ;;  %7640 = vmatpush.bf16.xpose.msrb.mxu1 %v11539_v27  ;;  %v1467_v24 = vld [vmem:[#allocation1 + $0x3f] sm:$0xff]  ;;  %v13363_v27 = vor.u32 %v14841_v21, %v13360_v22  ;;  %v10355_v22 = vor.u32 %v14090_v15, %v10352_v16 }
  0x97   : > { %7653 = vmatpush.bf16.xpose.msrb.mxu2 %v11543_v28  ;;  %7666 = vmatpush.bf16.xpose.msrb.mxu3 %v11547_v29  ;;  %v12750_v28 = vld [vmem:[%s15246_s23 + $0x1790] sm:$0xf]  ;;  %v14765_v29 = vld [vmem:[%s15246_s23 + $0x19e4] sm:$0xf0]  ;;  %v12174_v15 = vld [vmem:[%s15246_s23 + $0x12f8] sm:$0xf] }
  0x98   : > { %v14618_v16 = vld [vmem:[%s15246_s23 + $0x154c] sm:$0xf0] }
  0x9e   : > { %7628 = vmatpush.bf16.xpose.msrb.mxu0 %v10935_v36  ;;  %7641 = vmatpush.bf16.xpose.msrb.mxu1 %v10939_v39  ;;  %v12751_v36 = vor.u32 %v14765_v29, %v12750_v28  ;;  %v12763_v39 = vor.u32 %v14691_v34, %v12760_v35  ;;  %v14015_v28 = vld [vmem:[%s15246_s23 + $0x274] sm:$0xf0]  ;;  %v13940_v29 = vld [vmem:[%s15246_s23 + $0x24] sm:$0xf] }
  0x9f   : > { %7654 = vmatpush.bf16.xpose.msrb.mxu2 %v10943_v40  ;;  %7667 = vmatpush.bf16.xpose.msrb.mxu3 %v10947_v41  ;;  %v12150_v40 = vld [vmem:[%s15246_s23 + $0x12e0] sm:$0xf]  ;;  %v14615_v41 = vld [vmem:[%s15246_s23 + $0x1534] sm:$0xf0] }
  0xa6   : > { %7629 = vmatpush.bf16.xpose.msrb.mxu0 %v10335_v48  ;;  %7642 = vmatpush.bf16.xpose.msrb.mxu1 %v10339_v51  ;;  %v12151_v48 = vor.u32 %v14615_v41, %v12150_v40  ;;  %v12163_v51 = vor.u32 %v14541_v46, %v12160_v47  ;;  %v9755_v40 = vor.u32 %v13940_v29, %v9752_v30  ;;  %v14393_v29 = vld [vmem:[%s15246_s23 + $0xe4c] sm:$0xf]  ;;  %v11576_v30 = vld [vmem:[%s15246_s23 + $0x10a0] sm:$0xf0] }
  0xa7   : > { %7655 = vmatpush.bf16.xpose.msrb.mxu2 %v10343_v52  ;;  %7668 = vmatpush.bf16.xpose.msrb.mxu3 %v10347_v53  ;;  %v11550_v52 = vld [vmem:[%s15246_s23 + $0xe30] sm:$0xf]  ;;  %v315_v53 = vld [vmem:[%s15256_s19 + $0x8] sm:$0xff]  ;;  %v9759_v41 = vor.u32 %v14016_v32, %v9758_v31 }
  0xa8   : > { %1469 = vst [vmem:[#allocation1] ss:$9 sm:$0xff] %v315_v53  ;;  %v11551_v61 = vor.u32 %v14465_v54, %v11550_v52  ;;  %v13368_v52 = vld [vmem:[%s15246_s23 + $0x1ea8] sm:$0xf0]  ;;  %v13374_v53 = vld [vmem:[%s15246_s23 + $0x1c58] sm:$0xf] }
  0xa9   : > { %v14918_v54 = vld [vmem:[%s15246_s23 + $0x1eac] sm:$0xf0] }
  0xae   : > { %7630 = vmatpush.bf16.xpose.msrb.mxu0 %v9735_v1  ;;  %7643 = vmatpush.bf16.xpose.msrb.mxu1 %v9739_v5  ;;  %v10950_v1 = vld [vmem:[%s15246_s23 + $0x980] sm:$0xf]  ;;  %v10958_v5 = vld [vmem:[%s15246_s23 + $0x988] sm:$0xf] }
  0xaf   : > { %7656 = vmatpush.bf16.xpose.msrb.mxu2 %v9743_v6  ;;  %7669 = vmatpush.bf16.xpose.msrb.mxu3 %v9747_v10  ;;  %v14316_v6 = vld [vmem:[%s15246_s23 + $0xbdc] sm:$0xf0]  ;;  %v10955_v10 = vor.u32 %v14240_v3, %v10952_v4  ;;  %v1470_v47 = vld [vmem:[#allocation1] sm:$0xff]  ;;  %v12774_v3 = vld [vmem:[%s15246_s23 + $0x17a8] sm:$0xf] }
  0xb0   : > { %v1471_v55 = vld [vmem:[#allocation1 + $0x9] sm:$0xff]  ;;  %v1473_v59 = vld [vmem:[#allocation1 + $0x1b] sm:$0xff] }
  0xb1   : > { %v14768_v4 = vld [vmem:[%s15246_s23 + $0x19fc] sm:$0xf0] }
  0xb5   : > { %7631 = vmatmul.bf16.vlgmr.msrb.gmra.mxu0 %v1464_v12  ;;  %7644 = vmatmul.bf16.vlgmr.msrb.gmra.mxu1 %v1465_v20  ;;  %v10360_v20 = vld [vmem:[%s15246_s23 + $0x730] sm:$0xf0] }
  0xb6   : > { %7675 = vmatpush.bf16.xpose.msra.mxu0 %v6229_v7  ;;  %7688 = vmatpush.bf16.xpose.msra.mxu1 %v6230_v8  ;;  %v14241_v7 = vld [vmem:[%s15246_s23 + $0x98c] sm:$0xf]  ;;  %v10960_v8 = vld [vmem:[%s15246_s23 + $0xbe0] sm:$0xf0] }
  0xb7   : > { %7701 = vmatpush.bf16.xpose.msra.mxu2 %v6231_v9  ;;  %7714 = vmatpush.bf16.xpose.msra.mxu3 %v6232_v11  ;;  %v10951_v9 = vor.u32 %v14315_v2, %v10950_v1  ;;  %v10959_v11 = vor.u32 %v14316_v6, %v10958_v5  ;;  %v10963_v12 = vor.u32 %v14241_v7, %v10960_v8  ;;  %v14692_v1 = vld [vmem:[%s15246_s23 + $0x17a4] sm:$0xf]  ;;  %v12768_v2 = vld [vmem:[%s15246_s23 + $0x19f8] sm:$0xf0]  ;;  %v14693_v5 = vld [vmem:[%s15246_s23 + $0x17ac] sm:$0xf] }
  0xb8   : > { %7657 = vmatmul.bf16.vlgmr.msrb.gmra.mxu2 %v1466_v13  ;;  %7670 = vmatmul.bf16.vlgmr.msrb.gmra.mxu3 %v1467_v24  ;;  %v10350_v13 = vld [vmem:[%s15246_s23 + $0x4d0] sm:$0xf]  ;;  %v10363_v24 = vor.u32 %v14091_v19, %v10360_v20  ;;  %v12776_v6 = vld [vmem:[%s15246_s23 + $0x1a00] sm:$0xf0]  ;;  %v12771_v8 = vor.u32 %v14692_v1, %v12768_v2 }
  0xb9   : > { %v10351_v21 = vor.u32 %v14165_v14, %v10350_v13  ;;  %v14542_v13 = vld [vmem:[%s15246_s23 + $0x12f4] sm:$0xf]  ;;  %v12168_v14 = vld [vmem:[%s15246_s23 + $0x1548] sm:$0xf0] }
  0xba   : > { %v12171_v20 = vor.u32 %v14542_v13, %v12168_v14  ;;  %v14018_v13 = vld [vmem:[%s15246_s23 + $0x28c] sm:$0xf0] }
  0xbe   : > { %7676 = vmatpush.bf16.xpose.msra.mxu0 %v13351_v23  ;;  %7689 = vmatpush.bf16.xpose.msra.mxu1 %v13355_v25  ;;  %v10359_v23 = vor.u32 %v14166_v18, %v10358_v17  ;;  %v1389_v25 = vld [vmem:[%s15246_s23 + $0x2100] sm:$0xff]  ;;  %v14543_v17 = vld [vmem:[%s15246_s23 + $0x12fc] sm:$0xf]  ;;  %v12176_v18 = vld [vmem:[%s15246_s23 + $0x1550] sm:$0xf0] }
  0xbf   : > { %7702 = vmatpush.bf16.xpose.msra.mxu2 %v13359_v26  ;;  %7715 = vmatpush.bf16.xpose.msra.mxu3 %v13363_v27  ;;  %v1390_v26 = vld [vmem:[%s15246_s23 + $0x2108] sm:$0xff]  ;;  %v9750_v27 = vld [vmem:[%s15246_s23 + $0x20] sm:$0xf]  ;;  %v5033_v33 = vunpack.c.l.b16 %v1389_v25  ;;  %v5034_v34 = vunpack.c.h.b16 %v1389_v25  ;;  %v14392_v25 = vld [vmem:[%s15246_s23 + $0xe44] sm:$0xf] }
  0xc0   : > { %v5035_v35 = vunpack.c.l.b16 %v1390_v26 }
  0xc1   : > { %v6233_v42 = vpack.c.b16 %v5033_v33, %v5033_v33  ;;  %v6234_v43 = vpack.c.b16 %v5034_v34, %v5034_v34 }
  0xc2   : > { %v6235_v44 = vpack.c.b16 %v5035_v35, %v5035_v35 }
  0xc6   : > { %7677 = vmatpush.bf16.xpose.msra.mxu0 %v12751_v36  ;;  %7690 = vmatpush.bf16.xpose.msra.mxu1 %v12755_v37  ;;  %v9751_v36 = vor.u32 %v14015_v28, %v9750_v27  ;;  %v13941_v37 = vld [vmem:[%s15246_s23 + $0x2c] sm:$0xf]  ;;  %v11574_v27 = vld [vmem:[%s15246_s23 + $0xe48] sm:$0xf]  ;;  %v14468_v28 = vld [vmem:[%s15246_s23 + $0x109c] sm:$0xf0] }
  0xc7   : > { %7703 = vmatpush.bf16.xpose.msra.mxu2 %v12759_v38  ;;  %7716 = vmatpush.bf16.xpose.msra.mxu3 %v12763_v39  ;;  %v9760_v38 = vld [vmem:[%s15246_s23 + $0x280] sm:$0xf0]  ;;  %v5036_v39 = vunpack.c.h.b16 %v1390_v26  ;;  %v11568_v26 = vld [vmem:[%s15246_s23 + $0x1098] sm:$0xf0]  ;;  %v11575_v35 = vor.u32 %v14468_v28, %v11574_v27 }
  0xc8   : > { %v9763_v45 = vor.u32 %v13941_v37, %v9760_v38  ;;  %v11571_v34 = vor.u32 %v14392_v25, %v11568_v26  ;;  %v11579_v37 = vor.u32 %v14393_v29, %v11576_v30  ;;  %v1474_v28 = vld [vmem:[#allocation1 + $0x24] sm:$0xff]  ;;  %v1476_v29 = vld [vmem:[#allocation1 + $0x36] sm:$0xff] }
  0xc9   : > { %v6236_v46 = vpack.c.b16 %v5036_v39, %v5036_v39  ;;  %v10966_v39 = vld [vmem:[%s15246_s23 + $0x990] sm:$0xf]  ;;  %v13382_v30 = vld [vmem:[%s15246_s23 + $0x1c60] sm:$0xf] }
  0xce   : > { %7678 = vmatpush.bf16.xpose.msra.mxu0 %v12151_v48  ;;  %7691 = vmatpush.bf16.xpose.msra.mxu1 %v12155_v49  ;;  %v1472_v48 = vld [vmem:[#allocation1 + $0x12] sm:$0xff]  ;;  %v13366_v49 = vld [vmem:[%s15246_s23 + $0x1c50] sm:$0xf] }
  0xcf   : > { %7704 = vmatpush.bf16.xpose.msra.mxu2 %v12159_v50  ;;  %7717 = vmatpush.bf16.xpose.msra.mxu3 %v12163_v51  ;;  %v14917_v50 = vld [vmem:[%s15246_s23 + $0x1ea4] sm:$0xf0]  ;;  %v14842_v51 = vld [vmem:[%s15246_s23 + $0x1c54] sm:$0xf] }
  0xd0   : > { %v13367_v58 = vor.u32 %v14917_v50, %v13366_v49  ;;  %v13371_v60 = vor.u32 %v14842_v51, %v13368_v52 }
  0xd6   : > { %7679 = vmatpush.bf16.xpose.msra.mxu0 %v11551_v61  ;;  %7692 = vmatpush.bf16.xpose.msra.mxu1 %v11555_v62  ;;  %v13375_v61 = vor.u32 %v14918_v54, %v13374_v53  ;;  %v13379_v62 = vor.u32 %v14843_v56, %v13376_v57  ;;  %v10366_v57 = vld [vmem:[%s15246_s23 + $0x4e0] sm:$0xf] }
  0xd7   : > { %7705 = vmatpush.bf16.xpose.msra.mxu2 %v11559_v63  ;;  %7718 = vmatpush.bf16.xpose.msra.mxu3 %v11563_v0  ;;  %v12766_v63 = vld [vmem:[%s15246_s23 + $0x17a0] sm:$0xf]  ;;  %v14767_v0 = vld [vmem:[%s15246_s23 + $0x19f4] sm:$0xf0] }
  0xd8   : > { %v12767_v7 = vor.u32 %v14767_v0, %v12766_v63  ;;  %v14093_v63 = vld [vmem:[%s15246_s23 + $0x4ec] sm:$0xf]  ;;  %v10376_v0 = vld [vmem:[%s15246_s23 + $0x740] sm:$0xf0] }
  0xde   : > { %7680 = vmatpush.bf16.xpose.msra.mxu0 %v10951_v9  ;;  %7693 = vmatpush.bf16.xpose.msra.mxu1 %v10955_v10  ;;  %v12775_v9 = vor.u32 %v14768_v4, %v12774_v3  ;;  %v12779_v10 = vor.u32 %v14693_v5, %v12776_v6  ;;  %v10379_v5 = vor.u32 %v14093_v63, %v10376_v0  ;;  %v1391_v6 = vld [vmem:[%s15246_s23 + $0x2110] sm:$0xff]  ;;  %v14544_v63 = vld [vmem:[%s15246_s23 + $0x1304] sm:$0xf]  ;;  %v12184_v0 = vld [vmem:[%s15246_s23 + $0x1558] sm:$0xf0] }
  0xdf   : > { %7706 = vmatpush.bf16.xpose.msra.mxu2 %v10959_v11  ;;  %7719 = vmatpush.bf16.xpose.msra.mxu3 %v10963_v12  ;;  %v12166_v11 = vld [vmem:[%s15246_s23 + $0x12f0] sm:$0xf]  ;;  %v14617_v12 = vld [vmem:[%s15246_s23 + $0x1544] sm:$0xf0]  ;;  %v5037_v14 = vunpack.c.l.b16 %v1391_v6 }
  0xe0   : > { %v12167_v19 = vor.u32 %v14617_v12, %v12166_v11  ;;  %v9768_v11 = vld [vmem:[%s15246_s23 + $0x288] sm:$0xf0]  ;;  %v9774_v12 = vld [vmem:[%s15246_s23 + $0x38] sm:$0xf] }
  0xe6   : > { %7681 = vmatpush.bf16.xpose.msra.mxu0 %v10351_v21  ;;  %7694 = vmatpush.bf16.xpose.msra.mxu1 %v10355_v22  ;;  %v12175_v21 = vor.u32 %v14618_v16, %v12174_v15  ;;  %v12179_v22 = vor.u32 %v14543_v17, %v12176_v18  ;;  %v5038_v15 = vunpack.c.h.b16 %v1391_v6  ;;  %v13943_v18 = vld [vmem:[%s15246_s23 + $0x3c] sm:$0xf]  ;;  %v12187_v6 = vor.u32 %v14544_v63, %v12184_v0 }
  0xe7   : > { %7707 = vmatpush.bf16.xpose.msra.mxu2 %v10359_v23  ;;  %7720 = vmatpush.bf16.xpose.msra.mxu3 %v10363_v24  ;;  %v11566_v23 = vld [vmem:[%s15246_s23 + $0xe40] sm:$0xf]  ;;  %v14467_v24 = vld [vmem:[%s15246_s23 + $0x1094] sm:$0xf0] }
  0xe8   : > { %v11567_v32 = vor.u32 %v14467_v24, %v11566_v23  ;;  %v6237_v23 = vpack.c.b16 %v5037_v14, %v5037_v14  ;;  %v6238_v24 = vpack.c.b16 %v5038_v15, %v5038_v15  ;;  %v11582_v14 = vld [vmem:[%s15246_s23 + $0xe50] sm:$0xf]  ;;  %v316_v15 = vld [vmem:[%s15256_s19 + $0x10] sm:$0xff] }
  0xee   : > { %7682 = vmatpush.bf16.xpose.msra.mxu0 %v9751_v36  ;;  %7695 = vmatpush.bf16.xpose.msra.mxu1 %v9755_v40  ;;  %v14317_v40 = vld [vmem:[%s15246_s23 + $0xbe4] sm:$0xf0] }
  0xef   : > { %7708 = vmatpush.bf16.xpose.msra.mxu2 %v9759_v41  ;;  %7721 = vmatpush.bf16.xpose.msra.mxu3 %v9763_v45  ;;  %v14242_v41 = vld [vmem:[%s15246_s23 + $0x994] sm:$0xf]  ;;  %v14318_v45 = vld [vmem:[%s15246_s23 + $0xbec] sm:$0xf0]  ;;  %v10967_v50 = vor.u32 %v14317_v40, %v10966_v39 }
  0xf0   : > { %v1477_v40 = vld [vmem:[#allocation1 + $0x3f] sm:$0xff] }
  0xf2   : > { %v7580_v31 = vpop.f32.mrf.mxu0  ;;  %v7593_v33 = vpop.f32.mrf.mxu1 }
  0xf3   : > { %v7594_v36 = vadd.f32 %v7593_v33, %v7580_v31  ;;  %v14919_v31 = vld [vmem:[%s15246_s23 + $0x1eb4] sm:$0xf0]  ;;  %v13384_v33 = vld [vmem:[%s15246_s23 + $0x1eb8] sm:$0xf0] }
  0xf4   : > { %v13383_v39 = vor.u32 %v14919_v31, %v13382_v30  ;;  %v14319_v30 = vld [vmem:[%s15246_s23 + $0xbf4] sm:$0xf0]  ;;  %v14244_v31 = vld [vmem:[%s15246_s23 + $0x9a4] sm:$0xf] }
  0xf5   : > { %7683 = vmatmul.bf16.vlgmr.msra.gmra.mxu0 %v1470_v47  ;;  %7696 = vmatmul.bf16.vlgmr.msra.gmra.mxu1 %v1471_v55  ;;  %v10976_v47 = vld [vmem:[%s15246_s23 + $0xbf0] sm:$0xf0] }
  0xf6   : > { %7727 = vmatpush.bf16.xpose.msrb.mxu0 %v6233_v42  ;;  %7740 = vmatpush.bf16.xpose.msrb.mxu1 %v6234_v43  ;;  %v10968_v43 = vld [vmem:[%s15246_s23 + $0xbe8] sm:$0xf0] }
  0xf7   : > { %7753 = vmatpush.bf16.xpose.msrb.mxu2 %v6235_v44  ;;  %7766 = vmatpush.bf16.xpose.msrb.mxu3 %v6236_v46  ;;  %v10974_v44 = vld [vmem:[%s15246_s23 + $0x998] sm:$0xf]  ;;  %v14243_v46 = vld [vmem:[%s15246_s23 + $0x99c] sm:$0xf]  ;;  %v10971_v53 = vor.u32 %v14242_v41, %v10968_v43 }
  0xf8   : > { %7709 = vmatmul.bf16.vlgmr.msra.gmra.mxu2 %v1472_v48  ;;  %7722 = vmatmul.bf16.vlgmr.msra.gmra.mxu3 %v1473_v59  ;;  %v10975_v54 = vor.u32 %v14318_v45, %v10974_v44  ;;  %v10979_v55 = vor.u32 %v14243_v46, %v10976_v47  ;;  %v14092_v59 = vld [vmem:[%s15246_s23 + $0x4e4] sm:$0xf]  ;;  %v12782_v44 = vld [vmem:[%s15246_s23 + $0x17b0] sm:$0xf]  ;;  %v14769_v45 = vld [vmem:[%s15246_s23 + $0x1a04] sm:$0xf0] }
  0xf9   : > { %v14694_v46 = vld [vmem:[%s15246_s23 + $0x17b4] sm:$0xf]  ;;  %v12784_v47 = vld [vmem:[%s15246_s23 + $0x1a08] sm:$0xf0] }
  0xfa   : > { %v7582_v48 = vpop.f32.mrf.mxu0  ;;  %v7595_v52 = vpop.f32.mrf.mxu1 }
  0xfb   : > { %v7606_v38 = vpop.f32.mrf.mxu2  ;;  %v7619_v49 = vpop.f32.mrf.mxu3  ;;  %v12790_v48 = vld [vmem:[%s15246_s23 + $0x17b8] sm:$0xf]  ;;  %v12792_v52 = vld [vmem:[%s15246_s23 + $0x1a10] sm:$0xf0] }
  0xfc   : > { %v7607_v42 = vadd.f32 %v7606_v38, %v7594_v36  ;;  %v1475_v36 = vld [vmem:[#allocation1 + $0x2d] sm:$0xff] }
  0xfd   : > { %v13392_v38 = vld [vmem:[%s15246_s23 + $0x1ec0] sm:$0xf0]  ;;  %1479 = vst [vmem:[#allocation1] ss:$9 sm:$0xff] %v316_v15  ;;  %v14921_v15 = vld [vmem:[%s15246_s23 + $0x1ec4] sm:$0xf0] }
  0xfe   : > { %7728 = vmatpush.bf16.xpose.msrb.mxu0 %v13367_v58  ;;  %7741 = vmatpush.bf16.xpose.msrb.mxu1 %v13371_v60  ;;  %v15477_v51 = vadd.f32 %v7619_v49, %v7607_v42  ;;  %v14167_v58 = vld [vmem:[%s15246_s23 + $0x734] sm:$0xf0]  ;;  %v10368_v60 = vld [vmem:[%s15246_s23 + $0x738] sm:$0xf0]  ;;  %v14770_v49 = vld [vmem:[%s15246_s23 + $0x1a0c] sm:$0xf0] }
  0xff   : > { %7754 = vmatpush.bf16.xpose.msrb.mxu2 %v13375_v61  ;;  %7767 = vmatpush.bf16.xpose.msrb.mxu3 %v13379_v62  ;;  %v10374_v61 = vld [vmem:[%s15246_s23 + $0x4e8] sm:$0xf]  ;;  %v14168_v62 = vld [vmem:[%s15246_s23 + $0x73c] sm:$0xf0]  ;;  %v10367_v2 = vor.u32 %v14167_v58, %v10366_v57  ;;  %v10371_v3 = vor.u32 %v14092_v59, %v10368_v60 }
 0x100   : > { %v10375_v4 = vor.u32 %v14168_v62, %v10374_v61  ;;  %v12182_v61 = vld [vmem:[%s15246_s23 + $0x1300] sm:$0xf]  ;;  %v14619_v62 = vld [vmem:[%s15246_s23 + $0x1554] sm:$0xf0] }
 0x103   : > { %v7608_v56 = vpop.f32.mrf.mxu2  ;;  %v7621_v1 = vpop.f32.mrf.mxu3 }
 0x104   : > { %v12190_v1 = vld [vmem:[%s15246_s23 + $0x1308] sm:$0xf] }
 0x106   : > { %7729 = vmatpush.bf16.xpose.msrb.mxu0 %v12767_v7  ;;  %7742 = vmatpush.bf16.xpose.msrb.mxu1 %v12771_v8  ;;  %v1392_v7 = vld [vmem:[%s15246_s23 + $0x2118] sm:$0xff]  ;;  %v9766_v8 = vld [vmem:[%s15246_s23 + $0x30] sm:$0xf] }
 0x107   : > { %7755 = vmatpush.bf16.xpose.msrb.mxu2 %v12775_v9  ;;  %7768 = vmatpush.bf16.xpose.msrb.mxu3 %v12779_v10  ;;  %v14017_v9 = vld [vmem:[%s15246_s23 + $0x284] sm:$0xf0]  ;;  %v13942_v10 = vld [vmem:[%s15246_s23 + $0x34] sm:$0xf]  ;;  %v5039_v16 = vunpack.c.l.b16 %v1392_v7 }
 0x108   : > { %v9767_v17 = vor.u32 %v14017_v9, %v9766_v8 }
 0x109   : > { %v6239_v25 = vpack.c.b16 %v5039_v16, %v5039_v16  ;;  %v14469_v16 = vld [vmem:[%s15246_s23 + $0x10a4] sm:$0xf0] }
 0x10e   : > { %7730 = vmatpush.bf16.xpose.msrb.mxu0 %v12167_v19  ;;  %7743 = vmatpush.bf16.xpose.msrb.mxu1 %v12171_v20  ;;  %v9776_v19 = vld [vmem:[%s15246_s23 + $0x290] sm:$0xf0]  ;;  %v5040_v20 = vunpack.c.h.b16 %v1392_v7 }
 0x10f   : > { %7756 = vmatpush.bf16.xpose.msrb.mxu2 %v12175_v21  ;;  %7769 = vmatpush.bf16.xpose.msrb.mxu3 %v12179_v22  ;;  %v9771_v21 = vor.u32 %v13942_v10, %v9768_v11  ;;  %v9775_v22 = vor.u32 %v14018_v13, %v9774_v12  ;;  %v9779_v26 = vor.u32 %v13943_v18, %v9776_v19  ;;  %v11584_v18 = vld [vmem:[%s15246_s23 + $0x10a8] sm:$0xf0]  ;;  %v11590_v19 = vld [vmem:[%s15246_s23 + $0xe58] sm:$0xf] }
 0x110   : > { %v6240_v27 = vpack.c.b16 %v5040_v20, %v5040_v20  ;;  %v14470_v20 = vld [vmem:[%s15246_s23 + $0x10ac] sm:$0xf0] }
 0x116   : > { %7731 = vmatpush.bf16.xpose.msrb.mxu0 %v11567_v32  ;;  %7744 = vmatpush.bf16.xpose.msrb.mxu1 %v11571_v34  ;;  %v14844_v32 = vld [vmem:[%s15246_s23 + $0x1c64] sm:$0xf]  ;;  %v13390_v34 = vld [vmem:[%s15246_s23 + $0x1c68] sm:$0xf] }
 0x117   : > { %7757 = vmatpush.bf16.xpose.msrb.mxu2 %v11575_v35  ;;  %7770 = vmatpush.bf16.xpose.msrb.mxu3 %v11579_v37  ;;  %v14920_v35 = vld [vmem:[%s15246_s23 + $0x1ebc] sm:$0xf0]  ;;  %v14845_v37 = vld [vmem:[%s15246_s23 + $0x1c6c] sm:$0xf]  ;;  %v13387_v41 = vor.u32 %v14844_v32, %v13384_v33  ;;  %v10984_v32 = vld [vmem:[%s15246_s23 + $0xbf8] sm:$0xf0] }
 0x118   : > { %v13391_v42 = vor.u32 %v14920_v35, %v13390_v34  ;;  %v13395_v43 = vor.u32 %v14845_v37, %v13392_v38  ;;  %v10990_v33 = vld [vmem:[%s15246_s23 + $0x9a8] sm:$0xf]  ;;  %v14320_v34 = vld [vmem:[%s15246_s23 + $0xbfc] sm:$0xf0]  ;;  %v14245_v35 = vld [vmem:[%s15246_s23 + $0x9ac] sm:$0xf]  ;;  %v10987_v38 = vor.u32 %v14244_v31, %v10984_v32 }
 0x119   : > { %v12800_v31 = vld [vmem:[%s15246_s23 + $0x1a18] sm:$0xf0]  ;;  %v12806_v32 = vld [vmem:[%s15246_s23 + $0x17c8] sm:$0xf] }
 0x11e   : > { %7732 = vmatpush.bf16.xpose.msrb.mxu0 %v10967_v50  ;;  %7745 = vmatpush.bf16.xpose.msrb.mxu1 %v10971_v53  ;;  %v14695_v50 = vld [vmem:[%s15246_s23 + $0x17bc] sm:$0xf]  ;;  %v12783_v53 = vor.u32 %v14769_v45, %v12782_v44  ;;  %v10384_v44 = vld [vmem:[%s15246_s23 + $0x748] sm:$0xf0]  ;;  %v10390_v45 = vld [vmem:[%s15246_s23 + $0x4f8] sm:$0xf] }
 0x11f   : > { %7758 = vmatpush.bf16.xpose.msrb.mxu2 %v10975_v54  ;;  %7771 = vmatpush.bf16.xpose.msrb.mxu3 %v10979_v55  ;;  %v12787_v54 = vor.u32 %v14694_v46, %v12784_v47  ;;  %v12791_v55 = vor.u32 %v14770_v49, %v12790_v48  ;;  %v12795_v57 = vor.u32 %v14695_v50, %v12792_v52  ;;  %v14170_v46 = vld [vmem:[%s15246_s23 + $0x74c] sm:$0xf0]  ;;  %v14095_v47 = vld [vmem:[%s15246_s23 + $0x4fc] sm:$0xf]  ;;  %v10392_v48 = vld [vmem:[%s15246_s23 + $0x750] sm:$0xf0] }
 0x120   : > { %v10391_v52 = vor.u32 %v14170_v46, %v10390_v45  ;;  %v14621_v45 = vld [vmem:[%s15246_s23 + $0x1564] sm:$0xf0]  ;;  %v14546_v46 = vld [vmem:[%s15246_s23 + $0x1314] sm:$0xf] }
 0x126   : > { %7733 = vmatpush.bf16.xpose.msrb.mxu0 %v10367_v2  ;;  %7746 = vmatpush.bf16.xpose.msrb.mxu1 %v10371_v3  ;;  %v14620_v2 = vld [vmem:[%s15246_s23 + $0x155c] sm:$0xf0]  ;;  %v14545_v3 = vld [vmem:[%s15246_s23 + $0x130c] sm:$0xf] }
 0x127   : > { %7759 = vmatpush.bf16.xpose.msrb.mxu2 %v10375_v4  ;;  %7772 = vmatpush.bf16.xpose.msrb.mxu3 %v10379_v5  ;;  %v12192_v4 = vld [vmem:[%s15246_s23 + $0x1560] sm:$0xf0]  ;;  %v12183_v5 = vor.u32 %v14619_v62, %v12182_v61  ;;  %v12191_v7 = vor.u32 %v14620_v2, %v12190_v1  ;;  %v14020_v61 = vld [vmem:[%s15246_s23 + $0x29c] sm:$0xf0]  ;;  %v13945_v2 = vld [vmem:[%s15246_s23 + $0x4c] sm:$0xf] }
 0x128   : > { %v12195_v9 = vor.u32 %v14545_v3, %v12192_v4  ;;  %v9792_v3 = vld [vmem:[%s15246_s23 + $0x2a0] sm:$0xf0] }
 0x12e   : > { %7734 = vmatpush.bf16.xpose.msrb.mxu0 %v9767_v17  ;;  %7747 = vmatpush.bf16.xpose.msrb.mxu1 %v9771_v21  ;;  %v14394_v17 = vld [vmem:[%s15246_s23 + $0xe54] sm:$0xf]  ;;  %v14395_v21 = vld [vmem:[%s15246_s23 + $0xe5c] sm:$0xf] }
 0x12f   : > { %7760 = vmatpush.bf16.xpose.msrb.mxu2 %v9775_v22  ;;  %7773 = vmatpush.bf16.xpose.msrb.mxu3 %v9779_v26  ;;  %v11592_v22 = vld [vmem:[%s15246_s23 + $0x10b0] sm:$0xf0] }
 0x132   : > { %v7632_v56 = vpop.f32.mrf.mxu0  ;;  %v7645_v59 = vpop.f32.mrf.mxu1 }
 0x133   : > { %v7633_v58 = vadd.f32 %v7632_v56, %v15477_v51  ;;  %v9782_v56 = vld [vmem:[%s15246_s23 + $0x40] sm:$0xf] }
 0x135   : > { %7735 = vmatmul.bf16.vlgmr.msrb.gmra.mxu0 %v1474_v28  ;;  %7748 = vmatmul.bf16.vlgmr.msrb.gmra.mxu1 %v1475_v36  ;;  %v7646_v60 = vadd.f32 %v7645_v59, %v7633_v58  ;;  %v10992_v36 = vld [vmem:[%s15246_s23 + $0xc00] sm:$0xf0]  ;;  %v9784_v59 = vld [vmem:[%s15246_s23 + $0x298] sm:$0xf0] }
 0x136   : > { %7779 = vmatpush.bf16.xpose.msra.mxu0 %v6237_v23  ;;  %7792 = vmatpush.bf16.xpose.msra.mxu1 %v6238_v24  ;;  %v11583_v23 = vor.u32 %v14469_v16, %v11582_v14  ;;  %v11587_v24 = vor.u32 %v14394_v17, %v11584_v18  ;;  %v13944_v58 = vld [vmem:[%s15246_s23 + $0x44] sm:$0xf]  ;;  %v13398_v14 = vld [vmem:[%s15246_s23 + $0x1c70] sm:$0xf]  ;;  %v14846_v16 = vld [vmem:[%s15246_s23 + $0x1c74] sm:$0xf] }
 0x137   : > { %7805 = vmatpush.bf16.xpose.msra.mxu2 %v6239_v25  ;;  %7818 = vmatpush.bf16.xpose.msra.mxu3 %v6240_v27  ;;  %v11591_v25 = vor.u32 %v14470_v20, %v11590_v19  ;;  %v11595_v27 = vor.u32 %v14395_v21, %v11592_v22  ;;  %v13400_v17 = vld [vmem:[%s15246_s23 + $0x1ec8] sm:$0xf0]  ;;  %v13406_v18 = vld [vmem:[%s15246_s23 + $0x1c78] sm:$0xf]  ;;  %v14922_v19 = vld [vmem:[%s15246_s23 + $0x1ecc] sm:$0xf0] }
 0x138   : > { %7761 = vmatmul.bf16.vlgmr.msrb.gmra.mxu2 %v1476_v29  ;;  %7774 = vmatmul.bf16.vlgmr.msrb.gmra.mxu3 %v1477_v40  ;;  %v10982_v29 = vld [vmem:[%s15246_s23 + $0x9a0] sm:$0xf]  ;;  %v10995_v40 = vor.u32 %v14245_v35, %v10992_v36  ;;  %v14847_v21 = vld [vmem:[%s15246_s23 + $0x1c7c] sm:$0xf]  ;;  %v13408_v22 = vld [vmem:[%s15246_s23 + $0x1ed0] sm:$0xf0] }
 0x139   : > { %v10983_v37 = vor.u32 %v14319_v30, %v10982_v29  ;;  %v1481_v20 = vld [vmem:[#allocation1 + $0x9] sm:$0xff] }
 0x13a   : > { %v7634_v10 = vpop.f32.mrf.mxu0  ;;  %v7647_v12 = vpop.f32.mrf.mxu1  ;;  %v14771_v29 = vld [vmem:[%s15246_s23 + $0x1a14] sm:$0xf0]  ;;  %v14696_v30 = vld [vmem:[%s15246_s23 + $0x17c4] sm:$0xf] }
 0x13b   : > { %v7658_v51 = vpop.f32.mrf.mxu2  ;;  %v7671_v11 = vpop.f32.mrf.mxu3  ;;  %v1482_v12 = vld [vmem:[#allocation1 + $0x12] sm:$0xff] }
 0x13c   : > { %v7659_v8 = vadd.f32 %v7658_v51, %v7646_v60  ;;  %v9790_v60 = vld [vmem:[%s15246_s23 + $0x48] sm:$0xf]  ;;  %v12808_v35 = vld [vmem:[%s15246_s23 + $0x1a20] sm:$0xf0] }
 0x13d   : > { %v9791_v51 = vor.u32 %v14020_v61, %v9790_v60 }
 0x13e   : > { %7780 = vmatpush.bf16.xpose.msra.mxu0 %v13383_v39  ;;  %7793 = vmatpush.bf16.xpose.msra.mxu1 %v13387_v41  ;;  %v15522_v13 = vadd.f32 %v7671_v11, %v7659_v8  ;;  %v10991_v39 = vor.u32 %v14320_v34, %v10990_v33  ;;  %v10382_v41 = vld [vmem:[%s15246_s23 + $0x4f0] sm:$0xf]  ;;  %v14772_v33 = vld [vmem:[%s15246_s23 + $0x1a1c] sm:$0xf0]  ;;  %v14697_v34 = vld [vmem:[%s15246_s23 + $0x17cc] sm:$0xf] }
 0x13f   : > { %7806 = vmatpush.bf16.xpose.msra.mxu2 %v13391_v42  ;;  %7819 = vmatpush.bf16.xpose.msra.mxu3 %v13395_v43  ;;  %v14169_v42 = vld [vmem:[%s15246_s23 + $0x744] sm:$0xf0]  ;;  %v14094_v43 = vld [vmem:[%s15246_s23 + $0x4f4] sm:$0xf] }
 0x140   : > { %v10383_v49 = vor.u32 %v14169_v42, %v10382_v41  ;;  %v10387_v50 = vor.u32 %v14094_v43, %v10384_v44  ;;  %v1480_v11 = vld [vmem:[#allocation1] sm:$0xff] }
 0x141   : > { %v12198_v44 = vld [vmem:[%s15246_s23 + $0x1310] sm:$0xf] }
 0x143   : > { %v7660_v26 = vpop.f32.mrf.mxu2  ;;  %v7673_v28 = vpop.f32.mrf.mxu3 }
 0x144   : > { %v13407_v26 = vor.u32 %v14922_v19, %v13406_v18  ;;  %v12798_v28 = vld [vmem:[%s15246_s23 + $0x17c0] sm:$0xf]  ;;  %v14247_v18 = vld [vmem:[%s15246_s23 + $0x9bc] sm:$0xf]  ;;  %v11008_v19 = vld [vmem:[%s15246_s23 + $0xc10] sm:$0xf0] }
 0x145   : > { %v12799_v36 = vor.u32 %v14771_v29, %v12798_v28  ;;  %v10406_v28 = vld [vmem:[%s15246_s23 + $0x508] sm:$0xf]  ;;  %v14172_v29 = vld [vmem:[%s15246_s23 + $0x75c] sm:$0xf0] }
 0x146   : > { %7781 = vmatpush.bf16.xpose.msra.mxu0 %v12783_v53  ;;  %7794 = vmatpush.bf16.xpose.msra.mxu1 %v12787_v54  ;;  %v10395_v53 = vor.u32 %v14095_v47, %v10392_v48  ;;  %v1393_v54 = vld [vmem:[%s15246_s23 + $0x2120] sm:$0xff]  ;;  %v12200_v47 = vld [vmem:[%s15246_s23 + $0x1568] sm:$0xf0]  ;;  %v12206_v48 = vld [vmem:[%s15246_s23 + $0x1318] sm:$0xf] }
 0x147   : > { %7807 = vmatpush.bf16.xpose.msra.mxu2 %v12791_v55  ;;  %7820 = vmatpush.bf16.xpose.msra.mxu3 %v12795_v57  ;;  %v1394_v55 = vld [vmem:[%s15246_s23 + $0x2128] sm:$0xff]  ;;  %v14019_v57 = vld [vmem:[%s15246_s23 + $0x294] sm:$0xf0]  ;;  %v5041_v62 = vunpack.c.l.b16 %v1393_v54  ;;  %v5042_v63 = vunpack.c.h.b16 %v1393_v54 }
 0x148   : > { %v5043_v0 = vunpack.c.l.b16 %v1394_v55  ;;  %v9783_v1 = vor.u32 %v14019_v57, %v9782_v56  ;;  %v5044_v4 = vunpack.c.h.b16 %v1394_v55 }
 0x14a   : > { %v6243_v8 = vpack.c.b16 %v5043_v0, %v5043_v0  ;;  %v6244_v10 = vpack.c.b16 %v5044_v4, %v5044_v4  ;;  %v14396_v0 = vld [vmem:[%s15246_s23 + $0xe64] sm:$0xf]  ;;  %v14397_v4 = vld [vmem:[%s15246_s23 + $0xe6c] sm:$0xf] }
 0x14e   : > { %7782 = vmatpush.bf16.xpose.msra.mxu0 %v12183_v5  ;;  %7795 = vmatpush.bf16.xpose.msra.mxu1 %v12187_v6  ;;  %v9787_v5 = vor.u32 %v13944_v58, %v9784_v59  ;;  %v6241_v6 = vpack.c.b16 %v5041_v62, %v5041_v62  ;;  %v11598_v62 = vld [vmem:[%s15246_s23 + $0xe60] sm:$0xf] }
 0x14f   : > { %7808 = vmatpush.bf16.xpose.msra.mxu2 %v12191_v7  ;;  %7821 = vmatpush.bf16.xpose.msra.mxu3 %v12195_v9  ;;  %v6242_v7 = vpack.c.b16 %v5042_v63, %v5042_v63  ;;  %v9795_v9 = vor.u32 %v13945_v2, %v9792_v3  ;;  %v14471_v63 = vld [vmem:[%s15246_s23 + $0x10b4] sm:$0xf0]  ;;  %v11606_v2 = vld [vmem:[%s15246_s23 + $0xe68] sm:$0xf]  ;;  %v14472_v3 = vld [vmem:[%s15246_s23 + $0x10bc] sm:$0xf0] }
 0x156   : > { %7783 = vmatpush.bf16.xpose.msra.mxu0 %v11583_v23  ;;  %7796 = vmatpush.bf16.xpose.msra.mxu1 %v11587_v24  ;;  %v13399_v23 = vor.u32 %v14921_v15, %v13398_v14  ;;  %v1483_v24 = vld [vmem:[#allocation1 + $0x1b] sm:$0xff] }
 0x157   : > { %7809 = vmatpush.bf16.xpose.msra.mxu2 %v11591_v25  ;;  %7822 = vmatpush.bf16.xpose.msra.mxu3 %v11595_v27  ;;  %v13403_v25 = vor.u32 %v14846_v16, %v13400_v17  ;;  %v13411_v27 = vor.u32 %v14847_v21, %v13408_v22  ;;  %v14246_v14 = vld [vmem:[%s15246_s23 + $0x9b4] sm:$0xf]  ;;  %v11000_v15 = vld [vmem:[%s15246_s23 + $0xc08] sm:$0xf0]  ;;  %v11006_v16 = vld [vmem:[%s15246_s23 + $0x9b8] sm:$0xf] }
 0x158   : > { %v14322_v17 = vld [vmem:[%s15246_s23 + $0xc0c] sm:$0xf0]  ;;  %v11003_v21 = vor.u32 %v14246_v14, %v11000_v15  ;;  %v12816_v14 = vld [vmem:[%s15246_s23 + $0x1a28] sm:$0xf0]  ;;  %v12822_v15 = vld [vmem:[%s15246_s23 + $0x17d8] sm:$0xf] }
 0x159   : > { %v11007_v22 = vor.u32 %v14322_v17, %v11006_v16  ;;  %v14774_v16 = vld [vmem:[%s15246_s23 + $0x1a2c] sm:$0xf0]  ;;  %v14699_v17 = vld [vmem:[%s15246_s23 + $0x17dc] sm:$0xf] }
 0x15e   : > { %7784 = vmatpush.bf16.xpose.msra.mxu0 %v10983_v37  ;;  %7797 = vmatpush.bf16.xpose.msra.mxu1 %v10987_v38  ;;  %v12803_v37 = vor.u32 %v14696_v30, %v12800_v31  ;;  %v12807_v38 = vor.u32 %v14772_v33, %v12806_v32  ;;  %v14097_v30 = vld [vmem:[%s15246_s23 + $0x50c] sm:$0xf]  ;;  %v10408_v31 = vld [vmem:[%s15246_s23 + $0x760] sm:$0xf0] }
 0x15f   : > { %7810 = vmatpush.bf16.xpose.msra.mxu2 %v10991_v39  ;;  %7823 = vmatpush.bf16.xpose.msra.mxu3 %v10995_v40  ;;  %v12811_v40 = vor.u32 %v14697_v34, %v12808_v35  ;;  %v10407_v34 = vor.u32 %v14172_v29, %v10406_v28  ;;  %v10411_v35 = vor.u32 %v14097_v30, %v10408_v31  ;;  %v14623_v28 = vld [vmem:[%s15246_s23 + $0x1574] sm:$0xf0]  ;;  %v14548_v29 = vld [vmem:[%s15246_s23 + $0x1324] sm:$0xf]  ;;  %v12216_v30 = vld [vmem:[%s15246_s23 + $0x1578] sm:$0xf0] }
 0x160   : > { %v12222_v31 = vld [vmem:[%s15246_s23 + $0x1328] sm:$0xf] }
 0x166   : > { %7785 = vmatpush.bf16.xpose.msra.mxu0 %v10383_v49  ;;  %7798 = vmatpush.bf16.xpose.msra.mxu1 %v10387_v50  ;;  %v14622_v49 = vld [vmem:[%s15246_s23 + $0x156c] sm:$0xf0]  ;;  %v14547_v50 = vld [vmem:[%s15246_s23 + $0x131c] sm:$0xf] }
 0x167   : > { %7811 = vmatpush.bf16.xpose.msra.mxu2 %v10391_v52  ;;  %7824 = vmatpush.bf16.xpose.msra.mxu3 %v10395_v53  ;;  %v12208_v52 = vld [vmem:[%s15246_s23 + $0x1570] sm:$0xf0]  ;;  %v12199_v53 = vor.u32 %v14621_v45, %v12198_v44  ;;  %v12207_v55 = vor.u32 %v14622_v49, %v12206_v48  ;;  %v13947_v48 = vld [vmem:[%s15246_s23 + $0x5c] sm:$0xf] }
 0x168   : > { %v12211_v57 = vor.u32 %v14547_v50, %v12208_v52  ;;  %v9808_v49 = vld [vmem:[%s15246_s23 + $0x2b0] sm:$0xf0] }
 0x16e   : > { %7786 = vmatpush.bf16.xpose.msra.mxu0 %v9783_v1  ;;  %7799 = vmatpush.bf16.xpose.msra.mxu1 %v9787_v5  ;;  %v11600_v1 = vld [vmem:[%s15246_s23 + $0x10b8] sm:$0xf0]  ;;  %v11608_v5 = vld [vmem:[%s15246_s23 + $0x10c0] sm:$0xf0] }
 0x16f   : > { %7812 = vmatpush.bf16.xpose.msra.mxu2 %v9791_v51  ;;  %7825 = vmatpush.bf16.xpose.msra.mxu3 %v9795_v9  ;;  %v11599_v51 = vor.u32 %v14471_v63, %v11598_v62  ;;  %v11611_v9 = vor.u32 %v14397_v4, %v11608_v5  ;;  %v14923_v62 = vld [vmem:[%s15246_s23 + $0x1ed4] sm:$0xf0]  ;;  %v14848_v63 = vld [vmem:[%s15246_s23 + $0x1c84] sm:$0xf]  ;;  %v14849_v4 = vld [vmem:[%s15246_s23 + $0x1c8c] sm:$0xf] }
 0x170   : > { %v13424_v5 = vld [vmem:[%s15246_s23 + $0x1ee0] sm:$0xf0] }
 0x172   : > { %v7684_v39 = vpop.f32.mrf.mxu0  ;;  %v7697_v42 = vpop.f32.mrf.mxu1 }
 0x173   : > { %v7685_v41 = vadd.f32 %v7684_v39, %v15522_v13  ;;  %v12203_v13 = vor.u32 %v14546_v46, %v12200_v47  ;;  %v14021_v39 = vld [vmem:[%s15246_s23 + $0x2a4] sm:$0xf0] }
 0x175   : > { %7787 = vmatmul.bf16.vlgmr.msra.gmra.mxu0 %v1480_v11  ;;  %7800 = vmatmul.bf16.vlgmr.msra.gmra.mxu1 %v1481_v20  ;;  %v7698_v43 = vadd.f32 %v7697_v42, %v7685_v41  ;;  %v10998_v11 = vld [vmem:[%s15246_s23 + $0x9b0] sm:$0xf]  ;;  %v9800_v41 = vld [vmem:[%s15246_s23 + $0x2a8] sm:$0xf0]  ;;  %v9806_v42 = vld [vmem:[%s15246_s23 + $0x58] sm:$0xf] }
 0x176   : > { %7831 = vmatpush.bf16.xpose.msrb.mxu0 %v6241_v6  ;;  %7844 = vmatpush.bf16.xpose.msrb.mxu1 %v6242_v7  ;;  %v11603_v6 = vor.u32 %v14396_v0, %v11600_v1  ;;  %v11607_v7 = vor.u32 %v14472_v3, %v11606_v2  ;;  %v13416_v0 = vld [vmem:[%s15246_s23 + $0x1ed8] sm:$0xf0]  ;;  %v13422_v1 = vld [vmem:[%s15246_s23 + $0x1c88] sm:$0xf]  ;;  %v14924_v2 = vld [vmem:[%s15246_s23 + $0x1edc] sm:$0xf0] }
 0x177   : > { %7857 = vmatpush.bf16.xpose.msrb.mxu2 %v6243_v8  ;;  %7870 = vmatpush.bf16.xpose.msrb.mxu3 %v6244_v10  ;;  %v1485_v3 = vld [vmem:[#allocation1 + $0x2d] sm:$0xff] }
 0x178   : > { %7813 = vmatmul.bf16.vlgmr.msra.gmra.mxu2 %v1482_v12  ;;  %7826 = vmatmul.bf16.vlgmr.msra.gmra.mxu3 %v1483_v24  ;;  %v14321_v12 = vld [vmem:[%s15246_s23 + $0xc04] sm:$0xf0]  ;;  %v10398_v24 = vld [vmem:[%s15246_s23 + $0x500] sm:$0xf] }
 0x179   : > { %v10999_v20 = vor.u32 %v14321_v12, %v10998_v11  ;;  %v14773_v11 = vld [vmem:[%s15246_s23 + $0x1a24] sm:$0xf0]  ;;  %v14698_v12 = vld [vmem:[%s15246_s23 + $0x17d4] sm:$0xf] }
 0x17a   : > { %v7686_v58 = vpop.f32.mrf.mxu0  ;;  %v7699_v60 = vpop.f32.mrf.mxu1 }
 0x17b   : > { %v7710_v54 = vpop.f32.mrf.mxu2  ;;  %v7723_v59 = vpop.f32.mrf.mxu3  ;;  %v1484_v58 = vld [vmem:[#allocation1 + $0x24] sm:$0xff] }
 0x17c   : > { %v7711_v56 = vadd.f32 %v7710_v54, %v7698_v43  ;;  %v14022_v43 = vld [vmem:[%s15246_s23 + $0x2ac] sm:$0xf0]  ;;  %v13414_v60 = vld [vmem:[%s15246_s23 + $0x1c80] sm:$0xf] }
 0x17e   : > { %7832 = vmatpush.bf16.xpose.msrb.mxu0 %v13399_v23  ;;  %7845 = vmatpush.bf16.xpose.msrb.mxu1 %v13403_v25  ;;  %v15584_v61 = vadd.f32 %v7723_v59, %v7711_v56  ;;  %v11011_v23 = vor.u32 %v14247_v18, %v11008_v19  ;;  %v14171_v25 = vld [vmem:[%s15246_s23 + $0x754] sm:$0xf0]  ;;  %v9811_v56 = vor.u32 %v13947_v48, %v9808_v49  ;;  %v1486_v59 = vld [vmem:[#allocation1 + $0x36] sm:$0xff]  ;;  %v12824_v18 = vld [vmem:[%s15246_s23 + $0x1a30] sm:$0xf0] }
 0x17f   : > { %7858 = vmatpush.bf16.xpose.msrb.mxu2 %v13407_v26  ;;  %7871 = vmatpush.bf16.xpose.msrb.mxu3 %v13411_v27  ;;  %v14096_v26 = vld [vmem:[%s15246_s23 + $0x504] sm:$0xf]  ;;  %v10400_v27 = vld [vmem:[%s15246_s23 + $0x758] sm:$0xf0]  ;;  %v10399_v32 = vor.u32 %v14171_v25, %v10398_v24  ;;  %v11616_v48 = vld [vmem:[%s15246_s23 + $0x10c8] sm:$0xf0] }
 0x180   : > { %v10403_v33 = vor.u32 %v14096_v26, %v10400_v27  ;;  %v12214_v27 = vld [vmem:[%s15246_s23 + $0x1320] sm:$0xf]  ;;  %v11622_v49 = vld [vmem:[%s15246_s23 + $0xe78] sm:$0xf] }
 0x183   : > { %v7712_v8 = vpop.f32.mrf.mxu2  ;;  %v7725_v10 = vpop.f32.mrf.mxu3 }
 0x184   : > { %v13423_v8 = vor.u32 %v14924_v2, %v13422_v1  ;;  %v12814_v10 = vld [vmem:[%s15246_s23 + $0x17d0] sm:$0xf]  ;;  %v14324_v1 = vld [vmem:[%s15246_s23 + $0xc1c] sm:$0xf0]  ;;  %v14249_v2 = vld [vmem:[%s15246_s23 + $0x9cc] sm:$0xf] }
 0x185   : > { %v12815_v19 = vor.u32 %v14773_v11, %v12814_v10  ;;  %v10416_v10 = vld [vmem:[%s15246_s23 + $0x768] sm:$0xf0]  ;;  %v10422_v11 = vld [vmem:[%s15246_s23 + $0x518] sm:$0xf] }
 0x186   : > { %7833 = vmatpush.bf16.xpose.msrb.mxu0 %v12799_v36  ;;  %7846 = vmatpush.bf16.xpose.msrb.mxu1 %v12803_v37  ;;  %v1395_v36 = vld [vmem:[%s15246_s23 + $0x2130] sm:$0xff]  ;;  %v1396_v37 = vld [vmem:[%s15246_s23 + $0x2138] sm:$0xff] }
 0x187   : > { %7859 = vmatpush.bf16.xpose.msrb.mxu2 %v12807_v38  ;;  %7872 = vmatpush.bf16.xpose.msrb.mxu3 %v12811_v40  ;;  %v9798_v38 = vld [vmem:[%s15246_s23 + $0x50] sm:$0xf]  ;;  %v13946_v40 = vld [vmem:[%s15246_s23 + $0x54] sm:$0xf]  ;;  %v5045_v44 = vunpack.c.l.b16 %v1395_v36  ;;  %v5046_v45 = vunpack.c.h.b16 %v1395_v36  ;;  %v5047_v46 = vunpack.c.l.b16 %v1396_v37  ;;  %v5048_v50 = vunpack.c.h.b16 %v1396_v37 }
 0x188   : > { %v9799_v47 = vor.u32 %v14021_v39, %v9798_v38  ;;  %v9803_v52 = vor.u32 %v13946_v40, %v9800_v41  ;;  %v12219_v36 = vor.u32 %v14548_v29, %v12216_v30 }
 0x189   : > { %v6245_v54 = vpack.c.b16 %v5045_v44, %v5045_v44  ;;  %v11614_v44 = vld [vmem:[%s15246_s23 + $0xe70] sm:$0xf] }
 0x18e   : > { %7834 = vmatpush.bf16.xpose.msrb.mxu0 %v12199_v53  ;;  %7847 = vmatpush.bf16.xpose.msrb.mxu1 %v12203_v13  ;;  %v9807_v53 = vor.u32 %v14022_v43, %v9806_v42  ;;  %v6246_v13 = vpack.c.b16 %v5046_v45, %v5046_v45  ;;  %v317_v45 = vld [vmem:[%s15256_s19 + $0x18] sm:$0xff] }
 0x18f   : > { %7860 = vmatpush.bf16.xpose.msrb.mxu2 %v12207_v55  ;;  %7873 = vmatpush.bf16.xpose.msrb.mxu3 %v12211_v57  ;;  %v6247_v55 = vpack.c.b16 %v5047_v46, %v5047_v46  ;;  %v6248_v57 = vpack.c.b16 %v5048_v50, %v5048_v50  ;;  %v14473_v46 = vld [vmem:[%s15246_s23 + $0x10c4] sm:$0xf0]  ;;  %v14474_v50 = vld [vmem:[%s15246_s23 + $0x10cc] sm:$0xf0] }
 0x196   : > { %7835 = vmatpush.bf16.xpose.msrb.mxu0 %v11599_v51  ;;  %7848 = vmatpush.bf16.xpose.msrb.mxu1 %v11603_v6  ;;  %v13415_v51 = vor.u32 %v14923_v62, %v13414_v60  ;;  %v1487_v6 = vld [vmem:[#allocation1 + $0x3f] sm:$0xff]  ;;  %v14248_v62 = vld [vmem:[%s15246_s23 + $0x9c4] sm:$0xf] }
 0x197   : > { %7861 = vmatpush.bf16.xpose.msrb.mxu2 %v11607_v7  ;;  %7874 = vmatpush.bf16.xpose.msrb.mxu3 %v11611_v9  ;;  %v13419_v7 = vor.u32 %v14848_v63, %v13416_v0  ;;  %v13427_v9 = vor.u32 %v14849_v4, %v13424_v5  ;;  %1489 = vst [vmem:[#allocation1] ss:$9 sm:$0xff] %v317_v45  ;;  %v14323_v60 = vld [vmem:[%s15246_s23 + $0xc14] sm:$0xf0]  ;;  %v11016_v63 = vld [vmem:[%s15246_s23 + $0xc18] sm:$0xf0] }
 0x198   : > { %v11022_v0 = vld [vmem:[%s15246_s23 + $0x9c8] sm:$0xf]  ;;  %v11019_v5 = vor.u32 %v14248_v62, %v11016_v63  ;;  %v12832_v62 = vld [vmem:[%s15246_s23 + $0x1a38] sm:$0xf0] }
 0x199   : > { %v14925_v45 = vld [vmem:[%s15246_s23 + $0x1ee4] sm:$0xf0] }
 0x19a   : > { %v12838_v63 = vld [vmem:[%s15246_s23 + $0x17e8] sm:$0xf] }
 0x19e   : > { %7836 = vmatpush.bf16.xpose.msrb.mxu0 %v10999_v20  ;;  %7849 = vmatpush.bf16.xpose.msrb.mxu1 %v11003_v21  ;;  %v12819_v20 = vor.u32 %v14698_v12, %v12816_v14  ;;  %v12823_v21 = vor.u32 %v14774_v16, %v12822_v15  ;;  %v14174_v12 = vld [vmem:[%s15246_s23 + $0x76c] sm:$0xf0]  ;;  %v14099_v14 = vld [vmem:[%s15246_s23 + $0x51c] sm:$0xf]  ;;  %v10424_v15 = vld [vmem:[%s15246_s23 + $0x770] sm:$0xf0] }
 0x19f   : > { %7862 = vmatpush.bf16.xpose.msrb.mxu2 %v11007_v22  ;;  %7875 = vmatpush.bf16.xpose.msrb.mxu3 %v11011_v23  ;;  %v12827_v23 = vor.u32 %v14699_v17, %v12824_v18  ;;  %v10423_v18 = vor.u32 %v14174_v12, %v10422_v11  ;;  %v14625_v11 = vld [vmem:[%s15246_s23 + $0x1584] sm:$0xf0]  ;;  %v14550_v12 = vld [vmem:[%s15246_s23 + $0x1334] sm:$0xf] }
 0x1a6   : > { %7837 = vmatpush.bf16.xpose.msrb.mxu0 %v10399_v32  ;;  %7850 = vmatpush.bf16.xpose.msrb.mxu1 %v10403_v33  ;;  %v14624_v32 = vld [vmem:[%s15246_s23 + $0x157c] sm:$0xf0]  ;;  %v14549_v33 = vld [vmem:[%s15246_s23 + $0x132c] sm:$0xf] }
 0x1a7   : > { %7863 = vmatpush.bf16.xpose.msrb.mxu2 %v10407_v34  ;;  %7876 = vmatpush.bf16.xpose.msrb.mxu3 %v10411_v35  ;;  %v12224_v34 = vld [vmem:[%s15246_s23 + $0x1580] sm:$0xf0]  ;;  %v12215_v35 = vor.u32 %v14623_v28, %v12214_v27  ;;  %v12223_v37 = vor.u32 %v14624_v32, %v12222_v31  ;;  %v14024_v27 = vld [vmem:[%s15246_s23 + $0x2bc] sm:$0xf0]  ;;  %v13949_v32 = vld [vmem:[%s15246_s23 + $0x6c] sm:$0xf] }
 0x1a8   : > { %v12227_v39 = vor.u32 %v14549_v33, %v12224_v34  ;;  %v9824_v33 = vld [vmem:[%s15246_s23 + $0x2c0] sm:$0xf0] }
 0x1ae   : > { %7838 = vmatpush.bf16.xpose.msrb.mxu0 %v9799_v47  ;;  %7851 = vmatpush.bf16.xpose.msrb.mxu1 %v9803_v52  ;;  %v14398_v47 = vld [vmem:[%s15246_s23 + $0xe74] sm:$0xf]  ;;  %v14399_v52 = vld [vmem:[%s15246_s23 + $0xe7c] sm:$0xf] }
 0x1af   : > { %7864 = vmatpush.bf16.xpose.msrb.mxu2 %v9807_v53  ;;  %7877 = vmatpush.bf16.xpose.msrb.mxu3 %v9811_v56  ;;  %v11624_v53 = vld [vmem:[%s15246_s23 + $0x10d0] sm:$0xf0] }
 0x1b2   : > { %v7736_v22 = vpop.f32.mrf.mxu0  ;;  %v7749_v25 = vpop.f32.mrf.mxu1 }
 0x1b3   : > { %v7737_v24 = vadd.f32 %v7736_v22, %v15584_v61  ;;  %v9814_v22 = vld [vmem:[%s15246_s23 + $0x60] sm:$0xf] }
 0x1b5   : > { %7839 = vmatmul.bf16.vlgmr.msrb.gmra.mxu0 %v1484_v58  ;;  %7852 = vmatmul.bf16.vlgmr.msrb.gmra.mxu1 %v1485_v3  ;;  %v7750_v26 = vadd.f32 %v7749_v25, %v7737_v24  ;;  %v11024_v3 = vld [vmem:[%s15246_s23 + $0xc20] sm:$0xf0]  ;;  %v9816_v25 = vld [vmem:[%s15246_s23 + $0x2b8] sm:$0xf0] }
 0x1b6   : > { %7883 = vmatpush.bf16.xpose.msra.mxu0 %v6245_v54  ;;  %7896 = vmatpush.bf16.xpose.msra.mxu1 %v6246_v13  ;;  %v11615_v54 = vor.u32 %v14473_v46, %v11614_v44  ;;  %v11619_v13 = vor.u32 %v14398_v47, %v11616_v48  ;;  %v13948_v24 = vld [vmem:[%s15246_s23 + $0x64] sm:$0xf]  ;;  %v13430_v44 = vld [vmem:[%s15246_s23 + $0x1c90] sm:$0xf]  ;;  %v14850_v46 = vld [vmem:[%s15246_s23 + $0x1c94] sm:$0xf] }
 0x1b7   : > { %7909 = vmatpush.bf16.xpose.msra.mxu2 %v6247_v55  ;;  %7922 = vmatpush.bf16.xpose.msra.mxu3 %v6248_v57  ;;  %v11623_v55 = vor.u32 %v14474_v50, %v11622_v49  ;;  %v11627_v57 = vor.u32 %v14399_v52, %v11624_v53  ;;  %v13432_v47 = vld [vmem:[%s15246_s23 + $0x1ee8] sm:$0xf0]  ;;  %v13438_v48 = vld [vmem:[%s15246_s23 + $0x1c98] sm:$0xf]  ;;  %v14926_v49 = vld [vmem:[%s15246_s23 + $0x1eec] sm:$0xf0] }
 0x1b8   : > { %7865 = vmatmul.bf16.vlgmr.msrb.gmra.mxu2 %v1486_v59  ;;  %7878 = vmatmul.bf16.vlgmr.msrb.gmra.mxu3 %v1487_v6  ;;  %v11014_v59 = vld [vmem:[%s15246_s23 + $0x9c0] sm:$0xf]  ;;  %v11027_v6 = vor.u32 %v14249_v2, %v11024_v3  ;;  %v14851_v52 = vld [vmem:[%s15246_s23 + $0x1c9c] sm:$0xf]  ;;  %v13440_v53 = vld [vmem:[%s15246_s23 + $0x1ef0] sm:$0xf0] }
 0x1b9   : > { %v11015_v4 = vor.u32 %v14323_v60, %v11014_v59  ;;  %v1491_v50 = vld [vmem:[#allocation1 + $0x9] sm:$0xff] }
 0x1ba   : > { %v7738_v40 = vpop.f32.mrf.mxu0  ;;  %v7751_v42 = vpop.f32.mrf.mxu1  ;;  %v14775_v59 = vld [vmem:[%s15246_s23 + $0x1a34] sm:$0xf0]  ;;  %v14700_v60 = vld [vmem:[%s15246_s23 + $0x17e4] sm:$0xf] }
 0x1bb   : > { %v7762_v61 = vpop.f32.mrf.mxu2  ;;  %v7775_v41 = vpop.f32.mrf.mxu3  ;;  %v1492_v42 = vld [vmem:[#allocation1 + $0x12] sm:$0xff] }
 0x1bc   : > { %v7763_v38 = vadd.f32 %v7762_v61, %v7750_v26  ;;  %v9822_v26 = vld [vmem:[%s15246_s23 + $0x68] sm:$0xf]  ;;  %v12840_v2 = vld [vmem:[%s15246_s23 + $0x1a40] sm:$0xf0] }
 0x1bd   : > { %v9823_v61 = vor.u32 %v14024_v27, %v9822_v26 }
 0x1be   : > { %7884 = vmatpush.bf16.xpose.msra.mxu0 %v13415_v51  ;;  %7897 = vmatpush.bf16.xpose.msra.mxu1 %v13419_v7  ;;  %v15645_v43 = vadd.f32 %v7775_v41, %v7763_v38  ;;  %v11023_v51 = vor.u32 %v14324_v1, %v11022_v0  ;;  %v10414_v7 = vld [vmem:[%s15246_s23 + $0x510] sm:$0xf]  ;;  %v14776_v0 = vld [vmem:[%s15246_s23 + $0x1a3c] sm:$0xf0]  ;;  %v14701_v1 = vld [vmem:[%s15246_s23 + $0x17ec] sm:$0xf] }
 0x1bf   : > { %7910 = vmatpush.bf16.xpose.msra.mxu2 %v13423_v8  ;;  %7923 = vmatpush.bf16.xpose.msra.mxu3 %v13427_v9  ;;  %v14173_v8 = vld [vmem:[%s15246_s23 + $0x764] sm:$0xf0]  ;;  %v14098_v9 = vld [vmem:[%s15246_s23 + $0x514] sm:$0xf] }
 0x1c0   : > { %v10415_v16 = vor.u32 %v14173_v8, %v10414_v7  ;;  %v10419_v17 = vor.u32 %v14098_v9, %v10416_v10  ;;  %v1490_v41 = vld [vmem:[#allocation1] sm:$0xff] }
 0x1c1   : > { %v12230_v10 = vld [vmem:[%s15246_s23 + $0x1330] sm:$0xf] }
 0x1c3   : > { %v7764_v56 = vpop.f32.mrf.mxu2  ;;  %v7777_v58 = vpop.f32.mrf.mxu3 }
 0x1c4   : > { %v13439_v56 = vor.u32 %v14926_v49, %v13438_v48  ;;  %v12830_v58 = vld [vmem:[%s15246_s23 + $0x17e0] sm:$0xf]  ;;  %v14251_v48 = vld [vmem:[%s15246_s23 + $0x9dc] sm:$0xf]  ;;  %v11040_v49 = vld [vmem:[%s15246_s23 + $0xc30] sm:$0xf0] }
 0x1c5   : > { %v12831_v3 = vor.u32 %v14775_v59, %v12830_v58  ;;  %v10438_v58 = vld [vmem:[%s15246_s23 + $0x528] sm:$0xf]  ;;  %v14176_v59 = vld [vmem:[%s15246_s23 + $0x77c] sm:$0xf0] }
 0x1c6   : > { %7885 = vmatpush.bf16.xpose.msra.mxu0 %v12815_v19  ;;  %7898 = vmatpush.bf16.xpose.msra.mxu1 %v12819_v20  ;;  %v10427_v19 = vor.u32 %v14099_v14, %v10424_v15  ;;  %v1397_v20 = vld [vmem:[%s15246_s23 + $0x2140] sm:$0xff]  ;;  %v12232_v14 = vld [vmem:[%s15246_s23 + $0x1588] sm:$0xf0]  ;;  %v12238_v15 = vld [vmem:[%s15246_s23 + $0x1338] sm:$0xf] }
 0x1c7   : > { %7911 = vmatpush.bf16.xpose.msra.mxu2 %v12823_v21  ;;  %7924 = vmatpush.bf16.xpose.msra.mxu3 %v12827_v23  ;;  %v1398_v21 = vld [vmem:[%s15246_s23 + $0x2148] sm:$0xff]  ;;  %v14023_v23 = vld [vmem:[%s15246_s23 + $0x2b4] sm:$0xf0]  ;;  %v5049_v28 = vunpack.c.l.b16 %v1397_v20  ;;  %v5050_v29 = vunpack.c.h.b16 %v1397_v20 }
 0x1c8   : > { %v5051_v30 = vunpack.c.l.b16 %v1398_v21  ;;  %v9815_v31 = vor.u32 %v14023_v23, %v9814_v22  ;;  %v5052_v34 = vunpack.c.h.b16 %v1398_v21 }
 0x1ca   : > { %v6251_v38 = vpack.c.b16 %v5051_v30, %v5051_v30  ;;  %v6252_v40 = vpack.c.b16 %v5052_v34, %v5052_v34  ;;  %v14400_v30 = vld [vmem:[%s15246_s23 + $0xe84] sm:$0xf]  ;;  %v14401_v34 = vld [vmem:[%s15246_s23 + $0xe8c] sm:$0xf] }
 0x1ce   : > { %7886 = vmatpush.bf16.xpose.msra.mxu0 %v12215_v35  ;;  %7899 = vmatpush.bf16.xpose.msra.mxu1 %v12219_v36  ;;  %v9819_v35 = vor.u32 %v13948_v24, %v9816_v25  ;;  %v6249_v36 = vpack.c.b16 %v5049_v28, %v5049_v28  ;;  %v11630_v28 = vld [vmem:[%s15246_s23 + $0xe80] sm:$0xf] }
 0x1cf   : > { %7912 = vmatpush.bf16.xpose.msra.mxu2 %v12223_v37  ;;  %7925 = vmatpush.bf16.xpose.msra.mxu3 %v12227_v39  ;;  %v6250_v37 = vpack.c.b16 %v5050_v29, %v5050_v29  ;;  %v9827_v39 = vor.u32 %v13949_v32, %v9824_v33  ;;  %v14475_v29 = vld [vmem:[%s15246_s23 + $0x10d4] sm:$0xf0]  ;;  %v11638_v32 = vld [vmem:[%s15246_s23 + $0xe88] sm:$0xf]  ;;  %v14476_v33 = vld [vmem:[%s15246_s23 + $0x10dc] sm:$0xf0] }
 0x1d6   : > { %7887 = vmatpush.bf16.xpose.msra.mxu0 %v11615_v54  ;;  %7900 = vmatpush.bf16.xpose.msra.mxu1 %v11619_v13  ;;  %v13431_v54 = vor.u32 %v14925_v45, %v13430_v44  ;;  %v1493_v13 = vld [vmem:[#allocation1 + $0x1b] sm:$0xff] }
 0x1d7   : > { %7913 = vmatpush.bf16.xpose.msra.mxu2 %v11623_v55  ;;  %7926 = vmatpush.bf16.xpose.msra.mxu3 %v11627_v57  ;;  %v13435_v55 = vor.u32 %v14850_v46, %v13432_v47  ;;  %v13443_v57 = vor.u32 %v14851_v52, %v13440_v53  ;;  %v14250_v44 = vld [vmem:[%s15246_s23 + $0x9d4] sm:$0xf]  ;;  %v11032_v45 = vld [vmem:[%s15246_s23 + $0xc28] sm:$0xf0]  ;;  %v11038_v46 = vld [vmem:[%s15246_s23 + $0x9d8] sm:$0xf] }
 0x1d8   : > { %v14326_v47 = vld [vmem:[%s15246_s23 + $0xc2c] sm:$0xf0]  ;;  %v11035_v52 = vor.u32 %v14250_v44, %v11032_v45  ;;  %v12848_v44 = vld [vmem:[%s15246_s23 + $0x1a48] sm:$0xf0]  ;;  %v12854_v45 = vld [vmem:[%s15246_s23 + $0x17f8] sm:$0xf] }
 0x1d9   : > { %v11039_v53 = vor.u32 %v14326_v47, %v11038_v46  ;;  %v14778_v46 = vld [vmem:[%s15246_s23 + $0x1a4c] sm:$0xf0]  ;;  %v14703_v47 = vld [vmem:[%s15246_s23 + $0x17fc] sm:$0xf] }
 0x1de   : > { %7888 = vmatpush.bf16.xpose.msra.mxu0 %v11015_v4  ;;  %7901 = vmatpush.bf16.xpose.msra.mxu1 %v11019_v5  ;;  %v12835_v4 = vor.u32 %v14700_v60, %v12832_v62  ;;  %v12839_v5 = vor.u32 %v14776_v0, %v12838_v63  ;;  %v14101_v60 = vld [vmem:[%s15246_s23 + $0x52c] sm:$0xf]  ;;  %v10440_v62 = vld [vmem:[%s15246_s23 + $0x780] sm:$0xf0] }
 0x1df   : > { %7914 = vmatpush.bf16.xpose.msra.mxu2 %v11023_v51  ;;  %7927 = vmatpush.bf16.xpose.msra.mxu3 %v11027_v6  ;;  %v12843_v6 = vor.u32 %v14701_v1, %v12840_v2  ;;  %v10439_v1 = vor.u32 %v14176_v59, %v10438_v58  ;;  %v10443_v2 = vor.u32 %v14101_v60, %v10440_v62  ;;  %v14627_v58 = vld [vmem:[%s15246_s23 + $0x1594] sm:$0xf0]  ;;  %v14552_v59 = vld [vmem:[%s15246_s23 + $0x1344] sm:$0xf]  ;;  %v12248_v60 = vld [vmem:[%s15246_s23 + $0x1598] sm:$0xf0] }
 0x1e0   : > { %v12254_v62 = vld [vmem:[%s15246_s23 + $0x1348] sm:$0xf] }
 0x1e6   : > { %7889 = vmatpush.bf16.xpose.msra.mxu0 %v10415_v16  ;;  %7902 = vmatpush.bf16.xpose.msra.mxu1 %v10419_v17  ;;  %v14626_v16 = vld [vmem:[%s15246_s23 + $0x158c] sm:$0xf0]  ;;  %v14551_v17 = vld [vmem:[%s15246_s23 + $0x133c] sm:$0xf] }
 0x1e7   : > { %7915 = vmatpush.bf16.xpose.msra.mxu2 %v10423_v18  ;;  %7928 = vmatpush.bf16.xpose.msra.mxu3 %v10427_v19  ;;  %v12240_v18 = vld [vmem:[%s15246_s23 + $0x1590] sm:$0xf0]  ;;  %v12231_v19 = vor.u32 %v14625_v11, %v12230_v10  ;;  %v12239_v21 = vor.u32 %v14626_v16, %v12238_v15  ;;  %v13951_v15 = vld [vmem:[%s15246_s23 + $0x7c] sm:$0xf] }
 0x1e8   : > { %v12243_v23 = vor.u32 %v14551_v17, %v12240_v18  ;;  %v9840_v16 = vld [vmem:[%s15246_s23 + $0x2d0] sm:$0xf0] }
 0x1ee   : > { %7890 = vmatpush.bf16.xpose.msra.mxu0 %v9815_v31  ;;  %7903 = vmatpush.bf16.xpose.msra.mxu1 %v9819_v35  ;;  %v11632_v31 = vld [vmem:[%s15246_s23 + $0x10d8] sm:$0xf0]  ;;  %v11640_v35 = vld [vmem:[%s15246_s23 + $0x10e0] sm:$0xf0] }
 0x1ef   : > { %7916 = vmatpush.bf16.xpose.msra.mxu2 %v9823_v61  ;;  %7929 = vmatpush.bf16.xpose.msra.mxu3 %v9827_v39  ;;  %v11631_v61 = vor.u32 %v14475_v29, %v11630_v28  ;;  %v11643_v39 = vor.u32 %v14401_v34, %v11640_v35  ;;  %v14927_v28 = vld [vmem:[%s15246_s23 + $0x1ef4] sm:$0xf0]  ;;  %v14852_v29 = vld [vmem:[%s15246_s23 + $0x1ca4] sm:$0xf]  ;;  %v14853_v34 = vld [vmem:[%s15246_s23 + $0x1cac] sm:$0xf] }
 0x1f0   : > { %v13456_v35 = vld [vmem:[%s15246_s23 + $0x1f00] sm:$0xf0] }
 0x1f2   : > { %v7788_v51 = vpop.f32.mrf.mxu0  ;;  %v7801_v8 = vpop.f32.mrf.mxu1 }
 0x1f3   : > { %v7789_v7 = vadd.f32 %v7788_v51, %v15645_v43  ;;  %v12235_v43 = vor.u32 %v14550_v12, %v12232_v14  ;;  %v14025_v51 = vld [vmem:[%s15246_s23 + $0x2c4] sm:$0xf0] }
 0x1f5   : > { %7891 = vmatmul.bf16.vlgmr.msra.gmra.mxu0 %v1490_v41  ;;  %7904 = vmatmul.bf16.vlgmr.msra.gmra.mxu1 %v1491_v50  ;;  %v7802_v9 = vadd.f32 %v7801_v8, %v7789_v7  ;;  %v11030_v41 = vld [vmem:[%s15246_s23 + $0x9d0] sm:$0xf]  ;;  %v9832_v7 = vld [vmem:[%s15246_s23 + $0x2c8] sm:$0xf0]  ;;  %v9838_v8 = vld [vmem:[%s15246_s23 + $0x78] sm:$0xf] }
 0x1f6   : > { %7935 = vmatpush.bf16.xpose.msrb.mxu0 %v6249_v36  ;;  %7948 = vmatpush.bf16.xpose.msrb.mxu1 %v6250_v37  ;;  %v11635_v36 = vor.u32 %v14400_v30, %v11632_v31  ;;  %v11639_v37 = vor.u32 %v14476_v33, %v11638_v32  ;;  %v13448_v30 = vld [vmem:[%s15246_s23 + $0x1ef8] sm:$0xf0]  ;;  %v13454_v31 = vld [vmem:[%s15246_s23 + $0x1ca8] sm:$0xf]  ;;  %v14928_v32 = vld [vmem:[%s15246_s23 + $0x1efc] sm:$0xf0] }
 0x1f7   : > { %7961 = vmatpush.bf16.xpose.msrb.mxu2 %v6251_v38  ;;  %7974 = vmatpush.bf16.xpose.msrb.mxu3 %v6252_v40  ;;  %v1495_v33 = vld [vmem:[#allocation1 + $0x2d] sm:$0xff] }
 0x1f8   : > { %7917 = vmatmul.bf16.vlgmr.msra.gmra.mxu2 %v1492_v42  ;;  %7930 = vmatmul.bf16.vlgmr.msra.gmra.mxu3 %v1493_v13  ;;  %v14325_v42 = vld [vmem:[%s15246_s23 + $0xc24] sm:$0xf0]  ;;  %v10430_v13 = vld [vmem:[%s15246_s23 + $0x520] sm:$0xf] }
 0x1f9   : > { %v11031_v50 = vor.u32 %v14325_v42, %v11030_v41  ;;  %v14777_v41 = vld [vmem:[%s15246_s23 + $0x1a44] sm:$0xf0]  ;;  %v14702_v42 = vld [vmem:[%s15246_s23 + $0x17f4] sm:$0xf] }
 0x1fa   : > { %v7790_v24 = vpop.f32.mrf.mxu0  ;;  %v7803_v26 = vpop.f32.mrf.mxu1 }
 0x1fb   : > { %v7814_v20 = vpop.f32.mrf.mxu2  ;;  %v7827_v25 = vpop.f32.mrf.mxu3  ;;  %v1494_v24 = vld [vmem:[#allocation1 + $0x24] sm:$0xff] }
 0x1fc   : > { %v7815_v22 = vadd.f32 %v7814_v20, %v7802_v9  ;;  %v14026_v9 = vld [vmem:[%s15246_s23 + $0x2cc] sm:$0xf0]  ;;  %v13446_v26 = vld [vmem:[%s15246_s23 + $0x1ca0] sm:$0xf] }
 0x1fe   : > { %7936 = vmatpush.bf16.xpose.msrb.mxu0 %v13431_v54  ;;  %7949 = vmatpush.bf16.xpose.msrb.mxu1 %v13435_v55  ;;  %v15707_v27 = vadd.f32 %v7827_v25, %v7815_v22  ;;  %v11043_v54 = vor.u32 %v14251_v48, %v11040_v49  ;;  %v14175_v55 = vld [vmem:[%s15246_s23 + $0x774] sm:$0xf0]  ;;  %v9843_v22 = vor.u32 %v13951_v15, %v9840_v16  ;;  %v1496_v25 = vld [vmem:[#allocation1 + $0x36] sm:$0xff]  ;;  %v12856_v48 = vld [vmem:[%s15246_s23 + $0x1a50] sm:$0xf0] }
 0x1ff   : > { %7962 = vmatpush.bf16.xpose.msrb.mxu2 %v13439_v56  ;;  %7975 = vmatpush.bf16.xpose.msrb.mxu3 %v13443_v57  ;;  %v14100_v56 = vld [vmem:[%s15246_s23 + $0x524] sm:$0xf]  ;;  %v10432_v57 = vld [vmem:[%s15246_s23 + $0x778] sm:$0xf0]  ;;  %v10431_v63 = vor.u32 %v14175_v55, %v10430_v13  ;;  %v11648_v15 = vld [vmem:[%s15246_s23 + $0x10e8] sm:$0xf0] }
 0x200   : > { %v10435_v0 = vor.u32 %v14100_v56, %v10432_v57  ;;  %v12246_v57 = vld [vmem:[%s15246_s23 + $0x1340] sm:$0xf]  ;;  %v11654_v16 = vld [vmem:[%s15246_s23 + $0xe98] sm:$0xf] }
 0x203   : > { %v7816_v38 = vpop.f32.mrf.mxu2  ;;  %v7829_v40 = vpop.f32.mrf.mxu3 }
 0x204   : > { %v13455_v38 = vor.u32 %v14928_v32, %v13454_v31  ;;  %v12846_v40 = vld [vmem:[%s15246_s23 + $0x17f0] sm:$0xf]  ;;  %v14328_v31 = vld [vmem:[%s15246_s23 + $0xc3c] sm:$0xf0]  ;;  %v14253_v32 = vld [vmem:[%s15246_s23 + $0x9ec] sm:$0xf] }
 0x205   : > { %v12847_v49 = vor.u32 %v14777_v41, %v12846_v40  ;;  %v10448_v40 = vld [vmem:[%s15246_s23 + $0x788] sm:$0xf0]  ;;  %v10454_v41 = vld [vmem:[%s15246_s23 + $0x538] sm:$0xf] }
 0x206   : > { %7937 = vmatpush.bf16.xpose.msrb.mxu0 %v12831_v3  ;;  %7950 = vmatpush.bf16.xpose.msrb.mxu1 %v12835_v4  ;;  %v1399_v3 = vld [vmem:[%s15246_s23 + $0x2150] sm:$0xff]  ;;  %v1400_v4 = vld [vmem:[%s15246_s23 + $0x2158] sm:$0xff] }
 0x207   : > { %7963 = vmatpush.bf16.xpose.msrb.mxu2 %v12839_v5  ;;  %7976 = vmatpush.bf16.xpose.msrb.mxu3 %v12843_v6  ;;  %v9830_v5 = vld [vmem:[%s15246_s23 + $0x70] sm:$0xf]  ;;  %v13950_v6 = vld [vmem:[%s15246_s23 + $0x74] sm:$0xf]  ;;  %v5053_v10 = vunpack.c.l.b16 %v1399_v3  ;;  %v5054_v11 = vunpack.c.h.b16 %v1399_v3  ;;  %v5055_v12 = vunpack.c.l.b16 %v1400_v4  ;;  %v5056_v17 = vunpack.c.h.b16 %v1400_v4 }
 0x208   : > { %v9831_v14 = vor.u32 %v14025_v51, %v9830_v5  ;;  %v9835_v18 = vor.u32 %v13950_v6, %v9832_v7  ;;  %v12251_v3 = vor.u32 %v14552_v59, %v12248_v60 }
 0x209   : > { %v6253_v20 = vpack.c.b16 %v5053_v10, %v5053_v10  ;;  %v11646_v10 = vld [vmem:[%s15246_s23 + $0xe90] sm:$0xf] }
 0x20e   : > { %7938 = vmatpush.bf16.xpose.msrb.mxu0 %v12231_v19  ;;  %7951 = vmatpush.bf16.xpose.msrb.mxu1 %v12235_v43  ;;  %v9839_v19 = vor.u32 %v14026_v9, %v9838_v8  ;;  %v6254_v43 = vpack.c.b16 %v5054_v11, %v5054_v11  ;;  %v318_v11 = vld [vmem:[%s15256_s19 + $0x20] sm:$0xff] }
 0x20f   : > { %7964 = vmatpush.bf16.xpose.msrb.mxu2 %v12239_v21  ;;  %7977 = vmatpush.bf16.xpose.msrb.mxu3 %v12243_v23  ;;  %v6255_v21 = vpack.c.b16 %v5055_v12, %v5055_v12  ;;  %v6256_v23 = vpack.c.b16 %v5056_v17, %v5056_v17  ;;  %v14477_v12 = vld [vmem:[%s15246_s23 + $0x10e4] sm:$0xf0]  ;;  %v14478_v17 = vld [vmem:[%s15246_s23 + $0x10ec] sm:$0xf0] }
 0x216   : > { %7939 = vmatpush.bf16.xpose.msrb.mxu0 %v11631_v61  ;;  %7952 = vmatpush.bf16.xpose.msrb.mxu1 %v11635_v36  ;;  %v13447_v61 = vor.u32 %v14927_v28, %v13446_v26  ;;  %v1497_v36 = vld [vmem:[#allocation1 + $0x3f] sm:$0xff]  ;;  %v14252_v28 = vld [vmem:[%s15246_s23 + $0x9e4] sm:$0xf] }
 0x217   : > { %7965 = vmatpush.bf16.xpose.msrb.mxu2 %v11639_v37  ;;  %7978 = vmatpush.bf16.xpose.msrb.mxu3 %v11643_v39  ;;  %v13451_v37 = vor.u32 %v14852_v29, %v13448_v30  ;;  %v13459_v39 = vor.u32 %v14853_v34, %v13456_v35  ;;  %1499 = vst [vmem:[#allocation1] ss:$9 sm:$0xff] %v318_v11  ;;  %v14327_v26 = vld [vmem:[%s15246_s23 + $0xc34] sm:$0xf0]  ;;  %v11048_v29 = vld [vmem:[%s15246_s23 + $0xc38] sm:$0xf0] }
 0x218   : > { %v11054_v30 = vld [vmem:[%s15246_s23 + $0x9e8] sm:$0xf]  ;;  %v11051_v35 = vor.u32 %v14252_v28, %v11048_v29  ;;  %v12864_v28 = vld [vmem:[%s15246_s23 + $0x1a58] sm:$0xf0] }
 0x219   : > { %v14929_v11 = vld [vmem:[%s15246_s23 + $0x1f04] sm:$0xf0] }
 0x21a   : > { %v12870_v29 = vld [vmem:[%s15246_s23 + $0x1808] sm:$0xf] }
 0x21e   : > { %7940 = vmatpush.bf16.xpose.msrb.mxu0 %v11031_v50  ;;  %7953 = vmatpush.bf16.xpose.msrb.mxu1 %v11035_v52  ;;  %v12851_v50 = vor.u32 %v14702_v42, %v12848_v44  ;;  %v12855_v52 = vor.u32 %v14778_v46, %v12854_v45  ;;  %v14178_v42 = vld [vmem:[%s15246_s23 + $0x78c] sm:$0xf0]  ;;  %v14103_v44 = vld [vmem:[%s15246_s23 + $0x53c] sm:$0xf]  ;;  %v10456_v45 = vld [vmem:[%s15246_s23 + $0x790] sm:$0xf0] }
 0x21f   : > { %7966 = vmatpush.bf16.xpose.msrb.mxu2 %v11039_v53  ;;  %7979 = vmatpush.bf16.xpose.msrb.mxu3 %v11043_v54  ;;  %v12859_v54 = vor.u32 %v14703_v47, %v12856_v48  ;;  %v10455_v48 = vor.u32 %v14178_v42, %v10454_v41  ;;  %v14629_v41 = vld [vmem:[%s15246_s23 + $0x15a4] sm:$0xf0]  ;;  %v14554_v42 = vld [vmem:[%s15246_s23 + $0x1354] sm:$0xf] }
 0x226   : > { %7941 = vmatpush.bf16.xpose.msrb.mxu0 %v10431_v63  ;;  %7954 = vmatpush.bf16.xpose.msrb.mxu1 %v10435_v0  ;;  %v14628_v63 = vld [vmem:[%s15246_s23 + $0x159c] sm:$0xf0]  ;;  %v14553_v0 = vld [vmem:[%s15246_s23 + $0x134c] sm:$0xf] }
 0x227   : > { %7967 = vmatpush.bf16.xpose.msrb.mxu2 %v10439_v1  ;;  %7980 = vmatpush.bf16.xpose.msrb.mxu3 %v10443_v2  ;;  %v12256_v1 = vld [vmem:[%s15246_s23 + $0x15a0] sm:$0xf0]  ;;  %v12247_v2 = vor.u32 %v14627_v58, %v12246_v57  ;;  %v12255_v4 = vor.u32 %v14628_v63, %v12254_v62  ;;  %v14028_v57 = vld [vmem:[%s15246_s23 + $0x2dc] sm:$0xf0]  ;;  %v13953_v63 = vld [vmem:[%s15246_s23 + $0x8c] sm:$0xf] }
 0x228   : > { %v12259_v51 = vor.u32 %v14553_v0, %v12256_v1  ;;  %v9856_v0 = vld [vmem:[%s15246_s23 + $0x2e0] sm:$0xf0] }
 0x22e   : > { %7942 = vmatpush.bf16.xpose.msrb.mxu0 %v9831_v14  ;;  %7955 = vmatpush.bf16.xpose.msrb.mxu1 %v9835_v18  ;;  %v14402_v14 = vld [vmem:[%s15246_s23 + $0xe94] sm:$0xf]  ;;  %v14403_v18 = vld [vmem:[%s15246_s23 + $0xe9c] sm:$0xf] }
 0x22f   : > { %7968 = vmatpush.bf16.xpose.msrb.mxu2 %v9839_v19  ;;  %7981 = vmatpush.bf16.xpose.msrb.mxu3 %v9843_v22  ;;  %v11656_v19 = vld [vmem:[%s15246_s23 + $0x10f0] sm:$0xf0] }
 0x232   : > { %v7840_v53 = vpop.f32.mrf.mxu0  ;;  %v7853_v55 = vpop.f32.mrf.mxu1 }
 0x233   : > { %v7841_v13 = vadd.f32 %v7840_v53, %v15707_v27  ;;  %v9846_v53 = vld [vmem:[%s15246_s23 + $0x80] sm:$0xf] }
 0x235   : > { %7943 = vmatmul.bf16.vlgmr.msrb.gmra.mxu0 %v1494_v24  ;;  %7956 = vmatmul.bf16.vlgmr.msrb.gmra.mxu1 %v1495_v33  ;;  %v7854_v56 = vadd.f32 %v7853_v55, %v7841_v13  ;;  %v11056_v33 = vld [vmem:[%s15246_s23 + $0xc40] sm:$0xf0]  ;;  %v9848_v55 = vld [vmem:[%s15246_s23 + $0x2d8] sm:$0xf0] }
 0x236   : > { %7987 = vmatpush.bf16.xpose.msra.mxu0 %v6253_v20  ;;  %8000 = vmatpush.bf16.xpose.msra.mxu1 %v6254_v43  ;;  %v11647_v20 = vor.u32 %v14477_v12, %v11646_v10  ;;  %v11651_v43 = vor.u32 %v14402_v14, %v11648_v15  ;;  %v13952_v13 = vld [vmem:[%s15246_s23 + $0x84] sm:$0xf]  ;;  %v13462_v10 = vld [vmem:[%s15246_s23 + $0x1cb0] sm:$0xf]  ;;  %v14854_v12 = vld [vmem:[%s15246_s23 + $0x1cb4] sm:$0xf] }
 0x237   : > { %8013 = vmatpush.bf16.xpose.msra.mxu2 %v6255_v21  ;;  %8026 = vmatpush.bf16.xpose.msra.mxu3 %v6256_v23  ;;  %v11655_v21 = vor.u32 %v14478_v17, %v11654_v16  ;;  %v11659_v23 = vor.u32 %v14403_v18, %v11656_v19  ;;  %v13464_v14 = vld [vmem:[%s15246_s23 + $0x1f08] sm:$0xf0]  ;;  %v13470_v15 = vld [vmem:[%s15246_s23 + $0x1cb8] sm:$0xf]  ;;  %v14930_v16 = vld [vmem:[%s15246_s23 + $0x1f0c] sm:$0xf0] }
 0x238   : > { %7969 = vmatmul.bf16.vlgmr.msrb.gmra.mxu2 %v1496_v25  ;;  %7982 = vmatmul.bf16.vlgmr.msrb.gmra.mxu3 %v1497_v36  ;;  %v11046_v25 = vld [vmem:[%s15246_s23 + $0x9e0] sm:$0xf]  ;;  %v11059_v36 = vor.u32 %v14253_v32, %v11056_v33  ;;  %v14855_v18 = vld [vmem:[%s15246_s23 + $0x1cbc] sm:$0xf]  ;;  %v13472_v19 = vld [vmem:[%s15246_s23 + $0x1f10] sm:$0xf0] }
 0x239   : > { %v11047_v34 = vor.u32 %v14327_v26, %v11046_v25  ;;  %v1501_v17 = vld [vmem:[#allocation1 + $0x9] sm:$0xff] }
 0x23a   : > { %v7842_v6 = vpop.f32.mrf.mxu0  ;;  %v7855_v8 = vpop.f32.mrf.mxu1  ;;  %v14779_v25 = vld [vmem:[%s15246_s23 + $0x1a54] sm:$0xf0]  ;;  %v14704_v26 = vld [vmem:[%s15246_s23 + $0x1804] sm:$0xf] }
 0x23b   : > { %v7866_v27 = vpop.f32.mrf.mxu2  ;;  %v7879_v7 = vpop.f32.mrf.mxu3  ;;  %v1502_v8 = vld [vmem:[#allocation1 + $0x12] sm:$0xff] }
 0x23c   : > { %v7867_v5 = vadd.f32 %v7866_v27, %v7854_v56  ;;  %v9854_v56 = vld [vmem:[%s15246_s23 + $0x88] sm:$0xf]  ;;  %v12872_v32 = vld [vmem:[%s15246_s23 + $0x1a60] sm:$0xf0] }
 0x23d   : > { %v9855_v27 = vor.u32 %v14028_v57, %v9854_v56 }
 0x23e   : > { %7988 = vmatpush.bf16.xpose.msra.mxu0 %v13447_v61  ;;  %8001 = vmatpush.bf16.xpose.msra.mxu1 %v13451_v37  ;;  %v15768_v9 = vadd.f32 %v7879_v7, %v7867_v5  ;;  %v11055_v61 = vor.u32 %v14328_v31, %v11054_v30  ;;  %v10446_v37 = vld [vmem:[%s15246_s23 + $0x530] sm:$0xf]  ;;  %v14780_v30 = vld [vmem:[%s15246_s23 + $0x1a5c] sm:$0xf0]  ;;  %v14705_v31 = vld [vmem:[%s15246_s23 + $0x180c] sm:$0xf] }
 0x23f   : > { %8014 = vmatpush.bf16.xpose.msra.mxu2 %v13455_v38  ;;  %8027 = vmatpush.bf16.xpose.msra.mxu3 %v13459_v39  ;;  %v14177_v38 = vld [vmem:[%s15246_s23 + $0x784] sm:$0xf0]  ;;  %v14102_v39 = vld [vmem:[%s15246_s23 + $0x534] sm:$0xf] }
 0x240   : > { %v10447_v46 = vor.u32 %v14177_v38, %v10446_v37  ;;  %v10451_v47 = vor.u32 %v14102_v39, %v10448_v40  ;;  %v1500_v7 = vld [vmem:[#allocation1] sm:$0xff] }
 0x241   : > { %v12262_v40 = vld [vmem:[%s15246_s23 + $0x1350] sm:$0xf] }
 0x243   : > { %v7868_v22 = vpop.f32.mrf.mxu2  ;;  %v7881_v24 = vpop.f32.mrf.mxu3 }
 0x244   : > { %v13471_v22 = vor.u32 %v14930_v16, %v13470_v15  ;;  %v12862_v24 = vld [vmem:[%s15246_s23 + $0x1800] sm:$0xf]  ;;  %v14255_v15 = vld [vmem:[%s15246_s23 + $0x9fc] sm:$0xf]  ;;  %v11072_v16 = vld [vmem:[%s15246_s23 + $0xc50] sm:$0xf0] }
 0x245   : > { %v12863_v33 = vor.u32 %v14779_v25, %v12862_v24  ;;  %v10470_v24 = vld [vmem:[%s15246_s23 + $0x548] sm:$0xf]  ;;  %v14180_v25 = vld [vmem:[%s15246_s23 + $0x79c] sm:$0xf0] }
 0x246   : > { %7989 = vmatpush.bf16.xpose.msra.mxu0 %v12847_v49  ;;  %8002 = vmatpush.bf16.xpose.msra.mxu1 %v12851_v50  ;;  %v10459_v49 = vor.u32 %v14103_v44, %v10456_v45  ;;  %v1401_v50 = vld [vmem:[%s15246_s23 + $0x2160] sm:$0xff]  ;;  %v12264_v44 = vld [vmem:[%s15246_s23 + $0x15a8] sm:$0xf0]  ;;  %v12270_v45 = vld [vmem:[%s15246_s23 + $0x1358] sm:$0xf] }
 0x247   : > { %8015 = vmatpush.bf16.xpose.msra.mxu2 %v12855_v52  ;;  %8028 = vmatpush.bf16.xpose.msra.mxu3 %v12859_v54  ;;  %v1402_v52 = vld [vmem:[%s15246_s23 + $0x2168] sm:$0xff]  ;;  %v14027_v54 = vld [vmem:[%s15246_s23 + $0x2d4] sm:$0xf0]  ;;  %v5057_v58 = vunpack.c.l.b16 %v1401_v50  ;;  %v5058_v59 = vunpack.c.h.b16 %v1401_v50 }
 0x248   : > { %v5059_v60 = vunpack.c.l.b16 %v1402_v52  ;;  %v9847_v62 = vor.u32 %v14027_v54, %v9846_v53  ;;  %v5060_v1 = vunpack.c.h.b16 %v1402_v52 }
 0x24a   : > { %v6259_v5 = vpack.c.b16 %v5059_v60, %v5059_v60  ;;  %v6260_v6 = vpack.c.b16 %v5060_v1, %v5060_v1  ;;  %v14404_v60 = vld [vmem:[%s15246_s23 + $0xea4] sm:$0xf]  ;;  %v14405_v1 = vld [vmem:[%s15246_s23 + $0xeac] sm:$0xf] }
 0x24e   : > { %7990 = vmatpush.bf16.xpose.msra.mxu0 %v12247_v2  ;;  %8003 = vmatpush.bf16.xpose.msra.mxu1 %v12251_v3  ;;  %v9851_v2 = vor.u32 %v13952_v13, %v9848_v55  ;;  %v6257_v3 = vpack.c.b16 %v5057_v58, %v5057_v58  ;;  %v11662_v58 = vld [vmem:[%s15246_s23 + $0xea0] sm:$0xf] }
 0x24f   : > { %8016 = vmatpush.bf16.xpose.msra.mxu2 %v12255_v4  ;;  %8029 = vmatpush.bf16.xpose.msra.mxu3 %v12259_v51  ;;  %v6258_v4 = vpack.c.b16 %v5058_v59, %v5058_v59  ;;  %v9859_v51 = vor.u32 %v13953_v63, %v9856_v0  ;;  %v14479_v59 = vld [vmem:[%s15246_s23 + $0x10f4] sm:$0xf0]  ;;  %v11670_v63 = vld [vmem:[%s15246_s23 + $0xea8] sm:$0xf]  ;;  %v14480_v0 = vld [vmem:[%s15246_s23 + $0x10fc] sm:$0xf0] }
 0x256   : > { %7991 = vmatpush.bf16.xpose.msra.mxu0 %v11647_v20  ;;  %8004 = vmatpush.bf16.xpose.msra.mxu1 %v11651_v43  ;;  %v13463_v20 = vor.u32 %v14929_v11, %v13462_v10  ;;  %v1503_v43 = vld [vmem:[#allocation1 + $0x1b] sm:$0xff] }
 0x257   : > { %8017 = vmatpush.bf16.xpose.msra.mxu2 %v11655_v21  ;;  %8030 = vmatpush.bf16.xpose.msra.mxu3 %v11659_v23  ;;  %v13467_v21 = vor.u32 %v14854_v12, %v13464_v14  ;;  %v13475_v23 = vor.u32 %v14855_v18, %v13472_v19  ;;  %v14254_v10 = vld [vmem:[%s15246_s23 + $0x9f4] sm:$0xf]  ;;  %v11064_v11 = vld [vmem:[%s15246_s23 + $0xc48] sm:$0xf0]  ;;  %v11070_v12 = vld [vmem:[%s15246_s23 + $0x9f8] sm:$0xf] }
 0x258   : > { %v14330_v14 = vld [vmem:[%s15246_s23 + $0xc4c] sm:$0xf0]  ;;  %v11067_v18 = vor.u32 %v14254_v10, %v11064_v11  ;;  %v12880_v10 = vld [vmem:[%s15246_s23 + $0x1a68] sm:$0xf0]  ;;  %v12886_v11 = vld [vmem:[%s15246_s23 + $0x1818] sm:$0xf] }
 0x259   : > { %v11071_v19 = vor.u32 %v14330_v14, %v11070_v12  ;;  %v14782_v12 = vld [vmem:[%s15246_s23 + $0x1a6c] sm:$0xf0]  ;;  %v14707_v14 = vld [vmem:[%s15246_s23 + $0x181c] sm:$0xf] }
 0x25e   : > { %7992 = vmatpush.bf16.xpose.msra.mxu0 %v11047_v34  ;;  %8005 = vmatpush.bf16.xpose.msra.mxu1 %v11051_v35  ;;  %v12867_v34 = vor.u32 %v14704_v26, %v12864_v28  ;;  %v12871_v35 = vor.u32 %v14780_v30, %v12870_v29  ;;  %v14105_v26 = vld [vmem:[%s15246_s23 + $0x54c] sm:$0xf]  ;;  %v10472_v28 = vld [vmem:[%s15246_s23 + $0x7a0] sm:$0xf0] }
 0x25f   : > { %8018 = vmatpush.bf16.xpose.msra.mxu2 %v11055_v61  ;;  %8031 = vmatpush.bf16.xpose.msra.mxu3 %v11059_v36  ;;  %v12875_v36 = vor.u32 %v14705_v31, %v12872_v32  ;;  %v10471_v31 = vor.u32 %v14180_v25, %v10470_v24  ;;  %v10475_v32 = vor.u32 %v14105_v26, %v10472_v28  ;;  %v14631_v24 = vld [vmem:[%s15246_s23 + $0x15b4] sm:$0xf0]  ;;  %v14556_v25 = vld [vmem:[%s15246_s23 + $0x1364] sm:$0xf]  ;;  %v12280_v26 = vld [vmem:[%s15246_s23 + $0x15b8] sm:$0xf0] }
 0x260   : > { %v12286_v28 = vld [vmem:[%s15246_s23 + $0x1368] sm:$0xf] }
 0x266   : > { %7993 = vmatpush.bf16.xpose.msra.mxu0 %v10447_v46  ;;  %8006 = vmatpush.bf16.xpose.msra.mxu1 %v10451_v47  ;;  %v14630_v46 = vld [vmem:[%s15246_s23 + $0x15ac] sm:$0xf0]  ;;  %v14555_v47 = vld [vmem:[%s15246_s23 + $0x135c] sm:$0xf] }
 0x267   : > { %8019 = vmatpush.bf16.xpose.msra.mxu2 %v10455_v48  ;;  %8032 = vmatpush.bf16.xpose.msra.mxu3 %v10459_v49  ;;  %v12272_v48 = vld [vmem:[%s15246_s23 + $0x15b0] sm:$0xf0]  ;;  %v12263_v49 = vor.u32 %v14629_v41, %v12262_v40  ;;  %v12271_v52 = vor.u32 %v14630_v46, %v12270_v45  ;;  %v13955_v45 = vld [vmem:[%s15246_s23 + $0x9c] sm:$0xf] }
 0x268   : > { %v12275_v54 = vor.u32 %v14555_v47, %v12272_v48  ;;  %v9872_v46 = vld [vmem:[%s15246_s23 + $0x2f0] sm:$0xf0] }
 0x26e   : > { %7994 = vmatpush.bf16.xpose.msra.mxu0 %v9847_v62  ;;  %8007 = vmatpush.bf16.xpose.msra.mxu1 %v9851_v2  ;;  %v11664_v62 = vld [vmem:[%s15246_s23 + $0x10f8] sm:$0xf0]  ;;  %v11672_v2 = vld [vmem:[%s15246_s23 + $0x1100] sm:$0xf0] }
 0x26f   : > { %8020 = vmatpush.bf16.xpose.msra.mxu2 %v9855_v27  ;;  %8033 = vmatpush.bf16.xpose.msra.mxu3 %v9859_v51  ;;  %v11663_v27 = vor.u32 %v14479_v59, %v11662_v58  ;;  %v11675_v51 = vor.u32 %v14405_v1, %v11672_v2  ;;  %v14931_v58 = vld [vmem:[%s15246_s23 + $0x1f14] sm:$0xf0]  ;;  %v14856_v59 = vld [vmem:[%s15246_s23 + $0x1cc4] sm:$0xf]  ;;  %v14857_v1 = vld [vmem:[%s15246_s23 + $0x1ccc] sm:$0xf] }
 0x270   : > { %v13488_v2 = vld [vmem:[%s15246_s23 + $0x1f20] sm:$0xf0] }
 0x272   : > { %v7892_v61 = vpop.f32.mrf.mxu0  ;;  %v7905_v38 = vpop.f32.mrf.mxu1 }
 0x273   : > { %v7893_v37 = vadd.f32 %v7892_v61, %v15768_v9  ;;  %v12267_v9 = vor.u32 %v14554_v42, %v12264_v44  ;;  %v14029_v61 = vld [vmem:[%s15246_s23 + $0x2e4] sm:$0xf0] }
 0x275   : > { %7995 = vmatmul.bf16.vlgmr.msra.gmra.mxu0 %v1500_v7  ;;  %8008 = vmatmul.bf16.vlgmr.msra.gmra.mxu1 %v1501_v17  ;;  %v7906_v39 = vadd.f32 %v7905_v38, %v7893_v37  ;;  %v11062_v7 = vld [vmem:[%s15246_s23 + $0x9f0] sm:$0xf]  ;;  %v9864_v37 = vld [vmem:[%s15246_s23 + $0x2e8] sm:$0xf0]  ;;  %v9870_v38 = vld [vmem:[%s15246_s23 + $0x98] sm:$0xf] }
 0x276   : > { %8039 = vmatpush.bf16.xpose.msrb.mxu0 %v6257_v3  ;;  %8052 = vmatpush.bf16.xpose.msrb.mxu1 %v6258_v4  ;;  %v11667_v3 = vor.u32 %v14404_v60, %v11664_v62  ;;  %v11671_v4 = vor.u32 %v14480_v0, %v11670_v63  ;;  %v13480_v60 = vld [vmem:[%s15246_s23 + $0x1f18] sm:$0xf0]  ;;  %v13486_v62 = vld [vmem:[%s15246_s23 + $0x1cc8] sm:$0xf]  ;;  %v14932_v63 = vld [vmem:[%s15246_s23 + $0x1f1c] sm:$0xf0] }
 0x277   : > { %8065 = vmatpush.bf16.xpose.msrb.mxu2 %v6259_v5  ;;  %8078 = vmatpush.bf16.xpose.msrb.mxu3 %v6260_v6  ;;  %v1505_v0 = vld [vmem:[#allocation1 + $0x2d] sm:$0xff] }
 0x278   : > { %8021 = vmatmul.bf16.vlgmr.msra.gmra.mxu2 %v1502_v8  ;;  %8034 = vmatmul.bf16.vlgmr.msra.gmra.mxu3 %v1503_v43  ;;  %v14329_v8 = vld [vmem:[%s15246_s23 + $0xc44] sm:$0xf0]  ;;  %v10462_v43 = vld [vmem:[%s15246_s23 + $0x540] sm:$0xf] }
 0x279   : > { %v11063_v17 = vor.u32 %v14329_v8, %v11062_v7  ;;  %v14781_v7 = vld [vmem:[%s15246_s23 + $0x1a64] sm:$0xf0]  ;;  %v14706_v8 = vld [vmem:[%s15246_s23 + $0x1814] sm:$0xf] }
 0x27a   : > { %v7894_v13 = vpop.f32.mrf.mxu0  ;;  %v7907_v56 = vpop.f32.mrf.mxu1 }
 0x27b   : > { %v7918_v50 = vpop.f32.mrf.mxu2  ;;  %v7931_v55 = vpop.f32.mrf.mxu3  ;;  %v1504_v13 = vld [vmem:[#allocation1 + $0x24] sm:$0xff] }
 0x27c   : > { %v7919_v53 = vadd.f32 %v7918_v50, %v7906_v39  ;;  %v14030_v39 = vld [vmem:[%s15246_s23 + $0x2ec] sm:$0xf0]  ;;  %v13478_v56 = vld [vmem:[%s15246_s23 + $0x1cc0] sm:$0xf] }
 0x27e   : > { %8040 = vmatpush.bf16.xpose.msrb.mxu0 %v13463_v20  ;;  %8053 = vmatpush.bf16.xpose.msrb.mxu1 %v13467_v21  ;;  %v15830_v57 = vadd.f32 %v7931_v55, %v7919_v53  ;;  %v11075_v20 = vor.u32 %v14255_v15, %v11072_v16  ;;  %v14179_v21 = vld [vmem:[%s15246_s23 + $0x794] sm:$0xf0]  ;;  %v9875_v53 = vor.u32 %v13955_v45, %v9872_v46  ;;  %v1506_v55 = vld [vmem:[#allocation1 + $0x36] sm:$0xff]  ;;  %v12888_v15 = vld [vmem:[%s15246_s23 + $0x1a70] sm:$0xf0] }
 0x27f   : > { %8066 = vmatpush.bf16.xpose.msrb.mxu2 %v13471_v22  ;;  %8079 = vmatpush.bf16.xpose.msrb.mxu3 %v13475_v23  ;;  %v14104_v22 = vld [vmem:[%s15246_s23 + $0x544] sm:$0xf]  ;;  %v10464_v23 = vld [vmem:[%s15246_s23 + $0x798] sm:$0xf0]  ;;  %v10463_v29 = vor.u32 %v14179_v21, %v10462_v43  ;;  %v11680_v45 = vld [vmem:[%s15246_s23 + $0x1108] sm:$0xf0] }
 0x280   : > { %v10467_v30 = vor.u32 %v14104_v22, %v10464_v23  ;;  %v12278_v23 = vld [vmem:[%s15246_s23 + $0x1360] sm:$0xf]  ;;  %v11686_v46 = vld [vmem:[%s15246_s23 + $0xeb8] sm:$0xf] }
 0x283   : > { %v7920_v5 = vpop.f32.mrf.mxu2  ;;  %v7933_v6 = vpop.f32.mrf.mxu3 }
 0x284   : > { %v13487_v5 = vor.u32 %v14932_v63, %v13486_v62  ;;  %v12878_v6 = vld [vmem:[%s15246_s23 + $0x1810] sm:$0xf]  ;;  %v14332_v62 = vld [vmem:[%s15246_s23 + $0xc5c] sm:$0xf0]  ;;  %v14257_v63 = vld [vmem:[%s15246_s23 + $0xa0c] sm:$0xf] }
 0x285   : > { %v12879_v16 = vor.u32 %v14781_v7, %v12878_v6  ;;  %v10480_v6 = vld [vmem:[%s15246_s23 + $0x7a8] sm:$0xf0]  ;;  %v10486_v7 = vld [vmem:[%s15246_s23 + $0x558] sm:$0xf] }
 0x286   : > { %8041 = vmatpush.bf16.xpose.msrb.mxu0 %v12863_v33  ;;  %8054 = vmatpush.bf16.xpose.msrb.mxu1 %v12867_v34  ;;  %v1403_v33 = vld [vmem:[%s15246_s23 + $0x2170] sm:$0xff]  ;;  %v1404_v34 = vld [vmem:[%s15246_s23 + $0x2178] sm:$0xff] }
 0x287   : > { %8067 = vmatpush.bf16.xpose.msrb.mxu2 %v12871_v35  ;;  %8080 = vmatpush.bf16.xpose.msrb.mxu3 %v12875_v36  ;;  %v9862_v35 = vld [vmem:[%s15246_s23 + $0x90] sm:$0xf]  ;;  %v13954_v36 = vld [vmem:[%s15246_s23 + $0x94] sm:$0xf]  ;;  %v5061_v40 = vunpack.c.l.b16 %v1403_v33  ;;  %v5062_v41 = vunpack.c.h.b16 %v1403_v33  ;;  %v5063_v42 = vunpack.c.l.b16 %v1404_v34  ;;  %v5064_v47 = vunpack.c.h.b16 %v1404_v34 }
 0x288   : > { %v9863_v44 = vor.u32 %v14029_v61, %v9862_v35  ;;  %v9867_v48 = vor.u32 %v13954_v36, %v9864_v37  ;;  %v12283_v33 = vor.u32 %v14556_v25, %v12280_v26 }
 0x289   : > { %v6261_v50 = vpack.c.b16 %v5061_v40, %v5061_v40  ;;  %v11678_v40 = vld [vmem:[%s15246_s23 + $0xeb0] sm:$0xf] }
 0x28e   : > { %8042 = vmatpush.bf16.xpose.msrb.mxu0 %v12263_v49  ;;  %8055 = vmatpush.bf16.xpose.msrb.mxu1 %v12267_v9  ;;  %v9871_v49 = vor.u32 %v14030_v39, %v9870_v38  ;;  %v6262_v9 = vpack.c.b16 %v5062_v41, %v5062_v41  ;;  %v319_v41 = vld [vmem:[%s15256_s19 + $0x28] sm:$0xff] }
 0x28f   : > { %8068 = vmatpush.bf16.xpose.msrb.mxu2 %v12271_v52  ;;  %8081 = vmatpush.bf16.xpose.msrb.mxu3 %v12275_v54  ;;  %v6263_v52 = vpack.c.b16 %v5063_v42, %v5063_v42  ;;  %v6264_v54 = vpack.c.b16 %v5064_v47, %v5064_v47  ;;  %v14481_v42 = vld [vmem:[%s15246_s23 + $0x1104] sm:$0xf0]  ;;  %v14482_v47 = vld [vmem:[%s15246_s23 + $0x110c] sm:$0xf0] }
 0x296   : > { %8043 = vmatpush.bf16.xpose.msrb.mxu0 %v11663_v27  ;;  %8056 = vmatpush.bf16.xpose.msrb.mxu1 %v11667_v3  ;;  %v13479_v27 = vor.u32 %v14931_v58, %v13478_v56  ;;  %v1507_v3 = vld [vmem:[#allocation1 + $0x3f] sm:$0xff]  ;;  %v14256_v58 = vld [vmem:[%s15246_s23 + $0xa04] sm:$0xf] }
 0x297   : > { %8069 = vmatpush.bf16.xpose.msrb.mxu2 %v11671_v4  ;;  %8082 = vmatpush.bf16.xpose.msrb.mxu3 %v11675_v51  ;;  %v13483_v4 = vor.u32 %v14856_v59, %v13480_v60  ;;  %v13491_v51 = vor.u32 %v14857_v1, %v13488_v2  ;;  %1509 = vst [vmem:[#allocation1] ss:$9 sm:$0xff] %v319_v41  ;;  %v14331_v56 = vld [vmem:[%s15246_s23 + $0xc54] sm:$0xf0]  ;;  %v11080_v59 = vld [vmem:[%s15246_s23 + $0xc58] sm:$0xf0] }
 0x298   : > { %v11086_v60 = vld [vmem:[%s15246_s23 + $0xa08] sm:$0xf]  ;;  %v11083_v2 = vor.u32 %v14256_v58, %v11080_v59  ;;  %v12896_v58 = vld [vmem:[%s15246_s23 + $0x1a78] sm:$0xf0] }
 0x299   : > { %v14933_v41 = vld [vmem:[%s15246_s23 + $0x1f24] sm:$0xf0] }
 0x29a   : > { %v12902_v59 = vld [vmem:[%s15246_s23 + $0x1828] sm:$0xf] }
 0x29e   : > { %8044 = vmatpush.bf16.xpose.msrb.mxu0 %v11063_v17  ;;  %8057 = vmatpush.bf16.xpose.msrb.mxu1 %v11067_v18  ;;  %v12883_v17 = vor.u32 %v14706_v8, %v12880_v10  ;;  %v12887_v18 = vor.u32 %v14782_v12, %v12886_v11  ;;  %v14182_v8 = vld [vmem:[%s15246_s23 + $0x7ac] sm:$0xf0]  ;;  %v14107_v10 = vld [vmem:[%s15246_s23 + $0x55c] sm:$0xf]  ;;  %v10488_v11 = vld [vmem:[%s15246_s23 + $0x7b0] sm:$0xf0] }
 0x29f   : > { %8070 = vmatpush.bf16.xpose.msrb.mxu2 %v11071_v19  ;;  %8083 = vmatpush.bf16.xpose.msrb.mxu3 %v11075_v20  ;;  %v12891_v20 = vor.u32 %v14707_v14, %v12888_v15  ;;  %v10487_v15 = vor.u32 %v14182_v8, %v10486_v7  ;;  %v14633_v7 = vld [vmem:[%s15246_s23 + $0x15c4] sm:$0xf0]  ;;  %v14558_v8 = vld [vmem:[%s15246_s23 + $0x1374] sm:$0xf] }
 0x2a6   : > { %8045 = vmatpush.bf16.xpose.msrb.mxu0 %v10463_v29  ;;  %8058 = vmatpush.bf16.xpose.msrb.mxu1 %v10467_v30  ;;  %v14632_v29 = vld [vmem:[%s15246_s23 + $0x15bc] sm:$0xf0]  ;;  %v14557_v30 = vld [vmem:[%s15246_s23 + $0x136c] sm:$0xf] }
 0x2a7   : > { %8071 = vmatpush.bf16.xpose.msrb.mxu2 %v10471_v31  ;;  %8084 = vmatpush.bf16.xpose.msrb.mxu3 %v10475_v32  ;;  %v12288_v31 = vld [vmem:[%s15246_s23 + $0x15c0] sm:$0xf0]  ;;  %v12279_v32 = vor.u32 %v14631_v24, %v12278_v23  ;;  %v12287_v34 = vor.u32 %v14632_v29, %v12286_v28  ;;  %v14032_v23 = vld [vmem:[%s15246_s23 + $0x2fc] sm:$0xf0]  ;;  %v13957_v29 = vld [vmem:[%s15246_s23 + $0xac] sm:$0xf] }
 0x2a8   : > { %v12291_v61 = vor.u32 %v14557_v30, %v12288_v31  ;;  %v9888_v30 = vld [vmem:[%s15246_s23 + $0x300] sm:$0xf0] }
 0x2ae   : > { %8046 = vmatpush.bf16.xpose.msrb.mxu0 %v9863_v44  ;;  %8059 = vmatpush.bf16.xpose.msrb.mxu1 %v9867_v48  ;;  %v14406_v44 = vld [vmem:[%s15246_s23 + $0xeb4] sm:$0xf]  ;;  %v14407_v48 = vld [vmem:[%s15246_s23 + $0xebc] sm:$0xf] }
 0x2af   : > { %8072 = vmatpush.bf16.xpose.msrb.mxu2 %v9871_v49  ;;  %8085 = vmatpush.bf16.xpose.msrb.mxu3 %v9875_v53  ;;  %v11688_v49 = vld [vmem:[%s15246_s23 + $0x1110] sm:$0xf0] }
 0x2b2   : > { %v7944_v19 = vpop.f32.mrf.mxu0  ;;  %v7957_v21 = vpop.f32.mrf.mxu1 }
 0x2b3   : > { %v7945_v43 = vadd.f32 %v7944_v19, %v15830_v57  ;;  %v9878_v19 = vld [vmem:[%s15246_s23 + $0xa0] sm:$0xf] }
 0x2b5   : > { %8047 = vmatmul.bf16.vlgmr.msrb.gmra.mxu0 %v1504_v13  ;;  %8060 = vmatmul.bf16.vlgmr.msrb.gmra.mxu1 %v1505_v0  ;;  %v7958_v22 = vadd.f32 %v7957_v21, %v7945_v43  ;;  %v11088_v0 = vld [vmem:[%s15246_s23 + $0xc60] sm:$0xf0]  ;;  %v9880_v21 = vld [vmem:[%s15246_s23 + $0x2f8] sm:$0xf0] }
 0x2b6   : > { %8091 = vmatpush.bf16.xpose.msra.mxu0 %v6261_v50  ;;  %8104 = vmatpush.bf16.xpose.msra.mxu1 %v6262_v9  ;;  %v11679_v50 = vor.u32 %v14481_v42, %v11678_v40  ;;  %v11683_v9 = vor.u32 %v14406_v44, %v11680_v45  ;;  %v13956_v43 = vld [vmem:[%s15246_s23 + $0xa4] sm:$0xf]  ;;  %v13494_v40 = vld [vmem:[%s15246_s23 + $0x1cd0] sm:$0xf]  ;;  %v14858_v42 = vld [vmem:[%s15246_s23 + $0x1cd4] sm:$0xf] }
 0x2b7   : > { %8117 = vmatpush.bf16.xpose.msra.mxu2 %v6263_v52  ;;  %8130 = vmatpush.bf16.xpose.msra.mxu3 %v6264_v54  ;;  %v11687_v52 = vor.u32 %v14482_v47, %v11686_v46  ;;  %v11691_v54 = vor.u32 %v14407_v48, %v11688_v49  ;;  %v13496_v44 = vld [vmem:[%s15246_s23 + $0x1f28] sm:$0xf0]  ;;  %v13502_v45 = vld [vmem:[%s15246_s23 + $0x1cd8] sm:$0xf]  ;;  %v14934_v46 = vld [vmem:[%s15246_s23 + $0x1f2c] sm:$0xf0] }
 0x2b8   : > { %8073 = vmatmul.bf16.vlgmr.msrb.gmra.mxu2 %v1506_v55  ;;  %8086 = vmatmul.bf16.vlgmr.msrb.gmra.mxu3 %v1507_v3  ;;  %v11078_v55 = vld [vmem:[%s15246_s23 + $0xa00] sm:$0xf]  ;;  %v11091_v3 = vor.u32 %v14257_v63, %v11088_v0  ;;  %v14859_v48 = vld [vmem:[%s15246_s23 + $0x1cdc] sm:$0xf]  ;;  %v13504_v49 = vld [vmem:[%s15246_s23 + $0x1f30] sm:$0xf0] }
 0x2b9   : > { %v11079_v1 = vor.u32 %v14331_v56, %v11078_v55  ;;  %v1511_v47 = vld [vmem:[#allocation1 + $0x9] sm:$0xff] }
 0x2ba   : > { %v7946_v36 = vpop.f32.mrf.mxu0  ;;  %v7959_v38 = vpop.f32.mrf.mxu1  ;;  %v14783_v55 = vld [vmem:[%s15246_s23 + $0x1a74] sm:$0xf0]  ;;  %v14708_v56 = vld [vmem:[%s15246_s23 + $0x1824] sm:$0xf] }
 0x2bb   : > { %v7970_v57 = vpop.f32.mrf.mxu2  ;;  %v7983_v37 = vpop.f32.mrf.mxu3  ;;  %v1512_v38 = vld [vmem:[#allocation1 + $0x12] sm:$0xff] }
 0x2bc   : > { %v7971_v35 = vadd.f32 %v7970_v57, %v7958_v22  ;;  %v9886_v22 = vld [vmem:[%s15246_s23 + $0xa8] sm:$0xf]  ;;  %v12904_v63 = vld [vmem:[%s15246_s23 + $0x1a80] sm:$0xf0] }
 0x2bd   : > { %v9887_v57 = vor.u32 %v14032_v23, %v9886_v22 }
 0x2be   : > { %8092 = vmatpush.bf16.xpose.msra.mxu0 %v13479_v27  ;;  %8105 = vmatpush.bf16.xpose.msra.mxu1 %v13483_v4  ;;  %v15891_v39 = vadd.f32 %v7983_v37, %v7971_v35  ;;  %v11087_v27 = vor.u32 %v14332_v62, %v11086_v60  ;;  %v10478_v4 = vld [vmem:[%s15246_s23 + $0x550] sm:$0xf]  ;;  %v14784_v60 = vld [vmem:[%s15246_s23 + $0x1a7c] sm:$0xf0]  ;;  %v14709_v62 = vld [vmem:[%s15246_s23 + $0x182c] sm:$0xf] }
 0x2bf   : > { %8118 = vmatpush.bf16.xpose.msra.mxu2 %v13487_v5  ;;  %8131 = vmatpush.bf16.xpose.msra.mxu3 %v13491_v51  ;;  %v14181_v5 = vld [vmem:[%s15246_s23 + $0x7a4] sm:$0xf0]  ;;  %v14106_v51 = vld [vmem:[%s15246_s23 + $0x554] sm:$0xf] }
 0x2c0   : > { %v10479_v12 = vor.u32 %v14181_v5, %v10478_v4  ;;  %v10483_v14 = vor.u32 %v14106_v51, %v10480_v6  ;;  %v1510_v37 = vld [vmem:[#allocation1] sm:$0xff] }
 0x2c1   : > { %v12294_v6 = vld [vmem:[%s15246_s23 + $0x1370] sm:$0xf] }
 0x2c3   : > { %v7972_v53 = vpop.f32.mrf.mxu2  ;;  %v7985_v13 = vpop.f32.mrf.mxu3 }
 0x2c4   : > { %v13503_v53 = vor.u32 %v14934_v46, %v13502_v45  ;;  %v12894_v13 = vld [vmem:[%s15246_s23 + $0x1820] sm:$0xf]  ;;  %v14259_v45 = vld [vmem:[%s15246_s23 + $0xa1c] sm:$0xf]  ;;  %v11104_v46 = vld [vmem:[%s15246_s23 + $0xc70] sm:$0xf0] }
 0x2c5   : > { %v12895_v0 = vor.u32 %v14783_v55, %v12894_v13  ;;  %v10502_v13 = vld [vmem:[%s15246_s23 + $0x568] sm:$0xf]  ;;  %v14184_v55 = vld [vmem:[%s15246_s23 + $0x7bc] sm:$0xf0] }
 0x2c6   : > { %8093 = vmatpush.bf16.xpose.msra.mxu0 %v12879_v16  ;;  %8106 = vmatpush.bf16.xpose.msra.mxu1 %v12883_v17  ;;  %v10491_v16 = vor.u32 %v14107_v10, %v10488_v11  ;;  %v1405_v17 = vld [vmem:[%s15246_s23 + $0x2180] sm:$0xff]  ;;  %v12296_v10 = vld [vmem:[%s15246_s23 + $0x15c8] sm:$0xf0]  ;;  %v12302_v11 = vld [vmem:[%s15246_s23 + $0x1378] sm:$0xf] }
 0x2c7   : > { %8119 = vmatpush.bf16.xpose.msra.mxu2 %v12887_v18  ;;  %8132 = vmatpush.bf16.xpose.msra.mxu3 %v12891_v20  ;;  %v1406_v18 = vld [vmem:[%s15246_s23 + $0x2188] sm:$0xff]  ;;  %v14031_v20 = vld [vmem:[%s15246_s23 + $0x2f4] sm:$0xf0]  ;;  %v5065_v24 = vunpack.c.l.b16 %v1405_v17  ;;  %v5066_v25 = vunpack.c.h.b16 %v1405_v17 }
 0x2c8   : > { %v5067_v26 = vunpack.c.l.b16 %v1406_v18  ;;  %v9879_v28 = vor.u32 %v14031_v20, %v9878_v19  ;;  %v5068_v31 = vunpack.c.h.b16 %v1406_v18 }
 0x2ca   : > { %v6267_v35 = vpack.c.b16 %v5067_v26, %v5067_v26  ;;  %v6268_v36 = vpack.c.b16 %v5068_v31, %v5068_v31  ;;  %v14408_v26 = vld [vmem:[%s15246_s23 + $0xec4] sm:$0xf]  ;;  %v14409_v31 = vld [vmem:[%s15246_s23 + $0xecc] sm:$0xf] }
 0x2ce   : > { %8094 = vmatpush.bf16.xpose.msra.mxu0 %v12279_v32  ;;  %8107 = vmatpush.bf16.xpose.msra.mxu1 %v12283_v33  ;;  %v9883_v32 = vor.u32 %v13956_v43, %v9880_v21  ;;  %v6265_v33 = vpack.c.b16 %v5065_v24, %v5065_v24  ;;  %v11694_v24 = vld [vmem:[%s15246_s23 + $0xec0] sm:$0xf] }
 0x2cf   : > { %8120 = vmatpush.bf16.xpose.msra.mxu2 %v12287_v34  ;;  %8133 = vmatpush.bf16.xpose.msra.mxu3 %v12291_v61  ;;  %v6266_v34 = vpack.c.b16 %v5066_v25, %v5066_v25  ;;  %v9891_v61 = vor.u32 %v13957_v29, %v9888_v30  ;;  %v14483_v25 = vld [vmem:[%s15246_s23 + $0x1114] sm:$0xf0]  ;;  %v11702_v29 = vld [vmem:[%s15246_s23 + $0xec8] sm:$0xf]  ;;  %v14484_v30 = vld [vmem:[%s15246_s23 + $0x111c] sm:$0xf0] }
 0x2d6   : > { %8095 = vmatpush.bf16.xpose.msra.mxu0 %v11679_v50  ;;  %8108 = vmatpush.bf16.xpose.msra.mxu1 %v11683_v9  ;;  %v13495_v50 = vor.u32 %v14933_v41, %v13494_v40  ;;  %v1513_v9 = vld [vmem:[#allocation1 + $0x1b] sm:$0xff] }
 0x2d7   : > { %8121 = vmatpush.bf16.xpose.msra.mxu2 %v11687_v52  ;;  %8134 = vmatpush.bf16.xpose.msra.mxu3 %v11691_v54  ;;  %v13499_v52 = vor.u32 %v14858_v42, %v13496_v44  ;;  %v13507_v54 = vor.u32 %v14859_v48, %v13504_v49  ;;  %v14258_v40 = vld [vmem:[%s15246_s23 + $0xa14] sm:$0xf]  ;;  %v11096_v41 = vld [vmem:[%s15246_s23 + $0xc68] sm:$0xf0]  ;;  %v11102_v42 = vld [vmem:[%s15246_s23 + $0xa18] sm:$0xf] }
 0x2d8   : > { %v14334_v44 = vld [vmem:[%s15246_s23 + $0xc6c] sm:$0xf0]  ;;  %v11099_v48 = vor.u32 %v14258_v40, %v11096_v41  ;;  %v12912_v40 = vld [vmem:[%s15246_s23 + $0x1a88] sm:$0xf0]  ;;  %v12918_v41 = vld [vmem:[%s15246_s23 + $0x1838] sm:$0xf] }
 0x2d9   : > { %v11103_v49 = vor.u32 %v14334_v44, %v11102_v42  ;;  %v14786_v42 = vld [vmem:[%s15246_s23 + $0x1a8c] sm:$0xf0]  ;;  %v14711_v44 = vld [vmem:[%s15246_s23 + $0x183c] sm:$0xf] }
 0x2de   : > { %8096 = vmatpush.bf16.xpose.msra.mxu0 %v11079_v1  ;;  %8109 = vmatpush.bf16.xpose.msra.mxu1 %v11083_v2  ;;  %v12899_v1 = vor.u32 %v14708_v56, %v12896_v58  ;;  %v12903_v2 = vor.u32 %v14784_v60, %v12902_v59  ;;  %v14109_v56 = vld [vmem:[%s15246_s23 + $0x56c] sm:$0xf]  ;;  %v10504_v58 = vld [vmem:[%s15246_s23 + $0x7c0] sm:$0xf0] }
 0x2df   : > { %8122 = vmatpush.bf16.xpose.msra.mxu2 %v11087_v27  ;;  %8135 = vmatpush.bf16.xpose.msra.mxu3 %v11091_v3  ;;  %v12907_v3 = vor.u32 %v14709_v62, %v12904_v63  ;;  %v10503_v62 = vor.u32 %v14184_v55, %v10502_v13  ;;  %v10507_v63 = vor.u32 %v14109_v56, %v10504_v58  ;;  %v14635_v13 = vld [vmem:[%s15246_s23 + $0x15d4] sm:$0xf0]  ;;  %v14560_v55 = vld [vmem:[%s15246_s23 + $0x1384] sm:$0xf]  ;;  %v12312_v56 = vld [vmem:[%s15246_s23 + $0x15d8] sm:$0xf0] }
 0x2e0   : > { %v12318_v58 = vld [vmem:[%s15246_s23 + $0x1388] sm:$0xf] }
 0x2e6   : > { %8097 = vmatpush.bf16.xpose.msra.mxu0 %v10479_v12  ;;  %8110 = vmatpush.bf16.xpose.msra.mxu1 %v10483_v14  ;;  %v14634_v12 = vld [vmem:[%s15246_s23 + $0x15cc] sm:$0xf0]  ;;  %v14559_v14 = vld [vmem:[%s15246_s23 + $0x137c] sm:$0xf] }
 0x2e7   : > { %8123 = vmatpush.bf16.xpose.msra.mxu2 %v10487_v15  ;;  %8136 = vmatpush.bf16.xpose.msra.mxu3 %v10491_v16  ;;  %v12304_v15 = vld [vmem:[%s15246_s23 + $0x15d0] sm:$0xf0]  ;;  %v12295_v16 = vor.u32 %v14633_v7, %v12294_v6  ;;  %v12303_v18 = vor.u32 %v14634_v12, %v12302_v11  ;;  %v13959_v11 = vld [vmem:[%s15246_s23 + $0xbc] sm:$0xf] }
 0x2e8   : > { %v12307_v20 = vor.u32 %v14559_v14, %v12304_v15  ;;  %v9904_v12 = vld [vmem:[%s15246_s23 + $0x310] sm:$0xf0] }
 0x2ee   : > { %8098 = vmatpush.bf16.xpose.msra.mxu0 %v9879_v28  ;;  %8111 = vmatpush.bf16.xpose.msra.mxu1 %v9883_v32  ;;  %v11696_v28 = vld [vmem:[%s15246_s23 + $0x1118] sm:$0xf0]  ;;  %v11704_v32 = vld [vmem:[%s15246_s23 + $0x1120] sm:$0xf0] }
 0x2ef   : > { %8124 = vmatpush.bf16.xpose.msra.mxu2 %v9887_v57  ;;  %8137 = vmatpush.bf16.xpose.msra.mxu3 %v9891_v61  ;;  %v11695_v57 = vor.u32 %v14483_v25, %v11694_v24  ;;  %v11707_v61 = vor.u32 %v14409_v31, %v11704_v32  ;;  %v14935_v24 = vld [vmem:[%s15246_s23 + $0x1f34] sm:$0xf0]  ;;  %v14860_v25 = vld [vmem:[%s15246_s23 + $0x1ce4] sm:$0xf]  ;;  %v14861_v31 = vld [vmem:[%s15246_s23 + $0x1cec] sm:$0xf] }
 0x2f0   : > { %v13520_v32 = vld [vmem:[%s15246_s23 + $0x1f40] sm:$0xf0] }
 0x2f2   : > { %v7996_v27 = vpop.f32.mrf.mxu0  ;;  %v8009_v5 = vpop.f32.mrf.mxu1 }
 0x2f3   : > { %v7997_v4 = vadd.f32 %v7996_v27, %v15891_v39  ;;  %v12299_v39 = vor.u32 %v14558_v8, %v12296_v10  ;;  %v14033_v27 = vld [vmem:[%s15246_s23 + $0x304] sm:$0xf0] }
 0x2f5   : > { %8099 = vmatmul.bf16.vlgmr.msra.gmra.mxu0 %v1510_v37  ;;  %8112 = vmatmul.bf16.vlgmr.msra.gmra.mxu1 %v1511_v47  ;;  %v8010_v51 = vadd.f32 %v8009_v5, %v7997_v4  ;;  %v11094_v37 = vld [vmem:[%s15246_s23 + $0xa10] sm:$0xf]  ;;  %v9896_v4 = vld [vmem:[%s15246_s23 + $0x308] sm:$0xf0]  ;;  %v9902_v5 = vld [vmem:[%s15246_s23 + $0xb8] sm:$0xf] }
 0x2f6   : > { %8143 = vmatpush.bf16.xpose.msrb.mxu0 %v6265_v33  ;;  %8156 = vmatpush.bf16.xpose.msrb.mxu1 %v6266_v34  ;;  %v11699_v33 = vor.u32 %v14408_v26, %v11696_v28  ;;  %v11703_v34 = vor.u32 %v14484_v30, %v11702_v29  ;;  %v13512_v26 = vld [vmem:[%s15246_s23 + $0x1f38] sm:$0xf0]  ;;  %v13518_v28 = vld [vmem:[%s15246_s23 + $0x1ce8] sm:$0xf]  ;;  %v14936_v29 = vld [vmem:[%s15246_s23 + $0x1f3c] sm:$0xf0] }
 0x2f7   : > { %8169 = vmatpush.bf16.xpose.msrb.mxu2 %v6267_v35  ;;  %8182 = vmatpush.bf16.xpose.msrb.mxu3 %v6268_v36  ;;  %v1515_v30 = vld [vmem:[#allocation1 + $0x2d] sm:$0xff] }
 0x2f8   : > { %8125 = vmatmul.bf16.vlgmr.msra.gmra.mxu2 %v1512_v38  ;;  %8138 = vmatmul.bf16.vlgmr.msra.gmra.mxu3 %v1513_v9  ;;  %v14333_v38 = vld [vmem:[%s15246_s23 + $0xc64] sm:$0xf0]  ;;  %v10494_v9 = vld [vmem:[%s15246_s23 + $0x560] sm:$0xf] }
 0x2f9   : > { %v11095_v47 = vor.u32 %v14333_v38, %v11094_v37  ;;  %v14785_v37 = vld [vmem:[%s15246_s23 + $0x1a84] sm:$0xf0]  ;;  %v14710_v38 = vld [vmem:[%s15246_s23 + $0x1834] sm:$0xf] }
 0x2fa   : > { %v7998_v43 = vpop.f32.mrf.mxu0  ;;  %v8011_v22 = vpop.f32.mrf.mxu1 }
 0x2fb   : > { %v8022_v17 = vpop.f32.mrf.mxu2  ;;  %v8035_v21 = vpop.f32.mrf.mxu3  ;;  %v1514_v43 = vld [vmem:[#allocation1 + $0x24] sm:$0xff] }
 0x2fc   : > { %v8023_v19 = vadd.f32 %v8022_v17, %v8010_v51  ;;  %v14034_v51 = vld [vmem:[%s15246_s23 + $0x30c] sm:$0xf0]  ;;  %v13510_v22 = vld [vmem:[%s15246_s23 + $0x1ce0] sm:$0xf] }
 0x2fe   : > { %8144 = vmatpush.bf16.xpose.msrb.mxu0 %v13495_v50  ;;  %8157 = vmatpush.bf16.xpose.msrb.mxu1 %v13499_v52  ;;  %v15953_v23 = vadd.f32 %v8035_v21, %v8023_v19  ;;  %v11107_v50 = vor.u32 %v14259_v45, %v11104_v46  ;;  %v14183_v52 = vld [vmem:[%s15246_s23 + $0x7b4] sm:$0xf0]  ;;  %v9907_v19 = vor.u32 %v13959_v11, %v9904_v12  ;;  %v1516_v21 = vld [vmem:[#allocation1 + $0x36] sm:$0xff]  ;;  %v12920_v45 = vld [vmem:[%s15246_s23 + $0x1a90] sm:$0xf0] }
 0x2ff   : > { %8170 = vmatpush.bf16.xpose.msrb.mxu2 %v13503_v53  ;;  %8183 = vmatpush.bf16.xpose.msrb.mxu3 %v13507_v54  ;;  %v14108_v53 = vld [vmem:[%s15246_s23 + $0x564] sm:$0xf]  ;;  %v10496_v54 = vld [vmem:[%s15246_s23 + $0x7b8] sm:$0xf0]  ;;  %v10495_v59 = vor.u32 %v14183_v52, %v10494_v9  ;;  %v11712_v11 = vld [vmem:[%s15246_s23 + $0x1128] sm:$0xf0] }
 0x300   : > { %v10499_v60 = vor.u32 %v14108_v53, %v10496_v54  ;;  %v12310_v54 = vld [vmem:[%s15246_s23 + $0x1380] sm:$0xf]  ;;  %v11718_v12 = vld [vmem:[%s15246_s23 + $0xed8] sm:$0xf] }
 0x303   : > { %v8024_v35 = vpop.f32.mrf.mxu2  ;;  %v8037_v36 = vpop.f32.mrf.mxu3 }
 0x304   : > { %v13519_v35 = vor.u32 %v14936_v29, %v13518_v28  ;;  %v12910_v36 = vld [vmem:[%s15246_s23 + $0x1830] sm:$0xf]  ;;  %v14336_v28 = vld [vmem:[%s15246_s23 + $0xc7c] sm:$0xf0]  ;;  %v14261_v29 = vld [vmem:[%s15246_s23 + $0xa2c] sm:$0xf] }
 0x305   : > { %v12911_v46 = vor.u32 %v14785_v37, %v12910_v36  ;;  %v10512_v36 = vld [vmem:[%s15246_s23 + $0x7c8] sm:$0xf0]  ;;  %v10518_v37 = vld [vmem:[%s15246_s23 + $0x578] sm:$0xf] }
 0x306   : > { %8145 = vmatpush.bf16.xpose.msrb.mxu0 %v12895_v0  ;;  %8158 = vmatpush.bf16.xpose.msrb.mxu1 %v12899_v1  ;;  %v1407_v0 = vld [vmem:[%s15246_s23 + $0x2190] sm:$0xff]  ;;  %v1408_v1 = vld [vmem:[%s15246_s23 + $0x2198] sm:$0xff] }
 0x307   : > { %8171 = vmatpush.bf16.xpose.msrb.mxu2 %v12903_v2  ;;  %8184 = vmatpush.bf16.xpose.msrb.mxu3 %v12907_v3  ;;  %v9894_v2 = vld [vmem:[%s15246_s23 + $0xb0] sm:$0xf]  ;;  %v13958_v3 = vld [vmem:[%s15246_s23 + $0xb4] sm:$0xf]  ;;  %v5069_v6 = vunpack.c.l.b16 %v1407_v0  ;;  %v5070_v7 = vunpack.c.h.b16 %v1407_v0  ;;  %v5071_v8 = vunpack.c.l.b16 %v1408_v1  ;;  %v5072_v14 = vunpack.c.h.b16 %v1408_v1 }
 0x308   : > { %v9895_v10 = vor.u32 %v14033_v27, %v9894_v2  ;;  %v9899_v15 = vor.u32 %v13958_v3, %v9896_v4  ;;  %v12315_v0 = vor.u32 %v14560_v55, %v12312_v56 }
 0x309   : > { %v6269_v17 = vpack.c.b16 %v5069_v6, %v5069_v6  ;;  %v11710_v6 = vld [vmem:[%s15246_s23 + $0xed0] sm:$0xf] }
 0x30e   : > { %8146 = vmatpush.bf16.xpose.msrb.mxu0 %v12295_v16  ;;  %8159 = vmatpush.bf16.xpose.msrb.mxu1 %v12299_v39  ;;  %v9903_v16 = vor.u32 %v14034_v51, %v9902_v5  ;;  %v6270_v39 = vpack.c.b16 %v5070_v7, %v5070_v7  ;;  %v320_v7 = vld [vmem:[%s15256_s19 + $0x30] sm:$0xff] }
 0x30f   : > { %8172 = vmatpush.bf16.xpose.msrb.mxu2 %v12303_v18  ;;  %8185 = vmatpush.bf16.xpose.msrb.mxu3 %v12307_v20  ;;  %v6271_v18 = vpack.c.b16 %v5071_v8, %v5071_v8  ;;  %v6272_v20 = vpack.c.b16 %v5072_v14, %v5072_v14  ;;  %v14485_v8 = vld [vmem:[%s15246_s23 + $0x1124] sm:$0xf0]  ;;  %v14486_v14 = vld [vmem:[%s15246_s23 + $0x112c] sm:$0xf0] }
 0x316   : > { %8147 = vmatpush.bf16.xpose.msrb.mxu0 %v11695_v57  ;;  %8160 = vmatpush.bf16.xpose.msrb.mxu1 %v11699_v33  ;;  %v13511_v57 = vor.u32 %v14935_v24, %v13510_v22  ;;  %v1517_v33 = vld [vmem:[#allocation1 + $0x3f] sm:$0xff]  ;;  %v14260_v24 = vld [vmem:[%s15246_s23 + $0xa24] sm:$0xf] }
 0x317   : > { %8173 = vmatpush.bf16.xpose.msrb.mxu2 %v11703_v34  ;;  %8186 = vmatpush.bf16.xpose.msrb.mxu3 %v11707_v61  ;;  %v13515_v34 = vor.u32 %v14860_v25, %v13512_v26  ;;  %v13523_v61 = vor.u32 %v14861_v31, %v13520_v32  ;;  %1519 = vst [vmem:[#allocation1] ss:$9 sm:$0xff] %v320_v7  ;;  %v14335_v22 = vld [vmem:[%s15246_s23 + $0xc74] sm:$0xf0]  ;;  %v11112_v25 = vld [vmem:[%s15246_s23 + $0xc78] sm:$0xf0] }
 0x318   : > { %v11118_v26 = vld [vmem:[%s15246_s23 + $0xa28] sm:$0xf]  ;;  %v11115_v32 = vor.u32 %v14260_v24, %v11112_v25  ;;  %v12928_v24 = vld [vmem:[%s15246_s23 + $0x1a98] sm:$0xf0] }
 0x319   : > { %v14937_v7 = vld [vmem:[%s15246_s23 + $0x1f44] sm:$0xf0] }
 0x31a   : > { %v12934_v25 = vld [vmem:[%s15246_s23 + $0x1848] sm:$0xf] }
 0x31e   : > { %8148 = vmatpush.bf16.xpose.msrb.mxu0 %v11095_v47  ;;  %8161 = vmatpush.bf16.xpose.msrb.mxu1 %v11099_v48  ;;  %v12915_v47 = vor.u32 %v14710_v38, %v12912_v40  ;;  %v12919_v48 = vor.u32 %v14786_v42, %v12918_v41  ;;  %v14186_v38 = vld [vmem:[%s15246_s23 + $0x7cc] sm:$0xf0]  ;;  %v14111_v40 = vld [vmem:[%s15246_s23 + $0x57c] sm:$0xf]  ;;  %v10520_v41 = vld [vmem:[%s15246_s23 + $0x7d0] sm:$0xf0] }
 0x31f   : > { %8174 = vmatpush.bf16.xpose.msrb.mxu2 %v11103_v49  ;;  %8187 = vmatpush.bf16.xpose.msrb.mxu3 %v11107_v50  ;;  %v12923_v50 = vor.u32 %v14711_v44, %v12920_v45  ;;  %v10519_v45 = vor.u32 %v14186_v38, %v10518_v37  ;;  %v14637_v37 = vld [vmem:[%s15246_s23 + $0x15e4] sm:$0xf0]  ;;  %v14562_v38 = vld [vmem:[%s15246_s23 + $0x1394] sm:$0xf] }
 0x326   : > { %8149 = vmatpush.bf16.xpose.msrb.mxu0 %v10495_v59  ;;  %8162 = vmatpush.bf16.xpose.msrb.mxu1 %v10499_v60  ;;  %v14636_v59 = vld [vmem:[%s15246_s23 + $0x15dc] sm:$0xf0]  ;;  %v14561_v60 = vld [vmem:[%s15246_s23 + $0x138c] sm:$0xf] }
 0x327   : > { %8175 = vmatpush.bf16.xpose.msrb.mxu2 %v10503_v62  ;;  %8188 = vmatpush.bf16.xpose.msrb.mxu3 %v10507_v63  ;;  %v12320_v62 = vld [vmem:[%s15246_s23 + $0x15e0] sm:$0xf0]  ;;  %v12311_v63 = vor.u32 %v14635_v13, %v12310_v54  ;;  %v12319_v1 = vor.u32 %v14636_v59, %v12318_v58  ;;  %v14036_v54 = vld [vmem:[%s15246_s23 + $0x31c] sm:$0xf0]  ;;  %v13961_v59 = vld [vmem:[%s15246_s23 + $0xcc] sm:$0xf] }
 0x328   : > { %v12323_v27 = vor.u32 %v14561_v60, %v12320_v62  ;;  %v9920_v60 = vld [vmem:[%s15246_s23 + $0x320] sm:$0xf0] }
 0x32e   : > { %8150 = vmatpush.bf16.xpose.msrb.mxu0 %v9895_v10  ;;  %8163 = vmatpush.bf16.xpose.msrb.mxu1 %v9899_v15  ;;  %v14410_v10 = vld [vmem:[%s15246_s23 + $0xed4] sm:$0xf]  ;;  %v14411_v15 = vld [vmem:[%s15246_s23 + $0xedc] sm:$0xf] }
 0x32f   : > { %8176 = vmatpush.bf16.xpose.msrb.mxu2 %v9903_v16  ;;  %8189 = vmatpush.bf16.xpose.msrb.mxu3 %v9907_v19  ;;  %v11720_v16 = vld [vmem:[%s15246_s23 + $0x1130] sm:$0xf0] }
 0x332   : > { %v8048_v49 = vpop.f32.mrf.mxu0  ;;  %v8061_v52 = vpop.f32.mrf.mxu1 }
 0x333   : > { %v8049_v9 = vadd.f32 %v8048_v49, %v15953_v23  ;;  %v9910_v49 = vld [vmem:[%s15246_s23 + $0xc0] sm:$0xf] }
 0x335   : > { %8151 = vmatmul.bf16.vlgmr.msrb.gmra.mxu0 %v1514_v43  ;;  %8164 = vmatmul.bf16.vlgmr.msrb.gmra.mxu1 %v1515_v30  ;;  %v8062_v53 = vadd.f32 %v8061_v52, %v8049_v9  ;;  %v11120_v30 = vld [vmem:[%s15246_s23 + $0xc80] sm:$0xf0]  ;;  %v9912_v52 = vld [vmem:[%s15246_s23 + $0x318] sm:$0xf0] }
 0x336   : > { %8195 = vmatpush.bf16.xpose.msra.mxu0 %v6269_v17  ;;  %8208 = vmatpush.bf16.xpose.msra.mxu1 %v6270_v39  ;;  %v11711_v17 = vor.u32 %v14485_v8, %v11710_v6  ;;  %v11715_v39 = vor.u32 %v14410_v10, %v11712_v11  ;;  %v13960_v9 = vld [vmem:[%s15246_s23 + $0xc4] sm:$0xf]  ;;  %v13526_v6 = vld [vmem:[%s15246_s23 + $0x1cf0] sm:$0xf]  ;;  %v14862_v8 = vld [vmem:[%s15246_s23 + $0x1cf4] sm:$0xf] }
 0x337   : > { %8221 = vmatpush.bf16.xpose.msra.mxu2 %v6271_v18  ;;  %8234 = vmatpush.bf16.xpose.msra.mxu3 %v6272_v20  ;;  %v11719_v18 = vor.u32 %v14486_v14, %v11718_v12  ;;  %v11723_v20 = vor.u32 %v14411_v15, %v11720_v16  ;;  %v13528_v10 = vld [vmem:[%s15246_s23 + $0x1f48] sm:$0xf0]  ;;  %v13534_v11 = vld [vmem:[%s15246_s23 + $0x1cf8] sm:$0xf]  ;;  %v14938_v12 = vld [vmem:[%s15246_s23 + $0x1f4c] sm:$0xf0] }
 0x338   : > { %8177 = vmatmul.bf16.vlgmr.msrb.gmra.mxu2 %v1516_v21  ;;  %8190 = vmatmul.bf16.vlgmr.msrb.gmra.mxu3 %v1517_v33  ;;  %v11110_v21 = vld [vmem:[%s15246_s23 + $0xa20] sm:$0xf]  ;;  %v11123_v33 = vor.u32 %v14261_v29, %v11120_v30  ;;  %v14863_v15 = vld [vmem:[%s15246_s23 + $0x1cfc] sm:$0xf]  ;;  %v13536_v16 = vld [vmem:[%s15246_s23 + $0x1f50] sm:$0xf0] }
 0x339   : > { %v11111_v31 = vor.u32 %v14335_v22, %v11110_v21  ;;  %v1521_v14 = vld [vmem:[#allocation1 + $0x9] sm:$0xff] }
 0x33a   : > { %v8050_v3 = vpop.f32.mrf.mxu0  ;;  %v8063_v5 = vpop.f32.mrf.mxu1  ;;  %v14787_v21 = vld [vmem:[%s15246_s23 + $0x1a94] sm:$0xf0]  ;;  %v14712_v22 = vld [vmem:[%s15246_s23 + $0x1844] sm:$0xf] }
 0x33b   : > { %v8074_v23 = vpop.f32.mrf.mxu2  ;;  %v8087_v4 = vpop.f32.mrf.mxu3  ;;  %v1522_v5 = vld [vmem:[#allocation1 + $0x12] sm:$0xff] }
 0x33c   : > { %v8075_v2 = vadd.f32 %v8074_v23, %v8062_v53  ;;  %v9918_v53 = vld [vmem:[%s15246_s23 + $0xc8] sm:$0xf]  ;;  %v12936_v29 = vld [vmem:[%s15246_s23 + $0x1aa0] sm:$0xf0] }
 0x33d   : > { %v9919_v23 = vor.u32 %v14036_v54, %v9918_v53 }
 0x33e   : > { %8196 = vmatpush.bf16.xpose.msra.mxu0 %v13511_v57  ;;  %8209 = vmatpush.bf16.xpose.msra.mxu1 %v13515_v34  ;;  %v16014_v51 = vadd.f32 %v8087_v4, %v8075_v2  ;;  %v11119_v57 = vor.u32 %v14336_v28, %v11118_v26  ;;  %v10510_v34 = vld [vmem:[%s15246_s23 + $0x570] sm:$0xf]  ;;  %v14788_v26 = vld [vmem:[%s15246_s23 + $0x1a9c] sm:$0xf0]  ;;  %v14713_v28 = vld [vmem:[%s15246_s23 + $0x184c] sm:$0xf] }
 0x33f   : > { %8222 = vmatpush.bf16.xpose.msra.mxu2 %v13519_v35  ;;  %8235 = vmatpush.bf16.xpose.msra.mxu3 %v13523_v61  ;;  %v14185_v35 = vld [vmem:[%s15246_s23 + $0x7c4] sm:$0xf0]  ;;  %v14110_v61 = vld [vmem:[%s15246_s23 + $0x574] sm:$0xf] }
 0x340   : > { %v10511_v42 = vor.u32 %v14185_v35, %v10510_v34  ;;  %v10515_v44 = vor.u32 %v14110_v61, %v10512_v36  ;;  %v1520_v4 = vld [vmem:[#allocation1] sm:$0xff] }
 0x341   : > { %v12326_v36 = vld [vmem:[%s15246_s23 + $0x1390] sm:$0xf] }
 0x343   : > { %v8076_v19 = vpop.f32.mrf.mxu2  ;;  %v8089_v43 = vpop.f32.mrf.mxu3 }
 0x344   : > { %v13535_v19 = vor.u32 %v14938_v12, %v13534_v11  ;;  %v12926_v43 = vld [vmem:[%s15246_s23 + $0x1840] sm:$0xf]  ;;  %v14263_v11 = vld [vmem:[%s15246_s23 + $0xa3c] sm:$0xf]  ;;  %v11136_v12 = vld [vmem:[%s15246_s23 + $0xc90] sm:$0xf0] }
 0x345   : > { %v12927_v30 = vor.u32 %v14787_v21, %v12926_v43  ;;  %v10534_v43 = vld [vmem:[%s15246_s23 + $0x588] sm:$0xf]  ;;  %v14188_v21 = vld [vmem:[%s15246_s23 + $0x7dc] sm:$0xf0] }
 0x346   : > { %8197 = vmatpush.bf16.xpose.msra.mxu0 %v12911_v46  ;;  %8210 = vmatpush.bf16.xpose.msra.mxu1 %v12915_v47  ;;  %v10523_v46 = vor.u32 %v14111_v40, %v10520_v41  ;;  %v1409_v47 = vld [vmem:[%s15246_s23 + $0x21a0] sm:$0xff]  ;;  %v12328_v40 = vld [vmem:[%s15246_s23 + $0x15e8] sm:$0xf0]  ;;  %v12334_v41 = vld [vmem:[%s15246_s23 + $0x1398] sm:$0xf] }
 0x347   : > { %8223 = vmatpush.bf16.xpose.msra.mxu2 %v12919_v48  ;;  %8236 = vmatpush.bf16.xpose.msra.mxu3 %v12923_v50  ;;  %v1410_v48 = vld [vmem:[%s15246_s23 + $0x21a8] sm:$0xff]  ;;  %v14035_v50 = vld [vmem:[%s15246_s23 + $0x314] sm:$0xf0]  ;;  %v5073_v13 = vunpack.c.l.b16 %v1409_v47  ;;  %v5074_v55 = vunpack.c.h.b16 %v1409_v47 }
 0x348   : > { %v5075_v56 = vunpack.c.l.b16 %v1410_v48  ;;  %v9911_v58 = vor.u32 %v14035_v50, %v9910_v49  ;;  %v5076_v62 = vunpack.c.h.b16 %v1410_v48 }
 0x34a   : > { %v6275_v2 = vpack.c.b16 %v5075_v56, %v5075_v56  ;;  %v6276_v3 = vpack.c.b16 %v5076_v62, %v5076_v62  ;;  %v14412_v56 = vld [vmem:[%s15246_s23 + $0xee4] sm:$0xf]  ;;  %v14413_v62 = vld [vmem:[%s15246_s23 + $0xeec] sm:$0xf] }
 0x34e   : > { %8198 = vmatpush.bf16.xpose.msra.mxu0 %v12311_v63  ;;  %8211 = vmatpush.bf16.xpose.msra.mxu1 %v12315_v0  ;;  %v9915_v63 = vor.u32 %v13960_v9, %v9912_v52  ;;  %v6273_v0 = vpack.c.b16 %v5073_v13, %v5073_v13  ;;  %v11726_v13 = vld [vmem:[%s15246_s23 + $0xee0] sm:$0xf] }
 0x34f   : > { %8224 = vmatpush.bf16.xpose.msra.mxu2 %v12319_v1  ;;  %8237 = vmatpush.bf16.xpose.msra.mxu3 %v12323_v27  ;;  %v6274_v1 = vpack.c.b16 %v5074_v55, %v5074_v55  ;;  %v9923_v27 = vor.u32 %v13961_v59, %v9920_v60  ;;  %v14487_v55 = vld [vmem:[%s15246_s23 + $0x1134] sm:$0xf0]  ;;  %v11734_v59 = vld [vmem:[%s15246_s23 + $0xee8] sm:$0xf]  ;;  %v14488_v60 = vld [vmem:[%s15246_s23 + $0x113c] sm:$0xf0] }
 0x356   : > { %8199 = vmatpush.bf16.xpose.msra.mxu0 %v11711_v17  ;;  %8212 = vmatpush.bf16.xpose.msra.mxu1 %v11715_v39  ;;  %v13527_v17 = vor.u32 %v14937_v7, %v13526_v6  ;;  %v1523_v39 = vld [vmem:[#allocation1 + $0x1b] sm:$0xff] }
 0x357   : > { %8225 = vmatpush.bf16.xpose.msra.mxu2 %v11719_v18  ;;  %8238 = vmatpush.bf16.xpose.msra.mxu3 %v11723_v20  ;;  %v13531_v18 = vor.u32 %v14862_v8, %v13528_v10  ;;  %v13539_v20 = vor.u32 %v14863_v15, %v13536_v16  ;;  %v14262_v6 = vld [vmem:[%s15246_s23 + $0xa34] sm:$0xf]  ;;  %v11128_v7 = vld [vmem:[%s15246_s23 + $0xc88] sm:$0xf0]  ;;  %v11134_v8 = vld [vmem:[%s15246_s23 + $0xa38] sm:$0xf] }
 0x358   : > { %v14338_v10 = vld [vmem:[%s15246_s23 + $0xc8c] sm:$0xf0]  ;;  %v11131_v15 = vor.u32 %v14262_v6, %v11128_v7  ;;  %v12944_v6 = vld [vmem:[%s15246_s23 + $0x1aa8] sm:$0xf0]  ;;  %v12950_v7 = vld [vmem:[%s15246_s23 + $0x1858] sm:$0xf] }
 0x359   : > { %v11135_v16 = vor.u32 %v14338_v10, %v11134_v8  ;;  %v14790_v8 = vld [vmem:[%s15246_s23 + $0x1aac] sm:$0xf0]  ;;  %v14715_v10 = vld [vmem:[%s15246_s23 + $0x185c] sm:$0xf] }
 0x35e   : > { %8200 = vmatpush.bf16.xpose.msra.mxu0 %v11111_v31  ;;  %8213 = vmatpush.bf16.xpose.msra.mxu1 %v11115_v32  ;;  %v12931_v31 = vor.u32 %v14712_v22, %v12928_v24  ;;  %v12935_v32 = vor.u32 %v14788_v26, %v12934_v25  ;;  %v14113_v22 = vld [vmem:[%s15246_s23 + $0x58c] sm:$0xf]  ;;  %v10536_v24 = vld [vmem:[%s15246_s23 + $0x7e0] sm:$0xf0] }
 0x35f   : > { %8226 = vmatpush.bf16.xpose.msra.mxu2 %v11119_v57  ;;  %8239 = vmatpush.bf16.xpose.msra.mxu3 %v11123_v33  ;;  %v12939_v33 = vor.u32 %v14713_v28, %v12936_v29  ;;  %v10535_v28 = vor.u32 %v14188_v21, %v10534_v43  ;;  %v10539_v29 = vor.u32 %v14113_v22, %v10536_v24  ;;  %v14639_v43 = vld [vmem:[%s15246_s23 + $0x15f4] sm:$0xf0]  ;;  %v14564_v21 = vld [vmem:[%s15246_s23 + $0x13a4] sm:$0xf]  ;;  %v12344_v22 = vld [vmem:[%s15246_s23 + $0x15f8] sm:$0xf0] }
 0x360   : > { %v12350_v24 = vld [vmem:[%s15246_s23 + $0x13a8] sm:$0xf] }
 0x366   : > { %8201 = vmatpush.bf16.xpose.msra.mxu0 %v10511_v42  ;;  %8214 = vmatpush.bf16.xpose.msra.mxu1 %v10515_v44  ;;  %v14638_v42 = vld [vmem:[%s15246_s23 + $0x15ec] sm:$0xf0]  ;;  %v14563_v44 = vld [vmem:[%s15246_s23 + $0x139c] sm:$0xf] }
 0x367   : > { %8227 = vmatpush.bf16.xpose.msra.mxu2 %v10519_v45  ;;  %8240 = vmatpush.bf16.xpose.msra.mxu3 %v10523_v46  ;;  %v12336_v45 = vld [vmem:[%s15246_s23 + $0x15f0] sm:$0xf0]  ;;  %v12327_v46 = vor.u32 %v14637_v37, %v12326_v36  ;;  %v12335_v48 = vor.u32 %v14638_v42, %v12334_v41  ;;  %v13963_v41 = vld [vmem:[%s15246_s23 + $0xdc] sm:$0xf] }
 0x368   : > { %v12339_v50 = vor.u32 %v14563_v44, %v12336_v45  ;;  %v9936_v42 = vld [vmem:[%s15246_s23 + $0x330] sm:$0xf0] }
 0x36e   : > { %8202 = vmatpush.bf16.xpose.msra.mxu0 %v9911_v58  ;;  %8215 = vmatpush.bf16.xpose.msra.mxu1 %v9915_v63  ;;  %v11728_v58 = vld [vmem:[%s15246_s23 + $0x1138] sm:$0xf0]  ;;  %v11736_v63 = vld [vmem:[%s15246_s23 + $0x1140] sm:$0xf0] }
 0x36f   : > { %8228 = vmatpush.bf16.xpose.msra.mxu2 %v9919_v23  ;;  %8241 = vmatpush.bf16.xpose.msra.mxu3 %v9923_v27  ;;  %v11727_v23 = vor.u32 %v14487_v55, %v11726_v13  ;;  %v11739_v27 = vor.u32 %v14413_v62, %v11736_v63  ;;  %v14939_v13 = vld [vmem:[%s15246_s23 + $0x1f54] sm:$0xf0]  ;;  %v14864_v55 = vld [vmem:[%s15246_s23 + $0x1d04] sm:$0xf]  ;;  %v14865_v62 = vld [vmem:[%s15246_s23 + $0x1d0c] sm:$0xf] }
 0x370   : > { %v13552_v63 = vld [vmem:[%s15246_s23 + $0x1f60] sm:$0xf0] }
 0x372   : > { %v8100_v57 = vpop.f32.mrf.mxu0  ;;  %v8113_v35 = vpop.f32.mrf.mxu1 }
 0x373   : > { %v8101_v34 = vadd.f32 %v8100_v57, %v16014_v51  ;;  %v12331_v51 = vor.u32 %v14562_v38, %v12328_v40  ;;  %v14037_v57 = vld [vmem:[%s15246_s23 + $0x324] sm:$0xf0] }
 0x375   : > { %8203 = vmatmul.bf16.vlgmr.msra.gmra.mxu0 %v1520_v4  ;;  %8216 = vmatmul.bf16.vlgmr.msra.gmra.mxu1 %v1521_v14  ;;  %v8114_v61 = vadd.f32 %v8113_v35, %v8101_v34  ;;  %v11126_v4 = vld [vmem:[%s15246_s23 + $0xa30] sm:$0xf]  ;;  %v9928_v34 = vld [vmem:[%s15246_s23 + $0x328] sm:$0xf0]  ;;  %v9934_v35 = vld [vmem:[%s15246_s23 + $0xd8] sm:$0xf] }
 0x376   : > { %8247 = vmatpush.bf16.xpose.msrb.mxu0 %v6273_v0  ;;  %8260 = vmatpush.bf16.xpose.msrb.mxu1 %v6274_v1  ;;  %v11731_v0 = vor.u32 %v14412_v56, %v11728_v58  ;;  %v11735_v1 = vor.u32 %v14488_v60, %v11734_v59  ;;  %v13544_v56 = vld [vmem:[%s15246_s23 + $0x1f58] sm:$0xf0]  ;;  %v13550_v58 = vld [vmem:[%s15246_s23 + $0x1d08] sm:$0xf]  ;;  %v14940_v59 = vld [vmem:[%s15246_s23 + $0x1f5c] sm:$0xf0] }
 0x377   : > { %8273 = vmatpush.bf16.xpose.msrb.mxu2 %v6275_v2  ;;  %8286 = vmatpush.bf16.xpose.msrb.mxu3 %v6276_v3  ;;  %v1525_v60 = vld [vmem:[#allocation1 + $0x2d] sm:$0xff] }
 0x378   : > { %8229 = vmatmul.bf16.vlgmr.msra.gmra.mxu2 %v1522_v5  ;;  %8242 = vmatmul.bf16.vlgmr.msra.gmra.mxu3 %v1523_v39  ;;  %v14337_v5 = vld [vmem:[%s15246_s23 + $0xc84] sm:$0xf0]  ;;  %v10526_v39 = vld [vmem:[%s15246_s23 + $0x580] sm:$0xf] }
 0x379   : > { %v11127_v14 = vor.u32 %v14337_v5, %v11126_v4  ;;  %v14789_v4 = vld [vmem:[%s15246_s23 + $0x1aa4] sm:$0xf0]  ;;  %v14714_v5 = vld [vmem:[%s15246_s23 + $0x1854] sm:$0xf] }
 0x37a   : > { %v8102_v9 = vpop.f32.mrf.mxu0  ;;  %v8115_v53 = vpop.f32.mrf.mxu1 }
 0x37b   : > { %v8126_v47 = vpop.f32.mrf.mxu2  ;;  %v8139_v52 = vpop.f32.mrf.mxu3  ;;  %v1524_v9 = vld [vmem:[#allocation1 + $0x24] sm:$0xff] }
 0x37c   : > { %v8127_v49 = vadd.f32 %v8126_v47, %v8114_v61  ;;  %v14038_v61 = vld [vmem:[%s15246_s23 + $0x32c] sm:$0xf0]  ;;  %v13542_v53 = vld [vmem:[%s15246_s23 + $0x1d00] sm:$0xf] }
 0x37e   : > { %8248 = vmatpush.bf16.xpose.msrb.mxu0 %v13527_v17  ;;  %8261 = vmatpush.bf16.xpose.msrb.mxu1 %v13531_v18  ;;  %v16076_v54 = vadd.f32 %v8139_v52, %v8127_v49  ;;  %v11139_v17 = vor.u32 %v14263_v11, %v11136_v12  ;;  %v14187_v18 = vld [vmem:[%s15246_s23 + $0x7d4] sm:$0xf0]  ;;  %v9939_v49 = vor.u32 %v13963_v41, %v9936_v42  ;;  %v1526_v52 = vld [vmem:[#allocation1 + $0x36] sm:$0xff]  ;;  %v12952_v11 = vld [vmem:[%s15246_s23 + $0x1ab0] sm:$0xf0] }
 0x37f   : > { %8274 = vmatpush.bf16.xpose.msrb.mxu2 %v13535_v19  ;;  %8287 = vmatpush.bf16.xpose.msrb.mxu3 %v13539_v20  ;;  %v14112_v19 = vld [vmem:[%s15246_s23 + $0x584] sm:$0xf]  ;;  %v10528_v20 = vld [vmem:[%s15246_s23 + $0x7d8] sm:$0xf0]  ;;  %v10527_v25 = vor.u32 %v14187_v18, %v10526_v39  ;;  %v11744_v41 = vld [vmem:[%s15246_s23 + $0x1148] sm:$0xf0] }
 0x380   : > { %v10531_v26 = vor.u32 %v14112_v19, %v10528_v20  ;;  %v12342_v20 = vld [vmem:[%s15246_s23 + $0x13a0] sm:$0xf]  ;;  %v11750_v42 = vld [vmem:[%s15246_s23 + $0xef8] sm:$0xf] }
 0x383   : > { %v8128_v2 = vpop.f32.mrf.mxu2  ;;  %v8141_v3 = vpop.f32.mrf.mxu3 }
 0x384   : > { %v13551_v2 = vor.u32 %v14940_v59, %v13550_v58  ;;  %v12942_v3 = vld [vmem:[%s15246_s23 + $0x1850] sm:$0xf]  ;;  %v14340_v58 = vld [vmem:[%s15246_s23 + $0xc9c] sm:$0xf0]  ;;  %v14265_v59 = vld [vmem:[%s15246_s23 + $0xa4c] sm:$0xf] }
 0x385   : > { %v12943_v12 = vor.u32 %v14789_v4, %v12942_v3  ;;  %v10544_v3 = vld [vmem:[%s15246_s23 + $0x7e8] sm:$0xf0]  ;;  %v10550_v4 = vld [vmem:[%s15246_s23 + $0x598] sm:$0xf] }
 0x386   : > { %8249 = vmatpush.bf16.xpose.msrb.mxu0 %v12927_v30  ;;  %8262 = vmatpush.bf16.xpose.msrb.mxu1 %v12931_v31  ;;  %v1411_v30 = vld [vmem:[%s15246_s23 + $0x21b0] sm:$0xff]  ;;  %v1412_v31 = vld [vmem:[%s15246_s23 + $0x21b8] sm:$0xff] }
 0x387   : > { %8275 = vmatpush.bf16.xpose.msrb.mxu2 %v12935_v32  ;;  %8288 = vmatpush.bf16.xpose.msrb.mxu3 %v12939_v33  ;;  %v9926_v32 = vld [vmem:[%s15246_s23 + $0xd0] sm:$0xf]  ;;  %v13962_v33 = vld [vmem:[%s15246_s23 + $0xd4] sm:$0xf]  ;;  %v5077_v36 = vunpack.c.l.b16 %v1411_v30  ;;  %v5078_v37 = vunpack.c.h.b16 %v1411_v30  ;;  %v5079_v38 = vunpack.c.l.b16 %v1412_v31  ;;  %v5080_v44 = vunpack.c.h.b16 %v1412_v31 }
 0x388   : > { %v9927_v40 = vor.u32 %v14037_v57, %v9926_v32  ;;  %v9931_v45 = vor.u32 %v13962_v33, %v9928_v34  ;;  %v12347_v30 = vor.u32 %v14564_v21, %v12344_v22 }
 0x389   : > { %v6277_v47 = vpack.c.b16 %v5077_v36, %v5077_v36  ;;  %v11742_v36 = vld [vmem:[%s15246_s23 + $0xef0] sm:$0xf] }
 0x38e   : > { %8250 = vmatpush.bf16.xpose.msrb.mxu0 %v12327_v46  ;;  %8263 = vmatpush.bf16.xpose.msrb.mxu1 %v12331_v51  ;;  %v9935_v46 = vor.u32 %v14038_v61, %v9934_v35  ;;  %v6278_v51 = vpack.c.b16 %v5078_v37, %v5078_v37  ;;  %v321_v37 = vld [vmem:[%s15256_s19 + $0x38] sm:$0xff] }
 0x38f   : > { %8276 = vmatpush.bf16.xpose.msrb.mxu2 %v12335_v48  ;;  %8289 = vmatpush.bf16.xpose.msrb.mxu3 %v12339_v50  ;;  %v6279_v48 = vpack.c.b16 %v5079_v38, %v5079_v38  ;;  %v6280_v50 = vpack.c.b16 %v5080_v44, %v5080_v44  ;;  %v14489_v38 = vld [vmem:[%s15246_s23 + $0x1144] sm:$0xf0]  ;;  %v14490_v44 = vld [vmem:[%s15246_s23 + $0x114c] sm:$0xf0] }
 0x396   : > { %8251 = vmatpush.bf16.xpose.msrb.mxu0 %v11727_v23  ;;  %8264 = vmatpush.bf16.xpose.msrb.mxu1 %v11731_v0  ;;  %v13543_v23 = vor.u32 %v14939_v13, %v13542_v53  ;;  %v1527_v0 = vld [vmem:[#allocation1 + $0x3f] sm:$0xff]  ;;  %v14264_v13 = vld [vmem:[%s15246_s23 + $0xa44] sm:$0xf] }
 0x397   : > { %8277 = vmatpush.bf16.xpose.msrb.mxu2 %v11735_v1  ;;  %8290 = vmatpush.bf16.xpose.msrb.mxu3 %v11739_v27  ;;  %v13547_v1 = vor.u32 %v14864_v55, %v13544_v56  ;;  %v13555_v27 = vor.u32 %v14865_v62, %v13552_v63  ;;  %1529 = vst [vmem:[#allocation1] ss:$9 sm:$0xff] %v321_v37  ;;  %v14339_v53 = vld [vmem:[%s15246_s23 + $0xc94] sm:$0xf0]  ;;  %v11144_v55 = vld [vmem:[%s15246_s23 + $0xc98] sm:$0xf0] }
 0x398   : > { %v11150_v56 = vld [vmem:[%s15246_s23 + $0xa48] sm:$0xf]  ;;  %v11147_v63 = vor.u32 %v14264_v13, %v11144_v55  ;;  %v12960_v13 = vld [vmem:[%s15246_s23 + $0x1ab8] sm:$0xf0] }
 0x399   : > { %v14941_v37 = vld [vmem:[%s15246_s23 + $0x1f64] sm:$0xf0] }
 0x39a   : > { %v12966_v55 = vld [vmem:[%s15246_s23 + $0x1868] sm:$0xf] }
 0x39e   : > { %8252 = vmatpush.bf16.xpose.msrb.mxu0 %v11127_v14  ;;  %8265 = vmatpush.bf16.xpose.msrb.mxu1 %v11131_v15  ;;  %v12947_v14 = vor.u32 %v14714_v5, %v12944_v6  ;;  %v12951_v15 = vor.u32 %v14790_v8, %v12950_v7  ;;  %v14190_v5 = vld [vmem:[%s15246_s23 + $0x7ec] sm:$0xf0]  ;;  %v14115_v6 = vld [vmem:[%s15246_s23 + $0x59c] sm:$0xf]  ;;  %v10552_v7 = vld [vmem:[%s15246_s23 + $0x7f0] sm:$0xf0] }
 0x39f   : > { %8278 = vmatpush.bf16.xpose.msrb.mxu2 %v11135_v16  ;;  %8291 = vmatpush.bf16.xpose.msrb.mxu3 %v11139_v17  ;;  %v12955_v17 = vor.u32 %v14715_v10, %v12952_v11  ;;  %v10551_v11 = vor.u32 %v14190_v5, %v10550_v4  ;;  %v14641_v4 = vld [vmem:[%s15246_s23 + $0x1604] sm:$0xf0]  ;;  %v14566_v5 = vld [vmem:[%s15246_s23 + $0x13b4] sm:$0xf] }
 0x3a6   : > { %8253 = vmatpush.bf16.xpose.msrb.mxu0 %v10527_v25  ;;  %8266 = vmatpush.bf16.xpose.msrb.mxu1 %v10531_v26  ;;  %v14640_v25 = vld [vmem:[%s15246_s23 + $0x15fc] sm:$0xf0]  ;;  %v14565_v26 = vld [vmem:[%s15246_s23 + $0x13ac] sm:$0xf] }
 0x3a7   : > { %8279 = vmatpush.bf16.xpose.msrb.mxu2 %v10535_v28  ;;  %8292 = vmatpush.bf16.xpose.msrb.mxu3 %v10539_v29  ;;  %v12352_v28 = vld [vmem:[%s15246_s23 + $0x1600] sm:$0xf0]  ;;  %v12343_v29 = vor.u32 %v14639_v43, %v12342_v20  ;;  %v12351_v31 = vor.u32 %v14640_v25, %v12350_v24  ;;  %v14040_v20 = vld [vmem:[%s15246_s23 + $0x33c] sm:$0xf0]  ;;  %v13965_v25 = vld [vmem:[%s15246_s23 + $0xec] sm:$0xf] }
 0x3a8   : > { %v12355_v57 = vor.u32 %v14565_v26, %v12352_v28  ;;  %v9952_v26 = vld [vmem:[%s15246_s23 + $0x340] sm:$0xf0] }
 0x3ae   : > { %8254 = vmatpush.bf16.xpose.msrb.mxu0 %v9927_v40  ;;  %8267 = vmatpush.bf16.xpose.msrb.mxu1 %v9931_v45  ;;  %v14414_v40 = vld [vmem:[%s15246_s23 + $0xef4] sm:$0xf]  ;;  %v14415_v45 = vld [vmem:[%s15246_s23 + $0xefc] sm:$0xf] }
 0x3af   : > { %8280 = vmatpush.bf16.xpose.msrb.mxu2 %v9935_v46  ;;  %8293 = vmatpush.bf16.xpose.msrb.mxu3 %v9939_v49  ;;  %v11752_v46 = vld [vmem:[%s15246_s23 + $0x1150] sm:$0xf0] }
 0x3b2   : > { %v8152_v16 = vpop.f32.mrf.mxu0  ;;  %v8165_v18 = vpop.f32.mrf.mxu1 }
 0x3b3   : > { %v8153_v39 = vadd.f32 %v8152_v16, %v16076_v54  ;;  %v9942_v16 = vld [vmem:[%s15246_s23 + $0xe0] sm:$0xf] }
 0x3b5   : > { %8255 = vmatmul.bf16.vlgmr.msrb.gmra.mxu0 %v1524_v9  ;;  %8268 = vmatmul.bf16.vlgmr.msrb.gmra.mxu1 %v1525_v60  ;;  %v8166_v19 = vadd.f32 %v8165_v18, %v8153_v39  ;;  %v11152_v60 = vld [vmem:[%s15246_s23 + $0xca0] sm:$0xf0]  ;;  %v9944_v18 = vld [vmem:[%s15246_s23 + $0x338] sm:$0xf0] }
 0x3b6   : > { %8299 = vmatpush.bf16.xpose.msra.mxu0 %v6277_v47  ;;  %8312 = vmatpush.bf16.xpose.msra.mxu1 %v6278_v51  ;;  %v11743_v47 = vor.u32 %v14489_v38, %v11742_v36  ;;  %v11747_v51 = vor.u32 %v14414_v40, %v11744_v41  ;;  %v13964_v39 = vld [vmem:[%s15246_s23 + $0xe4] sm:$0xf]  ;;  %v13558_v36 = vld [vmem:[%s15246_s23 + $0x1d10] sm:$0xf]  ;;  %v14866_v38 = vld [vmem:[%s15246_s23 + $0x1d14] sm:$0xf] }
 0x3b7   : > { %8325 = vmatpush.bf16.xpose.msra.mxu2 %v6279_v48  ;;  %8338 = vmatpush.bf16.xpose.msra.mxu3 %v6280_v50  ;;  %v11751_v48 = vor.u32 %v14490_v44, %v11750_v42  ;;  %v11755_v50 = vor.u32 %v14415_v45, %v11752_v46  ;;  %v13560_v40 = vld [vmem:[%s15246_s23 + $0x1f68] sm:$0xf0]  ;;  %v13566_v41 = vld [vmem:[%s15246_s23 + $0x1d18] sm:$0xf]  ;;  %v14942_v42 = vld [vmem:[%s15246_s23 + $0x1f6c] sm:$0xf0] }
 0x3b8   : > { %8281 = vmatmul.bf16.vlgmr.msrb.gmra.mxu2 %v1526_v52  ;;  %8294 = vmatmul.bf16.vlgmr.msrb.gmra.mxu3 %v1527_v0  ;;  %v11142_v52 = vld [vmem:[%s15246_s23 + $0xa40] sm:$0xf]  ;;  %v11155_v0 = vor.u32 %v14265_v59, %v11152_v60  ;;  %v14867_v45 = vld [vmem:[%s15246_s23 + $0x1d1c] sm:$0xf]  ;;  %v13568_v46 = vld [vmem:[%s15246_s23 + $0x1f70] sm:$0xf0] }
 0x3b9   : > { %v11143_v62 = vor.u32 %v14339_v53, %v11142_v52  ;;  %v1531_v44 = vld [vmem:[#allocation1 + $0x9] sm:$0xff] }
 0x3ba   : > { %v8154_v33 = vpop.f32.mrf.mxu0  ;;  %v8167_v35 = vpop.f32.mrf.mxu1  ;;  %v14791_v52 = vld [vmem:[%s15246_s23 + $0x1ab4] sm:$0xf0]  ;;  %v14716_v53 = vld [vmem:[%s15246_s23 + $0x1864] sm:$0xf] }
 0x3bb   : > { %v8178_v54 = vpop.f32.mrf.mxu2  ;;  %v8191_v34 = vpop.f32.mrf.mxu3  ;;  %v1532_v35 = vld [vmem:[#allocation1 + $0x12] sm:$0xff] }
 0x3bc   : > { %v8179_v32 = vadd.f32 %v8178_v54, %v8166_v19  ;;  %v9950_v19 = vld [vmem:[%s15246_s23 + $0xe8] sm:$0xf]  ;;  %v12968_v59 = vld [vmem:[%s15246_s23 + $0x1ac0] sm:$0xf0] }
 0x3bd   : > { %v9951_v54 = vor.u32 %v14040_v20, %v9950_v19 }
 0x3be   : > { %8300 = vmatpush.bf16.xpose.msra.mxu0 %v13543_v23  ;;  %8313 = vmatpush.bf16.xpose.msra.mxu1 %v13547_v1  ;;  %v16137_v61 = vadd.f32 %v8191_v34, %v8179_v32  ;;  %v11151_v23 = vor.u32 %v14340_v58, %v11150_v56  ;;  %v10542_v1 = vld [vmem:[%s15246_s23 + $0x590] sm:$0xf]  ;;  %v14792_v56 = vld [vmem:[%s15246_s23 + $0x1abc] sm:$0xf0]  ;;  %v14717_v58 = vld [vmem:[%s15246_s23 + $0x186c] sm:$0xf] }
 0x3bf   : > { %8326 = vmatpush.bf16.xpose.msra.mxu2 %v13551_v2  ;;  %8339 = vmatpush.bf16.xpose.msra.mxu3 %v13555_v27  ;;  %v14189_v2 = vld [vmem:[%s15246_s23 + $0x7e4] sm:$0xf0]  ;;  %v14114_v27 = vld [vmem:[%s15246_s23 + $0x594] sm:$0xf] }
 0x3c0   : > { %v10543_v8 = vor.u32 %v14189_v2, %v10542_v1  ;;  %v10547_v10 = vor.u32 %v14114_v27, %v10544_v3  ;;  %v1530_v34 = vld [vmem:[#allocation1] sm:$0xff] }
 0x3c1   : > { %v12358_v3 = vld [vmem:[%s15246_s23 + $0x13b0] sm:$0xf] }
 0x3c3   : > { %v8180_v49 = vpop.f32.mrf.mxu2  ;;  %v8193_v9 = vpop.f32.mrf.mxu3 }
 0x3c4   : > { %v13567_v49 = vor.u32 %v14942_v42, %v13566_v41  ;;  %v12958_v9 = vld [vmem:[%s15246_s23 + $0x1860] sm:$0xf]  ;;  %v14267_v41 = vld [vmem:[%s15246_s23 + $0xa5c] sm:$0xf]  ;;  %v11168_v42 = vld [vmem:[%s15246_s23 + $0xcb0] sm:$0xf0] }
 0x3c5   : > { %v12959_v60 = vor.u32 %v14791_v52, %v12958_v9  ;;  %v10566_v9 = vld [vmem:[%s15246_s23 + $0x5a8] sm:$0xf]  ;;  %v14192_v52 = vld [vmem:[%s15246_s23 + $0x7fc] sm:$0xf0] }
 0x3c6   : > { %8301 = vmatpush.bf16.xpose.msra.mxu0 %v12943_v12  ;;  %8314 = vmatpush.bf16.xpose.msra.mxu1 %v12947_v14  ;;  %v10555_v12 = vor.u32 %v14115_v6, %v10552_v7  ;;  %v1413_v14 = vld [vmem:[%s15246_s23 + $0x21c0] sm:$0xff]  ;;  %v12360_v6 = vld [vmem:[%s15246_s23 + $0x1608] sm:$0xf0]  ;;  %v12366_v7 = vld [vmem:[%s15246_s23 + $0x13b8] sm:$0xf] }
 0x3c7   : > { %8327 = vmatpush.bf16.xpose.msra.mxu2 %v12951_v15  ;;  %8340 = vmatpush.bf16.xpose.msra.mxu3 %v12955_v17  ;;  %v1414_v15 = vld [vmem:[%s15246_s23 + $0x21c8] sm:$0xff]  ;;  %v14039_v17 = vld [vmem:[%s15246_s23 + $0x334] sm:$0xf0]  ;;  %v5081_v43 = vunpack.c.l.b16 %v1413_v14  ;;  %v5082_v21 = vunpack.c.h.b16 %v1413_v14 }
 0x3c8   : > { %v5083_v22 = vunpack.c.l.b16 %v1414_v15  ;;  %v9943_v24 = vor.u32 %v14039_v17, %v9942_v16  ;;  %v5084_v28 = vunpack.c.h.b16 %v1414_v15 }
 0x3ca   : > { %v6283_v32 = vpack.c.b16 %v5083_v22, %v5083_v22  ;;  %v6284_v33 = vpack.c.b16 %v5084_v28, %v5084_v28  ;;  %v14416_v22 = vld [vmem:[%s15246_s23 + $0xf04] sm:$0xf]  ;;  %v14417_v28 = vld [vmem:[%s15246_s23 + $0xf0c] sm:$0xf] }
 0x3ce   : > { %8302 = vmatpush.bf16.xpose.msra.mxu0 %v12343_v29  ;;  %8315 = vmatpush.bf16.xpose.msra.mxu1 %v12347_v30  ;;  %v9947_v29 = vor.u32 %v13964_v39, %v9944_v18  ;;  %v6281_v30 = vpack.c.b16 %v5081_v43, %v5081_v43  ;;  %v11758_v43 = vld [vmem:[%s15246_s23 + $0xf00] sm:$0xf] }
 0x3cf   : > { %8328 = vmatpush.bf16.xpose.msra.mxu2 %v12351_v31  ;;  %8341 = vmatpush.bf16.xpose.msra.mxu3 %v12355_v57  ;;  %v6282_v31 = vpack.c.b16 %v5082_v21, %v5082_v21  ;;  %v9955_v57 = vor.u32 %v13965_v25, %v9952_v26  ;;  %v14491_v21 = vld [vmem:[%s15246_s23 + $0x1154] sm:$0xf0]  ;;  %v11766_v25 = vld [vmem:[%s15246_s23 + $0xf08] sm:$0xf]  ;;  %v14492_v26 = vld [vmem:[%s15246_s23 + $0x115c] sm:$0xf0] }
 0x3d6   : > { %8303 = vmatpush.bf16.xpose.msra.mxu0 %v11743_v47  ;;  %8316 = vmatpush.bf16.xpose.msra.mxu1 %v11747_v51  ;;  %v13559_v47 = vor.u32 %v14941_v37, %v13558_v36  ;;  %v1533_v51 = vld [vmem:[#allocation1 + $0x1b] sm:$0xff] }
 0x3d7   : > { %8329 = vmatpush.bf16.xpose.msra.mxu2 %v11751_v48  ;;  %8342 = vmatpush.bf16.xpose.msra.mxu3 %v11755_v50  ;;  %v13563_v48 = vor.u32 %v14866_v38, %v13560_v40  ;;  %v13571_v50 = vor.u32 %v14867_v45, %v13568_v46  ;;  %v14266_v36 = vld [vmem:[%s15246_s23 + $0xa54] sm:$0xf]  ;;  %v11160_v37 = vld [vmem:[%s15246_s23 + $0xca8] sm:$0xf0]  ;;  %v11166_v38 = vld [vmem:[%s15246_s23 + $0xa58] sm:$0xf] }
 0x3d8   : > { %v14342_v40 = vld [vmem:[%s15246_s23 + $0xcac] sm:$0xf0]  ;;  %v11163_v45 = vor.u32 %v14266_v36, %v11160_v37  ;;  %v12976_v36 = vld [vmem:[%s15246_s23 + $0x1ac8] sm:$0xf0]  ;;  %v12982_v37 = vld [vmem:[%s15246_s23 + $0x1878] sm:$0xf] }
 0x3d9   : > { %v11167_v46 = vor.u32 %v14342_v40, %v11166_v38  ;;  %v14794_v38 = vld [vmem:[%s15246_s23 + $0x1acc] sm:$0xf0]  ;;  %v14719_v40 = vld [vmem:[%s15246_s23 + $0x187c] sm:$0xf] }
 0x3de   : > { %8304 = vmatpush.bf16.xpose.msra.mxu0 %v11143_v62  ;;  %8317 = vmatpush.bf16.xpose.msra.mxu1 %v11147_v63  ;;  %v12963_v62 = vor.u32 %v14716_v53, %v12960_v13  ;;  %v12967_v63 = vor.u32 %v14792_v56, %v12966_v55  ;;  %v14117_v53 = vld [vmem:[%s15246_s23 + $0x5ac] sm:$0xf]  ;;  %v10568_v13 = vld [vmem:[%s15246_s23 + $0x800] sm:$0xf0] }
 0x3df   : > { %8330 = vmatpush.bf16.xpose.msra.mxu2 %v11151_v23  ;;  %8343 = vmatpush.bf16.xpose.msra.mxu3 %v11155_v0  ;;  %v12971_v0 = vor.u32 %v14717_v58, %v12968_v59  ;;  %v10567_v58 = vor.u32 %v14192_v52, %v10566_v9  ;;  %v10571_v59 = vor.u32 %v14117_v53, %v10568_v13  ;;  %v14643_v9 = vld [vmem:[%s15246_s23 + $0x1614] sm:$0xf0]  ;;  %v14568_v52 = vld [vmem:[%s15246_s23 + $0x13c4] sm:$0xf]  ;;  %v12376_v53 = vld [vmem:[%s15246_s23 + $0x1618] sm:$0xf0] }
 0x3e0   : > { %v12382_v13 = vld [vmem:[%s15246_s23 + $0x13c8] sm:$0xf] }
 0x3e6   : > { %8305 = vmatpush.bf16.xpose.msra.mxu0 %v10543_v8  ;;  %8318 = vmatpush.bf16.xpose.msra.mxu1 %v10547_v10  ;;  %v14642_v8 = vld [vmem:[%s15246_s23 + $0x160c] sm:$0xf0]  ;;  %v14567_v10 = vld [vmem:[%s15246_s23 + $0x13bc] sm:$0xf] }
 0x3e7   : > { %8331 = vmatpush.bf16.xpose.msra.mxu2 %v10551_v11  ;;  %8344 = vmatpush.bf16.xpose.msra.mxu3 %v10555_v12  ;;  %v12368_v11 = vld [vmem:[%s15246_s23 + $0x1610] sm:$0xf0]  ;;  %v12359_v12 = vor.u32 %v14641_v4, %v12358_v3  ;;  %v12367_v15 = vor.u32 %v14642_v8, %v12366_v7  ;;  %v13967_v7 = vld [vmem:[%s15246_s23 + $0xfc] sm:$0xf] }
 0x3e8   : > { %v12371_v17 = vor.u32 %v14567_v10, %v12368_v11  ;;  %v9968_v8 = vld [vmem:[%s15246_s23 + $0x350] sm:$0xf0] }
 0x3ee   : > { %8306 = vmatpush.bf16.xpose.msra.mxu0 %v9943_v24  ;;  %8319 = vmatpush.bf16.xpose.msra.mxu1 %v9947_v29  ;;  %v11760_v24 = vld [vmem:[%s15246_s23 + $0x1158] sm:$0xf0]  ;;  %v11768_v29 = vld [vmem:[%s15246_s23 + $0x1160] sm:$0xf0] }
 0x3ef   : > { %8332 = vmatpush.bf16.xpose.msra.mxu2 %v9951_v54  ;;  %8345 = vmatpush.bf16.xpose.msra.mxu3 %v9955_v57  ;;  %v11759_v54 = vor.u32 %v14491_v21, %v11758_v43  ;;  %v11771_v57 = vor.u32 %v14417_v28, %v11768_v29  ;;  %v14943_v43 = vld [vmem:[%s15246_s23 + $0x1f74] sm:$0xf0]  ;;  %v14868_v21 = vld [vmem:[%s15246_s23 + $0x1d24] sm:$0xf]  ;;  %v14869_v28 = vld [vmem:[%s15246_s23 + $0x1d2c] sm:$0xf] }
 0x3f0   : > { %v13584_v29 = vld [vmem:[%s15246_s23 + $0x1f80] sm:$0xf0] }
 0x3f2   : > { %v8204_v23 = vpop.f32.mrf.mxu0  ;;  %v8217_v2 = vpop.f32.mrf.mxu1 }
 0x3f3   : > { %v8205_v1 = vadd.f32 %v8204_v23, %v16137_v61  ;;  %v12363_v61 = vor.u32 %v14566_v5, %v12360_v6  ;;  %v14041_v23 = vld [vmem:[%s15246_s23 + $0x344] sm:$0xf0] }
 0x3f5   : > { %8307 = vmatmul.bf16.vlgmr.msra.gmra.mxu0 %v1530_v34  ;;  %8320 = vmatmul.bf16.vlgmr.msra.gmra.mxu1 %v1531_v44  ;;  %v8218_v27 = vadd.f32 %v8217_v2, %v8205_v1  ;;  %v11158_v34 = vld [vmem:[%s15246_s23 + $0xa50] sm:$0xf]  ;;  %v9960_v1 = vld [vmem:[%s15246_s23 + $0x348] sm:$0xf0]  ;;  %v9966_v2 = vld [vmem:[%s15246_s23 + $0xf8] sm:$0xf] }
 0x3f6   : > { %8351 = vmatpush.bf16.xpose.msrb.mxu0 %v6281_v30  ;;  %8364 = vmatpush.bf16.xpose.msrb.mxu1 %v6282_v31  ;;  %v11763_v30 = vor.u32 %v14416_v22, %v11760_v24  ;;  %v11767_v31 = vor.u32 %v14492_v26, %v11766_v25  ;;  %v13576_v22 = vld [vmem:[%s15246_s23 + $0x1f78] sm:$0xf0]  ;;  %v13582_v24 = vld [vmem:[%s15246_s23 + $0x1d28] sm:$0xf]  ;;  %v14944_v25 = vld [vmem:[%s15246_s23 + $0x1f7c] sm:$0xf0] }
 0x3f7   : > { %8377 = vmatpush.bf16.xpose.msrb.mxu2 %v6283_v32  ;;  %8390 = vmatpush.bf16.xpose.msrb.mxu3 %v6284_v33  ;;  %v1535_v26 = vld [vmem:[#allocation1 + $0x2d] sm:$0xff] }
 0x3f8   : > { %8333 = vmatmul.bf16.vlgmr.msra.gmra.mxu2 %v1532_v35  ;;  %8346 = vmatmul.bf16.vlgmr.msra.gmra.mxu3 %v1533_v51  ;;  %v14341_v35 = vld [vmem:[%s15246_s23 + $0xca4] sm:$0xf0]  ;;  %v10558_v51 = vld [vmem:[%s15246_s23 + $0x5a0] sm:$0xf] }
 0x3f9   : > { %v11159_v44 = vor.u32 %v14341_v35, %v11158_v34  ;;  %v14793_v34 = vld [vmem:[%s15246_s23 + $0x1ac4] sm:$0xf0]  ;;  %v14718_v35 = vld [vmem:[%s15246_s23 + $0x1874] sm:$0xf] }
 0x3fa   : > { %v8206_v39 = vpop.f32.mrf.mxu0  ;;  %v8219_v19 = vpop.f32.mrf.mxu1 }
 0x3fb   : > { %v8230_v14 = vpop.f32.mrf.mxu2  ;;  %v8243_v18 = vpop.f32.mrf.mxu3  ;;  %v1534_v39 = vld [vmem:[#allocation1 + $0x24] sm:$0xff] }
 0x3fc   : > { %v8231_v16 = vadd.f32 %v8230_v14, %v8218_v27  ;;  %v14042_v27 = vld [vmem:[%s15246_s23 + $0x34c] sm:$0xf0]  ;;  %v13574_v19 = vld [vmem:[%s15246_s23 + $0x1d20] sm:$0xf] }
 0x3fe   : > { %8352 = vmatpush.bf16.xpose.msrb.mxu0 %v13559_v47  ;;  %8365 = vmatpush.bf16.xpose.msrb.mxu1 %v13563_v48  ;;  %v16199_v20 = vadd.f32 %v8243_v18, %v8231_v16  ;;  %v11171_v47 = vor.u32 %v14267_v41, %v11168_v42  ;;  %v14191_v48 = vld [vmem:[%s15246_s23 + $0x7f4] sm:$0xf0]  ;;  %v9971_v16 = vor.u32 %v13967_v7, %v9968_v8  ;;  %v1536_v18 = vld [vmem:[#allocation1 + $0x36] sm:$0xff]  ;;  %v12984_v41 = vld [vmem:[%s15246_s23 + $0x1ad0] sm:$0xf0] }
 0x3ff   : > { %8378 = vmatpush.bf16.xpose.msrb.mxu2 %v13567_v49  ;;  %8391 = vmatpush.bf16.xpose.msrb.mxu3 %v13571_v50  ;;  %v14116_v49 = vld [vmem:[%s15246_s23 + $0x5a4] sm:$0xf]  ;;  %v10560_v50 = vld [vmem:[%s15246_s23 + $0x7f8] sm:$0xf0]  ;;  %v10559_v55 = vor.u32 %v14191_v48, %v10558_v51  ;;  %v11776_v7 = vld [vmem:[%s15246_s23 + $0x1168] sm:$0xf0] }
 0x400   : > { %v10563_v56 = vor.u32 %v14116_v49, %v10560_v50  ;;  %v12374_v50 = vld [vmem:[%s15246_s23 + $0x13c0] sm:$0xf]  ;;  %v11782_v8 = vld [vmem:[%s15246_s23 + $0xf18] sm:$0xf] }
 0x403   : > { %v8232_v32 = vpop.f32.mrf.mxu2  ;;  %v8245_v33 = vpop.f32.mrf.mxu3 }
 0x404   : > { %v13583_v32 = vor.u32 %v14944_v25, %v13582_v24  ;;  %v12974_v33 = vld [vmem:[%s15246_s23 + $0x1870] sm:$0xf]  ;;  %v14344_v24 = vld [vmem:[%s15246_s23 + $0xcbc] sm:$0xf0]  ;;  %v14269_v25 = vld [vmem:[%s15246_s23 + $0xa6c] sm:$0xf] }
 0x405   : > { %v12975_v42 = vor.u32 %v14793_v34, %v12974_v33  ;;  %v10576_v33 = vld [vmem:[%s15246_s23 + $0x808] sm:$0xf0]  ;;  %v10582_v34 = vld [vmem:[%s15246_s23 + $0x5b8] sm:$0xf] }
 0x406   : > { %8353 = vmatpush.bf16.xpose.msrb.mxu0 %v12959_v60  ;;  %8366 = vmatpush.bf16.xpose.msrb.mxu1 %v12963_v62  ;;  %v1415_v60 = vld [vmem:[%s15246_s23 + $0x21d0] sm:$0xff]  ;;  %v1416_v62 = vld [vmem:[%s15246_s23 + $0x21d8] sm:$0xff] }
 0x407   : > { %8379 = vmatpush.bf16.xpose.msrb.mxu2 %v12967_v63  ;;  %8392 = vmatpush.bf16.xpose.msrb.mxu3 %v12971_v0  ;;  %v9958_v63 = vld [vmem:[%s15246_s23 + $0xf0] sm:$0xf]  ;;  %v13966_v0 = vld [vmem:[%s15246_s23 + $0xf4] sm:$0xf]  ;;  %v5085_v3 = vunpack.c.l.b16 %v1415_v60  ;;  %v5086_v4 = vunpack.c.h.b16 %v1415_v60  ;;  %v5087_v5 = vunpack.c.l.b16 %v1416_v62  ;;  %v5088_v10 = vunpack.c.h.b16 %v1416_v62 }
 0x408   : > { %v9959_v6 = vor.u32 %v14041_v23, %v9958_v63  ;;  %v9963_v11 = vor.u32 %v13966_v0, %v9960_v1  ;;  %v12379_v60 = vor.u32 %v14568_v52, %v12376_v53 }
 0x409   : > { %v6285_v14 = vpack.c.b16 %v5085_v3, %v5085_v3  ;;  %v11774_v3 = vld [vmem:[%s15246_s23 + $0xf10] sm:$0xf] }
 0x40e   : > { %8354 = vmatpush.bf16.xpose.msrb.mxu0 %v12359_v12  ;;  %8367 = vmatpush.bf16.xpose.msrb.mxu1 %v12363_v61  ;;  %v9967_v12 = vor.u32 %v14042_v27, %v9966_v2  ;;  %v6286_v61 = vpack.c.b16 %v5086_v4, %v5086_v4  ;;  %v322_v4 = vld [vmem:[%s15256_s19 + $0x40] sm:$0xff] }
 0x40f   : > { %8380 = vmatpush.bf16.xpose.msrb.mxu2 %v12367_v15  ;;  %8393 = vmatpush.bf16.xpose.msrb.mxu3 %v12371_v17  ;;  %v6287_v15 = vpack.c.b16 %v5087_v5, %v5087_v5  ;;  %v6288_v17 = vpack.c.b16 %v5088_v10, %v5088_v10  ;;  %v14493_v5 = vld [vmem:[%s15246_s23 + $0x1164] sm:$0xf0]  ;;  %v14494_v10 = vld [vmem:[%s15246_s23 + $0x116c] sm:$0xf0] }
 0x416   : > { %8355 = vmatpush.bf16.xpose.msrb.mxu0 %v11759_v54  ;;  %8368 = vmatpush.bf16.xpose.msrb.mxu1 %v11763_v30  ;;  %v13575_v54 = vor.u32 %v14943_v43, %v13574_v19  ;;  %v1537_v30 = vld [vmem:[#allocation1 + $0x3f] sm:$0xff]  ;;  %v14268_v43 = vld [vmem:[%s15246_s23 + $0xa64] sm:$0xf] }
 0x417   : > { %8381 = vmatpush.bf16.xpose.msrb.mxu2 %v11767_v31  ;;  %8394 = vmatpush.bf16.xpose.msrb.mxu3 %v11771_v57  ;;  %v13579_v31 = vor.u32 %v14868_v21, %v13576_v22  ;;  %v13587_v57 = vor.u32 %v14869_v28, %v13584_v29  ;;  %1539 = vst [vmem:[#allocation1] ss:$9 sm:$0xff] %v322_v4  ;;  %v14343_v19 = vld [vmem:[%s15246_s23 + $0xcb4] sm:$0xf0]  ;;  %v11176_v21 = vld [vmem:[%s15246_s23 + $0xcb8] sm:$0xf0] }
 0x418   : > { %v11182_v22 = vld [vmem:[%s15246_s23 + $0xa68] sm:$0xf]  ;;  %v11179_v29 = vor.u32 %v14268_v43, %v11176_v21  ;;  %v12992_v43 = vld [vmem:[%s15246_s23 + $0x1ad8] sm:$0xf0] }
 0x419   : > { %v14945_v4 = vld [vmem:[%s15246_s23 + $0x1f84] sm:$0xf0] }
 0x41a   : > { %v12998_v21 = vld [vmem:[%s15246_s23 + $0x1888] sm:$0xf] }
 0x41e   : > { %8356 = vmatpush.bf16.xpose.msrb.mxu0 %v11159_v44  ;;  %8369 = vmatpush.bf16.xpose.msrb.mxu1 %v11163_v45  ;;  %v12979_v44 = vor.u32 %v14718_v35, %v12976_v36  ;;  %v12983_v45 = vor.u32 %v14794_v38, %v12982_v37  ;;  %v14194_v35 = vld [vmem:[%s15246_s23 + $0x80c] sm:$0xf0]  ;;  %v14119_v36 = vld [vmem:[%s15246_s23 + $0x5bc] sm:$0xf]  ;;  %v10584_v37 = vld [vmem:[%s15246_s23 + $0x810] sm:$0xf0] }
 0x41f   : > { %8382 = vmatpush.bf16.xpose.msrb.mxu2 %v11167_v46  ;;  %8395 = vmatpush.bf16.xpose.msrb.mxu3 %v11171_v47  ;;  %v12987_v47 = vor.u32 %v14719_v40, %v12984_v41  ;;  %v10583_v41 = vor.u32 %v14194_v35, %v10582_v34  ;;  %v14645_v34 = vld [vmem:[%s15246_s23 + $0x1624] sm:$0xf0]  ;;  %v14570_v35 = vld [vmem:[%s15246_s23 + $0x13d4] sm:$0xf] }
 0x426   : > { %8357 = vmatpush.bf16.xpose.msrb.mxu0 %v10559_v55  ;;  %8370 = vmatpush.bf16.xpose.msrb.mxu1 %v10563_v56  ;;  %v14644_v55 = vld [vmem:[%s15246_s23 + $0x161c] sm:$0xf0]  ;;  %v14569_v56 = vld [vmem:[%s15246_s23 + $0x13cc] sm:$0xf] }
 0x427   : > { %8383 = vmatpush.bf16.xpose.msrb.mxu2 %v10567_v58  ;;  %8396 = vmatpush.bf16.xpose.msrb.mxu3 %v10571_v59  ;;  %v12384_v58 = vld [vmem:[%s15246_s23 + $0x1620] sm:$0xf0]  ;;  %v12375_v59 = vor.u32 %v14643_v9, %v12374_v50  ;;  %v12383_v62 = vor.u32 %v14644_v55, %v12382_v13  ;;  %v14044_v50 = vld [vmem:[%s15246_s23 + $0x35c] sm:$0xf0]  ;;  %v13969_v55 = vld [vmem:[%s15246_s23 + $0x10c] sm:$0xf] }
 0x428   : > { %v12387_v23 = vor.u32 %v14569_v56, %v12384_v58  ;;  %v9984_v56 = vld [vmem:[%s15246_s23 + $0x360] sm:$0xf0] }
 0x42e   : > { %8358 = vmatpush.bf16.xpose.msrb.mxu0 %v9959_v6  ;;  %8371 = vmatpush.bf16.xpose.msrb.mxu1 %v9963_v11  ;;  %v14418_v6 = vld [vmem:[%s15246_s23 + $0xf14] sm:$0xf]  ;;  %v14419_v11 = vld [vmem:[%s15246_s23 + $0xf1c] sm:$0xf] }
 0x42f   : > { %8384 = vmatpush.bf16.xpose.msrb.mxu2 %v9967_v12  ;;  %8397 = vmatpush.bf16.xpose.msrb.mxu3 %v9971_v16  ;;  %v11784_v12 = vld [vmem:[%s15246_s23 + $0x1170] sm:$0xf0] }
 0x432   : > { %v8256_v46 = vpop.f32.mrf.mxu0  ;;  %v8269_v48 = vpop.f32.mrf.mxu1 }
 0x433   : > { %v8257_v51 = vadd.f32 %v8256_v46, %v16199_v20  ;;  %v9974_v46 = vld [vmem:[%s15246_s23 + $0x100] sm:$0xf] }
 0x435   : > { %8359 = vmatmul.bf16.vlgmr.msrb.gmra.mxu0 %v1534_v39  ;;  %8372 = vmatmul.bf16.vlgmr.msrb.gmra.mxu1 %v1535_v26  ;;  %v8270_v49 = vadd.f32 %v8269_v48, %v8257_v51  ;;  %v11184_v26 = vld [vmem:[%s15246_s23 + $0xcc0] sm:$0xf0]  ;;  %v9976_v48 = vld [vmem:[%s15246_s23 + $0x358] sm:$0xf0] }
 0x436   : > { %8403 = vmatpush.bf16.xpose.msra.mxu0 %v6285_v14  ;;  %8416 = vmatpush.bf16.xpose.msra.mxu1 %v6286_v61  ;;  %v11775_v14 = vor.u32 %v14493_v5, %v11774_v3  ;;  %v11779_v61 = vor.u32 %v14418_v6, %v11776_v7  ;;  %v13968_v51 = vld [vmem:[%s15246_s23 + $0x104] sm:$0xf]  ;;  %v13590_v3 = vld [vmem:[%s15246_s23 + $0x1d30] sm:$0xf]  ;;  %v14870_v5 = vld [vmem:[%s15246_s23 + $0x1d34] sm:$0xf] }
 0x437   : > { %8429 = vmatpush.bf16.xpose.msra.mxu2 %v6287_v15  ;;  %8442 = vmatpush.bf16.xpose.msra.mxu3 %v6288_v17  ;;  %v11783_v15 = vor.u32 %v14494_v10, %v11782_v8  ;;  %v11787_v17 = vor.u32 %v14419_v11, %v11784_v12  ;;  %v13592_v6 = vld [vmem:[%s15246_s23 + $0x1f88] sm:$0xf0]  ;;  %v13598_v7 = vld [vmem:[%s15246_s23 + $0x1d38] sm:$0xf]  ;;  %v14946_v8 = vld [vmem:[%s15246_s23 + $0x1f8c] sm:$0xf0] }
 0x438   : > { %8385 = vmatmul.bf16.vlgmr.msrb.gmra.mxu2 %v1536_v18  ;;  %8398 = vmatmul.bf16.vlgmr.msrb.gmra.mxu3 %v1537_v30  ;;  %v11174_v18 = vld [vmem:[%s15246_s23 + $0xa60] sm:$0xf]  ;;  %v11187_v30 = vor.u32 %v14269_v25, %v11184_v26  ;;  %v14871_v11 = vld [vmem:[%s15246_s23 + $0x1d3c] sm:$0xf]  ;;  %v13600_v12 = vld [vmem:[%s15246_s23 + $0x1f90] sm:$0xf0] }
 0x439   : > { %v11175_v28 = vor.u32 %v14343_v19, %v11174_v18  ;;  %v1541_v10 = vld [vmem:[#allocation1 + $0x9] sm:$0xff] }
 0x43a   : > { %v8258_v0 = vpop.f32.mrf.mxu0  ;;  %v8271_v2 = vpop.f32.mrf.mxu1  ;;  %v14795_v18 = vld [vmem:[%s15246_s23 + $0x1ad4] sm:$0xf0]  ;;  %v14720_v19 = vld [vmem:[%s15246_s23 + $0x1884] sm:$0xf] }
 0x43b   : > { %v8282_v20 = vpop.f32.mrf.mxu2  ;;  %v8295_v1 = vpop.f32.mrf.mxu3  ;;  %v1542_v2 = vld [vmem:[#allocation1 + $0x12] sm:$0xff] }
 0x43c   : > { %v8283_v63 = vadd.f32 %v8282_v20, %v8270_v49  ;;  %v9982_v49 = vld [vmem:[%s15246_s23 + $0x108] sm:$0xf]  ;;  %v13000_v25 = vld [vmem:[%s15246_s23 + $0x1ae0] sm:$0xf0] }
 0x43d   : > { %v9983_v20 = vor.u32 %v14044_v50, %v9982_v49 }
 0x43e   : > { %8404 = vmatpush.bf16.xpose.msra.mxu0 %v13575_v54  ;;  %8417 = vmatpush.bf16.xpose.msra.mxu1 %v13579_v31  ;;  %v16260_v27 = vadd.f32 %v8295_v1, %v8283_v63  ;;  %v11183_v54 = vor.u32 %v14344_v24, %v11182_v22  ;;  %v10574_v31 = vld [vmem:[%s15246_s23 + $0x5b0] sm:$0xf]  ;;  %v14796_v22 = vld [vmem:[%s15246_s23 + $0x1adc] sm:$0xf0]  ;;  %v14721_v24 = vld [vmem:[%s15246_s23 + $0x188c] sm:$0xf] }
 0x43f   : > { %8430 = vmatpush.bf16.xpose.msra.mxu2 %v13583_v32  ;;  %8443 = vmatpush.bf16.xpose.msra.mxu3 %v13587_v57  ;;  %v14193_v32 = vld [vmem:[%s15246_s23 + $0x804] sm:$0xf0]  ;;  %v14118_v57 = vld [vmem:[%s15246_s23 + $0x5b4] sm:$0xf] }
 0x440   : > { %v10575_v38 = vor.u32 %v14193_v32, %v10574_v31  ;;  %v10579_v40 = vor.u32 %v14118_v57, %v10576_v33  ;;  %v1540_v1 = vld [vmem:[#allocation1] sm:$0xff] }
 0x441   : > { %v12390_v33 = vld [vmem:[%s15246_s23 + $0x13d0] sm:$0xf] }
 0x443   : > { %v8284_v16 = vpop.f32.mrf.mxu2  ;;  %v8297_v39 = vpop.f32.mrf.mxu3 }
 0x444   : > { %v13599_v16 = vor.u32 %v14946_v8, %v13598_v7  ;;  %v12990_v39 = vld [vmem:[%s15246_s23 + $0x1880] sm:$0xf]  ;;  %v14271_v7 = vld [vmem:[%s15246_s23 + $0xa7c] sm:$0xf]  ;;  %v11200_v8 = vld [vmem:[%s15246_s23 + $0xcd0] sm:$0xf0] }
 0x445   : > { %v12991_v26 = vor.u32 %v14795_v18, %v12990_v39  ;;  %v10598_v39 = vld [vmem:[%s15246_s23 + $0x5c8] sm:$0xf]  ;;  %v14196_v18 = vld [vmem:[%s15246_s23 + $0x81c] sm:$0xf0] }
 0x446   : > { %8405 = vmatpush.bf16.xpose.msra.mxu0 %v12975_v42  ;;  %8418 = vmatpush.bf16.xpose.msra.mxu1 %v12979_v44  ;;  %v10587_v42 = vor.u32 %v14119_v36, %v10584_v37  ;;  %v1417_v44 = vld [vmem:[%s15246_s23 + $0x21e0] sm:$0xff]  ;;  %v12392_v36 = vld [vmem:[%s15246_s23 + $0x1628] sm:$0xf0]  ;;  %v12398_v37 = vld [vmem:[%s15246_s23 + $0x13d8] sm:$0xf] }
 0x447   : > { %8431 = vmatpush.bf16.xpose.msra.mxu2 %v12983_v45  ;;  %8444 = vmatpush.bf16.xpose.msra.mxu3 %v12987_v47  ;;  %v1418_v45 = vld [vmem:[%s15246_s23 + $0x21e8] sm:$0xff]  ;;  %v14043_v47 = vld [vmem:[%s15246_s23 + $0x354] sm:$0xf0]  ;;  %v5089_v9 = vunpack.c.l.b16 %v1417_v44  ;;  %v5090_v52 = vunpack.c.h.b16 %v1417_v44 }
 0x448   : > { %v5091_v53 = vunpack.c.l.b16 %v1418_v45  ;;  %v9975_v13 = vor.u32 %v14043_v47, %v9974_v46  ;;  %v5092_v58 = vunpack.c.h.b16 %v1418_v45 }
 0x44a   : > { %v6291_v63 = vpack.c.b16 %v5091_v53, %v5091_v53  ;;  %v6292_v0 = vpack.c.b16 %v5092_v58, %v5092_v58  ;;  %v14420_v53 = vld [vmem:[%s15246_s23 + $0xf24] sm:$0xf]  ;;  %v14421_v58 = vld [vmem:[%s15246_s23 + $0xf2c] sm:$0xf] }
 0x44e   : > { %8406 = vmatpush.bf16.xpose.msra.mxu0 %v12375_v59  ;;  %8419 = vmatpush.bf16.xpose.msra.mxu1 %v12379_v60  ;;  %v9979_v59 = vor.u32 %v13968_v51, %v9976_v48  ;;  %v6289_v60 = vpack.c.b16 %v5089_v9, %v5089_v9  ;;  %v11790_v9 = vld [vmem:[%s15246_s23 + $0xf20] sm:$0xf] }
 0x44f   : > { %8432 = vmatpush.bf16.xpose.msra.mxu2 %v12383_v62  ;;  %8445 = vmatpush.bf16.xpose.msra.mxu3 %v12387_v23  ;;  %v6290_v62 = vpack.c.b16 %v5090_v52, %v5090_v52  ;;  %v9987_v23 = vor.u32 %v13969_v55, %v9984_v56  ;;  %v14495_v52 = vld [vmem:[%s15246_s23 + $0x1174] sm:$0xf0]  ;;  %v11798_v55 = vld [vmem:[%s15246_s23 + $0xf28] sm:$0xf]  ;;  %v14496_v56 = vld [vmem:[%s15246_s23 + $0x117c] sm:$0xf0] }
 0x456   : > { %8407 = vmatpush.bf16.xpose.msra.mxu0 %v11775_v14  ;;  %8420 = vmatpush.bf16.xpose.msra.mxu1 %v11779_v61  ;;  %v13591_v14 = vor.u32 %v14945_v4, %v13590_v3  ;;  %v1543_v61 = vld [vmem:[#allocation1 + $0x1b] sm:$0xff] }
 0x457   : > { %8433 = vmatpush.bf16.xpose.msra.mxu2 %v11783_v15  ;;  %8446 = vmatpush.bf16.xpose.msra.mxu3 %v11787_v17  ;;  %v13595_v15 = vor.u32 %v14870_v5, %v13592_v6  ;;  %v13603_v17 = vor.u32 %v14871_v11, %v13600_v12  ;;  %v14270_v3 = vld [vmem:[%s15246_s23 + $0xa74] sm:$0xf]  ;;  %v11192_v4 = vld [vmem:[%s15246_s23 + $0xcc8] sm:$0xf0]  ;;  %v11198_v5 = vld [vmem:[%s15246_s23 + $0xa78] sm:$0xf] }
 0x458   : > { %v14346_v6 = vld [vmem:[%s15246_s23 + $0xccc] sm:$0xf0]  ;;  %v11195_v11 = vor.u32 %v14270_v3, %v11192_v4  ;;  %v13008_v3 = vld [vmem:[%s15246_s23 + $0x1ae8] sm:$0xf0]  ;;  %v13014_v4 = vld [vmem:[%s15246_s23 + $0x1898] sm:$0xf] }
 0x459   : > { %v11199_v12 = vor.u32 %v14346_v6, %v11198_v5  ;;  %v14798_v5 = vld [vmem:[%s15246_s23 + $0x1aec] sm:$0xf0]  ;;  %v14723_v6 = vld [vmem:[%s15246_s23 + $0x189c] sm:$0xf] }
 0x45e   : > { %8408 = vmatpush.bf16.xpose.msra.mxu0 %v11175_v28  ;;  %8421 = vmatpush.bf16.xpose.msra.mxu1 %v11179_v29  ;;  %v12995_v28 = vor.u32 %v14720_v19, %v12992_v43  ;;  %v12999_v29 = vor.u32 %v14796_v22, %v12998_v21  ;;  %v14121_v19 = vld [vmem:[%s15246_s23 + $0x5cc] sm:$0xf]  ;;  %v10600_v43 = vld [vmem:[%s15246_s23 + $0x820] sm:$0xf0] }
 0x45f   : > { %8434 = vmatpush.bf16.xpose.msra.mxu2 %v11183_v54  ;;  %8447 = vmatpush.bf16.xpose.msra.mxu3 %v11187_v30  ;;  %v13003_v30 = vor.u32 %v14721_v24, %v13000_v25  ;;  %v10599_v24 = vor.u32 %v14196_v18, %v10598_v39  ;;  %v10603_v25 = vor.u32 %v14121_v19, %v10600_v43  ;;  %v14647_v39 = vld [vmem:[%s15246_s23 + $0x1634] sm:$0xf0]  ;;  %v14572_v18 = vld [vmem:[%s15246_s23 + $0x13e4] sm:$0xf]  ;;  %v12408_v19 = vld [vmem:[%s15246_s23 + $0x1638] sm:$0xf0] }
 0x460   : > { %v12414_v43 = vld [vmem:[%s15246_s23 + $0x13e8] sm:$0xf] }
 0x466   : > { %8409 = vmatpush.bf16.xpose.msra.mxu0 %v10575_v38  ;;  %8422 = vmatpush.bf16.xpose.msra.mxu1 %v10579_v40  ;;  %v14646_v38 = vld [vmem:[%s15246_s23 + $0x162c] sm:$0xf0]  ;;  %v14571_v40 = vld [vmem:[%s15246_s23 + $0x13dc] sm:$0xf] }
 0x467   : > { %8435 = vmatpush.bf16.xpose.msra.mxu2 %v10583_v41  ;;  %8448 = vmatpush.bf16.xpose.msra.mxu3 %v10587_v42  ;;  %v12400_v41 = vld [vmem:[%s15246_s23 + $0x1630] sm:$0xf0]  ;;  %v12391_v42 = vor.u32 %v14645_v34, %v12390_v33  ;;  %v12399_v45 = vor.u32 %v14646_v38, %v12398_v37  ;;  %v13971_v37 = vld [vmem:[%s15246_s23 + $0x11c] sm:$0xf] }
 0x468   : > { %v12403_v47 = vor.u32 %v14571_v40, %v12400_v41  ;;  %v10000_v38 = vld [vmem:[%s15246_s23 + $0x370] sm:$0xf0] }
 0x46e   : > { %8410 = vmatpush.bf16.xpose.msra.mxu0 %v9975_v13  ;;  %8423 = vmatpush.bf16.xpose.msra.mxu1 %v9979_v59  ;;  %v11792_v13 = vld [vmem:[%s15246_s23 + $0x1178] sm:$0xf0]  ;;  %v11800_v59 = vld [vmem:[%s15246_s23 + $0x1180] sm:$0xf0] }
 0x46f   : > { %8436 = vmatpush.bf16.xpose.msra.mxu2 %v9983_v20  ;;  %8449 = vmatpush.bf16.xpose.msra.mxu3 %v9987_v23  ;;  %v11791_v20 = vor.u32 %v14495_v52, %v11790_v9  ;;  %v11803_v23 = vor.u32 %v14421_v58, %v11800_v59  ;;  %v14947_v9 = vld [vmem:[%s15246_s23 + $0x1f94] sm:$0xf0]  ;;  %v14872_v52 = vld [vmem:[%s15246_s23 + $0x1d44] sm:$0xf]  ;;  %v14873_v58 = vld [vmem:[%s15246_s23 + $0x1d4c] sm:$0xf] }
 0x470   : > { %v13616_v59 = vld [vmem:[%s15246_s23 + $0x1fa0] sm:$0xf0] }
 0x472   : > { %v8308_v54 = vpop.f32.mrf.mxu0  ;;  %v8321_v32 = vpop.f32.mrf.mxu1 }
 0x473   : > { %v8309_v31 = vadd.f32 %v8308_v54, %v16260_v27  ;;  %v12395_v27 = vor.u32 %v14570_v35, %v12392_v36  ;;  %v14045_v54 = vld [vmem:[%s15246_s23 + $0x364] sm:$0xf0] }
 0x475   : > { %8411 = vmatmul.bf16.vlgmr.msra.gmra.mxu0 %v1540_v1  ;;  %8424 = vmatmul.bf16.vlgmr.msra.gmra.mxu1 %v1541_v10  ;;  %v8322_v57 = vadd.f32 %v8321_v32, %v8309_v31  ;;  %v11190_v1 = vld [vmem:[%s15246_s23 + $0xa70] sm:$0xf]  ;;  %v9992_v31 = vld [vmem:[%s15246_s23 + $0x368] sm:$0xf0]  ;;  %v9998_v32 = vld [vmem:[%s15246_s23 + $0x118] sm:$0xf] }
 0x476   : > { %8455 = vmatpush.bf16.xpose.msrb.mxu0 %v6289_v60  ;;  %8468 = vmatpush.bf16.xpose.msrb.mxu1 %v6290_v62  ;;  %v11795_v60 = vor.u32 %v14420_v53, %v11792_v13  ;;  %v11799_v62 = vor.u32 %v14496_v56, %v11798_v55  ;;  %v13608_v53 = vld [vmem:[%s15246_s23 + $0x1f98] sm:$0xf0]  ;;  %v13614_v13 = vld [vmem:[%s15246_s23 + $0x1d48] sm:$0xf]  ;;  %v14948_v55 = vld [vmem:[%s15246_s23 + $0x1f9c] sm:$0xf0] }
 0x477   : > { %8481 = vmatpush.bf16.xpose.msrb.mxu2 %v6291_v63  ;;  %8494 = vmatpush.bf16.xpose.msrb.mxu3 %v6292_v0  ;;  %v1545_v56 = vld [vmem:[#allocation1 + $0x2d] sm:$0xff] }
 0x478   : > { %8437 = vmatmul.bf16.vlgmr.msra.gmra.mxu2 %v1542_v2  ;;  %8450 = vmatmul.bf16.vlgmr.msra.gmra.mxu3 %v1543_v61  ;;  %v14345_v2 = vld [vmem:[%s15246_s23 + $0xcc4] sm:$0xf0]  ;;  %v10590_v61 = vld [vmem:[%s15246_s23 + $0x5c0] sm:$0xf] }
 0x479   : > { %v11191_v10 = vor.u32 %v14345_v2, %v11190_v1  ;;  %v14797_v1 = vld [vmem:[%s15246_s23 + $0x1ae4] sm:$0xf0]  ;;  %v14722_v2 = vld [vmem:[%s15246_s23 + $0x1894] sm:$0xf] }
 0x47a   : > { %v8310_v51 = vpop.f32.mrf.mxu0  ;;  %v8323_v49 = vpop.f32.mrf.mxu1 }
 0x47b   : > { %v8334_v44 = vpop.f32.mrf.mxu2  ;;  %v8347_v48 = vpop.f32.mrf.mxu3  ;;  %v1544_v51 = vld [vmem:[#allocation1 + $0x24] sm:$0xff] }
 0x47c   : > { %v8335_v46 = vadd.f32 %v8334_v44, %v8322_v57  ;;  %v14046_v57 = vld [vmem:[%s15246_s23 + $0x36c] sm:$0xf0]  ;;  %v13606_v49 = vld [vmem:[%s15246_s23 + $0x1d40] sm:$0xf] }
 0x47e   : > { %8456 = vmatpush.bf16.xpose.msrb.mxu0 %v13591_v14  ;;  %8469 = vmatpush.bf16.xpose.msrb.mxu1 %v13595_v15  ;;  %v16322_v50 = vadd.f32 %v8347_v48, %v8335_v46  ;;  %v11203_v14 = vor.u32 %v14271_v7, %v11200_v8  ;;  %v14195_v15 = vld [vmem:[%s15246_s23 + $0x814] sm:$0xf0]  ;;  %v10003_v46 = vor.u32 %v13971_v37, %v10000_v38  ;;  %v1546_v48 = vld [vmem:[#allocation1 + $0x36] sm:$0xff]  ;;  %v13016_v7 = vld [vmem:[%s15246_s23 + $0x1af0] sm:$0xf0] }
 0x47f   : > { %8482 = vmatpush.bf16.xpose.msrb.mxu2 %v13599_v16  ;;  %8495 = vmatpush.bf16.xpose.msrb.mxu3 %v13603_v17  ;;  %v14120_v16 = vld [vmem:[%s15246_s23 + $0x5c4] sm:$0xf]  ;;  %v10592_v17 = vld [vmem:[%s15246_s23 + $0x818] sm:$0xf0]  ;;  %v10591_v21 = vor.u32 %v14195_v15, %v10590_v61  ;;  %v11808_v37 = vld [vmem:[%s15246_s23 + $0x1188] sm:$0xf0] }
 0x480   : > { %v10595_v22 = vor.u32 %v14120_v16, %v10592_v17  ;;  %v12406_v17 = vld [vmem:[%s15246_s23 + $0x13e0] sm:$0xf]  ;;  %v11814_v38 = vld [vmem:[%s15246_s23 + $0xf38] sm:$0xf] }
 0x483   : > { %v8336_v63 = vpop.f32.mrf.mxu2  ;;  %v8349_v0 = vpop.f32.mrf.mxu3 }
 0x484   : > { %v13615_v63 = vor.u32 %v14948_v55, %v13614_v13  ;;  %v13006_v0 = vld [vmem:[%s15246_s23 + $0x1890] sm:$0xf]  ;;  %v14348_v13 = vld [vmem:[%s15246_s23 + $0xcdc] sm:$0xf0]  ;;  %v14273_v55 = vld [vmem:[%s15246_s23 + $0xa8c] sm:$0xf] }
 0x485   : > { %v13007_v8 = vor.u32 %v14797_v1, %v13006_v0  ;;  %v10608_v0 = vld [vmem:[%s15246_s23 + $0x828] sm:$0xf0]  ;;  %v10614_v1 = vld [vmem:[%s15246_s23 + $0x5d8] sm:$0xf] }
 0x486   : > { %8457 = vmatpush.bf16.xpose.msrb.mxu0 %v12991_v26  ;;  %8470 = vmatpush.bf16.xpose.msrb.mxu1 %v12995_v28  ;;  %v1419_v26 = vld [vmem:[%s15246_s23 + $0x21f0] sm:$0xff]  ;;  %v1420_v28 = vld [vmem:[%s15246_s23 + $0x21f8] sm:$0xff] }
 0x487   : > { %8483 = vmatpush.bf16.xpose.msrb.mxu2 %v12999_v29  ;;  %8496 = vmatpush.bf16.xpose.msrb.mxu3 %v13003_v30  ;;  %v9990_v29 = vld [vmem:[%s15246_s23 + $0x110] sm:$0xf]  ;;  %v13970_v30 = vld [vmem:[%s15246_s23 + $0x114] sm:$0xf]  ;;  %v5093_v33 = vunpack.c.l.b16 %v1419_v26  ;;  %v5094_v34 = vunpack.c.h.b16 %v1419_v26  ;;  %v5095_v35 = vunpack.c.l.b16 %v1420_v28  ;;  %v5096_v40 = vunpack.c.h.b16 %v1420_v28 }
 0x488   : > { %v9991_v36 = vor.u32 %v14045_v54, %v9990_v29  ;;  %v9995_v41 = vor.u32 %v13970_v30, %v9992_v31  ;;  %v12411_v26 = vor.u32 %v14572_v18, %v12408_v19 }
 0x489   : > { %v6293_v44 = vpack.c.b16 %v5093_v33, %v5093_v33  ;;  %v11806_v33 = vld [vmem:[%s15246_s23 + $0xf30] sm:$0xf] }
 0x48e   : > { %8458 = vmatpush.bf16.xpose.msrb.mxu0 %v12391_v42  ;;  %8471 = vmatpush.bf16.xpose.msrb.mxu1 %v12395_v27  ;;  %v9999_v42 = vor.u32 %v14046_v57, %v9998_v32  ;;  %v6294_v27 = vpack.c.b16 %v5094_v34, %v5094_v34  ;;  %v323_v34 = vld [vmem:[%s15256_s19 + $0x48] sm:$0xff] }
 0x48f   : > { %8484 = vmatpush.bf16.xpose.msrb.mxu2 %v12399_v45  ;;  %8497 = vmatpush.bf16.xpose.msrb.mxu3 %v12403_v47  ;;  %v6295_v45 = vpack.c.b16 %v5095_v35, %v5095_v35  ;;  %v6296_v47 = vpack.c.b16 %v5096_v40, %v5096_v40  ;;  %v14497_v35 = vld [vmem:[%s15246_s23 + $0x1184] sm:$0xf0]  ;;  %v14498_v40 = vld [vmem:[%s15246_s23 + $0x118c] sm:$0xf0] }
 0x496   : > { %8459 = vmatpush.bf16.xpose.msrb.mxu0 %v11791_v20  ;;  %8472 = vmatpush.bf16.xpose.msrb.mxu1 %v11795_v60  ;;  %v13607_v20 = vor.u32 %v14947_v9, %v13606_v49  ;;  %v1547_v60 = vld [vmem:[#allocation1 + $0x3f] sm:$0xff]  ;;  %v14272_v9 = vld [vmem:[%s15246_s23 + $0xa84] sm:$0xf] }
 0x497   : > { %8485 = vmatpush.bf16.xpose.msrb.mxu2 %v11799_v62  ;;  %8498 = vmatpush.bf16.xpose.msrb.mxu3 %v11803_v23  ;;  %v13611_v62 = vor.u32 %v14872_v52, %v13608_v53  ;;  %v13619_v23 = vor.u32 %v14873_v58, %v13616_v59  ;;  %1549 = vst [vmem:[#allocation1] ss:$9 sm:$0xff] %v323_v34  ;;  %v14347_v49 = vld [vmem:[%s15246_s23 + $0xcd4] sm:$0xf0]  ;;  %v11208_v52 = vld [vmem:[%s15246_s23 + $0xcd8] sm:$0xf0] }
 0x498   : > { %v11214_v53 = vld [vmem:[%s15246_s23 + $0xa88] sm:$0xf]  ;;  %v11211_v59 = vor.u32 %v14272_v9, %v11208_v52  ;;  %v13024_v9 = vld [vmem:[%s15246_s23 + $0x1af8] sm:$0xf0] }
 0x499   : > { %v14949_v34 = vld [vmem:[%s15246_s23 + $0x1fa4] sm:$0xf0] }
 0x49a   : > { %v13030_v52 = vld [vmem:[%s15246_s23 + $0x18a8] sm:$0xf] }
 0x49e   : > { %8460 = vmatpush.bf16.xpose.msrb.mxu0 %v11191_v10  ;;  %8473 = vmatpush.bf16.xpose.msrb.mxu1 %v11195_v11  ;;  %v13011_v10 = vor.u32 %v14722_v2, %v13008_v3  ;;  %v13015_v11 = vor.u32 %v14798_v5, %v13014_v4  ;;  %v14198_v2 = vld [vmem:[%s15246_s23 + $0x82c] sm:$0xf0]  ;;  %v14123_v3 = vld [vmem:[%s15246_s23 + $0x5dc] sm:$0xf]  ;;  %v10616_v4 = vld [vmem:[%s15246_s23 + $0x830] sm:$0xf0] }
 0x49f   : > { %8486 = vmatpush.bf16.xpose.msrb.mxu2 %v11199_v12  ;;  %8499 = vmatpush.bf16.xpose.msrb.mxu3 %v11203_v14  ;;  %v13019_v14 = vor.u32 %v14723_v6, %v13016_v7  ;;  %v10615_v7 = vor.u32 %v14198_v2, %v10614_v1  ;;  %v14649_v1 = vld [vmem:[%s15246_s23 + $0x1644] sm:$0xf0]  ;;  %v14574_v2 = vld [vmem:[%s15246_s23 + $0x13f4] sm:$0xf] }
 0x4a6   : > { %8461 = vmatpush.bf16.xpose.msrb.mxu0 %v10591_v21  ;;  %8474 = vmatpush.bf16.xpose.msrb.mxu1 %v10595_v22  ;;  %v14648_v21 = vld [vmem:[%s15246_s23 + $0x163c] sm:$0xf0]  ;;  %v14573_v22 = vld [vmem:[%s15246_s23 + $0x13ec] sm:$0xf] }
 0x4a7   : > { %8487 = vmatpush.bf16.xpose.msrb.mxu2 %v10599_v24  ;;  %8500 = vmatpush.bf16.xpose.msrb.mxu3 %v10603_v25  ;;  %v12416_v24 = vld [vmem:[%s15246_s23 + $0x1640] sm:$0xf0]  ;;  %v12407_v25 = vor.u32 %v14647_v39, %v12406_v17  ;;  %v12415_v28 = vor.u32 %v14648_v21, %v12414_v43  ;;  %v14048_v17 = vld [vmem:[%s15246_s23 + $0x37c] sm:$0xf0]  ;;  %v13973_v21 = vld [vmem:[%s15246_s23 + $0x12c] sm:$0xf] }
 0x4a8   : > { %v12419_v54 = vor.u32 %v14573_v22, %v12416_v24  ;;  %v10016_v22 = vld [vmem:[%s15246_s23 + $0x380] sm:$0xf0] }
 0x4ae   : > { %8462 = vmatpush.bf16.xpose.msrb.mxu0 %v9991_v36  ;;  %8475 = vmatpush.bf16.xpose.msrb.mxu1 %v9995_v41  ;;  %v14422_v36 = vld [vmem:[%s15246_s23 + $0xf34] sm:$0xf]  ;;  %v14423_v41 = vld [vmem:[%s15246_s23 + $0xf3c] sm:$0xf] }
 0x4af   : > { %8488 = vmatpush.bf16.xpose.msrb.mxu2 %v9999_v42  ;;  %8501 = vmatpush.bf16.xpose.msrb.mxu3 %v10003_v46  ;;  %v11816_v42 = vld [vmem:[%s15246_s23 + $0x1190] sm:$0xf0] }
 0x4b2   : > { %v8360_v12 = vpop.f32.mrf.mxu0  ;;  %v8373_v15 = vpop.f32.mrf.mxu1 }
 0x4b3   : > { %v8361_v61 = vadd.f32 %v8360_v12, %v16322_v50  ;;  %v10006_v12 = vld [vmem:[%s15246_s23 + $0x120] sm:$0xf] }
 0x4b5   : > { %8463 = vmatmul.bf16.vlgmr.msrb.gmra.mxu0 %v1544_v51  ;;  %8476 = vmatmul.bf16.vlgmr.msrb.gmra.mxu1 %v1545_v56  ;;  %v8374_v16 = vadd.f32 %v8373_v15, %v8361_v61  ;;  %v11216_v56 = vld [vmem:[%s15246_s23 + $0xce0] sm:$0xf0]  ;;  %v10008_v15 = vld [vmem:[%s15246_s23 + $0x378] sm:$0xf0] }
 0x4b6   : > { %8507 = vmatpush.bf16.xpose.msra.mxu0 %v6293_v44  ;;  %8520 = vmatpush.bf16.xpose.msra.mxu1 %v6294_v27  ;;  %v11807_v44 = vor.u32 %v14497_v35, %v11806_v33  ;;  %v11811_v27 = vor.u32 %v14422_v36, %v11808_v37  ;;  %v13972_v61 = vld [vmem:[%s15246_s23 + $0x124] sm:$0xf]  ;;  %v13622_v33 = vld [vmem:[%s15246_s23 + $0x1d50] sm:$0xf]  ;;  %v14874_v35 = vld [vmem:[%s15246_s23 + $0x1d54] sm:$0xf] }
 0x4b7   : > { %8533 = vmatpush.bf16.xpose.msra.mxu2 %v6295_v45  ;;  %8546 = vmatpush.bf16.xpose.msra.mxu3 %v6296_v47  ;;  %v11815_v45 = vor.u32 %v14498_v40, %v11814_v38  ;;  %v11819_v47 = vor.u32 %v14423_v41, %v11816_v42  ;;  %v13624_v36 = vld [vmem:[%s15246_s23 + $0x1fa8] sm:$0xf0]  ;;  %v13630_v37 = vld [vmem:[%s15246_s23 + $0x1d58] sm:$0xf]  ;;  %v14950_v38 = vld [vmem:[%s15246_s23 + $0x1fac] sm:$0xf0] }
 0x4b8   : > { %8489 = vmatmul.bf16.vlgmr.msrb.gmra.mxu2 %v1546_v48  ;;  %8502 = vmatmul.bf16.vlgmr.msrb.gmra.mxu3 %v1547_v60  ;;  %v11206_v48 = vld [vmem:[%s15246_s23 + $0xa80] sm:$0xf]  ;;  %v11219_v60 = vor.u32 %v14273_v55, %v11216_v56  ;;  %v14875_v41 = vld [vmem:[%s15246_s23 + $0x1d5c] sm:$0xf]  ;;  %v13632_v42 = vld [vmem:[%s15246_s23 + $0x1fb0] sm:$0xf0] }
 0x4b9   : > { %v11207_v58 = vor.u32 %v14347_v49, %v11206_v48  ;;  %v1551_v40 = vld [vmem:[#allocation1 + $0x9] sm:$0xff] }
 0x4ba   : > { %v8362_v30 = vpop.f32.mrf.mxu0  ;;  %v8375_v32 = vpop.f32.mrf.mxu1  ;;  %v14799_v48 = vld [vmem:[%s15246_s23 + $0x1af4] sm:$0xf0]  ;;  %v14724_v49 = vld [vmem:[%s15246_s23 + $0x18a4] sm:$0xf] }
 0x4bb   : > { %v8386_v50 = vpop.f32.mrf.mxu2  ;;  %v8399_v31 = vpop.f32.mrf.mxu3  ;;  %v1552_v32 = vld [vmem:[#allocation1 + $0x12] sm:$0xff] }
 0x4bc   : > { %v8387_v29 = vadd.f32 %v8386_v50, %v8374_v16  ;;  %v10014_v16 = vld [vmem:[%s15246_s23 + $0x128] sm:$0xf]  ;;  %v13032_v55 = vld [vmem:[%s15246_s23 + $0x1b00] sm:$0xf0] }
 0x4bd   : > { %v10015_v50 = vor.u32 %v14048_v17, %v10014_v16 }
 0x4be   : > { %8508 = vmatpush.bf16.xpose.msra.mxu0 %v13607_v20  ;;  %8521 = vmatpush.bf16.xpose.msra.mxu1 %v13611_v62  ;;  %v16383_v57 = vadd.f32 %v8399_v31, %v8387_v29  ;;  %v11215_v20 = vor.u32 %v14348_v13, %v11214_v53  ;;  %v10606_v62 = vld [vmem:[%s15246_s23 + $0x5d0] sm:$0xf]  ;;  %v14800_v53 = vld [vmem:[%s15246_s23 + $0x1afc] sm:$0xf0]  ;;  %v14725_v13 = vld [vmem:[%s15246_s23 + $0x18ac] sm:$0xf] }
 0x4bf   : > { %8534 = vmatpush.bf16.xpose.msra.mxu2 %v13615_v63  ;;  %8547 = vmatpush.bf16.xpose.msra.mxu3 %v13619_v23  ;;  %v14197_v63 = vld [vmem:[%s15246_s23 + $0x824] sm:$0xf0]  ;;  %v14122_v23 = vld [vmem:[%s15246_s23 + $0x5d4] sm:$0xf] }
 0x4c0   : > { %v10607_v5 = vor.u32 %v14197_v63, %v10606_v62  ;;  %v10611_v6 = vor.u32 %v14122_v23, %v10608_v0  ;;  %v1550_v31 = vld [vmem:[#allocation1] sm:$0xff] }
 0x4c1   : > { %v12422_v0 = vld [vmem:[%s15246_s23 + $0x13f0] sm:$0xf] }
 0x4c3   : > { %v8388_v46 = vpop.f32.mrf.mxu2  ;;  %v8401_v51 = vpop.f32.mrf.mxu3 }
 0x4c4   : > { %v13631_v46 = vor.u32 %v14950_v38, %v13630_v37  ;;  %v13022_v51 = vld [vmem:[%s15246_s23 + $0x18a0] sm:$0xf]  ;;  %v14275_v37 = vld [vmem:[%s15246_s23 + $0xa9c] sm:$0xf]  ;;  %v11232_v38 = vld [vmem:[%s15246_s23 + $0xcf0] sm:$0xf0] }
 0x4c5   : > { %v13023_v56 = vor.u32 %v14799_v48, %v13022_v51  ;;  %v10630_v51 = vld [vmem:[%s15246_s23 + $0x5e8] sm:$0xf]  ;;  %v14200_v48 = vld [vmem:[%s15246_s23 + $0x83c] sm:$0xf0] }
 0x4c6   : > { %8509 = vmatpush.bf16.xpose.msra.mxu0 %v13007_v8  ;;  %8522 = vmatpush.bf16.xpose.msra.mxu1 %v13011_v10  ;;  %v10619_v8 = vor.u32 %v14123_v3, %v10616_v4  ;;  %v1421_v10 = vld [vmem:[%s15246_s23 + $0x2200] sm:$0xff]  ;;  %v12424_v3 = vld [vmem:[%s15246_s23 + $0x1648] sm:$0xf0]  ;;  %v12430_v4 = vld [vmem:[%s15246_s23 + $0x13f8] sm:$0xf] }
 0x4c7   : > { %8535 = vmatpush.bf16.xpose.msra.mxu2 %v13015_v11  ;;  %8548 = vmatpush.bf16.xpose.msra.mxu3 %v13019_v14  ;;  %v1422_v11 = vld [vmem:[%s15246_s23 + $0x2208] sm:$0xff]  ;;  %v14047_v14 = vld [vmem:[%s15246_s23 + $0x374] sm:$0xf0]  ;;  %v5097_v39 = vunpack.c.l.b16 %v1421_v10  ;;  %v5098_v18 = vunpack.c.h.b16 %v1421_v10 }
 0x4c8   : > { %v5099_v19 = vunpack.c.l.b16 %v1422_v11  ;;  %v10007_v43 = vor.u32 %v14047_v14, %v10006_v12  ;;  %v5100_v24 = vunpack.c.h.b16 %v1422_v11 }
 0x4ca   : > { %v6299_v29 = vpack.c.b16 %v5099_v19, %v5099_v19  ;;  %v6300_v30 = vpack.c.b16 %v5100_v24, %v5100_v24  ;;  %v14424_v19 = vld [vmem:[%s15246_s23 + $0xf44] sm:$0xf]  ;;  %v14425_v24 = vld [vmem:[%s15246_s23 + $0xf4c] sm:$0xf] }
 0x4ce   : > { %8510 = vmatpush.bf16.xpose.msra.mxu0 %v12407_v25  ;;  %8523 = vmatpush.bf16.xpose.msra.mxu1 %v12411_v26  ;;  %v10011_v25 = vor.u32 %v13972_v61, %v10008_v15  ;;  %v6297_v26 = vpack.c.b16 %v5097_v39, %v5097_v39  ;;  %v11822_v39 = vld [vmem:[%s15246_s23 + $0xf40] sm:$0xf] }
 0x4cf   : > { %8536 = vmatpush.bf16.xpose.msra.mxu2 %v12415_v28  ;;  %8549 = vmatpush.bf16.xpose.msra.mxu3 %v12419_v54  ;;  %v6298_v28 = vpack.c.b16 %v5098_v18, %v5098_v18  ;;  %v10019_v54 = vor.u32 %v13973_v21, %v10016_v22  ;;  %v14499_v18 = vld [vmem:[%s15246_s23 + $0x1194] sm:$0xf0]  ;;  %v11830_v21 = vld [vmem:[%s15246_s23 + $0xf48] sm:$0xf]  ;;  %v14500_v22 = vld [vmem:[%s15246_s23 + $0x119c] sm:$0xf0] }
 0x4d6   : > { %8511 = vmatpush.bf16.xpose.msra.mxu0 %v11807_v44  ;;  %8524 = vmatpush.bf16.xpose.msra.mxu1 %v11811_v27  ;;  %v13623_v44 = vor.u32 %v14949_v34, %v13622_v33  ;;  %v1553_v27 = vld [vmem:[#allocation1 + $0x1b] sm:$0xff] }
 0x4d7   : > { %8537 = vmatpush.bf16.xpose.msra.mxu2 %v11815_v45  ;;  %8550 = vmatpush.bf16.xpose.msra.mxu3 %v11819_v47  ;;  %v13627_v45 = vor.u32 %v14874_v35, %v13624_v36  ;;  %v13635_v47 = vor.u32 %v14875_v41, %v13632_v42  ;;  %v14274_v33 = vld [vmem:[%s15246_s23 + $0xa94] sm:$0xf]  ;;  %v11224_v34 = vld [vmem:[%s15246_s23 + $0xce8] sm:$0xf0]  ;;  %v11230_v35 = vld [vmem:[%s15246_s23 + $0xa98] sm:$0xf] }
 0x4d8   : > { %v14350_v36 = vld [vmem:[%s15246_s23 + $0xcec] sm:$0xf0]  ;;  %v11227_v41 = vor.u32 %v14274_v33, %v11224_v34  ;;  %v13040_v33 = vld [vmem:[%s15246_s23 + $0x1b08] sm:$0xf0]  ;;  %v13046_v34 = vld [vmem:[%s15246_s23 + $0x18b8] sm:$0xf] }
 0x4d9   : > { %v11231_v42 = vor.u32 %v14350_v36, %v11230_v35  ;;  %v14802_v35 = vld [vmem:[%s15246_s23 + $0x1b0c] sm:$0xf0]  ;;  %v14727_v36 = vld [vmem:[%s15246_s23 + $0x18bc] sm:$0xf] }
 0x4de   : > { %8512 = vmatpush.bf16.xpose.msra.mxu0 %v11207_v58  ;;  %8525 = vmatpush.bf16.xpose.msra.mxu1 %v11211_v59  ;;  %v13027_v58 = vor.u32 %v14724_v49, %v13024_v9  ;;  %v13031_v59 = vor.u32 %v14800_v53, %v13030_v52  ;;  %v14125_v49 = vld [vmem:[%s15246_s23 + $0x5ec] sm:$0xf]  ;;  %v10632_v9 = vld [vmem:[%s15246_s23 + $0x840] sm:$0xf0] }
 0x4df   : > { %8538 = vmatpush.bf16.xpose.msra.mxu2 %v11215_v20  ;;  %8551 = vmatpush.bf16.xpose.msra.mxu3 %v11219_v60  ;;  %v13035_v60 = vor.u32 %v14725_v13, %v13032_v55  ;;  %v10631_v13 = vor.u32 %v14200_v48, %v10630_v51  ;;  %v10635_v55 = vor.u32 %v14125_v49, %v10632_v9  ;;  %v14651_v51 = vld [vmem:[%s15246_s23 + $0x1654] sm:$0xf0]  ;;  %v14576_v48 = vld [vmem:[%s15246_s23 + $0x1404] sm:$0xf]  ;;  %v12440_v49 = vld [vmem:[%s15246_s23 + $0x1658] sm:$0xf0] }
 0x4e0   : > { %v12446_v9 = vld [vmem:[%s15246_s23 + $0x1408] sm:$0xf] }
 0x4e6   : > { %8513 = vmatpush.bf16.xpose.msra.mxu0 %v10607_v5  ;;  %8526 = vmatpush.bf16.xpose.msra.mxu1 %v10611_v6  ;;  %v14650_v5 = vld [vmem:[%s15246_s23 + $0x164c] sm:$0xf0]  ;;  %v14575_v6 = vld [vmem:[%s15246_s23 + $0x13fc] sm:$0xf] }
 0x4e7   : > { %8539 = vmatpush.bf16.xpose.msra.mxu2 %v10615_v7  ;;  %8552 = vmatpush.bf16.xpose.msra.mxu3 %v10619_v8  ;;  %v12432_v7 = vld [vmem:[%s15246_s23 + $0x1650] sm:$0xf0]  ;;  %v12423_v8 = vor.u32 %v14649_v1, %v12422_v0  ;;  %v12431_v11 = vor.u32 %v14650_v5, %v12430_v4  ;;  %v13975_v4 = vld [vmem:[%s15246_s23 + $0x13c] sm:$0xf] }
 0x4e8   : > { %v12435_v14 = vor.u32 %v14575_v6, %v12432_v7  ;;  %v10032_v5 = vld [vmem:[%s15246_s23 + $0x390] sm:$0xf0] }
 0x4ee   : > { %8514 = vmatpush.bf16.xpose.msra.mxu0 %v10007_v43  ;;  %8527 = vmatpush.bf16.xpose.msra.mxu1 %v10011_v25  ;;  %v11824_v43 = vld [vmem:[%s15246_s23 + $0x1198] sm:$0xf0]  ;;  %v11832_v25 = vld [vmem:[%s15246_s23 + $0x11a0] sm:$0xf0] }
 0x4ef   : > { %8540 = vmatpush.bf16.xpose.msra.mxu2 %v10015_v50  ;;  %8553 = vmatpush.bf16.xpose.msra.mxu3 %v10019_v54  ;;  %v11823_v50 = vor.u32 %v14499_v18, %v11822_v39  ;;  %v11835_v54 = vor.u32 %v14425_v24, %v11832_v25  ;;  %v14951_v39 = vld [vmem:[%s15246_s23 + $0x1fb4] sm:$0xf0]  ;;  %v14876_v18 = vld [vmem:[%s15246_s23 + $0x1d64] sm:$0xf]  ;;  %v14877_v24 = vld [vmem:[%s15246_s23 + $0x1d6c] sm:$0xf] }
 0x4f0   : > { %v13648_v25 = vld [vmem:[%s15246_s23 + $0x1fc0] sm:$0xf0] }
 0x4f2   : > { %v8412_v20 = vpop.f32.mrf.mxu0  ;;  %v8425_v63 = vpop.f32.mrf.mxu1 }
 0x4f3   : > { %v8413_v62 = vadd.f32 %v8412_v20, %v16383_v57  ;;  %v12427_v57 = vor.u32 %v14574_v2, %v12424_v3  ;;  %v14049_v20 = vld [vmem:[%s15246_s23 + $0x384] sm:$0xf0] }
 0x4f5   : > { %8515 = vmatmul.bf16.vlgmr.msra.gmra.mxu0 %v1550_v31  ;;  %8528 = vmatmul.bf16.vlgmr.msra.gmra.mxu1 %v1551_v40  ;;  %v8426_v23 = vadd.f32 %v8425_v63, %v8413_v62  ;;  %v11222_v31 = vld [vmem:[%s15246_s23 + $0xa90] sm:$0xf]  ;;  %v10024_v62 = vld [vmem:[%s15246_s23 + $0x388] sm:$0xf0]  ;;  %v10030_v63 = vld [vmem:[%s15246_s23 + $0x138] sm:$0xf] }
 0x4f6   : > { %8559 = vmatpush.bf16.xpose.msrb.mxu0 %v6297_v26  ;;  %8572 = vmatpush.bf16.xpose.msrb.mxu1 %v6298_v28  ;;  %v11827_v26 = vor.u32 %v14424_v19, %v11824_v43  ;;  %v11831_v28 = vor.u32 %v14500_v22, %v11830_v21  ;;  %v13640_v19 = vld [vmem:[%s15246_s23 + $0x1fb8] sm:$0xf0]  ;;  %v13646_v43 = vld [vmem:[%s15246_s23 + $0x1d68] sm:$0xf]  ;;  %v14952_v21 = vld [vmem:[%s15246_s23 + $0x1fbc] sm:$0xf0] }
 0x4f7   : > { %8585 = vmatpush.bf16.xpose.msrb.mxu2 %v6299_v29  ;;  %8598 = vmatpush.bf16.xpose.msrb.mxu3 %v6300_v30  ;;  %v1555_v22 = vld [vmem:[#allocation1 + $0x2d] sm:$0xff] }
 0x4f8   : > { %8541 = vmatmul.bf16.vlgmr.msra.gmra.mxu2 %v1552_v32  ;;  %8554 = vmatmul.bf16.vlgmr.msra.gmra.mxu3 %v1553_v27  ;;  %v14349_v32 = vld [vmem:[%s15246_s23 + $0xce4] sm:$0xf0]  ;;  %v10622_v27 = vld [vmem:[%s15246_s23 + $0x5e0] sm:$0xf] }
 0x4f9   : > { %v11223_v40 = vor.u32 %v14349_v32, %v11222_v31  ;;  %v14801_v31 = vld [vmem:[%s15246_s23 + $0x1b04] sm:$0xf0]  ;;  %v14726_v32 = vld [vmem:[%s15246_s23 + $0x18b4] sm:$0xf] }
 0x4fa   : > { %v8414_v61 = vpop.f32.mrf.mxu0  ;;  %v8427_v16 = vpop.f32.mrf.mxu1 }
 0x4fb   : > { %v8438_v10 = vpop.f32.mrf.mxu2  ;;  %v8451_v15 = vpop.f32.mrf.mxu3  ;;  %v1554_v61 = vld [vmem:[#allocation1 + $0x24] sm:$0xff] }
 0x4fc   : > { %v8439_v12 = vadd.f32 %v8438_v10, %v8426_v23  ;;  %v14050_v23 = vld [vmem:[%s15246_s23 + $0x38c] sm:$0xf0]  ;;  %v13638_v16 = vld [vmem:[%s15246_s23 + $0x1d60] sm:$0xf] }
 0x4fe   : > { %8560 = vmatpush.bf16.xpose.msrb.mxu0 %v13623_v44  ;;  %8573 = vmatpush.bf16.xpose.msrb.mxu1 %v13627_v45  ;;  %v16445_v17 = vadd.f32 %v8451_v15, %v8439_v12  ;;  %v11235_v44 = vor.u32 %v14275_v37, %v11232_v38  ;;  %v14199_v45 = vld [vmem:[%s15246_s23 + $0x834] sm:$0xf0]  ;;  %v10035_v12 = vor.u32 %v13975_v4, %v10032_v5  ;;  %v1556_v15 = vld [vmem:[#allocation1 + $0x36] sm:$0xff]  ;;  %v13048_v37 = vld [vmem:[%s15246_s23 + $0x1b10] sm:$0xf0] }
 0x4ff   : > { %8586 = vmatpush.bf16.xpose.msrb.mxu2 %v13631_v46  ;;  %8599 = vmatpush.bf16.xpose.msrb.mxu3 %v13635_v47  ;;  %v14124_v46 = vld [vmem:[%s15246_s23 + $0x5e4] sm:$0xf]  ;;  %v10624_v47 = vld [vmem:[%s15246_s23 + $0x838] sm:$0xf0]  ;;  %v10623_v52 = vor.u32 %v14199_v45, %v10622_v27  ;;  %v11840_v4 = vld [vmem:[%s15246_s23 + $0x11a8] sm:$0xf0] }
 0x500   : > { %v10627_v53 = vor.u32 %v14124_v46, %v10624_v47  ;;  %v12438_v47 = vld [vmem:[%s15246_s23 + $0x1400] sm:$0xf]  ;;  %v11846_v5 = vld [vmem:[%s15246_s23 + $0xf58] sm:$0xf] }
 0x503   : > { %v8440_v29 = vpop.f32.mrf.mxu2  ;;  %v8453_v30 = vpop.f32.mrf.mxu3 }
 0x504   : > { %v13647_v29 = vor.u32 %v14952_v21, %v13646_v43  ;;  %v13038_v30 = vld [vmem:[%s15246_s23 + $0x18b0] sm:$0xf]  ;;  %v14352_v43 = vld [vmem:[%s15246_s23 + $0xcfc] sm:$0xf0]  ;;  %v14277_v21 = vld [vmem:[%s15246_s23 + $0xaac] sm:$0xf] }
 0x505   : > { %v13039_v38 = vor.u32 %v14801_v31, %v13038_v30  ;;  %v10640_v30 = vld [vmem:[%s15246_s23 + $0x848] sm:$0xf0]  ;;  %v10646_v31 = vld [vmem:[%s15246_s23 + $0x5f8] sm:$0xf] }
 0x506   : > { %8561 = vmatpush.bf16.xpose.msrb.mxu0 %v13023_v56  ;;  %8574 = vmatpush.bf16.xpose.msrb.mxu1 %v13027_v58  ;;  %v1423_v56 = vld [vmem:[%s15246_s23 + $0x2210] sm:$0xff]  ;;  %v1424_v58 = vld [vmem:[%s15246_s23 + $0x2218] sm:$0xff] }
 0x507   : > { %8587 = vmatpush.bf16.xpose.msrb.mxu2 %v13031_v59  ;;  %8600 = vmatpush.bf16.xpose.msrb.mxu3 %v13035_v60  ;;  %v10022_v59 = vld [vmem:[%s15246_s23 + $0x130] sm:$0xf]  ;;  %v13974_v60 = vld [vmem:[%s15246_s23 + $0x134] sm:$0xf]  ;;  %v5101_v0 = vunpack.c.l.b16 %v1423_v56  ;;  %v5102_v1 = vunpack.c.h.b16 %v1423_v56  ;;  %v5103_v2 = vunpack.c.l.b16 %v1424_v58  ;;  %v5104_v6 = vunpack.c.h.b16 %v1424_v58 }
 0x508   : > { %v10023_v3 = vor.u32 %v14049_v20, %v10022_v59  ;;  %v10027_v7 = vor.u32 %v13974_v60, %v10024_v62  ;;  %v12443_v56 = vor.u32 %v14576_v48, %v12440_v49 }
 0x509   : > { %v6301_v10 = vpack.c.b16 %v5101_v0, %v5101_v0  ;;  %v11838_v0 = vld [vmem:[%s15246_s23 + $0xf50] sm:$0xf] }
 0x50e   : > { %8562 = vmatpush.bf16.xpose.msrb.mxu0 %v12423_v8  ;;  %8575 = vmatpush.bf16.xpose.msrb.mxu1 %v12427_v57  ;;  %v10031_v8 = vor.u32 %v14050_v23, %v10030_v63  ;;  %v6302_v57 = vpack.c.b16 %v5102_v1, %v5102_v1  ;;  %v324_v1 = vld [vmem:[%s15256_s19 + $0x50] sm:$0xff] }
 0x50f   : > { %8588 = vmatpush.bf16.xpose.msrb.mxu2 %v12431_v11  ;;  %8601 = vmatpush.bf16.xpose.msrb.mxu3 %v12435_v14  ;;  %v6303_v11 = vpack.c.b16 %v5103_v2, %v5103_v2  ;;  %v6304_v14 = vpack.c.b16 %v5104_v6, %v5104_v6  ;;  %v14501_v2 = vld [vmem:[%s15246_s23 + $0x11a4] sm:$0xf0]  ;;  %v14502_v6 = vld [vmem:[%s15246_s23 + $0x11ac] sm:$0xf0] }
 0x516   : > { %8563 = vmatpush.bf16.xpose.msrb.mxu0 %v11823_v50  ;;  %8576 = vmatpush.bf16.xpose.msrb.mxu1 %v11827_v26  ;;  %v13639_v50 = vor.u32 %v14951_v39, %v13638_v16  ;;  %v1557_v26 = vld [vmem:[#allocation1 + $0x3f] sm:$0xff]  ;;  %v14276_v39 = vld [vmem:[%s15246_s23 + $0xaa4] sm:$0xf] }
 0x517   : > { %8589 = vmatpush.bf16.xpose.msrb.mxu2 %v11831_v28  ;;  %8602 = vmatpush.bf16.xpose.msrb.mxu3 %v11835_v54  ;;  %v13643_v28 = vor.u32 %v14876_v18, %v13640_v19  ;;  %v13651_v54 = vor.u32 %v14877_v24, %v13648_v25  ;;  %1559 = vst [vmem:[#allocation1] ss:$9 sm:$0xff] %v324_v1  ;;  %v14351_v16 = vld [vmem:[%s15246_s23 + $0xcf4] sm:$0xf0]  ;;  %v11240_v18 = vld [vmem:[%s15246_s23 + $0xcf8] sm:$0xf0] }
 0x518   : > { %v11246_v19 = vld [vmem:[%s15246_s23 + $0xaa8] sm:$0xf]  ;;  %v11243_v25 = vor.u32 %v14276_v39, %v11240_v18  ;;  %v13056_v39 = vld [vmem:[%s15246_s23 + $0x1b18] sm:$0xf0] }
 0x519   : > { %v14953_v1 = vld [vmem:[%s15246_s23 + $0x1fc4] sm:$0xf0] }
 0x51a   : > { %v13062_v18 = vld [vmem:[%s15246_s23 + $0x18c8] sm:$0xf] }
 0x51e   : > { %8564 = vmatpush.bf16.xpose.msrb.mxu0 %v11223_v40  ;;  %8577 = vmatpush.bf16.xpose.msrb.mxu1 %v11227_v41  ;;  %v13043_v40 = vor.u32 %v14726_v32, %v13040_v33  ;;  %v13047_v41 = vor.u32 %v14802_v35, %v13046_v34  ;;  %v14202_v32 = vld [vmem:[%s15246_s23 + $0x84c] sm:$0xf0]  ;;  %v14127_v33 = vld [vmem:[%s15246_s23 + $0x5fc] sm:$0xf]  ;;  %v10648_v34 = vld [vmem:[%s15246_s23 + $0x850] sm:$0xf0] }
 0x51f   : > { %8590 = vmatpush.bf16.xpose.msrb.mxu2 %v11231_v42  ;;  %8603 = vmatpush.bf16.xpose.msrb.mxu3 %v11235_v44  ;;  %v13051_v44 = vor.u32 %v14727_v36, %v13048_v37  ;;  %v10647_v37 = vor.u32 %v14202_v32, %v10646_v31  ;;  %v14653_v31 = vld [vmem:[%s15246_s23 + $0x1664] sm:$0xf0]  ;;  %v14578_v32 = vld [vmem:[%s15246_s23 + $0x1414] sm:$0xf] }
 0x526   : > { %8565 = vmatpush.bf16.xpose.msrb.mxu0 %v10623_v52  ;;  %8578 = vmatpush.bf16.xpose.msrb.mxu1 %v10627_v53  ;;  %v14652_v52 = vld [vmem:[%s15246_s23 + $0x165c] sm:$0xf0]  ;;  %v14577_v53 = vld [vmem:[%s15246_s23 + $0x140c] sm:$0xf] }
 0x527   : > { %8591 = vmatpush.bf16.xpose.msrb.mxu2 %v10631_v13  ;;  %8604 = vmatpush.bf16.xpose.msrb.mxu3 %v10635_v55  ;;  %v12448_v13 = vld [vmem:[%s15246_s23 + $0x1660] sm:$0xf0]  ;;  %v12439_v55 = vor.u32 %v14651_v51, %v12438_v47  ;;  %v12447_v58 = vor.u32 %v14652_v52, %v12446_v9  ;;  %v14052_v47 = vld [vmem:[%s15246_s23 + $0x39c] sm:$0xf0]  ;;  %v13977_v52 = vld [vmem:[%s15246_s23 + $0x14c] sm:$0xf] }
 0x528   : > { %v12451_v20 = vor.u32 %v14577_v53, %v12448_v13  ;;  %v10048_v53 = vld [vmem:[%s15246_s23 + $0x3a0] sm:$0xf0] }
 0x52e   : > { %8566 = vmatpush.bf16.xpose.msrb.mxu0 %v10023_v3  ;;  %8579 = vmatpush.bf16.xpose.msrb.mxu1 %v10027_v7  ;;  %v14426_v3 = vld [vmem:[%s15246_s23 + $0xf54] sm:$0xf]  ;;  %v14427_v7 = vld [vmem:[%s15246_s23 + $0xf5c] sm:$0xf] }
 0x52f   : > { %8592 = vmatpush.bf16.xpose.msrb.mxu2 %v10031_v8  ;;  %8605 = vmatpush.bf16.xpose.msrb.mxu3 %v10035_v12  ;;  %v11848_v8 = vld [vmem:[%s15246_s23 + $0x11b0] sm:$0xf0] }
 0x532   : > { %v8464_v42 = vpop.f32.mrf.mxu0  ;;  %v8477_v45 = vpop.f32.mrf.mxu1 }
 0x533   : > { %v8465_v27 = vadd.f32 %v8464_v42, %v16445_v17  ;;  %v10038_v42 = vld [vmem:[%s15246_s23 + $0x140] sm:$0xf] }
 0x535   : > { %8567 = vmatmul.bf16.vlgmr.msrb.gmra.mxu0 %v1554_v61  ;;  %8580 = vmatmul.bf16.vlgmr.msrb.gmra.mxu1 %v1555_v22  ;;  %v8478_v46 = vadd.f32 %v8477_v45, %v8465_v27  ;;  %v11248_v22 = vld [vmem:[%s15246_s23 + $0xd00] sm:$0xf0]  ;;  %v10040_v45 = vld [vmem:[%s15246_s23 + $0x398] sm:$0xf0] }
 0x536   : > { %8611 = vmatpush.bf16.xpose.msra.mxu0 %v6301_v10  ;;  %8624 = vmatpush.bf16.xpose.msra.mxu1 %v6302_v57  ;;  %v11839_v10 = vor.u32 %v14501_v2, %v11838_v0  ;;  %v11843_v57 = vor.u32 %v14426_v3, %v11840_v4  ;;  %v13976_v27 = vld [vmem:[%s15246_s23 + $0x144] sm:$0xf]  ;;  %v13654_v0 = vld [vmem:[%s15246_s23 + $0x1d70] sm:$0xf]  ;;  %v14878_v2 = vld [vmem:[%s15246_s23 + $0x1d74] sm:$0xf] }
 0x537   : > { %8637 = vmatpush.bf16.xpose.msra.mxu2 %v6303_v11  ;;  %8650 = vmatpush.bf16.xpose.msra.mxu3 %v6304_v14  ;;  %v11847_v11 = vor.u32 %v14502_v6, %v11846_v5  ;;  %v11851_v14 = vor.u32 %v14427_v7, %v11848_v8  ;;  %v13656_v3 = vld [vmem:[%s15246_s23 + $0x1fc8] sm:$0xf0]  ;;  %v13662_v4 = vld [vmem:[%s15246_s23 + $0x1d78] sm:$0xf]  ;;  %v14954_v5 = vld [vmem:[%s15246_s23 + $0x1fcc] sm:$0xf0] }
 0x538   : > { %8593 = vmatmul.bf16.vlgmr.msrb.gmra.mxu2 %v1556_v15  ;;  %8606 = vmatmul.bf16.vlgmr.msrb.gmra.mxu3 %v1557_v26  ;;  %v11238_v15 = vld [vmem:[%s15246_s23 + $0xaa0] sm:$0xf]  ;;  %v11251_v26 = vor.u32 %v14277_v21, %v11248_v22  ;;  %v14879_v7 = vld [vmem:[%s15246_s23 + $0x1d7c] sm:$0xf]  ;;  %v13664_v8 = vld [vmem:[%s15246_s23 + $0x1fd0] sm:$0xf0] }
 0x539   : > { %v11239_v24 = vor.u32 %v14351_v16, %v11238_v15  ;;  %v1561_v6 = vld [vmem:[#allocation1 + $0x9] sm:$0xff] }
 0x53a   : > { %v8466_v60 = vpop.f32.mrf.mxu0  ;;  %v8479_v63 = vpop.f32.mrf.mxu1  ;;  %v14803_v15 = vld [vmem:[%s15246_s23 + $0x1b14] sm:$0xf0]  ;;  %v14728_v16 = vld [vmem:[%s15246_s23 + $0x18c4] sm:$0xf] }
 0x53b   : > { %v8490_v17 = vpop.f32.mrf.mxu2  ;;  %v8503_v62 = vpop.f32.mrf.mxu3  ;;  %v1562_v63 = vld [vmem:[#allocation1 + $0x12] sm:$0xff] }
 0x53c   : > { %v8491_v59 = vadd.f32 %v8490_v17, %v8478_v46  ;;  %v10046_v46 = vld [vmem:[%s15246_s23 + $0x148] sm:$0xf]  ;;  %v13064_v21 = vld [vmem:[%s15246_s23 + $0x1b20] sm:$0xf0] }
 0x53d   : > { %v10047_v17 = vor.u32 %v14052_v47, %v10046_v46 }
 0x53e   : > { %8612 = vmatpush.bf16.xpose.msra.mxu0 %v13639_v50  ;;  %8625 = vmatpush.bf16.xpose.msra.mxu1 %v13643_v28  ;;  %v16506_v23 = vadd.f32 %v8503_v62, %v8491_v59  ;;  %v11247_v50 = vor.u32 %v14352_v43, %v11246_v19  ;;  %v10638_v28 = vld [vmem:[%s15246_s23 + $0x5f0] sm:$0xf]  ;;  %v14804_v19 = vld [vmem:[%s15246_s23 + $0x1b1c] sm:$0xf0]  ;;  %v14729_v43 = vld [vmem:[%s15246_s23 + $0x18cc] sm:$0xf] }
 0x53f   : > { %8638 = vmatpush.bf16.xpose.msra.mxu2 %v13647_v29  ;;  %8651 = vmatpush.bf16.xpose.msra.mxu3 %v13651_v54  ;;  %v14201_v29 = vld [vmem:[%s15246_s23 + $0x844] sm:$0xf0]  ;;  %v14126_v54 = vld [vmem:[%s15246_s23 + $0x5f4] sm:$0xf] }
 0x540   : > { %v10639_v35 = vor.u32 %v14201_v29, %v10638_v28  ;;  %v10643_v36 = vor.u32 %v14126_v54, %v10640_v30  ;;  %v1560_v62 = vld [vmem:[#allocation1] sm:$0xff] }
 0x541   : > { %v12454_v30 = vld [vmem:[%s15246_s23 + $0x1410] sm:$0xf] }
 0x543   : > { %v8492_v12 = vpop.f32.mrf.mxu2  ;;  %v8505_v61 = vpop.f32.mrf.mxu3 }
 0x544   : > { %v13663_v12 = vor.u32 %v14954_v5, %v13662_v4  ;;  %v13054_v61 = vld [vmem:[%s15246_s23 + $0x18c0] sm:$0xf]  ;;  %v14279_v4 = vld [vmem:[%s15246_s23 + $0xabc] sm:$0xf]  ;;  %v11264_v5 = vld [vmem:[%s15246_s23 + $0xd10] sm:$0xf0] }
 0x545   : > { %v13055_v22 = vor.u32 %v14803_v15, %v13054_v61  ;;  %v10662_v61 = vld [vmem:[%s15246_s23 + $0x608] sm:$0xf]  ;;  %v14204_v15 = vld [vmem:[%s15246_s23 + $0x85c] sm:$0xf0] }
 0x546   : > { %8613 = vmatpush.bf16.xpose.msra.mxu0 %v13039_v38  ;;  %8626 = vmatpush.bf16.xpose.msra.mxu1 %v13043_v40  ;;  %v10651_v38 = vor.u32 %v14127_v33, %v10648_v34  ;;  %v1425_v40 = vld [vmem:[%s15246_s23 + $0x2220] sm:$0xff]  ;;  %v12456_v33 = vld [vmem:[%s15246_s23 + $0x1668] sm:$0xf0]  ;;  %v12462_v34 = vld [vmem:[%s15246_s23 + $0x1418] sm:$0xf] }
 0x547   : > { %8639 = vmatpush.bf16.xpose.msra.mxu2 %v13047_v41  ;;  %8652 = vmatpush.bf16.xpose.msra.mxu3 %v13051_v44  ;;  %v1426_v41 = vld [vmem:[%s15246_s23 + $0x2228] sm:$0xff]  ;;  %v14051_v44 = vld [vmem:[%s15246_s23 + $0x394] sm:$0xf0]  ;;  %v5105_v51 = vunpack.c.l.b16 %v1425_v40  ;;  %v5106_v48 = vunpack.c.h.b16 %v1425_v40 }
 0x548   : > { %v5107_v49 = vunpack.c.l.b16 %v1426_v41  ;;  %v10039_v9 = vor.u32 %v14051_v44, %v10038_v42  ;;  %v5108_v13 = vunpack.c.h.b16 %v1426_v41 }
 0x54a   : > { %v6307_v59 = vpack.c.b16 %v5107_v49, %v5107_v49  ;;  %v6308_v60 = vpack.c.b16 %v5108_v13, %v5108_v13  ;;  %v14428_v49 = vld [vmem:[%s15246_s23 + $0xf64] sm:$0xf]  ;;  %v14429_v13 = vld [vmem:[%s15246_s23 + $0xf6c] sm:$0xf] }
 0x54e   : > { %8614 = vmatpush.bf16.xpose.msra.mxu0 %v12439_v55  ;;  %8627 = vmatpush.bf16.xpose.msra.mxu1 %v12443_v56  ;;  %v10043_v55 = vor.u32 %v13976_v27, %v10040_v45  ;;  %v6305_v56 = vpack.c.b16 %v5105_v51, %v5105_v51  ;;  %v11854_v51 = vld [vmem:[%s15246_s23 + $0xf60] sm:$0xf] }
 0x54f   : > { %8640 = vmatpush.bf16.xpose.msra.mxu2 %v12447_v58  ;;  %8653 = vmatpush.bf16.xpose.msra.mxu3 %v12451_v20  ;;  %v6306_v58 = vpack.c.b16 %v5106_v48, %v5106_v48  ;;  %v10051_v20 = vor.u32 %v13977_v52, %v10048_v53  ;;  %v14503_v48 = vld [vmem:[%s15246_s23 + $0x11b4] sm:$0xf0]  ;;  %v11862_v52 = vld [vmem:[%s15246_s23 + $0xf68] sm:$0xf]  ;;  %v14504_v53 = vld [vmem:[%s15246_s23 + $0x11bc] sm:$0xf0] }
 0x556   : > { %8615 = vmatpush.bf16.xpose.msra.mxu0 %v11839_v10  ;;  %8628 = vmatpush.bf16.xpose.msra.mxu1 %v11843_v57  ;;  %v13655_v10 = vor.u32 %v14953_v1, %v13654_v0  ;;  %v1563_v57 = vld [vmem:[#allocation1 + $0x1b] sm:$0xff] }
 0x557   : > { %8641 = vmatpush.bf16.xpose.msra.mxu2 %v11847_v11  ;;  %8654 = vmatpush.bf16.xpose.msra.mxu3 %v11851_v14  ;;  %v13659_v11 = vor.u32 %v14878_v2, %v13656_v3  ;;  %v13667_v14 = vor.u32 %v14879_v7, %v13664_v8  ;;  %v14278_v0 = vld [vmem:[%s15246_s23 + $0xab4] sm:$0xf]  ;;  %v11256_v1 = vld [vmem:[%s15246_s23 + $0xd08] sm:$0xf0]  ;;  %v11262_v2 = vld [vmem:[%s15246_s23 + $0xab8] sm:$0xf] }
 0x558   : > { %v14354_v3 = vld [vmem:[%s15246_s23 + $0xd0c] sm:$0xf0]  ;;  %v11259_v7 = vor.u32 %v14278_v0, %v11256_v1  ;;  %v13072_v0 = vld [vmem:[%s15246_s23 + $0x1b28] sm:$0xf0]  ;;  %v13078_v1 = vld [vmem:[%s15246_s23 + $0x18d8] sm:$0xf] }
 0x559   : > { %v11263_v8 = vor.u32 %v14354_v3, %v11262_v2  ;;  %v14806_v2 = vld [vmem:[%s15246_s23 + $0x1b2c] sm:$0xf0]  ;;  %v14731_v3 = vld [vmem:[%s15246_s23 + $0x18dc] sm:$0xf] }
 0x55e   : > { %8616 = vmatpush.bf16.xpose.msra.mxu0 %v11239_v24  ;;  %8629 = vmatpush.bf16.xpose.msra.mxu1 %v11243_v25  ;;  %v13059_v24 = vor.u32 %v14728_v16, %v13056_v39  ;;  %v13063_v25 = vor.u32 %v14804_v19, %v13062_v18  ;;  %v14129_v16 = vld [vmem:[%s15246_s23 + $0x60c] sm:$0xf]  ;;  %v10664_v39 = vld [vmem:[%s15246_s23 + $0x860] sm:$0xf0] }
 0x55f   : > { %8642 = vmatpush.bf16.xpose.msra.mxu2 %v11247_v50  ;;  %8655 = vmatpush.bf16.xpose.msra.mxu3 %v11251_v26  ;;  %v13067_v26 = vor.u32 %v14729_v43, %v13064_v21  ;;  %v10663_v43 = vor.u32 %v14204_v15, %v10662_v61  ;;  %v10667_v21 = vor.u32 %v14129_v16, %v10664_v39  ;;  %v14655_v61 = vld [vmem:[%s15246_s23 + $0x1674] sm:$0xf0]  ;;  %v14580_v15 = vld [vmem:[%s15246_s23 + $0x1424] sm:$0xf]  ;;  %v12472_v16 = vld [vmem:[%s15246_s23 + $0x1678] sm:$0xf0] }
 0x560   : > { %v12478_v39 = vld [vmem:[%s15246_s23 + $0x1428] sm:$0xf] }
 0x566   : > { %8617 = vmatpush.bf16.xpose.msra.mxu0 %v10639_v35  ;;  %8630 = vmatpush.bf16.xpose.msra.mxu1 %v10643_v36  ;;  %v14654_v35 = vld [vmem:[%s15246_s23 + $0x166c] sm:$0xf0]  ;;  %v14579_v36 = vld [vmem:[%s15246_s23 + $0x141c] sm:$0xf] }
 0x567   : > { %8643 = vmatpush.bf16.xpose.msra.mxu2 %v10647_v37  ;;  %8656 = vmatpush.bf16.xpose.msra.mxu3 %v10651_v38  ;;  %v12464_v37 = vld [vmem:[%s15246_s23 + $0x1670] sm:$0xf0]  ;;  %v12455_v38 = vor.u32 %v14653_v31, %v12454_v30  ;;  %v12463_v41 = vor.u32 %v14654_v35, %v12462_v34  ;;  %v13979_v34 = vld [vmem:[%s15246_s23 + $0x15c] sm:$0xf] }
 0x568   : > { %v12467_v44 = vor.u32 %v14579_v36, %v12464_v37  ;;  %v10064_v35 = vld [vmem:[%s15246_s23 + $0x3b0] sm:$0xf0] }
 0x56e   : > { %8618 = vmatpush.bf16.xpose.msra.mxu0 %v10039_v9  ;;  %8631 = vmatpush.bf16.xpose.msra.mxu1 %v10043_v55  ;;  %v11856_v9 = vld [vmem:[%s15246_s23 + $0x11b8] sm:$0xf0]  ;;  %v11864_v55 = vld [vmem:[%s15246_s23 + $0x11c0] sm:$0xf0] }
 0x56f   : > { %8644 = vmatpush.bf16.xpose.msra.mxu2 %v10047_v17  ;;  %8657 = vmatpush.bf16.xpose.msra.mxu3 %v10051_v20  ;;  %v11855_v17 = vor.u32 %v14503_v48, %v11854_v51  ;;  %v11867_v20 = vor.u32 %v14429_v13, %v11864_v55  ;;  %v14955_v51 = vld [vmem:[%s15246_s23 + $0x1fd4] sm:$0xf0]  ;;  %v14880_v48 = vld [vmem:[%s15246_s23 + $0x1d84] sm:$0xf]  ;;  %v14881_v13 = vld [vmem:[%s15246_s23 + $0x1d8c] sm:$0xf] }
 0x570   : > { %v13680_v55 = vld [vmem:[%s15246_s23 + $0x1fe0] sm:$0xf0] }
 0x572   : > { %v8516_v50 = vpop.f32.mrf.mxu0  ;;  %v8529_v29 = vpop.f32.mrf.mxu1 }
 0x573   : > { %v8517_v28 = vadd.f32 %v8516_v50, %v16506_v23  ;;  %v12459_v23 = vor.u32 %v14578_v32, %v12456_v33  ;;  %v14053_v50 = vld [vmem:[%s15246_s23 + $0x3a4] sm:$0xf0] }
 0x575   : > { %8619 = vmatmul.bf16.vlgmr.msra.gmra.mxu0 %v1560_v62  ;;  %8632 = vmatmul.bf16.vlgmr.msra.gmra.mxu1 %v1561_v6  ;;  %v8530_v54 = vadd.f32 %v8529_v29, %v8517_v28  ;;  %v11254_v62 = vld [vmem:[%s15246_s23 + $0xab0] sm:$0xf]  ;;  %v10056_v28 = vld [vmem:[%s15246_s23 + $0x3a8] sm:$0xf0]  ;;  %v10062_v29 = vld [vmem:[%s15246_s23 + $0x158] sm:$0xf] }
 0x576   : > { %8663 = vmatpush.bf16.xpose.msrb.mxu0 %v6305_v56  ;;  %8676 = vmatpush.bf16.xpose.msrb.mxu1 %v6306_v58  ;;  %v11859_v56 = vor.u32 %v14428_v49, %v11856_v9  ;;  %v11863_v58 = vor.u32 %v14504_v53, %v11862_v52  ;;  %v13672_v49 = vld [vmem:[%s15246_s23 + $0x1fd8] sm:$0xf0]  ;;  %v13678_v9 = vld [vmem:[%s15246_s23 + $0x1d88] sm:$0xf]  ;;  %v14956_v52 = vld [vmem:[%s15246_s23 + $0x1fdc] sm:$0xf0] }
 0x577   : > { %8689 = vmatpush.bf16.xpose.msrb.mxu2 %v6307_v59  ;;  %8702 = vmatpush.bf16.xpose.msrb.mxu3 %v6308_v60  ;;  %v1565_v53 = vld [vmem:[#allocation1 + $0x2d] sm:$0xff] }
 0x578   : > { %8645 = vmatmul.bf16.vlgmr.msra.gmra.mxu2 %v1562_v63  ;;  %8658 = vmatmul.bf16.vlgmr.msra.gmra.mxu3 %v1563_v57  ;;  %v14353_v63 = vld [vmem:[%s15246_s23 + $0xd04] sm:$0xf0]  ;;  %v10654_v57 = vld [vmem:[%s15246_s23 + $0x600] sm:$0xf] }
 0x579   : > { %v11255_v6 = vor.u32 %v14353_v63, %v11254_v62  ;;  %v14805_v62 = vld [vmem:[%s15246_s23 + $0x1b24] sm:$0xf0]  ;;  %v14730_v63 = vld [vmem:[%s15246_s23 + $0x18d4] sm:$0xf] }
 0x57a   : > { %v8518_v27 = vpop.f32.mrf.mxu0  ;;  %v8531_v46 = vpop.f32.mrf.mxu1 }
 0x57b   : > { %v8542_v40 = vpop.f32.mrf.mxu2  ;;  %v8555_v45 = vpop.f32.mrf.mxu3  ;;  %v1564_v27 = vld [vmem:[#allocation1 + $0x24] sm:$0xff] }
 0x57c   : > { %v8543_v42 = vadd.f32 %v8542_v40, %v8530_v54  ;;  %v14054_v54 = vld [vmem:[%s15246_s23 + $0x3ac] sm:$0xf0]  ;;  %v13670_v46 = vld [vmem:[%s15246_s23 + $0x1d80] sm:$0xf] }
 0x57e   : > { %8664 = vmatpush.bf16.xpose.msrb.mxu0 %v13655_v10  ;;  %8677 = vmatpush.bf16.xpose.msrb.mxu1 %v13659_v11  ;;  %v16568_v47 = vadd.f32 %v8555_v45, %v8543_v42  ;;  %v11267_v10 = vor.u32 %v14279_v4, %v11264_v5  ;;  %v14203_v11 = vld [vmem:[%s15246_s23 + $0x854] sm:$0xf0]  ;;  %v10067_v42 = vor.u32 %v13979_v34, %v10064_v35  ;;  %v1566_v45 = vld [vmem:[#allocation1 + $0x36] sm:$0xff]  ;;  %v13080_v4 = vld [vmem:[%s15246_s23 + $0x1b30] sm:$0xf0] }
 0x57f   : > { %8690 = vmatpush.bf16.xpose.msrb.mxu2 %v13663_v12  ;;  %8703 = vmatpush.bf16.xpose.msrb.mxu3 %v13667_v14  ;;  %v14128_v12 = vld [vmem:[%s15246_s23 + $0x604] sm:$0xf]  ;;  %v10656_v14 = vld [vmem:[%s15246_s23 + $0x858] sm:$0xf0]  ;;  %v10655_v18 = vor.u32 %v14203_v11, %v10654_v57  ;;  %v11872_v34 = vld [vmem:[%s15246_s23 + $0x11c8] sm:$0xf0] }
 0x580   : > { %v10659_v19 = vor.u32 %v14128_v12, %v10656_v14  ;;  %v12470_v14 = vld [vmem:[%s15246_s23 + $0x1420] sm:$0xf]  ;;  %v11878_v35 = vld [vmem:[%s15246_s23 + $0xf78] sm:$0xf] }
 0x583   : > { %v8544_v59 = vpop.f32.mrf.mxu2  ;;  %v8557_v60 = vpop.f32.mrf.mxu3 }
 0x584   : > { %v13679_v59 = vor.u32 %v14956_v52, %v13678_v9  ;;  %v13070_v60 = vld [vmem:[%s15246_s23 + $0x18d0] sm:$0xf]  ;;  %v14356_v9 = vld [vmem:[%s15246_s23 + $0xd1c] sm:$0xf0]  ;;  %v14281_v52 = vld [vmem:[%s15246_s23 + $0xacc] sm:$0xf] }
 0x585   : > { %v13071_v5 = vor.u32 %v14805_v62, %v13070_v60  ;;  %v10672_v60 = vld [vmem:[%s15246_s23 + $0x868] sm:$0xf0]  ;;  %v10678_v62 = vld [vmem:[%s15246_s23 + $0x618] sm:$0xf] }
 0x586   : > { %8665 = vmatpush.bf16.xpose.msrb.mxu0 %v13055_v22  ;;  %8678 = vmatpush.bf16.xpose.msrb.mxu1 %v13059_v24  ;;  %v1427_v22 = vld [vmem:[%s15246_s23 + $0x2230] sm:$0xff]  ;;  %v1428_v24 = vld [vmem:[%s15246_s23 + $0x2238] sm:$0xff] }
 0x587   : > { %8691 = vmatpush.bf16.xpose.msrb.mxu2 %v13063_v25  ;;  %8704 = vmatpush.bf16.xpose.msrb.mxu3 %v13067_v26  ;;  %v10054_v25 = vld [vmem:[%s15246_s23 + $0x150] sm:$0xf]  ;;  %v13978_v26 = vld [vmem:[%s15246_s23 + $0x154] sm:$0xf]  ;;  %v5109_v30 = vunpack.c.l.b16 %v1427_v22  ;;  %v5110_v31 = vunpack.c.h.b16 %v1427_v22  ;;  %v5111_v32 = vunpack.c.l.b16 %v1428_v24  ;;  %v5112_v36 = vunpack.c.h.b16 %v1428_v24 }
 0x588   : > { %v10055_v33 = vor.u32 %v14053_v50, %v10054_v25  ;;  %v10059_v37 = vor.u32 %v13978_v26, %v10056_v28  ;;  %v12475_v22 = vor.u32 %v14580_v15, %v12472_v16 }
 0x589   : > { %v6309_v40 = vpack.c.b16 %v5109_v30, %v5109_v30  ;;  %v11870_v30 = vld [vmem:[%s15246_s23 + $0xf70] sm:$0xf] }
 0x58e   : > { %8666 = vmatpush.bf16.xpose.msrb.mxu0 %v12455_v38  ;;  %8679 = vmatpush.bf16.xpose.msrb.mxu1 %v12459_v23  ;;  %v10063_v38 = vor.u32 %v14054_v54, %v10062_v29  ;;  %v6310_v23 = vpack.c.b16 %v5110_v31, %v5110_v31  ;;  %v325_v31 = vld [vmem:[%s15256_s19 + $0x58] sm:$0xff] }
 0x58f   : > { %8692 = vmatpush.bf16.xpose.msrb.mxu2 %v12463_v41  ;;  %8705 = vmatpush.bf16.xpose.msrb.mxu3 %v12467_v44  ;;  %v6311_v41 = vpack.c.b16 %v5111_v32, %v5111_v32  ;;  %v6312_v44 = vpack.c.b16 %v5112_v36, %v5112_v36  ;;  %v14505_v32 = vld [vmem:[%s15246_s23 + $0x11c4] sm:$0xf0]  ;;  %v14506_v36 = vld [vmem:[%s15246_s23 + $0x11cc] sm:$0xf0] }
 0x596   : > { %8667 = vmatpush.bf16.xpose.msrb.mxu0 %v11855_v17  ;;  %8680 = vmatpush.bf16.xpose.msrb.mxu1 %v11859_v56  ;;  %v13671_v17 = vor.u32 %v14955_v51, %v13670_v46  ;;  %v1567_v56 = vld [vmem:[#allocation1 + $0x3f] sm:$0xff]  ;;  %v14280_v51 = vld [vmem:[%s15246_s23 + $0xac4] sm:$0xf] }
 0x597   : > { %8693 = vmatpush.bf16.xpose.msrb.mxu2 %v11863_v58  ;;  %8706 = vmatpush.bf16.xpose.msrb.mxu3 %v11867_v20  ;;  %v13675_v58 = vor.u32 %v14880_v48, %v13672_v49  ;;  %v13683_v20 = vor.u32 %v14881_v13, %v13680_v55  ;;  %1569 = vst [vmem:[#allocation1] ss:$9 sm:$0xff] %v325_v31  ;;  %v14355_v46 = vld [vmem:[%s15246_s23 + $0xd14] sm:$0xf0]  ;;  %v11272_v48 = vld [vmem:[%s15246_s23 + $0xd18] sm:$0xf0] }
 0x598   : > { %v11278_v49 = vld [vmem:[%s15246_s23 + $0xac8] sm:$0xf]  ;;  %v11275_v55 = vor.u32 %v14280_v51, %v11272_v48  ;;  %v13088_v51 = vld [vmem:[%s15246_s23 + $0x1b38] sm:$0xf0] }
 0x599   : > { %v14957_v31 = vld [vmem:[%s15246_s23 + $0x1fe4] sm:$0xf0] }
 0x59a   : > { %v13094_v48 = vld [vmem:[%s15246_s23 + $0x18e8] sm:$0xf] }
 0x59e   : > { %8668 = vmatpush.bf16.xpose.msrb.mxu0 %v11255_v6  ;;  %8681 = vmatpush.bf16.xpose.msrb.mxu1 %v11259_v7  ;;  %v13075_v6 = vor.u32 %v14730_v63, %v13072_v0  ;;  %v13079_v7 = vor.u32 %v14806_v2, %v13078_v1  ;;  %v14206_v63 = vld [vmem:[%s15246_s23 + $0x86c] sm:$0xf0]  ;;  %v14131_v0 = vld [vmem:[%s15246_s23 + $0x61c] sm:$0xf]  ;;  %v10680_v1 = vld [vmem:[%s15246_s23 + $0x870] sm:$0xf0] }
 0x59f   : > { %8694 = vmatpush.bf16.xpose.msrb.mxu2 %v11263_v8  ;;  %8707 = vmatpush.bf16.xpose.msrb.mxu3 %v11267_v10  ;;  %v13083_v10 = vor.u32 %v14731_v3, %v13080_v4  ;;  %v10679_v4 = vor.u32 %v14206_v63, %v10678_v62  ;;  %v14657_v62 = vld [vmem:[%s15246_s23 + $0x1684] sm:$0xf0]  ;;  %v14582_v63 = vld [vmem:[%s15246_s23 + $0x1434] sm:$0xf] }
 0x5a6   : > { %8669 = vmatpush.bf16.xpose.msrb.mxu0 %v10655_v18  ;;  %8682 = vmatpush.bf16.xpose.msrb.mxu1 %v10659_v19  ;;  %v14656_v18 = vld [vmem:[%s15246_s23 + $0x167c] sm:$0xf0]  ;;  %v14581_v19 = vld [vmem:[%s15246_s23 + $0x142c] sm:$0xf] }
 0x5a7   : > { %8695 = vmatpush.bf16.xpose.msrb.mxu2 %v10663_v43  ;;  %8708 = vmatpush.bf16.xpose.msrb.mxu3 %v10667_v21  ;;  %v12480_v43 = vld [vmem:[%s15246_s23 + $0x1680] sm:$0xf0]  ;;  %v12471_v21 = vor.u32 %v14655_v61, %v12470_v14  ;;  %v12479_v24 = vor.u32 %v14656_v18, %v12478_v39  ;;  %v14056_v14 = vld [vmem:[%s15246_s23 + $0x3bc] sm:$0xf0]  ;;  %v13981_v18 = vld [vmem:[%s15246_s23 + $0x16c] sm:$0xf] }
 0x5a8   : > { %v12483_v50 = vor.u32 %v14581_v19, %v12480_v43  ;;  %v10080_v19 = vld [vmem:[%s15246_s23 + $0x3c0] sm:$0xf0] }
 0x5ae   : > { %8670 = vmatpush.bf16.xpose.msrb.mxu0 %v10055_v33  ;;  %8683 = vmatpush.bf16.xpose.msrb.mxu1 %v10059_v37  ;;  %v14430_v33 = vld [vmem:[%s15246_s23 + $0xf74] sm:$0xf]  ;;  %v14431_v37 = vld [vmem:[%s15246_s23 + $0xf7c] sm:$0xf] }
 0x5af   : > { %8696 = vmatpush.bf16.xpose.msrb.mxu2 %v10063_v38  ;;  %8709 = vmatpush.bf16.xpose.msrb.mxu3 %v10067_v42  ;;  %v11880_v38 = vld [vmem:[%s15246_s23 + $0x11d0] sm:$0xf0] }
 0x5b2   : > { %v8568_v8 = vpop.f32.mrf.mxu0  ;;  %v8581_v11 = vpop.f32.mrf.mxu1 }
 0x5b3   : > { %v8569_v57 = vadd.f32 %v8568_v8, %v16568_v47  ;;  %v10070_v8 = vld [vmem:[%s15246_s23 + $0x160] sm:$0xf] }
 0x5b5   : > { %8671 = vmatmul.bf16.vlgmr.msrb.gmra.mxu0 %v1564_v27  ;;  %8684 = vmatmul.bf16.vlgmr.msrb.gmra.mxu1 %v1565_v53  ;;  %v8582_v12 = vadd.f32 %v8581_v11, %v8569_v57  ;;  %v11280_v53 = vld [vmem:[%s15246_s23 + $0xd20] sm:$0xf0]  ;;  %v10072_v11 = vld [vmem:[%s15246_s23 + $0x3b8] sm:$0xf0] }
 0x5b6   : > { %8715 = vmatpush.bf16.xpose.msra.mxu0 %v6309_v40  ;;  %8728 = vmatpush.bf16.xpose.msra.mxu1 %v6310_v23  ;;  %v11871_v40 = vor.u32 %v14505_v32, %v11870_v30  ;;  %v11875_v23 = vor.u32 %v14430_v33, %v11872_v34  ;;  %v13980_v57 = vld [vmem:[%s15246_s23 + $0x164] sm:$0xf]  ;;  %v13686_v30 = vld [vmem:[%s15246_s23 + $0x1d90] sm:$0xf]  ;;  %v14882_v32 = vld [vmem:[%s15246_s23 + $0x1d94] sm:$0xf] }
 0x5b7   : > { %8741 = vmatpush.bf16.xpose.msra.mxu2 %v6311_v41  ;;  %8754 = vmatpush.bf16.xpose.msra.mxu3 %v6312_v44  ;;  %v11879_v41 = vor.u32 %v14506_v36, %v11878_v35  ;;  %v11883_v44 = vor.u32 %v14431_v37, %v11880_v38  ;;  %v13688_v33 = vld [vmem:[%s15246_s23 + $0x1fe8] sm:$0xf0]  ;;  %v13694_v34 = vld [vmem:[%s15246_s23 + $0x1d98] sm:$0xf]  ;;  %v14958_v35 = vld [vmem:[%s15246_s23 + $0x1fec] sm:$0xf0] }
 0x5b8   : > { %8697 = vmatmul.bf16.vlgmr.msrb.gmra.mxu2 %v1566_v45  ;;  %8710 = vmatmul.bf16.vlgmr.msrb.gmra.mxu3 %v1567_v56  ;;  %v11270_v45 = vld [vmem:[%s15246_s23 + $0xac0] sm:$0xf]  ;;  %v11283_v56 = vor.u32 %v14281_v52, %v11280_v53  ;;  %v14883_v37 = vld [vmem:[%s15246_s23 + $0x1d9c] sm:$0xf]  ;;  %v13696_v38 = vld [vmem:[%s15246_s23 + $0x1ff0] sm:$0xf0] }
 0x5b9   : > { %v11271_v13 = vor.u32 %v14355_v46, %v11270_v45  ;;  %v1571_v36 = vld [vmem:[#allocation1 + $0x9] sm:$0xff] }
 0x5ba   : > { %v8570_v26 = vpop.f32.mrf.mxu0  ;;  %v8583_v29 = vpop.f32.mrf.mxu1  ;;  %v14807_v45 = vld [vmem:[%s15246_s23 + $0x1b34] sm:$0xf0]  ;;  %v14732_v46 = vld [vmem:[%s15246_s23 + $0x18e4] sm:$0xf] }
 0x5bb   : > { %v8594_v47 = vpop.f32.mrf.mxu2  ;;  %v8607_v28 = vpop.f32.mrf.mxu3  ;;  %v1572_v29 = vld [vmem:[#allocation1 + $0x12] sm:$0xff] }
 0x5bc   : > { %v8595_v25 = vadd.f32 %v8594_v47, %v8582_v12  ;;  %v10078_v12 = vld [vmem:[%s15246_s23 + $0x168] sm:$0xf]  ;;  %v13096_v52 = vld [vmem:[%s15246_s23 + $0x1b40] sm:$0xf0] }
 0x5bd   : > { %v10079_v47 = vor.u32 %v14056_v14, %v10078_v12 }
 0x5be   : > { %8716 = vmatpush.bf16.xpose.msra.mxu0 %v13671_v17  ;;  %8729 = vmatpush.bf16.xpose.msra.mxu1 %v13675_v58  ;;  %v16629_v54 = vadd.f32 %v8607_v28, %v8595_v25  ;;  %v11279_v17 = vor.u32 %v14356_v9, %v11278_v49  ;;  %v10670_v58 = vld [vmem:[%s15246_s23 + $0x610] sm:$0xf]  ;;  %v14808_v49 = vld [vmem:[%s15246_s23 + $0x1b3c] sm:$0xf0]  ;;  %v14733_v9 = vld [vmem:[%s15246_s23 + $0x18ec] sm:$0xf] }
 0x5bf   : > { %8742 = vmatpush.bf16.xpose.msra.mxu2 %v13679_v59  ;;  %8755 = vmatpush.bf16.xpose.msra.mxu3 %v13683_v20  ;;  %v14205_v59 = vld [vmem:[%s15246_s23 + $0x864] sm:$0xf0]  ;;  %v14130_v20 = vld [vmem:[%s15246_s23 + $0x614] sm:$0xf] }
 0x5c0   : > { %v10671_v2 = vor.u32 %v14205_v59, %v10670_v58  ;;  %v10675_v3 = vor.u32 %v14130_v20, %v10672_v60  ;;  %v1570_v28 = vld [vmem:[#allocation1] sm:$0xff] }
 0x5c1   : > { %v12486_v60 = vld [vmem:[%s15246_s23 + $0x1430] sm:$0xf] }
 0x5c3   : > { %v8596_v42 = vpop.f32.mrf.mxu2  ;;  %v8609_v27 = vpop.f32.mrf.mxu3 }
 0x5c4   : > { %v13695_v42 = vor.u32 %v14958_v35, %v13694_v34  ;;  %v13086_v27 = vld [vmem:[%s15246_s23 + $0x18e0] sm:$0xf]  ;;  %v14283_v34 = vld [vmem:[%s15246_s23 + $0xadc] sm:$0xf]  ;;  %v11296_v35 = vld [vmem:[%s15246_s23 + $0xd30] sm:$0xf0] }
 0x5c5   : > { %v13087_v53 = vor.u32 %v14807_v45, %v13086_v27  ;;  %v10694_v27 = vld [vmem:[%s15246_s23 + $0x628] sm:$0xf]  ;;  %v14208_v45 = vld [vmem:[%s15246_s23 + $0x87c] sm:$0xf0] }
 0x5c6   : > { %8717 = vmatpush.bf16.xpose.msra.mxu0 %v13071_v5  ;;  %8730 = vmatpush.bf16.xpose.msra.mxu1 %v13075_v6  ;;  %v10683_v5 = vor.u32 %v14131_v0, %v10680_v1  ;;  %v1429_v6 = vld [vmem:[%s15246_s23 + $0x2240] sm:$0xff]  ;;  %v12488_v0 = vld [vmem:[%s15246_s23 + $0x1688] sm:$0xf0]  ;;  %v12494_v1 = vld [vmem:[%s15246_s23 + $0x1438] sm:$0xf] }
 0x5c7   : > { %8743 = vmatpush.bf16.xpose.msra.mxu2 %v13079_v7  ;;  %8756 = vmatpush.bf16.xpose.msra.mxu3 %v13083_v10  ;;  %v1430_v7 = vld [vmem:[%s15246_s23 + $0x2248] sm:$0xff]  ;;  %v14055_v10 = vld [vmem:[%s15246_s23 + $0x3b4] sm:$0xf0]  ;;  %v5113_v61 = vunpack.c.l.b16 %v1429_v6  ;;  %v5114_v15 = vunpack.c.h.b16 %v1429_v6 }
 0x5c8   : > { %v5115_v16 = vunpack.c.l.b16 %v1430_v7  ;;  %v10071_v39 = vor.u32 %v14055_v10, %v10070_v8  ;;  %v5116_v43 = vunpack.c.h.b16 %v1430_v7 }
 0x5ca   : > { %v6315_v25 = vpack.c.b16 %v5115_v16, %v5115_v16  ;;  %v6316_v26 = vpack.c.b16 %v5116_v43, %v5116_v43  ;;  %v14432_v16 = vld [vmem:[%s15246_s23 + $0xf84] sm:$0xf]  ;;  %v14433_v43 = vld [vmem:[%s15246_s23 + $0xf8c] sm:$0xf] }
 0x5ce   : > { %8718 = vmatpush.bf16.xpose.msra.mxu0 %v12471_v21  ;;  %8731 = vmatpush.bf16.xpose.msra.mxu1 %v12475_v22  ;;  %v10075_v21 = vor.u32 %v13980_v57, %v10072_v11  ;;  %v6313_v22 = vpack.c.b16 %v5113_v61, %v5113_v61  ;;  %v11886_v61 = vld [vmem:[%s15246_s23 + $0xf80] sm:$0xf] }
 0x5cf   : > { %8744 = vmatpush.bf16.xpose.msra.mxu2 %v12479_v24  ;;  %8757 = vmatpush.bf16.xpose.msra.mxu3 %v12483_v50  ;;  %v6314_v24 = vpack.c.b16 %v5114_v15, %v5114_v15  ;;  %v10083_v50 = vor.u32 %v13981_v18, %v10080_v19  ;;  %v14507_v15 = vld [vmem:[%s15246_s23 + $0x11d4] sm:$0xf0]  ;;  %v11894_v18 = vld [vmem:[%s15246_s23 + $0xf88] sm:$0xf]  ;;  %v14508_v19 = vld [vmem:[%s15246_s23 + $0x11dc] sm:$0xf0] }
 0x5d6   : > { %8719 = vmatpush.bf16.xpose.msra.mxu0 %v11871_v40  ;;  %8732 = vmatpush.bf16.xpose.msra.mxu1 %v11875_v23  ;;  %v13687_v40 = vor.u32 %v14957_v31, %v13686_v30  ;;  %v1573_v23 = vld [vmem:[#allocation1 + $0x1b] sm:$0xff] }
 0x5d7   : > { %8745 = vmatpush.bf16.xpose.msra.mxu2 %v11879_v41  ;;  %8758 = vmatpush.bf16.xpose.msra.mxu3 %v11883_v44  ;;  %v13691_v41 = vor.u32 %v14882_v32, %v13688_v33  ;;  %v13699_v44 = vor.u32 %v14883_v37, %v13696_v38  ;;  %v14282_v30 = vld [vmem:[%s15246_s23 + $0xad4] sm:$0xf]  ;;  %v11288_v31 = vld [vmem:[%s15246_s23 + $0xd28] sm:$0xf0]  ;;  %v11294_v32 = vld [vmem:[%s15246_s23 + $0xad8] sm:$0xf] }
 0x5d8   : > { %v14358_v33 = vld [vmem:[%s15246_s23 + $0xd2c] sm:$0xf0]  ;;  %v11291_v37 = vor.u32 %v14282_v30, %v11288_v31  ;;  %v13104_v30 = vld [vmem:[%s15246_s23 + $0x1b48] sm:$0xf0]  ;;  %v13110_v31 = vld [vmem:[%s15246_s23 + $0x18f8] sm:$0xf] }
 0x5d9   : > { %v11295_v38 = vor.u32 %v14358_v33, %v11294_v32  ;;  %v14810_v32 = vld [vmem:[%s15246_s23 + $0x1b4c] sm:$0xf0]  ;;  %v14735_v33 = vld [vmem:[%s15246_s23 + $0x18fc] sm:$0xf] }
 0x5de   : > { %8720 = vmatpush.bf16.xpose.msra.mxu0 %v11271_v13  ;;  %8733 = vmatpush.bf16.xpose.msra.mxu1 %v11275_v55  ;;  %v13091_v13 = vor.u32 %v14732_v46, %v13088_v51  ;;  %v13095_v55 = vor.u32 %v14808_v49, %v13094_v48  ;;  %v14133_v46 = vld [vmem:[%s15246_s23 + $0x62c] sm:$0xf]  ;;  %v10696_v51 = vld [vmem:[%s15246_s23 + $0x880] sm:$0xf0] }
 0x5df   : > { %8746 = vmatpush.bf16.xpose.msra.mxu2 %v11279_v17  ;;  %8759 = vmatpush.bf16.xpose.msra.mxu3 %v11283_v56  ;;  %v13099_v56 = vor.u32 %v14733_v9, %v13096_v52  ;;  %v10695_v9 = vor.u32 %v14208_v45, %v10694_v27  ;;  %v10699_v52 = vor.u32 %v14133_v46, %v10696_v51  ;;  %v14659_v27 = vld [vmem:[%s15246_s23 + $0x1694] sm:$0xf0]  ;;  %v14584_v45 = vld [vmem:[%s15246_s23 + $0x1444] sm:$0xf]  ;;  %v12504_v46 = vld [vmem:[%s15246_s23 + $0x1698] sm:$0xf0] }
 0x5e0   : > { %v12510_v51 = vld [vmem:[%s15246_s23 + $0x1448] sm:$0xf] }
 0x5e6   : > { %8721 = vmatpush.bf16.xpose.msra.mxu0 %v10671_v2  ;;  %8734 = vmatpush.bf16.xpose.msra.mxu1 %v10675_v3  ;;  %v14658_v2 = vld [vmem:[%s15246_s23 + $0x168c] sm:$0xf0]  ;;  %v14583_v3 = vld [vmem:[%s15246_s23 + $0x143c] sm:$0xf] }
 0x5e7   : > { %8747 = vmatpush.bf16.xpose.msra.mxu2 %v10679_v4  ;;  %8760 = vmatpush.bf16.xpose.msra.mxu3 %v10683_v5  ;;  %v12496_v4 = vld [vmem:[%s15246_s23 + $0x1690] sm:$0xf0]  ;;  %v12487_v5 = vor.u32 %v14657_v62, %v12486_v60  ;;  %v12495_v7 = vor.u32 %v14658_v2, %v12494_v1  ;;  %v13983_v1 = vld [vmem:[%s15246_s23 + $0x17c] sm:$0xf] }
 0x5e8   : > { %v12499_v10 = vor.u32 %v14583_v3, %v12496_v4  ;;  %v10096_v2 = vld [vmem:[%s15246_s23 + $0x3d0] sm:$0xf0] }
 0x5ee   : > { %8722 = vmatpush.bf16.xpose.msra.mxu0 %v10071_v39  ;;  %8735 = vmatpush.bf16.xpose.msra.mxu1 %v10075_v21  ;;  %v11888_v39 = vld [vmem:[%s15246_s23 + $0x11d8] sm:$0xf0]  ;;  %v11896_v21 = vld [vmem:[%s15246_s23 + $0x11e0] sm:$0xf0] }
 0x5ef   : > { %8748 = vmatpush.bf16.xpose.msra.mxu2 %v10079_v47  ;;  %8761 = vmatpush.bf16.xpose.msra.mxu3 %v10083_v50  ;;  %v11887_v47 = vor.u32 %v14507_v15, %v11886_v61  ;;  %v11899_v50 = vor.u32 %v14433_v43, %v11896_v21  ;;  %v14959_v61 = vld [vmem:[%s15246_s23 + $0x1ff4] sm:$0xf0]  ;;  %v14884_v15 = vld [vmem:[%s15246_s23 + $0x1da4] sm:$0xf]  ;;  %v14885_v43 = vld [vmem:[%s15246_s23 + $0x1dac] sm:$0xf] }
 0x5f0   : > { %v13712_v21 = vld [vmem:[%s15246_s23 + $0x2000] sm:$0xf0] }
 0x5f2   : > { %v8620_v17 = vpop.f32.mrf.mxu0  ;;  %v8633_v59 = vpop.f32.mrf.mxu1 }
 0x5f3   : > { %v8621_v58 = vadd.f32 %v8620_v17, %v16629_v54  ;;  %v12491_v54 = vor.u32 %v14582_v63, %v12488_v0  ;;  %v14057_v17 = vld [vmem:[%s15246_s23 + $0x3c4] sm:$0xf0] }
 0x5f5   : > { %8723 = vmatmul.bf16.vlgmr.msra.gmra.mxu0 %v1570_v28  ;;  %8736 = vmatmul.bf16.vlgmr.msra.gmra.mxu1 %v1571_v36  ;;  %v8634_v20 = vadd.f32 %v8633_v59, %v8621_v58  ;;  %v11286_v28 = vld [vmem:[%s15246_s23 + $0xad0] sm:$0xf]  ;;  %v10088_v58 = vld [vmem:[%s15246_s23 + $0x3c8] sm:$0xf0]  ;;  %v10094_v59 = vld [vmem:[%s15246_s23 + $0x178] sm:$0xf] }
 0x5f6   : > { %8767 = vmatpush.bf16.xpose.msrb.mxu0 %v6313_v22  ;;  %8780 = vmatpush.bf16.xpose.msrb.mxu1 %v6314_v24  ;;  %v11891_v22 = vor.u32 %v14432_v16, %v11888_v39  ;;  %v11895_v24 = vor.u32 %v14508_v19, %v11894_v18  ;;  %v13704_v16 = vld [vmem:[%s15246_s23 + $0x1ff8] sm:$0xf0]  ;;  %v13710_v39 = vld [vmem:[%s15246_s23 + $0x1da8] sm:$0xf]  ;;  %v14960_v18 = vld [vmem:[%s15246_s23 + $0x1ffc] sm:$0xf0] }
 0x5f7   : > { %8793 = vmatpush.bf16.xpose.msrb.mxu2 %v6315_v25  ;;  %8806 = vmatpush.bf16.xpose.msrb.mxu3 %v6316_v26  ;;  %v1575_v19 = vld [vmem:[#allocation1 + $0x2d] sm:$0xff] }
 0x5f8   : > { %8749 = vmatmul.bf16.vlgmr.msra.gmra.mxu2 %v1572_v29  ;;  %8762 = vmatmul.bf16.vlgmr.msra.gmra.mxu3 %v1573_v23  ;;  %v14357_v29 = vld [vmem:[%s15246_s23 + $0xd24] sm:$0xf0]  ;;  %v10686_v23 = vld [vmem:[%s15246_s23 + $0x620] sm:$0xf] }
 0x5f9   : > { %v11287_v36 = vor.u32 %v14357_v29, %v11286_v28  ;;  %v14809_v28 = vld [vmem:[%s15246_s23 + $0x1b44] sm:$0xf0]  ;;  %v14734_v29 = vld [vmem:[%s15246_s23 + $0x18f4] sm:$0xf] }
 0x5fa   : > { %v8622_v57 = vpop.f32.mrf.mxu0  ;;  %v8635_v12 = vpop.f32.mrf.mxu1 }
 0x5fb   : > { %v8646_v6 = vpop.f32.mrf.mxu2  ;;  %v8659_v11 = vpop.f32.mrf.mxu3  ;;  %v1574_v57 = vld [vmem:[#allocation1 + $0x24] sm:$0xff] }
 0x5fc   : > { %v8647_v8 = vadd.f32 %v8646_v6, %v8634_v20  ;;  %v14058_v20 = vld [vmem:[%s15246_s23 + $0x3cc] sm:$0xf0]  ;;  %v13702_v12 = vld [vmem:[%s15246_s23 + $0x1da0] sm:$0xf] }
 0x5fe   : > { %8768 = vmatpush.bf16.xpose.msrb.mxu0 %v13687_v40  ;;  %8781 = vmatpush.bf16.xpose.msrb.mxu1 %v13691_v41  ;;  %v16691_v14 = vadd.f32 %v8659_v11, %v8647_v8  ;;  %v11299_v40 = vor.u32 %v14283_v34, %v11296_v35  ;;  %v14207_v41 = vld [vmem:[%s15246_s23 + $0x874] sm:$0xf0]  ;;  %v10099_v8 = vor.u32 %v13983_v1, %v10096_v2  ;;  %v1576_v11 = vld [vmem:[#allocation1 + $0x36] sm:$0xff]  ;;  %v13112_v34 = vld [vmem:[%s15246_s23 + $0x1b50] sm:$0xf0] }
 0x5ff   : > { %8794 = vmatpush.bf16.xpose.msrb.mxu2 %v13695_v42  ;;  %8807 = vmatpush.bf16.xpose.msrb.mxu3 %v13699_v44  ;;  %v14132_v42 = vld [vmem:[%s15246_s23 + $0x624] sm:$0xf]  ;;  %v10688_v44 = vld [vmem:[%s15246_s23 + $0x878] sm:$0xf0]  ;;  %v10687_v48 = vor.u32 %v14207_v41, %v10686_v23  ;;  %v11904_v1 = vld [vmem:[%s15246_s23 + $0x11e8] sm:$0xf0] }
 0x600   : > { %v10691_v49 = vor.u32 %v14132_v42, %v10688_v44  ;;  %v12502_v44 = vld [vmem:[%s15246_s23 + $0x1440] sm:$0xf]  ;;  %v11910_v2 = vld [vmem:[%s15246_s23 + $0xf98] sm:$0xf] }
 0x603   : > { %v8648_v25 = vpop.f32.mrf.mxu2  ;;  %v8661_v26 = vpop.f32.mrf.mxu3 }
 0x604   : > { %v13711_v25 = vor.u32 %v14960_v18, %v13710_v39  ;;  %v13102_v26 = vld [vmem:[%s15246_s23 + $0x18f0] sm:$0xf]  ;;  %v14360_v39 = vld [vmem:[%s15246_s23 + $0xd3c] sm:$0xf0]  ;;  %v14285_v18 = vld [vmem:[%s15246_s23 + $0xaec] sm:$0xf] }
 0x605   : > { %v13103_v35 = vor.u32 %v14809_v28, %v13102_v26  ;;  %v10704_v26 = vld [vmem:[%s15246_s23 + $0x888] sm:$0xf0]  ;;  %v10710_v28 = vld [vmem:[%s15246_s23 + $0x638] sm:$0xf] }
 0x606   : > { %8769 = vmatpush.bf16.xpose.msrb.mxu0 %v13087_v53  ;;  %8782 = vmatpush.bf16.xpose.msrb.mxu1 %v13091_v13  ;;  %v1431_v53 = vld [vmem:[%s15246_s23 + $0x2250] sm:$0xff]  ;;  %v1432_v13 = vld [vmem:[%s15246_s23 + $0x2258] sm:$0xff] }
 0x607   : > { %8795 = vmatpush.bf16.xpose.msrb.mxu2 %v13095_v55  ;;  %8808 = vmatpush.bf16.xpose.msrb.mxu3 %v13099_v56  ;;  %v10086_v55 = vld [vmem:[%s15246_s23 + $0x170] sm:$0xf]  ;;  %v13982_v56 = vld [vmem:[%s15246_s23 + $0x174] sm:$0xf]  ;;  %v5117_v60 = vunpack.c.l.b16 %v1431_v53  ;;  %v5118_v62 = vunpack.c.h.b16 %v1431_v53  ;;  %v5119_v63 = vunpack.c.l.b16 %v1432_v13  ;;  %v5120_v3 = vunpack.c.h.b16 %v1432_v13 }
 0x608   : > { %v10087_v0 = vor.u32 %v14057_v17, %v10086_v55  ;;  %v10091_v4 = vor.u32 %v13982_v56, %v10088_v58  ;;  %v12507_v53 = vor.u32 %v14584_v45, %v12504_v46 }
 0x609   : > { %v6317_v6 = vpack.c.b16 %v5117_v60, %v5117_v60  ;;  %v11902_v60 = vld [vmem:[%s15246_s23 + $0xf90] sm:$0xf] }
 0x60e   : > { %8770 = vmatpush.bf16.xpose.msrb.mxu0 %v12487_v5  ;;  %8783 = vmatpush.bf16.xpose.msrb.mxu1 %v12491_v54  ;;  %v10095_v5 = vor.u32 %v14058_v20, %v10094_v59  ;;  %v6318_v54 = vpack.c.b16 %v5118_v62, %v5118_v62  ;;  %v326_v62 = vld [vmem:[%s15256_s19 + $0x60] sm:$0xff] }
 0x60f   : > { %8796 = vmatpush.bf16.xpose.msrb.mxu2 %v12495_v7  ;;  %8809 = vmatpush.bf16.xpose.msrb.mxu3 %v12499_v10  ;;  %v6319_v7 = vpack.c.b16 %v5119_v63, %v5119_v63  ;;  %v6320_v10 = vpack.c.b16 %v5120_v3, %v5120_v3  ;;  %v14509_v63 = vld [vmem:[%s15246_s23 + $0x11e4] sm:$0xf0]  ;;  %v14510_v3 = vld [vmem:[%s15246_s23 + $0x11ec] sm:$0xf0] }
 0x616   : > { %8771 = vmatpush.bf16.xpose.msrb.mxu0 %v11887_v47  ;;  %8784 = vmatpush.bf16.xpose.msrb.mxu1 %v11891_v22  ;;  %v13703_v47 = vor.u32 %v14959_v61, %v13702_v12  ;;  %v1577_v22 = vld [vmem:[#allocation1 + $0x3f] sm:$0xff]  ;;  %v14284_v61 = vld [vmem:[%s15246_s23 + $0xae4] sm:$0xf] }
 0x617   : > { %8797 = vmatpush.bf16.xpose.msrb.mxu2 %v11895_v24  ;;  %8810 = vmatpush.bf16.xpose.msrb.mxu3 %v11899_v50  ;;  %v13707_v24 = vor.u32 %v14884_v15, %v13704_v16  ;;  %v13715_v50 = vor.u32 %v14885_v43, %v13712_v21  ;;  %1579 = vst [vmem:[#allocation1] ss:$9 sm:$0xff] %v326_v62  ;;  %v14359_v12 = vld [vmem:[%s15246_s23 + $0xd34] sm:$0xf0]  ;;  %v11304_v15 = vld [vmem:[%s15246_s23 + $0xd38] sm:$0xf0] }
 0x618   : > { %v11310_v16 = vld [vmem:[%s15246_s23 + $0xae8] sm:$0xf]  ;;  %v11307_v21 = vor.u32 %v14284_v61, %v11304_v15  ;;  %v13120_v61 = vld [vmem:[%s15246_s23 + $0x1b58] sm:$0xf0] }
 0x619   : > { %v14961_v62 = vld [vmem:[%s15246_s23 + $0x2004] sm:$0xf0] }
 0x61a   : > { %v13126_v15 = vld [vmem:[%s15246_s23 + $0x1908] sm:$0xf] }
 0x61e   : > { %8772 = vmatpush.bf16.xpose.msrb.mxu0 %v11287_v36  ;;  %8785 = vmatpush.bf16.xpose.msrb.mxu1 %v11291_v37  ;;  %v13107_v36 = vor.u32 %v14734_v29, %v13104_v30  ;;  %v13111_v37 = vor.u32 %v14810_v32, %v13110_v31  ;;  %v14210_v29 = vld [vmem:[%s15246_s23 + $0x88c] sm:$0xf0]  ;;  %v14135_v30 = vld [vmem:[%s15246_s23 + $0x63c] sm:$0xf]  ;;  %v10712_v31 = vld [vmem:[%s15246_s23 + $0x890] sm:$0xf0] }
 0x61f   : > { %8798 = vmatpush.bf16.xpose.msrb.mxu2 %v11295_v38  ;;  %8811 = vmatpush.bf16.xpose.msrb.mxu3 %v11299_v40  ;;  %v13115_v40 = vor.u32 %v14735_v33, %v13112_v34  ;;  %v10711_v34 = vor.u32 %v14210_v29, %v10710_v28  ;;  %v14661_v28 = vld [vmem:[%s15246_s23 + $0x16a4] sm:$0xf0]  ;;  %v14586_v29 = vld [vmem:[%s15246_s23 + $0x1454] sm:$0xf] }
 0x626   : > { %8773 = vmatpush.bf16.xpose.msrb.mxu0 %v10687_v48  ;;  %8786 = vmatpush.bf16.xpose.msrb.mxu1 %v10691_v49  ;;  %v14660_v48 = vld [vmem:[%s15246_s23 + $0x169c] sm:$0xf0]  ;;  %v14585_v49 = vld [vmem:[%s15246_s23 + $0x144c] sm:$0xf] }
 0x627   : > { %8799 = vmatpush.bf16.xpose.msrb.mxu2 %v10695_v9  ;;  %8812 = vmatpush.bf16.xpose.msrb.mxu3 %v10699_v52  ;;  %v12512_v9 = vld [vmem:[%s15246_s23 + $0x16a0] sm:$0xf0]  ;;  %v12503_v52 = vor.u32 %v14659_v27, %v12502_v44  ;;  %v12511_v13 = vor.u32 %v14660_v48, %v12510_v51  ;;  %v14060_v44 = vld [vmem:[%s15246_s23 + $0x3dc] sm:$0xf0]  ;;  %v13985_v48 = vld [vmem:[%s15246_s23 + $0x18c] sm:$0xf] }
 0x628   : > { %v12515_v17 = vor.u32 %v14585_v49, %v12512_v9  ;;  %v10112_v49 = vld [vmem:[%s15246_s23 + $0x3e0] sm:$0xf0] }
 0x62e   : > { %8774 = vmatpush.bf16.xpose.msrb.mxu0 %v10087_v0  ;;  %8787 = vmatpush.bf16.xpose.msrb.mxu1 %v10091_v4  ;;  %v14434_v0 = vld [vmem:[%s15246_s23 + $0xf94] sm:$0xf]  ;;  %v14435_v4 = vld [vmem:[%s15246_s23 + $0xf9c] sm:$0xf] }
 0x62f   : > { %8800 = vmatpush.bf16.xpose.msrb.mxu2 %v10095_v5  ;;  %8813 = vmatpush.bf16.xpose.msrb.mxu3 %v10099_v8  ;;  %v11912_v5 = vld [vmem:[%s15246_s23 + $0x11f0] sm:$0xf0] }
 0x632   : > { %v8672_v38 = vpop.f32.mrf.mxu0  ;;  %v8685_v41 = vpop.f32.mrf.mxu1 }
 0x633   : > { %v8673_v23 = vadd.f32 %v8672_v38, %v16691_v14  ;;  %v10102_v38 = vld [vmem:[%s15246_s23 + $0x180] sm:$0xf] }
 0x635   : > { %8775 = vmatmul.bf16.vlgmr.msrb.gmra.mxu0 %v1574_v57  ;;  %8788 = vmatmul.bf16.vlgmr.msrb.gmra.mxu1 %v1575_v19  ;;  %v8686_v42 = vadd.f32 %v8685_v41, %v8673_v23  ;;  %v11312_v19 = vld [vmem:[%s15246_s23 + $0xd40] sm:$0xf0]  ;;  %v10104_v41 = vld [vmem:[%s15246_s23 + $0x3d8] sm:$0xf0] }
 0x636   : > { %8819 = vmatpush.bf16.xpose.msra.mxu0 %v6317_v6  ;;  %8832 = vmatpush.bf16.xpose.msra.mxu1 %v6318_v54  ;;  %v11903_v6 = vor.u32 %v14509_v63, %v11902_v60  ;;  %v11907_v54 = vor.u32 %v14434_v0, %v11904_v1  ;;  %v13984_v23 = vld [vmem:[%s15246_s23 + $0x184] sm:$0xf]  ;;  %v13718_v60 = vld [vmem:[%s15246_s23 + $0x1db0] sm:$0xf]  ;;  %v14886_v63 = vld [vmem:[%s15246_s23 + $0x1db4] sm:$0xf] }
 0x637   : > { %8845 = vmatpush.bf16.xpose.msra.mxu2 %v6319_v7  ;;  %8858 = vmatpush.bf16.xpose.msra.mxu3 %v6320_v10  ;;  %v11911_v7 = vor.u32 %v14510_v3, %v11910_v2  ;;  %v11915_v10 = vor.u32 %v14435_v4, %v11912_v5  ;;  %v13720_v0 = vld [vmem:[%s15246_s23 + $0x2008] sm:$0xf0]  ;;  %v13726_v1 = vld [vmem:[%s15246_s23 + $0x1db8] sm:$0xf]  ;;  %v14962_v2 = vld [vmem:[%s15246_s23 + $0x200c] sm:$0xf0] }
 0x638   : > { %8801 = vmatmul.bf16.vlgmr.msrb.gmra.mxu2 %v1576_v11  ;;  %8814 = vmatmul.bf16.vlgmr.msrb.gmra.mxu3 %v1577_v22  ;;  %v11302_v11 = vld [vmem:[%s15246_s23 + $0xae0] sm:$0xf]  ;;  %v11315_v22 = vor.u32 %v14285_v18, %v11312_v19  ;;  %v14887_v4 = vld [vmem:[%s15246_s23 + $0x1dbc] sm:$0xf]  ;;  %v13728_v5 = vld [vmem:[%s15246_s23 + $0x2010] sm:$0xf0] }
 0x639   : > { %v11303_v43 = vor.u32 %v14359_v12, %v11302_v11  ;;  %v1581_v3 = vld [vmem:[#allocation1 + $0x9] sm:$0xff] }
 0x63a   : > { %v8674_v56 = vpop.f32.mrf.mxu0  ;;  %v8687_v59 = vpop.f32.mrf.mxu1  ;;  %v14811_v11 = vld [vmem:[%s15246_s23 + $0x1b54] sm:$0xf0]  ;;  %v14736_v12 = vld [vmem:[%s15246_s23 + $0x1904] sm:$0xf] }
 0x63b   : > { %v8698_v14 = vpop.f32.mrf.mxu2  ;;  %v8711_v58 = vpop.f32.mrf.mxu3  ;;  %v1582_v59 = vld [vmem:[#allocation1 + $0x12] sm:$0xff] }
 0x63c   : > { %v8699_v55 = vadd.f32 %v8698_v14, %v8686_v42  ;;  %v10110_v42 = vld [vmem:[%s15246_s23 + $0x188] sm:$0xf]  ;;  %v13128_v18 = vld [vmem:[%s15246_s23 + $0x1b60] sm:$0xf0] }
 0x63d   : > { %v10111_v14 = vor.u32 %v14060_v44, %v10110_v42 }
 0x63e   : > { %8820 = vmatpush.bf16.xpose.msra.mxu0 %v13703_v47  ;;  %8833 = vmatpush.bf16.xpose.msra.mxu1 %v13707_v24  ;;  %v16752_v20 = vadd.f32 %v8711_v58, %v8699_v55  ;;  %v11311_v47 = vor.u32 %v14360_v39, %v11310_v16  ;;  %v10702_v24 = vld [vmem:[%s15246_s23 + $0x630] sm:$0xf]  ;;  %v14812_v16 = vld [vmem:[%s15246_s23 + $0x1b5c] sm:$0xf0]  ;;  %v14737_v39 = vld [vmem:[%s15246_s23 + $0x190c] sm:$0xf] }
 0x63f   : > { %8846 = vmatpush.bf16.xpose.msra.mxu2 %v13711_v25  ;;  %8859 = vmatpush.bf16.xpose.msra.mxu3 %v13715_v50  ;;  %v14209_v25 = vld [vmem:[%s15246_s23 + $0x884] sm:$0xf0]  ;;  %v14134_v50 = vld [vmem:[%s15246_s23 + $0x634] sm:$0xf] }
 0x640   : > { %v10703_v32 = vor.u32 %v14209_v25, %v10702_v24  ;;  %v10707_v33 = vor.u32 %v14134_v50, %v10704_v26  ;;  %v1580_v58 = vld [vmem:[#allocation1] sm:$0xff] }
 0x641   : > { %v12518_v26 = vld [vmem:[%s15246_s23 + $0x1450] sm:$0xf] }
 0x643   : > { %v8700_v8 = vpop.f32.mrf.mxu2  ;;  %v8713_v57 = vpop.f32.mrf.mxu3 }
 0x644   : > { %v13727_v8 = vor.u32 %v14962_v2, %v13726_v1  ;;  %v13118_v57 = vld [vmem:[%s15246_s23 + $0x1900] sm:$0xf]  ;;  %v14287_v1 = vld [vmem:[%s15246_s23 + $0xafc] sm:$0xf]  ;;  %v11328_v2 = vld [vmem:[%s15246_s23 + $0xd50] sm:$0xf0] }
 0x645   : > { %v13119_v19 = vor.u32 %v14811_v11, %v13118_v57  ;;  %v10726_v57 = vld [vmem:[%s15246_s23 + $0x648] sm:$0xf]  ;;  %v14212_v11 = vld [vmem:[%s15246_s23 + $0x89c] sm:$0xf0] }
 0x646   : > { %8821 = vmatpush.bf16.xpose.msra.mxu0 %v13103_v35  ;;  %8834 = vmatpush.bf16.xpose.msra.mxu1 %v13107_v36  ;;  %v10715_v35 = vor.u32 %v14135_v30, %v10712_v31  ;;  %v1433_v36 = vld [vmem:[%s15246_s23 + $0x2260] sm:$0xff]  ;;  %v12520_v30 = vld [vmem:[%s15246_s23 + $0x16a8] sm:$0xf0]  ;;  %v12526_v31 = vld [vmem:[%s15246_s23 + $0x1458] sm:$0xf] }
 0x647   : > { %8847 = vmatpush.bf16.xpose.msra.mxu2 %v13111_v37  ;;  %8860 = vmatpush.bf16.xpose.msra.mxu3 %v13115_v40  ;;  %v1434_v37 = vld [vmem:[%s15246_s23 + $0x2268] sm:$0xff]  ;;  %v14059_v40 = vld [vmem:[%s15246_s23 + $0x3d4] sm:$0xf0]  ;;  %v5121_v27 = vunpack.c.l.b16 %v1433_v36  ;;  %v5122_v45 = vunpack.c.h.b16 %v1433_v36 }
 0x648   : > { %v5123_v46 = vunpack.c.l.b16 %v1434_v37  ;;  %v10103_v51 = vor.u32 %v14059_v40, %v10102_v38  ;;  %v5124_v9 = vunpack.c.h.b16 %v1434_v37 }
 0x64a   : > { %v6323_v55 = vpack.c.b16 %v5123_v46, %v5123_v46  ;;  %v6324_v56 = vpack.c.b16 %v5124_v9, %v5124_v9  ;;  %v14436_v46 = vld [vmem:[%s15246_s23 + $0xfa4] sm:$0xf]  ;;  %v14437_v9 = vld [vmem:[%s15246_s23 + $0xfac] sm:$0xf] }
 0x64e   : > { %8822 = vmatpush.bf16.xpose.msra.mxu0 %v12503_v52  ;;  %8835 = vmatpush.bf16.xpose.msra.mxu1 %v12507_v53  ;;  %v10107_v52 = vor.u32 %v13984_v23, %v10104_v41  ;;  %v6321_v53 = vpack.c.b16 %v5121_v27, %v5121_v27  ;;  %v11918_v27 = vld [vmem:[%s15246_s23 + $0xfa0] sm:$0xf] }
 0x64f   : > { %8848 = vmatpush.bf16.xpose.msra.mxu2 %v12511_v13  ;;  %8861 = vmatpush.bf16.xpose.msra.mxu3 %v12515_v17  ;;  %v6322_v13 = vpack.c.b16 %v5122_v45, %v5122_v45  ;;  %v10115_v17 = vor.u32 %v13985_v48, %v10112_v49  ;;  %v14511_v45 = vld [vmem:[%s15246_s23 + $0x11f4] sm:$0xf0]  ;;  %v11926_v48 = vld [vmem:[%s15246_s23 + $0xfa8] sm:$0xf]  ;;  %v14512_v49 = vld [vmem:[%s15246_s23 + $0x11fc] sm:$0xf0] }
 0x656   : > { %8823 = vmatpush.bf16.xpose.msra.mxu0 %v11903_v6  ;;  %8836 = vmatpush.bf16.xpose.msra.mxu1 %v11907_v54  ;;  %v13719_v6 = vor.u32 %v14961_v62, %v13718_v60  ;;  %v1583_v54 = vld [vmem:[#allocation1 + $0x1b] sm:$0xff] }
 0x657   : > { %8849 = vmatpush.bf16.xpose.msra.mxu2 %v11911_v7  ;;  %8862 = vmatpush.bf16.xpose.msra.mxu3 %v11915_v10  ;;  %v13723_v7 = vor.u32 %v14886_v63, %v13720_v0  ;;  %v13731_v10 = vor.u32 %v14887_v4, %v13728_v5  ;;  %v14286_v60 = vld [vmem:[%s15246_s23 + $0xaf4] sm:$0xf]  ;;  %v11320_v62 = vld [vmem:[%s15246_s23 + $0xd48] sm:$0xf0]  ;;  %v11326_v63 = vld [vmem:[%s15246_s23 + $0xaf8] sm:$0xf] }
 0x658   : > { %v14362_v0 = vld [vmem:[%s15246_s23 + $0xd4c] sm:$0xf0]  ;;  %v11323_v4 = vor.u32 %v14286_v60, %v11320_v62  ;;  %v13136_v60 = vld [vmem:[%s15246_s23 + $0x1b68] sm:$0xf0]  ;;  %v13142_v62 = vld [vmem:[%s15246_s23 + $0x1918] sm:$0xf] }
 0x659   : > { %v11327_v5 = vor.u32 %v14362_v0, %v11326_v63  ;;  %v14814_v63 = vld [vmem:[%s15246_s23 + $0x1b6c] sm:$0xf0]  ;;  %v14739_v0 = vld [vmem:[%s15246_s23 + $0x191c] sm:$0xf] }
 0x65e   : > { %8824 = vmatpush.bf16.xpose.msra.mxu0 %v11303_v43  ;;  %8837 = vmatpush.bf16.xpose.msra.mxu1 %v11307_v21  ;;  %v13123_v43 = vor.u32 %v14736_v12, %v13120_v61  ;;  %v13127_v21 = vor.u32 %v14812_v16, %v13126_v15  ;;  %v14137_v12 = vld [vmem:[%s15246_s23 + $0x64c] sm:$0xf]  ;;  %v10728_v61 = vld [vmem:[%s15246_s23 + $0x8a0] sm:$0xf0] }
 0x65f   : > { %8850 = vmatpush.bf16.xpose.msra.mxu2 %v11311_v47  ;;  %8863 = vmatpush.bf16.xpose.msra.mxu3 %v11315_v22  ;;  %v13131_v22 = vor.u32 %v14737_v39, %v13128_v18  ;;  %v10727_v39 = vor.u32 %v14212_v11, %v10726_v57  ;;  %v10731_v18 = vor.u32 %v14137_v12, %v10728_v61  ;;  %v14663_v57 = vld [vmem:[%s15246_s23 + $0x16b4] sm:$0xf0]  ;;  %v14588_v11 = vld [vmem:[%s15246_s23 + $0x1464] sm:$0xf]  ;;  %v12536_v12 = vld [vmem:[%s15246_s23 + $0x16b8] sm:$0xf0] }
 0x660   : > { %v12542_v61 = vld [vmem:[%s15246_s23 + $0x1468] sm:$0xf] }
 0x666   : > { %8825 = vmatpush.bf16.xpose.msra.mxu0 %v10703_v32  ;;  %8838 = vmatpush.bf16.xpose.msra.mxu1 %v10707_v33  ;;  %v14662_v32 = vld [vmem:[%s15246_s23 + $0x16ac] sm:$0xf0]  ;;  %v14587_v33 = vld [vmem:[%s15246_s23 + $0x145c] sm:$0xf] }
 0x667   : > { %8851 = vmatpush.bf16.xpose.msra.mxu2 %v10711_v34  ;;  %8864 = vmatpush.bf16.xpose.msra.mxu3 %v10715_v35  ;;  %v12528_v34 = vld [vmem:[%s15246_s23 + $0x16b0] sm:$0xf0]  ;;  %v12519_v35 = vor.u32 %v14661_v28, %v12518_v26  ;;  %v12527_v37 = vor.u32 %v14662_v32, %v12526_v31  ;;  %v13987_v31 = vld [vmem:[%s15246_s23 + $0x19c] sm:$0xf] }
 0x668   : > { %v12531_v40 = vor.u32 %v14587_v33, %v12528_v34  ;;  %v10128_v32 = vld [vmem:[%s15246_s23 + $0x3f0] sm:$0xf0] }
 0x66e   : > { %8826 = vmatpush.bf16.xpose.msra.mxu0 %v10103_v51  ;;  %8839 = vmatpush.bf16.xpose.msra.mxu1 %v10107_v52  ;;  %v11920_v51 = vld [vmem:[%s15246_s23 + $0x11f8] sm:$0xf0]  ;;  %v11928_v52 = vld [vmem:[%s15246_s23 + $0x1200] sm:$0xf0] }
 0x66f   : > { %8852 = vmatpush.bf16.xpose.msra.mxu2 %v10111_v14  ;;  %8865 = vmatpush.bf16.xpose.msra.mxu3 %v10115_v17  ;;  %v11919_v14 = vor.u32 %v14511_v45, %v11918_v27  ;;  %v11931_v17 = vor.u32 %v14437_v9, %v11928_v52  ;;  %v14963_v27 = vld [vmem:[%s15246_s23 + $0x2014] sm:$0xf0]  ;;  %v14888_v45 = vld [vmem:[%s15246_s23 + $0x1dc4] sm:$0xf]  ;;  %v14889_v9 = vld [vmem:[%s15246_s23 + $0x1dcc] sm:$0xf] }
 0x670   : > { %v13744_v52 = vld [vmem:[%s15246_s23 + $0x2020] sm:$0xf0] }
 0x672   : > { %v8724_v47 = vpop.f32.mrf.mxu0  ;;  %v8737_v25 = vpop.f32.mrf.mxu1 }
 0x673   : > { %v8725_v24 = vadd.f32 %v8724_v47, %v16752_v20  ;;  %v12523_v20 = vor.u32 %v14586_v29, %v12520_v30  ;;  %v14061_v47 = vld [vmem:[%s15246_s23 + $0x3e4] sm:$0xf0] }
 0x675   : > { %8827 = vmatmul.bf16.vlgmr.msra.gmra.mxu0 %v1580_v58  ;;  %8840 = vmatmul.bf16.vlgmr.msra.gmra.mxu1 %v1581_v3  ;;  %v8738_v50 = vadd.f32 %v8737_v25, %v8725_v24  ;;  %v11318_v58 = vld [vmem:[%s15246_s23 + $0xaf0] sm:$0xf]  ;;  %v10120_v24 = vld [vmem:[%s15246_s23 + $0x3e8] sm:$0xf0]  ;;  %v10126_v25 = vld [vmem:[%s15246_s23 + $0x198] sm:$0xf] }
 0x676   : > { %8871 = vmatpush.bf16.xpose.msrb.mxu0 %v6321_v53  ;;  %8884 = vmatpush.bf16.xpose.msrb.mxu1 %v6322_v13  ;;  %v11923_v53 = vor.u32 %v14436_v46, %v11920_v51  ;;  %v11927_v13 = vor.u32 %v14512_v49, %v11926_v48  ;;  %v13736_v46 = vld [vmem:[%s15246_s23 + $0x2018] sm:$0xf0]  ;;  %v13742_v51 = vld [vmem:[%s15246_s23 + $0x1dc8] sm:$0xf]  ;;  %v14964_v48 = vld [vmem:[%s15246_s23 + $0x201c] sm:$0xf0] }
 0x677   : > { %8897 = vmatpush.bf16.xpose.msrb.mxu2 %v6323_v55  ;;  %8910 = vmatpush.bf16.xpose.msrb.mxu3 %v6324_v56  ;;  %v1585_v49 = vld [vmem:[#allocation1 + $0x2d] sm:$0xff] }
 0x678   : > { %8853 = vmatmul.bf16.vlgmr.msra.gmra.mxu2 %v1582_v59  ;;  %8866 = vmatmul.bf16.vlgmr.msra.gmra.mxu3 %v1583_v54  ;;  %v14361_v59 = vld [vmem:[%s15246_s23 + $0xd44] sm:$0xf0]  ;;  %v10718_v54 = vld [vmem:[%s15246_s23 + $0x640] sm:$0xf] }
 0x679   : > { %v11319_v3 = vor.u32 %v14361_v59, %v11318_v58  ;;  %v14813_v58 = vld [vmem:[%s15246_s23 + $0x1b64] sm:$0xf0]  ;;  %v14738_v59 = vld [vmem:[%s15246_s23 + $0x1914] sm:$0xf] }
 0x67a   : > { %v8726_v23 = vpop.f32.mrf.mxu0  ;;  %v8739_v42 = vpop.f32.mrf.mxu1 }
 0x67b   : > { %v8750_v36 = vpop.f32.mrf.mxu2  ;;  %v8763_v41 = vpop.f32.mrf.mxu3  ;;  %v1584_v23 = vld [vmem:[#allocation1 + $0x24] sm:$0xff] }
 0x67c   : > { %v8751_v38 = vadd.f32 %v8750_v36, %v8738_v50  ;;  %v14062_v50 = vld [vmem:[%s15246_s23 + $0x3ec] sm:$0xf0]  ;;  %v13734_v42 = vld [vmem:[%s15246_s23 + $0x1dc0] sm:$0xf] }
 0x67e   : > { %8872 = vmatpush.bf16.xpose.msrb.mxu0 %v13719_v6  ;;  %8885 = vmatpush.bf16.xpose.msrb.mxu1 %v13723_v7  ;;  %v16814_v44 = vadd.f32 %v8763_v41, %v8751_v38  ;;  %v11331_v6 = vor.u32 %v14287_v1, %v11328_v2  ;;  %v14211_v7 = vld [vmem:[%s15246_s23 + $0x894] sm:$0xf0]  ;;  %v10131_v38 = vor.u32 %v13987_v31, %v10128_v32  ;;  %v1586_v41 = vld [vmem:[#allocation1 + $0x36] sm:$0xff]  ;;  %v13144_v1 = vld [vmem:[%s15246_s23 + $0x1b70] sm:$0xf0] }
 0x67f   : > { %8898 = vmatpush.bf16.xpose.msrb.mxu2 %v13727_v8  ;;  %8911 = vmatpush.bf16.xpose.msrb.mxu3 %v13731_v10  ;;  %v14136_v8 = vld [vmem:[%s15246_s23 + $0x644] sm:$0xf]  ;;  %v10720_v10 = vld [vmem:[%s15246_s23 + $0x898] sm:$0xf0]  ;;  %v10719_v15 = vor.u32 %v14211_v7, %v10718_v54  ;;  %v11936_v31 = vld [vmem:[%s15246_s23 + $0x1208] sm:$0xf0] }
 0x680   : > { %v10723_v16 = vor.u32 %v14136_v8, %v10720_v10  ;;  %v12534_v10 = vld [vmem:[%s15246_s23 + $0x1460] sm:$0xf]  ;;  %v11942_v32 = vld [vmem:[%s15246_s23 + $0xfb8] sm:$0xf] }
 0x683   : > { %v8752_v55 = vpop.f32.mrf.mxu2  ;;  %v8765_v56 = vpop.f32.mrf.mxu3 }
 0x684   : > { %v13743_v55 = vor.u32 %v14964_v48, %v13742_v51  ;;  %v13134_v56 = vld [vmem:[%s15246_s23 + $0x1910] sm:$0xf]  ;;  %v14364_v51 = vld [vmem:[%s15246_s23 + $0xd5c] sm:$0xf0]  ;;  %v14289_v48 = vld [vmem:[%s15246_s23 + $0xb0c] sm:$0xf] }
 0x685   : > { %v13135_v2 = vor.u32 %v14813_v58, %v13134_v56  ;;  %v10736_v56 = vld [vmem:[%s15246_s23 + $0x8a8] sm:$0xf0]  ;;  %v10742_v58 = vld [vmem:[%s15246_s23 + $0x658] sm:$0xf] }
 0x686   : > { %8873 = vmatpush.bf16.xpose.msrb.mxu0 %v13119_v19  ;;  %8886 = vmatpush.bf16.xpose.msrb.mxu1 %v13123_v43  ;;  %v1435_v19 = vld [vmem:[%s15246_s23 + $0x2270] sm:$0xff]  ;;  %v1436_v43 = vld [vmem:[%s15246_s23 + $0x2278] sm:$0xff] }
 0x687   : > { %8899 = vmatpush.bf16.xpose.msrb.mxu2 %v13127_v21  ;;  %8912 = vmatpush.bf16.xpose.msrb.mxu3 %v13131_v22  ;;  %v10118_v21 = vld [vmem:[%s15246_s23 + $0x190] sm:$0xf]  ;;  %v13986_v22 = vld [vmem:[%s15246_s23 + $0x194] sm:$0xf]  ;;  %v5125_v26 = vunpack.c.l.b16 %v1435_v19  ;;  %v5126_v28 = vunpack.c.h.b16 %v1435_v19  ;;  %v5127_v29 = vunpack.c.l.b16 %v1436_v43  ;;  %v5128_v33 = vunpack.c.h.b16 %v1436_v43 }
 0x688   : > { %v10119_v30 = vor.u32 %v14061_v47, %v10118_v21  ;;  %v10123_v34 = vor.u32 %v13986_v22, %v10120_v24  ;;  %v12539_v19 = vor.u32 %v14588_v11, %v12536_v12 }
 0x689   : > { %v6325_v36 = vpack.c.b16 %v5125_v26, %v5125_v26  ;;  %v11934_v26 = vld [vmem:[%s15246_s23 + $0xfb0] sm:$0xf] }
 0x68e   : > { %8874 = vmatpush.bf16.xpose.msrb.mxu0 %v12519_v35  ;;  %8887 = vmatpush.bf16.xpose.msrb.mxu1 %v12523_v20  ;;  %v10127_v35 = vor.u32 %v14062_v50, %v10126_v25  ;;  %v6326_v20 = vpack.c.b16 %v5126_v28, %v5126_v28  ;;  %v327_v28 = vld [vmem:[%s15256_s19 + $0x68] sm:$0xff] }
 0x68f   : > { %8900 = vmatpush.bf16.xpose.msrb.mxu2 %v12527_v37  ;;  %8913 = vmatpush.bf16.xpose.msrb.mxu3 %v12531_v40  ;;  %v6327_v37 = vpack.c.b16 %v5127_v29, %v5127_v29  ;;  %v6328_v40 = vpack.c.b16 %v5128_v33, %v5128_v33  ;;  %v14513_v29 = vld [vmem:[%s15246_s23 + $0x1204] sm:$0xf0]  ;;  %v14514_v33 = vld [vmem:[%s15246_s23 + $0x120c] sm:$0xf0] }
 0x696   : > { %8875 = vmatpush.bf16.xpose.msrb.mxu0 %v11919_v14  ;;  %8888 = vmatpush.bf16.xpose.msrb.mxu1 %v11923_v53  ;;  %v13735_v14 = vor.u32 %v14963_v27, %v13734_v42  ;;  %v1587_v53 = vld [vmem:[#allocation1 + $0x3f] sm:$0xff]  ;;  %v14288_v27 = vld [vmem:[%s15246_s23 + $0xb04] sm:$0xf] }
 0x697   : > { %8901 = vmatpush.bf16.xpose.msrb.mxu2 %v11927_v13  ;;  %8914 = vmatpush.bf16.xpose.msrb.mxu3 %v11931_v17  ;;  %v13739_v13 = vor.u32 %v14888_v45, %v13736_v46  ;;  %v13747_v17 = vor.u32 %v14889_v9, %v13744_v52  ;;  %1589 = vst [vmem:[#allocation1] ss:$9 sm:$0xff] %v327_v28  ;;  %v14363_v42 = vld [vmem:[%s15246_s23 + $0xd54] sm:$0xf0]  ;;  %v11336_v45 = vld [vmem:[%s15246_s23 + $0xd58] sm:$0xf0] }
 0x698   : > { %v11342_v46 = vld [vmem:[%s15246_s23 + $0xb08] sm:$0xf]  ;;  %v11339_v52 = vor.u32 %v14288_v27, %v11336_v45  ;;  %v13152_v27 = vld [vmem:[%s15246_s23 + $0x1b78] sm:$0xf0] }
 0x699   : > { %v14965_v28 = vld [vmem:[%s15246_s23 + $0x2024] sm:$0xf0] }
 0x69a   : > { %v13158_v45 = vld [vmem:[%s15246_s23 + $0x1928] sm:$0xf] }
 0x69e   : > { %8876 = vmatpush.bf16.xpose.msrb.mxu0 %v11319_v3  ;;  %8889 = vmatpush.bf16.xpose.msrb.mxu1 %v11323_v4  ;;  %v13139_v3 = vor.u32 %v14738_v59, %v13136_v60  ;;  %v13143_v4 = vor.u32 %v14814_v63, %v13142_v62  ;;  %v14214_v59 = vld [vmem:[%s15246_s23 + $0x8ac] sm:$0xf0]  ;;  %v14139_v60 = vld [vmem:[%s15246_s23 + $0x65c] sm:$0xf]  ;;  %v10744_v62 = vld [vmem:[%s15246_s23 + $0x8b0] sm:$0xf0] }
 0x69f   : > { %8902 = vmatpush.bf16.xpose.msrb.mxu2 %v11327_v5  ;;  %8915 = vmatpush.bf16.xpose.msrb.mxu3 %v11331_v6  ;;  %v13147_v6 = vor.u32 %v14739_v0, %v13144_v1  ;;  %v10743_v1 = vor.u32 %v14214_v59, %v10742_v58  ;;  %v14665_v58 = vld [vmem:[%s15246_s23 + $0x16c4] sm:$0xf0]  ;;  %v14590_v59 = vld [vmem:[%s15246_s23 + $0x1474] sm:$0xf] }
 0x6a6   : > { %8877 = vmatpush.bf16.xpose.msrb.mxu0 %v10719_v15  ;;  %8890 = vmatpush.bf16.xpose.msrb.mxu1 %v10723_v16  ;;  %v14664_v15 = vld [vmem:[%s15246_s23 + $0x16bc] sm:$0xf0]  ;;  %v14589_v16 = vld [vmem:[%s15246_s23 + $0x146c] sm:$0xf] }
 0x6a7   : > { %8903 = vmatpush.bf16.xpose.msrb.mxu2 %v10727_v39  ;;  %8916 = vmatpush.bf16.xpose.msrb.mxu3 %v10731_v18  ;;  %v12544_v39 = vld [vmem:[%s15246_s23 + $0x16c0] sm:$0xf0]  ;;  %v12535_v18 = vor.u32 %v14663_v57, %v12534_v10  ;;  %v12543_v43 = vor.u32 %v14664_v15, %v12542_v61  ;;  %v14064_v10 = vld [vmem:[%s15246_s23 + $0x3fc] sm:$0xf0]  ;;  %v13989_v15 = vld [vmem:[%s15246_s23 + $0x1ac] sm:$0xf] }
 0x6a8   : > { %v12547_v47 = vor.u32 %v14589_v16, %v12544_v39  ;;  %v10144_v16 = vld [vmem:[%s15246_s23 + $0x400] sm:$0xf0] }
 0x6ae   : > { %8878 = vmatpush.bf16.xpose.msrb.mxu0 %v10119_v30  ;;  %8891 = vmatpush.bf16.xpose.msrb.mxu1 %v10123_v34  ;;  %v14438_v30 = vld [vmem:[%s15246_s23 + $0xfb4] sm:$0xf]  ;;  %v14439_v34 = vld [vmem:[%s15246_s23 + $0xfbc] sm:$0xf] }
 0x6af   : > { %8904 = vmatpush.bf16.xpose.msrb.mxu2 %v10127_v35  ;;  %8917 = vmatpush.bf16.xpose.msrb.mxu3 %v10131_v38  ;;  %v11944_v35 = vld [vmem:[%s15246_s23 + $0x1210] sm:$0xf0] }
 0x6b2   : > { %v8776_v5 = vpop.f32.mrf.mxu0  ;;  %v8789_v7 = vpop.f32.mrf.mxu1 }
 0x6b3   : > { %v8777_v54 = vadd.f32 %v8776_v5, %v16814_v44  ;;  %v10134_v5 = vld [vmem:[%s15246_s23 + $0x1a0] sm:$0xf] }
 0x6b5   : > { %8879 = vmatmul.bf16.vlgmr.msrb.gmra.mxu0 %v1584_v23  ;;  %8892 = vmatmul.bf16.vlgmr.msrb.gmra.mxu1 %v1585_v49  ;;  %v8790_v8 = vadd.f32 %v8789_v7, %v8777_v54  ;;  %v11344_v49 = vld [vmem:[%s15246_s23 + $0xd60] sm:$0xf0]  ;;  %v10136_v7 = vld [vmem:[%s15246_s23 + $0x3f8] sm:$0xf0] }
 0x6b6   : > { %8923 = vmatpush.bf16.xpose.msra.mxu0 %v6325_v36  ;;  %8936 = vmatpush.bf16.xpose.msra.mxu1 %v6326_v20  ;;  %v11935_v36 = vor.u32 %v14513_v29, %v11934_v26  ;;  %v11939_v20 = vor.u32 %v14438_v30, %v11936_v31  ;;  %v13988_v54 = vld [vmem:[%s15246_s23 + $0x1a4] sm:$0xf]  ;;  %v13750_v26 = vld [vmem:[%s15246_s23 + $0x1dd0] sm:$0xf]  ;;  %v14890_v29 = vld [vmem:[%s15246_s23 + $0x1dd4] sm:$0xf] }
 0x6b7   : > { %8949 = vmatpush.bf16.xpose.msra.mxu2 %v6327_v37  ;;  %8962 = vmatpush.bf16.xpose.msra.mxu3 %v6328_v40  ;;  %v11943_v37 = vor.u32 %v14514_v33, %v11942_v32  ;;  %v11947_v40 = vor.u32 %v14439_v34, %v11944_v35  ;;  %v13752_v30 = vld [vmem:[%s15246_s23 + $0x2028] sm:$0xf0]  ;;  %v13758_v31 = vld [vmem:[%s15246_s23 + $0x1dd8] sm:$0xf]  ;;  %v14966_v32 = vld [vmem:[%s15246_s23 + $0x202c] sm:$0xf0] }
 0x6b8   : > { %8905 = vmatmul.bf16.vlgmr.msrb.gmra.mxu2 %v1586_v41  ;;  %8918 = vmatmul.bf16.vlgmr.msrb.gmra.mxu3 %v1587_v53  ;;  %v11334_v41 = vld [vmem:[%s15246_s23 + $0xb00] sm:$0xf]  ;;  %v11347_v53 = vor.u32 %v14289_v48, %v11344_v49  ;;  %v14891_v34 = vld [vmem:[%s15246_s23 + $0x1ddc] sm:$0xf]  ;;  %v13760_v35 = vld [vmem:[%s15246_s23 + $0x2030] sm:$0xf0] }
 0x6b9   : > { %v11335_v9 = vor.u32 %v14363_v42, %v11334_v41  ;;  %v1591_v33 = vld [vmem:[#allocation1 + $0x9] sm:$0xff] }
 0x6ba   : > { %v8778_v22 = vpop.f32.mrf.mxu0  ;;  %v8791_v25 = vpop.f32.mrf.mxu1  ;;  %v14815_v41 = vld [vmem:[%s15246_s23 + $0x1b74] sm:$0xf0]  ;;  %v14740_v42 = vld [vmem:[%s15246_s23 + $0x1924] sm:$0xf] }
 0x6bb   : > { %v8802_v44 = vpop.f32.mrf.mxu2  ;;  %v8815_v24 = vpop.f32.mrf.mxu3  ;;  %v1592_v25 = vld [vmem:[#allocation1 + $0x12] sm:$0xff] }
 0x6bc   : > { %v8803_v21 = vadd.f32 %v8802_v44, %v8790_v8  ;;  %v10142_v8 = vld [vmem:[%s15246_s23 + $0x1a8] sm:$0xf]  ;;  %v13160_v48 = vld [vmem:[%s15246_s23 + $0x1b80] sm:$0xf0] }
 0x6bd   : > { %v10143_v44 = vor.u32 %v14064_v10, %v10142_v8 }
 0x6be   : > { %8924 = vmatpush.bf16.xpose.msra.mxu0 %v13735_v14  ;;  %8937 = vmatpush.bf16.xpose.msra.mxu1 %v13739_v13  ;;  %v16875_v50 = vadd.f32 %v8815_v24, %v8803_v21  ;;  %v11343_v14 = vor.u32 %v14364_v51, %v11342_v46  ;;  %v10734_v13 = vld [vmem:[%s15246_s23 + $0x650] sm:$0xf]  ;;  %v14816_v46 = vld [vmem:[%s15246_s23 + $0x1b7c] sm:$0xf0]  ;;  %v14741_v51 = vld [vmem:[%s15246_s23 + $0x192c] sm:$0xf] }
 0x6bf   : > { %8950 = vmatpush.bf16.xpose.msra.mxu2 %v13743_v55  ;;  %8963 = vmatpush.bf16.xpose.msra.mxu3 %v13747_v17  ;;  %v14213_v55 = vld [vmem:[%s15246_s23 + $0x8a4] sm:$0xf0]  ;;  %v14138_v17 = vld [vmem:[%s15246_s23 + $0x654] sm:$0xf] }
 0x6c0   : > { %v10735_v63 = vor.u32 %v14213_v55, %v10734_v13  ;;  %v10739_v0 = vor.u32 %v14138_v17, %v10736_v56  ;;  %v1590_v24 = vld [vmem:[#allocation1] sm:$0xff] }
 0x6c1   : > { %v12550_v56 = vld [vmem:[%s15246_s23 + $0x1470] sm:$0xf] }
 0x6c3   : > { %v8804_v38 = vpop.f32.mrf.mxu2  ;;  %v8817_v23 = vpop.f32.mrf.mxu3 }
 0x6c4   : > { %v13759_v38 = vor.u32 %v14966_v32, %v13758_v31  ;;  %v13150_v23 = vld [vmem:[%s15246_s23 + $0x1920] sm:$0xf]  ;;  %v14291_v31 = vld [vmem:[%s15246_s23 + $0xb1c] sm:$0xf]  ;;  %v11360_v32 = vld [vmem:[%s15246_s23 + $0xd70] sm:$0xf0] }
 0x6c5   : > { %v13151_v49 = vor.u32 %v14815_v41, %v13150_v23  ;;  %v10758_v23 = vld [vmem:[%s15246_s23 + $0x668] sm:$0xf]  ;;  %v14216_v41 = vld [vmem:[%s15246_s23 + $0x8bc] sm:$0xf0] }
 0x6c6   : > { %8925 = vmatpush.bf16.xpose.msra.mxu0 %v13135_v2  ;;  %8938 = vmatpush.bf16.xpose.msra.mxu1 %v13139_v3  ;;  %v10747_v2 = vor.u32 %v14139_v60, %v10744_v62  ;;  %v1437_v3 = vld [vmem:[%s15246_s23 + $0x2280] sm:$0xff]  ;;  %v12552_v60 = vld [vmem:[%s15246_s23 + $0x16c8] sm:$0xf0]  ;;  %v12558_v62 = vld [vmem:[%s15246_s23 + $0x1478] sm:$0xf] }
 0x6c7   : > { %8951 = vmatpush.bf16.xpose.msra.mxu2 %v13143_v4  ;;  %8964 = vmatpush.bf16.xpose.msra.mxu3 %v13147_v6  ;;  %v1438_v4 = vld [vmem:[%s15246_s23 + $0x2288] sm:$0xff]  ;;  %v14063_v6 = vld [vmem:[%s15246_s23 + $0x3f4] sm:$0xf0]  ;;  %v5129_v57 = vunpack.c.l.b16 %v1437_v3  ;;  %v5130_v11 = vunpack.c.h.b16 %v1437_v3 }
 0x6c8   : > { %v5131_v12 = vunpack.c.l.b16 %v1438_v4  ;;  %v10135_v61 = vor.u32 %v14063_v6, %v10134_v5  ;;  %v5132_v39 = vunpack.c.h.b16 %v1438_v4 }
 0x6ca   : > { %v6331_v21 = vpack.c.b16 %v5131_v12, %v5131_v12  ;;  %v6332_v22 = vpack.c.b16 %v5132_v39, %v5132_v39  ;;  %v14440_v12 = vld [vmem:[%s15246_s23 + $0xfc4] sm:$0xf]  ;;  %v14441_v39 = vld [vmem:[%s15246_s23 + $0xfcc] sm:$0xf] }
 0x6ce   : > { %8926 = vmatpush.bf16.xpose.msra.mxu0 %v12535_v18  ;;  %8939 = vmatpush.bf16.xpose.msra.mxu1 %v12539_v19  ;;  %v10139_v18 = vor.u32 %v13988_v54, %v10136_v7  ;;  %v6329_v19 = vpack.c.b16 %v5129_v57, %v5129_v57  ;;  %v11950_v57 = vld [vmem:[%s15246_s23 + $0xfc0] sm:$0xf] }
 0x6cf   : > { %8952 = vmatpush.bf16.xpose.msra.mxu2 %v12543_v43  ;;  %8965 = vmatpush.bf16.xpose.msra.mxu3 %v12547_v47  ;;  %v6330_v43 = vpack.c.b16 %v5130_v11, %v5130_v11  ;;  %v10147_v47 = vor.u32 %v13989_v15, %v10144_v16  ;;  %v14515_v11 = vld [vmem:[%s15246_s23 + $0x1214] sm:$0xf0]  ;;  %v11958_v15 = vld [vmem:[%s15246_s23 + $0xfc8] sm:$0xf]  ;;  %v14516_v16 = vld [vmem:[%s15246_s23 + $0x121c] sm:$0xf0] }
 0x6d6   : > { %8927 = vmatpush.bf16.xpose.msra.mxu0 %v11935_v36  ;;  %8940 = vmatpush.bf16.xpose.msra.mxu1 %v11939_v20  ;;  %v13751_v36 = vor.u32 %v14965_v28, %v13750_v26  ;;  %v1593_v20 = vld [vmem:[#allocation1 + $0x1b] sm:$0xff] }
 0x6d7   : > { %8953 = vmatpush.bf16.xpose.msra.mxu2 %v11943_v37  ;;  %8966 = vmatpush.bf16.xpose.msra.mxu3 %v11947_v40  ;;  %v13755_v37 = vor.u32 %v14890_v29, %v13752_v30  ;;  %v13763_v40 = vor.u32 %v14891_v34, %v13760_v35  ;;  %v14290_v26 = vld [vmem:[%s15246_s23 + $0xb14] sm:$0xf]  ;;  %v11352_v28 = vld [vmem:[%s15246_s23 + $0xd68] sm:$0xf0]  ;;  %v11358_v29 = vld [vmem:[%s15246_s23 + $0xb18] sm:$0xf] }
 0x6d8   : > { %v14366_v30 = vld [vmem:[%s15246_s23 + $0xd6c] sm:$0xf0]  ;;  %v11355_v34 = vor.u32 %v14290_v26, %v11352_v28  ;;  %v13168_v26 = vld [vmem:[%s15246_s23 + $0x1b88] sm:$0xf0]  ;;  %v13174_v28 = vld [vmem:[%s15246_s23 + $0x1938] sm:$0xf] }
 0x6d9   : > { %v11359_v35 = vor.u32 %v14366_v30, %v11358_v29  ;;  %v14818_v29 = vld [vmem:[%s15246_s23 + $0x1b8c] sm:$0xf0]  ;;  %v14743_v30 = vld [vmem:[%s15246_s23 + $0x193c] sm:$0xf] }
 0x6de   : > { %8928 = vmatpush.bf16.xpose.msra.mxu0 %v11335_v9  ;;  %8941 = vmatpush.bf16.xpose.msra.mxu1 %v11339_v52  ;;  %v13155_v9 = vor.u32 %v14740_v42, %v13152_v27  ;;  %v13159_v52 = vor.u32 %v14816_v46, %v13158_v45  ;;  %v14141_v42 = vld [vmem:[%s15246_s23 + $0x66c] sm:$0xf]  ;;  %v10760_v27 = vld [vmem:[%s15246_s23 + $0x8c0] sm:$0xf0] }
 0x6df   : > { %8954 = vmatpush.bf16.xpose.msra.mxu2 %v11343_v14  ;;  %8967 = vmatpush.bf16.xpose.msra.mxu3 %v11347_v53  ;;  %v13163_v53 = vor.u32 %v14741_v51, %v13160_v48  ;;  %v10759_v51 = vor.u32 %v14216_v41, %v10758_v23  ;;  %v10763_v48 = vor.u32 %v14141_v42, %v10760_v27  ;;  %v14667_v23 = vld [vmem:[%s15246_s23 + $0x16d4] sm:$0xf0]  ;;  %v14592_v41 = vld [vmem:[%s15246_s23 + $0x1484] sm:$0xf]  ;;  %v12568_v42 = vld [vmem:[%s15246_s23 + $0x16d8] sm:$0xf0] }
 0x6e0   : > { %v12574_v27 = vld [vmem:[%s15246_s23 + $0x1488] sm:$0xf] }
 0x6e6   : > { %8929 = vmatpush.bf16.xpose.msra.mxu0 %v10735_v63  ;;  %8942 = vmatpush.bf16.xpose.msra.mxu1 %v10739_v0  ;;  %v14666_v63 = vld [vmem:[%s15246_s23 + $0x16cc] sm:$0xf0]  ;;  %v14591_v0 = vld [vmem:[%s15246_s23 + $0x147c] sm:$0xf] }
 0x6e7   : > { %8955 = vmatpush.bf16.xpose.msra.mxu2 %v10743_v1  ;;  %8968 = vmatpush.bf16.xpose.msra.mxu3 %v10747_v2  ;;  %v12560_v1 = vld [vmem:[%s15246_s23 + $0x16d0] sm:$0xf0]  ;;  %v12551_v2 = vor.u32 %v14665_v58, %v12550_v56  ;;  %v12559_v4 = vor.u32 %v14666_v63, %v12558_v62  ;;  %v13991_v62 = vld [vmem:[%s15246_s23 + $0x1bc] sm:$0xf] }
 0x6e8   : > { %v12563_v6 = vor.u32 %v14591_v0, %v12560_v1  ;;  %v10160_v63 = vld [vmem:[%s15246_s23 + $0x410] sm:$0xf0] }
 0x6ee   : > { %8930 = vmatpush.bf16.xpose.msra.mxu0 %v10135_v61  ;;  %8943 = vmatpush.bf16.xpose.msra.mxu1 %v10139_v18  ;;  %v11952_v61 = vld [vmem:[%s15246_s23 + $0x1218] sm:$0xf0]  ;;  %v11960_v18 = vld [vmem:[%s15246_s23 + $0x1220] sm:$0xf0] }
 0x6ef   : > { %8956 = vmatpush.bf16.xpose.msra.mxu2 %v10143_v44  ;;  %8969 = vmatpush.bf16.xpose.msra.mxu3 %v10147_v47  ;;  %v11951_v44 = vor.u32 %v14515_v11, %v11950_v57  ;;  %v11963_v47 = vor.u32 %v14441_v39, %v11960_v18  ;;  %v14967_v57 = vld [vmem:[%s15246_s23 + $0x2034] sm:$0xf0]  ;;  %v14892_v11 = vld [vmem:[%s15246_s23 + $0x1de4] sm:$0xf]  ;;  %v14893_v39 = vld [vmem:[%s15246_s23 + $0x1dec] sm:$0xf] }
 0x6f0   : > { %v13776_v18 = vld [vmem:[%s15246_s23 + $0x2040] sm:$0xf0] }
 0x6f2   : > { %v8828_v14 = vpop.f32.mrf.mxu0  ;;  %v8841_v55 = vpop.f32.mrf.mxu1 }
 0x6f3   : > { %v8829_v13 = vadd.f32 %v8828_v14, %v16875_v50  ;;  %v12555_v50 = vor.u32 %v14590_v59, %v12552_v60  ;;  %v14065_v14 = vld [vmem:[%s15246_s23 + $0x404] sm:$0xf0] }
 0x6f5   : > { %8931 = vmatmul.bf16.vlgmr.msra.gmra.mxu0 %v1590_v24  ;;  %8944 = vmatmul.bf16.vlgmr.msra.gmra.mxu1 %v1591_v33  ;;  %v8842_v17 = vadd.f32 %v8841_v55, %v8829_v13  ;;  %v11350_v24 = vld [vmem:[%s15246_s23 + $0xb10] sm:$0xf]  ;;  %v10152_v13 = vld [vmem:[%s15246_s23 + $0x408] sm:$0xf0]  ;;  %v10158_v55 = vld [vmem:[%s15246_s23 + $0x1b8] sm:$0xf] }
 0x6f6   : > { %8975 = vmatpush.bf16.xpose.msrb.mxu0 %v6329_v19  ;;  %8988 = vmatpush.bf16.xpose.msrb.mxu1 %v6330_v43  ;;  %v11955_v19 = vor.u32 %v14440_v12, %v11952_v61  ;;  %v11959_v43 = vor.u32 %v14516_v16, %v11958_v15  ;;  %v13768_v12 = vld [vmem:[%s15246_s23 + $0x2038] sm:$0xf0]  ;;  %v13774_v61 = vld [vmem:[%s15246_s23 + $0x1de8] sm:$0xf]  ;;  %v14968_v15 = vld [vmem:[%s15246_s23 + $0x203c] sm:$0xf0] }
 0x6f7   : > { %9001 = vmatpush.bf16.xpose.msrb.mxu2 %v6331_v21  ;;  %9014 = vmatpush.bf16.xpose.msrb.mxu3 %v6332_v22  ;;  %v1595_v16 = vld [vmem:[#allocation1 + $0x2d] sm:$0xff] }
 0x6f8   : > { %8957 = vmatmul.bf16.vlgmr.msra.gmra.mxu2 %v1592_v25  ;;  %8970 = vmatmul.bf16.vlgmr.msra.gmra.mxu3 %v1593_v20  ;;  %v14365_v25 = vld [vmem:[%s15246_s23 + $0xd64] sm:$0xf0]  ;;  %v10750_v20 = vld [vmem:[%s15246_s23 + $0x660] sm:$0xf] }
 0x6f9   : > { %v11351_v33 = vor.u32 %v14365_v25, %v11350_v24  ;;  %v14817_v24 = vld [vmem:[%s15246_s23 + $0x1b84] sm:$0xf0]  ;;  %v14742_v25 = vld [vmem:[%s15246_s23 + $0x1934] sm:$0xf] }
 0x6fa   : > { %v8830_v54 = vpop.f32.mrf.mxu0  ;;  %v8843_v8 = vpop.f32.mrf.mxu1 }
 0x6fb   : > { %v8854_v3 = vpop.f32.mrf.mxu2  ;;  %v8867_v7 = vpop.f32.mrf.mxu3  ;;  %v1594_v54 = vld [vmem:[#allocation1 + $0x24] sm:$0xff] }
 0x6fc   : > { %v8855_v5 = vadd.f32 %v8854_v3, %v8842_v17  ;;  %v14066_v17 = vld [vmem:[%s15246_s23 + $0x40c] sm:$0xf0]  ;;  %v13766_v8 = vld [vmem:[%s15246_s23 + $0x1de0] sm:$0xf] }
 0x6fe   : > { %8976 = vmatpush.bf16.xpose.msrb.mxu0 %v13751_v36  ;;  %8989 = vmatpush.bf16.xpose.msrb.mxu1 %v13755_v37  ;;  %v16937_v10 = vadd.f32 %v8867_v7, %v8855_v5  ;;  %v11363_v36 = vor.u32 %v14291_v31, %v11360_v32  ;;  %v14215_v37 = vld [vmem:[%s15246_s23 + $0x8b4] sm:$0xf0]  ;;  %v10163_v5 = vor.u32 %v13991_v62, %v10160_v63  ;;  %v1596_v7 = vld [vmem:[#allocation1 + $0x36] sm:$0xff]  ;;  %v13176_v31 = vld [vmem:[%s15246_s23 + $0x1b90] sm:$0xf0] }
 0x6ff   : > { %9002 = vmatpush.bf16.xpose.msrb.mxu2 %v13759_v38  ;;  %9015 = vmatpush.bf16.xpose.msrb.mxu3 %v13763_v40  ;;  %v14140_v38 = vld [vmem:[%s15246_s23 + $0x664] sm:$0xf]  ;;  %v10752_v40 = vld [vmem:[%s15246_s23 + $0x8b8] sm:$0xf0]  ;;  %v10751_v45 = vor.u32 %v14215_v37, %v10750_v20  ;;  %v11968_v62 = vld [vmem:[%s15246_s23 + $0x1228] sm:$0xf0] }
 0x700   : > { %v10755_v46 = vor.u32 %v14140_v38, %v10752_v40  ;;  %v12566_v40 = vld [vmem:[%s15246_s23 + $0x1480] sm:$0xf]  ;;  %v11974_v63 = vld [vmem:[%s15246_s23 + $0xfd8] sm:$0xf] }
 0x703   : > { %v8856_v21 = vpop.f32.mrf.mxu2  ;;  %v8869_v22 = vpop.f32.mrf.mxu3 }
 0x704   : > { %v13775_v21 = vor.u32 %v14968_v15, %v13774_v61  ;;  %v13166_v22 = vld [vmem:[%s15246_s23 + $0x1930] sm:$0xf]  ;;  %v14368_v61 = vld [vmem:[%s15246_s23 + $0xd7c] sm:$0xf0]  ;;  %v14293_v15 = vld [vmem:[%s15246_s23 + $0xb2c] sm:$0xf] }
 0x705   : > { %v13167_v32 = vor.u32 %v14817_v24, %v13166_v22  ;;  %v10768_v22 = vld [vmem:[%s15246_s23 + $0x8c8] sm:$0xf0]  ;;  %v10774_v24 = vld [vmem:[%s15246_s23 + $0x678] sm:$0xf] }
 0x706   : > { %8977 = vmatpush.bf16.xpose.msrb.mxu0 %v13151_v49  ;;  %8990 = vmatpush.bf16.xpose.msrb.mxu1 %v13155_v9  ;;  %v1439_v49 = vld [vmem:[%s15246_s23 + $0x2290] sm:$0xff]  ;;  %v1440_v9 = vld [vmem:[%s15246_s23 + $0x2298] sm:$0xff] }
 0x707   : > { %9003 = vmatpush.bf16.xpose.msrb.mxu2 %v13159_v52  ;;  %9016 = vmatpush.bf16.xpose.msrb.mxu3 %v13163_v53  ;;  %v10150_v52 = vld [vmem:[%s15246_s23 + $0x1b0] sm:$0xf]  ;;  %v13990_v53 = vld [vmem:[%s15246_s23 + $0x1b4] sm:$0xf]  ;;  %v5133_v56 = vunpack.c.l.b16 %v1439_v49  ;;  %v5134_v58 = vunpack.c.h.b16 %v1439_v49  ;;  %v5135_v59 = vunpack.c.l.b16 %v1440_v9  ;;  %v5136_v0 = vunpack.c.h.b16 %v1440_v9 }
 0x708   : > { %v10151_v60 = vor.u32 %v14065_v14, %v10150_v52  ;;  %v10155_v1 = vor.u32 %v13990_v53, %v10152_v13  ;;  %v12571_v49 = vor.u32 %v14592_v41, %v12568_v42 }
 0x709   : > { %v6333_v3 = vpack.c.b16 %v5133_v56, %v5133_v56  ;;  %v11966_v56 = vld [vmem:[%s15246_s23 + $0xfd0] sm:$0xf] }
 0x70e   : > { %8978 = vmatpush.bf16.xpose.msrb.mxu0 %v12551_v2  ;;  %8991 = vmatpush.bf16.xpose.msrb.mxu1 %v12555_v50  ;;  %v10159_v2 = vor.u32 %v14066_v17, %v10158_v55  ;;  %v6334_v50 = vpack.c.b16 %v5134_v58, %v5134_v58  ;;  %v328_v58 = vld [vmem:[%s15256_s19 + $0x70] sm:$0xff] }
 0x70f   : > { %9004 = vmatpush.bf16.xpose.msrb.mxu2 %v12559_v4  ;;  %9017 = vmatpush.bf16.xpose.msrb.mxu3 %v12563_v6  ;;  %v6335_v4 = vpack.c.b16 %v5135_v59, %v5135_v59  ;;  %v6336_v6 = vpack.c.b16 %v5136_v0, %v5136_v0  ;;  %v14517_v59 = vld [vmem:[%s15246_s23 + $0x1224] sm:$0xf0]  ;;  %v14518_v0 = vld [vmem:[%s15246_s23 + $0x122c] sm:$0xf0] }
 0x716   : > { %8979 = vmatpush.bf16.xpose.msrb.mxu0 %v11951_v44  ;;  %8992 = vmatpush.bf16.xpose.msrb.mxu1 %v11955_v19  ;;  %v13767_v44 = vor.u32 %v14967_v57, %v13766_v8  ;;  %v1597_v19 = vld [vmem:[#allocation1 + $0x3f] sm:$0xff]  ;;  %v14292_v57 = vld [vmem:[%s15246_s23 + $0xb24] sm:$0xf] }
 0x717   : > { %9005 = vmatpush.bf16.xpose.msrb.mxu2 %v11959_v43  ;;  %9018 = vmatpush.bf16.xpose.msrb.mxu3 %v11963_v47  ;;  %v13771_v43 = vor.u32 %v14892_v11, %v13768_v12  ;;  %v13779_v47 = vor.u32 %v14893_v39, %v13776_v18  ;;  %1599 = vst [vmem:[#allocation1] ss:$9 sm:$0xff] %v328_v58  ;;  %v14367_v8 = vld [vmem:[%s15246_s23 + $0xd74] sm:$0xf0]  ;;  %v11368_v11 = vld [vmem:[%s15246_s23 + $0xd78] sm:$0xf0] }
 0x718   : > { %v11374_v12 = vld [vmem:[%s15246_s23 + $0xb28] sm:$0xf]  ;;  %v11371_v18 = vor.u32 %v14292_v57, %v11368_v11  ;;  %v13184_v57 = vld [vmem:[%s15246_s23 + $0x1b98] sm:$0xf0] }
 0x719   : > { %v14969_v58 = vld [vmem:[%s15246_s23 + $0x2044] sm:$0xf0] }
 0x71a   : > { %v13190_v11 = vld [vmem:[%s15246_s23 + $0x1948] sm:$0xf] }
 0x71e   : > { %8980 = vmatpush.bf16.xpose.msrb.mxu0 %v11351_v33  ;;  %8993 = vmatpush.bf16.xpose.msrb.mxu1 %v11355_v34  ;;  %v13171_v33 = vor.u32 %v14742_v25, %v13168_v26  ;;  %v13175_v34 = vor.u32 %v14818_v29, %v13174_v28  ;;  %v14218_v25 = vld [vmem:[%s15246_s23 + $0x8cc] sm:$0xf0]  ;;  %v14143_v26 = vld [vmem:[%s15246_s23 + $0x67c] sm:$0xf]  ;;  %v10776_v28 = vld [vmem:[%s15246_s23 + $0x8d0] sm:$0xf0] }
 0x71f   : > { %9006 = vmatpush.bf16.xpose.msrb.mxu2 %v11359_v35  ;;  %9019 = vmatpush.bf16.xpose.msrb.mxu3 %v11363_v36  ;;  %v13179_v36 = vor.u32 %v14743_v30, %v13176_v31  ;;  %v10775_v31 = vor.u32 %v14218_v25, %v10774_v24  ;;  %v14669_v24 = vld [vmem:[%s15246_s23 + $0x16e4] sm:$0xf0]  ;;  %v14594_v25 = vld [vmem:[%s15246_s23 + $0x1494] sm:$0xf] }
 0x726   : > { %8981 = vmatpush.bf16.xpose.msrb.mxu0 %v10751_v45  ;;  %8994 = vmatpush.bf16.xpose.msrb.mxu1 %v10755_v46  ;;  %v14668_v45 = vld [vmem:[%s15246_s23 + $0x16dc] sm:$0xf0]  ;;  %v14593_v46 = vld [vmem:[%s15246_s23 + $0x148c] sm:$0xf] }
 0x727   : > { %9007 = vmatpush.bf16.xpose.msrb.mxu2 %v10759_v51  ;;  %9020 = vmatpush.bf16.xpose.msrb.mxu3 %v10763_v48  ;;  %v12576_v51 = vld [vmem:[%s15246_s23 + $0x16e0] sm:$0xf0]  ;;  %v12567_v48 = vor.u32 %v14667_v23, %v12566_v40  ;;  %v12575_v9 = vor.u32 %v14668_v45, %v12574_v27  ;;  %v14068_v40 = vld [vmem:[%s15246_s23 + $0x41c] sm:$0xf0]  ;;  %v13993_v45 = vld [vmem:[%s15246_s23 + $0x1cc] sm:$0xf] }
 0x728   : > { %v12579_v14 = vor.u32 %v14593_v46, %v12576_v51  ;;  %v10176_v46 = vld [vmem:[%s15246_s23 + $0x420] sm:$0xf0] }
 0x72e   : > { %8982 = vmatpush.bf16.xpose.msrb.mxu0 %v10151_v60  ;;  %8995 = vmatpush.bf16.xpose.msrb.mxu1 %v10155_v1  ;;  %v14442_v60 = vld [vmem:[%s15246_s23 + $0xfd4] sm:$0xf]  ;;  %v14443_v1 = vld [vmem:[%s15246_s23 + $0xfdc] sm:$0xf] }
 0x72f   : > { %9008 = vmatpush.bf16.xpose.msrb.mxu2 %v10159_v2  ;;  %9021 = vmatpush.bf16.xpose.msrb.mxu3 %v10163_v5  ;;  %v11976_v2 = vld [vmem:[%s15246_s23 + $0x1230] sm:$0xf0] }
 0x732   : > { %v8880_v35 = vpop.f32.mrf.mxu0  ;;  %v8893_v37 = vpop.f32.mrf.mxu1 }
 0x733   : > { %v8881_v20 = vadd.f32 %v8880_v35, %v16937_v10  ;;  %v10166_v35 = vld [vmem:[%s15246_s23 + $0x1c0] sm:$0xf] }
 0x735   : > { %8983 = vmatmul.bf16.vlgmr.msrb.gmra.mxu0 %v1594_v54  ;;  %8996 = vmatmul.bf16.vlgmr.msrb.gmra.mxu1 %v1595_v16  ;;  %v8894_v38 = vadd.f32 %v8893_v37, %v8881_v20  ;;  %v11376_v16 = vld [vmem:[%s15246_s23 + $0xd80] sm:$0xf0]  ;;  %v10168_v37 = vld [vmem:[%s15246_s23 + $0x418] sm:$0xf0] }
 0x736   : > { %9027 = vmatpush.bf16.xpose.msra.mxu0 %v6333_v3  ;;  %9040 = vmatpush.bf16.xpose.msra.mxu1 %v6334_v50  ;;  %v11967_v3 = vor.u32 %v14517_v59, %v11966_v56  ;;  %v11971_v50 = vor.u32 %v14442_v60, %v11968_v62  ;;  %v13992_v20 = vld [vmem:[%s15246_s23 + $0x1c4] sm:$0xf]  ;;  %v13782_v56 = vld [vmem:[%s15246_s23 + $0x1df0] sm:$0xf]  ;;  %v14894_v59 = vld [vmem:[%s15246_s23 + $0x1df4] sm:$0xf] }
 0x737   : > { %9053 = vmatpush.bf16.xpose.msra.mxu2 %v6335_v4  ;;  %9066 = vmatpush.bf16.xpose.msra.mxu3 %v6336_v6  ;;  %v11975_v4 = vor.u32 %v14518_v0, %v11974_v63  ;;  %v11979_v6 = vor.u32 %v14443_v1, %v11976_v2  ;;  %v13784_v60 = vld [vmem:[%s15246_s23 + $0x2048] sm:$0xf0]  ;;  %v13790_v62 = vld [vmem:[%s15246_s23 + $0x1df8] sm:$0xf]  ;;  %v14970_v63 = vld [vmem:[%s15246_s23 + $0x204c] sm:$0xf0] }
 0x738   : > { %9009 = vmatmul.bf16.vlgmr.msrb.gmra.mxu2 %v1596_v7  ;;  %9022 = vmatmul.bf16.vlgmr.msrb.gmra.mxu3 %v1597_v19  ;;  %v11366_v7 = vld [vmem:[%s15246_s23 + $0xb20] sm:$0xf]  ;;  %v11379_v19 = vor.u32 %v14293_v15, %v11376_v16  ;;  %v14895_v1 = vld [vmem:[%s15246_s23 + $0x1dfc] sm:$0xf]  ;;  %v13792_v2 = vld [vmem:[%s15246_s23 + $0x2050] sm:$0xf0] }
 0x739   : > { %v11367_v39 = vor.u32 %v14367_v8, %v11366_v7  ;;  %v1601_v0 = vld [vmem:[#allocation1 + $0x9] sm:$0xff] }
 0x73a   : > { %v8882_v53 = vpop.f32.mrf.mxu0  ;;  %v8895_v55 = vpop.f32.mrf.mxu1  ;;  %v14819_v7 = vld [vmem:[%s15246_s23 + $0x1b94] sm:$0xf0]  ;;  %v14744_v8 = vld [vmem:[%s15246_s23 + $0x1944] sm:$0xf] }
 0x73b   : > { %v8906_v10 = vpop.f32.mrf.mxu2  ;;  %v8919_v13 = vpop.f32.mrf.mxu3  ;;  %v1602_v55 = vld [vmem:[#allocation1 + $0x12] sm:$0xff] }
 0x73c   : > { %v8907_v52 = vadd.f32 %v8906_v10, %v8894_v38  ;;  %v10174_v38 = vld [vmem:[%s15246_s23 + $0x1c8] sm:$0xf]  ;;  %v13192_v15 = vld [vmem:[%s15246_s23 + $0x1ba0] sm:$0xf0] }
 0x73d   : > { %v10175_v10 = vor.u32 %v14068_v40, %v10174_v38 }
 0x73e   : > { %9028 = vmatpush.bf16.xpose.msra.mxu0 %v13767_v44  ;;  %9041 = vmatpush.bf16.xpose.msra.mxu1 %v13771_v43  ;;  %v16998_v17 = vadd.f32 %v8919_v13, %v8907_v52  ;;  %v11375_v44 = vor.u32 %v14368_v61, %v11374_v12  ;;  %v10766_v43 = vld [vmem:[%s15246_s23 + $0x670] sm:$0xf]  ;;  %v14820_v12 = vld [vmem:[%s15246_s23 + $0x1b9c] sm:$0xf0]  ;;  %v14745_v61 = vld [vmem:[%s15246_s23 + $0x194c] sm:$0xf] }
 0x73f   : > { %9054 = vmatpush.bf16.xpose.msra.mxu2 %v13775_v21  ;;  %9067 = vmatpush.bf16.xpose.msra.mxu3 %v13779_v47  ;;  %v14217_v21 = vld [vmem:[%s15246_s23 + $0x8c4] sm:$0xf0]  ;;  %v14142_v47 = vld [vmem:[%s15246_s23 + $0x674] sm:$0xf] }
 0x740   : > { %v10767_v29 = vor.u32 %v14217_v21, %v10766_v43  ;;  %v10771_v30 = vor.u32 %v14142_v47, %v10768_v22  ;;  %v1600_v13 = vld [vmem:[#allocation1] sm:$0xff] }
 0x741   : > { %v12582_v22 = vld [vmem:[%s15246_s23 + $0x1490] sm:$0xf] }
 0x743   : > { %v8908_v5 = vpop.f32.mrf.mxu2  ;;  %v8921_v54 = vpop.f32.mrf.mxu3 }
 0x744   : > { %v13791_v5 = vor.u32 %v14970_v63, %v13790_v62  ;;  %v13182_v54 = vld [vmem:[%s15246_s23 + $0x1940] sm:$0xf]  ;;  %v14295_v62 = vld [vmem:[%s15246_s23 + $0xb3c] sm:$0xf]  ;;  %v11392_v63 = vld [vmem:[%s15246_s23 + $0xd90] sm:$0xf0] }
 0x745   : > { %v13183_v16 = vor.u32 %v14819_v7, %v13182_v54  ;;  %v10790_v54 = vld [vmem:[%s15246_s23 + $0x688] sm:$0xf]  ;;  %v14220_v7 = vld [vmem:[%s15246_s23 + $0x8dc] sm:$0xf0] }
 0x746   : > { %9029 = vmatpush.bf16.xpose.msra.mxu0 %v13167_v32  ;;  %9042 = vmatpush.bf16.xpose.msra.mxu1 %v13171_v33  ;;  %v10779_v32 = vor.u32 %v14143_v26, %v10776_v28  ;;  %v1441_v33 = vld [vmem:[%s15246_s23 + $0x22a0] sm:$0xff]  ;;  %v12584_v26 = vld [vmem:[%s15246_s23 + $0x16e8] sm:$0xf0]  ;;  %v12590_v28 = vld [vmem:[%s15246_s23 + $0x1498] sm:$0xf] }
 0x747   : > { %9055 = vmatpush.bf16.xpose.msra.mxu2 %v13175_v34  ;;  %9068 = vmatpush.bf16.xpose.msra.mxu3 %v13179_v36  ;;  %v1442_v34 = vld [vmem:[%s15246_s23 + $0x22a8] sm:$0xff]  ;;  %v14067_v36 = vld [vmem:[%s15246_s23 + $0x414] sm:$0xf0]  ;;  %v5137_v23 = vunpack.c.l.b16 %v1441_v33  ;;  %v5138_v41 = vunpack.c.h.b16 %v1441_v33 }
 0x748   : > { %v5139_v42 = vunpack.c.l.b16 %v1442_v34  ;;  %v10167_v27 = vor.u32 %v14067_v36, %v10166_v35  ;;  %v5140_v51 = vunpack.c.h.b16 %v1442_v34 }
 0x74a   : > { %v6339_v52 = vpack.c.b16 %v5139_v42, %v5139_v42  ;;  %v6340_v53 = vpack.c.b16 %v5140_v51, %v5140_v51  ;;  %v14444_v42 = vld [vmem:[%s15246_s23 + $0xfe4] sm:$0xf]  ;;  %v14445_v51 = vld [vmem:[%s15246_s23 + $0xfec] sm:$0xf] }
 0x74e   : > { %9030 = vmatpush.bf16.xpose.msra.mxu0 %v12567_v48  ;;  %9043 = vmatpush.bf16.xpose.msra.mxu1 %v12571_v49  ;;  %v10171_v48 = vor.u32 %v13992_v20, %v10168_v37  ;;  %v6337_v49 = vpack.c.b16 %v5137_v23, %v5137_v23  ;;  %v11982_v23 = vld [vmem:[%s15246_s23 + $0xfe0] sm:$0xf] }
 0x74f   : > { %9056 = vmatpush.bf16.xpose.msra.mxu2 %v12575_v9  ;;  %9069 = vmatpush.bf16.xpose.msra.mxu3 %v12579_v14  ;;  %v6338_v9 = vpack.c.b16 %v5138_v41, %v5138_v41  ;;  %v10179_v14 = vor.u32 %v13993_v45, %v10176_v46  ;;  %v14519_v41 = vld [vmem:[%s15246_s23 + $0x1234] sm:$0xf0]  ;;  %v11990_v45 = vld [vmem:[%s15246_s23 + $0xfe8] sm:$0xf]  ;;  %v14520_v46 = vld [vmem:[%s15246_s23 + $0x123c] sm:$0xf0] }
 0x756   : > { %9031 = vmatpush.bf16.xpose.msra.mxu0 %v11967_v3  ;;  %9044 = vmatpush.bf16.xpose.msra.mxu1 %v11971_v50  ;;  %v13783_v3 = vor.u32 %v14969_v58, %v13782_v56  ;;  %v1603_v50 = vld [vmem:[#allocation1 + $0x1b] sm:$0xff] }
 0x757   : > { %9057 = vmatpush.bf16.xpose.msra.mxu2 %v11975_v4  ;;  %9070 = vmatpush.bf16.xpose.msra.mxu3 %v11979_v6  ;;  %v13787_v4 = vor.u32 %v14894_v59, %v13784_v60  ;;  %v13795_v6 = vor.u32 %v14895_v1, %v13792_v2  ;;  %v14294_v56 = vld [vmem:[%s15246_s23 + $0xb34] sm:$0xf]  ;;  %v11384_v58 = vld [vmem:[%s15246_s23 + $0xd88] sm:$0xf0]  ;;  %v11390_v59 = vld [vmem:[%s15246_s23 + $0xb38] sm:$0xf] }
 0x758   : > { %v14370_v60 = vld [vmem:[%s15246_s23 + $0xd8c] sm:$0xf0]  ;;  %v11387_v1 = vor.u32 %v14294_v56, %v11384_v58  ;;  %v13200_v56 = vld [vmem:[%s15246_s23 + $0x1ba8] sm:$0xf0]  ;;  %v13206_v58 = vld [vmem:[%s15246_s23 + $0x1958] sm:$0xf] }
 0x759   : > { %v11391_v2 = vor.u32 %v14370_v60, %v11390_v59  ;;  %v14822_v59 = vld [vmem:[%s15246_s23 + $0x1bac] sm:$0xf0]  ;;  %v14747_v60 = vld [vmem:[%s15246_s23 + $0x195c] sm:$0xf] }
 0x75e   : > { %9032 = vmatpush.bf16.xpose.msra.mxu0 %v11367_v39  ;;  %9045 = vmatpush.bf16.xpose.msra.mxu1 %v11371_v18  ;;  %v13187_v39 = vor.u32 %v14744_v8, %v13184_v57  ;;  %v13191_v18 = vor.u32 %v14820_v12, %v13190_v11  ;;  %v14145_v8 = vld [vmem:[%s15246_s23 + $0x68c] sm:$0xf]  ;;  %v10792_v57 = vld [vmem:[%s15246_s23 + $0x8e0] sm:$0xf0] }
 0x75f   : > { %9058 = vmatpush.bf16.xpose.msra.mxu2 %v11375_v44  ;;  %9071 = vmatpush.bf16.xpose.msra.mxu3 %v11379_v19  ;;  %v13195_v19 = vor.u32 %v14745_v61, %v13192_v15  ;;  %v10791_v61 = vor.u32 %v14220_v7, %v10790_v54  ;;  %v10795_v15 = vor.u32 %v14145_v8, %v10792_v57  ;;  %v14671_v54 = vld [vmem:[%s15246_s23 + $0x16f4] sm:$0xf0]  ;;  %v14596_v7 = vld [vmem:[%s15246_s23 + $0x14a4] sm:$0xf]  ;;  %v12600_v8 = vld [vmem:[%s15246_s23 + $0x16f8] sm:$0xf0] }
 0x760   : > { %v12606_v57 = vld [vmem:[%s15246_s23 + $0x14a8] sm:$0xf] }
 0x766   : > { %9033 = vmatpush.bf16.xpose.msra.mxu0 %v10767_v29  ;;  %9046 = vmatpush.bf16.xpose.msra.mxu1 %v10771_v30  ;;  %v14670_v29 = vld [vmem:[%s15246_s23 + $0x16ec] sm:$0xf0]  ;;  %v14595_v30 = vld [vmem:[%s15246_s23 + $0x149c] sm:$0xf] }
 0x767   : > { %9059 = vmatpush.bf16.xpose.msra.mxu2 %v10775_v31  ;;  %9072 = vmatpush.bf16.xpose.msra.mxu3 %v10779_v32  ;;  %v12592_v31 = vld [vmem:[%s15246_s23 + $0x16f0] sm:$0xf0]  ;;  %v12583_v32 = vor.u32 %v14669_v24, %v12582_v22  ;;  %v12591_v34 = vor.u32 %v14670_v29, %v12590_v28  ;;  %v13995_v28 = vld [vmem:[%s15246_s23 + $0x1dc] sm:$0xf] }
 0x768   : > { %v12595_v36 = vor.u32 %v14595_v30, %v12592_v31  ;;  %v10192_v29 = vld [vmem:[%s15246_s23 + $0x430] sm:$0xf0] }
 0x76e   : > { %9034 = vmatpush.bf16.xpose.msra.mxu0 %v10167_v27  ;;  %9047 = vmatpush.bf16.xpose.msra.mxu1 %v10171_v48  ;;  %v11984_v27 = vld [vmem:[%s15246_s23 + $0x1238] sm:$0xf0]  ;;  %v11992_v48 = vld [vmem:[%s15246_s23 + $0x1240] sm:$0xf0] }
 0x76f   : > { %9060 = vmatpush.bf16.xpose.msra.mxu2 %v10175_v10  ;;  %9073 = vmatpush.bf16.xpose.msra.mxu3 %v10179_v14  ;;  %v11983_v10 = vor.u32 %v14519_v41, %v11982_v23  ;;  %v11995_v14 = vor.u32 %v14445_v51, %v11992_v48  ;;  %v14971_v23 = vld [vmem:[%s15246_s23 + $0x2054] sm:$0xf0]  ;;  %v14896_v41 = vld [vmem:[%s15246_s23 + $0x1e04] sm:$0xf]  ;;  %v14897_v51 = vld [vmem:[%s15246_s23 + $0x1e0c] sm:$0xf] }
 0x770   : > { %v13808_v48 = vld [vmem:[%s15246_s23 + $0x2060] sm:$0xf0] }
 0x772   : > { %v8932_v44 = vpop.f32.mrf.mxu0  ;;  %v8945_v21 = vpop.f32.mrf.mxu1 }
 0x773   : > { %v8933_v43 = vadd.f32 %v8932_v44, %v16998_v17  ;;  %v12587_v17 = vor.u32 %v14594_v25, %v12584_v26  ;;  %v14069_v44 = vld [vmem:[%s15246_s23 + $0x424] sm:$0xf0] }
 0x775   : > { %9035 = vmatmul.bf16.vlgmr.msra.gmra.mxu0 %v1600_v13  ;;  %9048 = vmatmul.bf16.vlgmr.msra.gmra.mxu1 %v1601_v0  ;;  %v8946_v47 = vadd.f32 %v8945_v21, %v8933_v43  ;;  %v11382_v13 = vld [vmem:[%s15246_s23 + $0xb30] sm:$0xf]  ;;  %v10184_v43 = vld [vmem:[%s15246_s23 + $0x428] sm:$0xf0]  ;;  %v10190_v21 = vld [vmem:[%s15246_s23 + $0x1d8] sm:$0xf] }
 0x776   : > { %9079 = vmatpush.bf16.xpose.msrb.mxu0 %v6337_v49  ;;  %9092 = vmatpush.bf16.xpose.msrb.mxu1 %v6338_v9  ;;  %v11987_v49 = vor.u32 %v14444_v42, %v11984_v27  ;;  %v11991_v9 = vor.u32 %v14520_v46, %v11990_v45  ;;  %v13800_v42 = vld [vmem:[%s15246_s23 + $0x2058] sm:$0xf0]  ;;  %v13806_v27 = vld [vmem:[%s15246_s23 + $0x1e08] sm:$0xf]  ;;  %v14972_v45 = vld [vmem:[%s15246_s23 + $0x205c] sm:$0xf0] }
 0x777   : > { %9105 = vmatpush.bf16.xpose.msrb.mxu2 %v6339_v52  ;;  %9118 = vmatpush.bf16.xpose.msrb.mxu3 %v6340_v53  ;;  %v1605_v46 = vld [vmem:[#allocation1 + $0x2d] sm:$0xff] }
 0x778   : > { %9061 = vmatmul.bf16.vlgmr.msra.gmra.mxu2 %v1602_v55  ;;  %9074 = vmatmul.bf16.vlgmr.msra.gmra.mxu3 %v1603_v50  ;;  %v14369_v55 = vld [vmem:[%s15246_s23 + $0xd84] sm:$0xf0]  ;;  %v10782_v50 = vld [vmem:[%s15246_s23 + $0x680] sm:$0xf] }
 0x779   : > { %v11383_v0 = vor.u32 %v14369_v55, %v11382_v13  ;;  %v14821_v13 = vld [vmem:[%s15246_s23 + $0x1ba4] sm:$0xf0]  ;;  %v14746_v55 = vld [vmem:[%s15246_s23 + $0x1954] sm:$0xf] }
 0x77a   : > { %v8934_v20 = vpop.f32.mrf.mxu0  ;;  %v8947_v38 = vpop.f32.mrf.mxu1 }
 0x77b   : > { %v8958_v33 = vpop.f32.mrf.mxu2  ;;  %v8971_v37 = vpop.f32.mrf.mxu3  ;;  %v1604_v20 = vld [vmem:[#allocation1 + $0x24] sm:$0xff] }
 0x77c   : > { %v8959_v35 = vadd.f32 %v8958_v33, %v8946_v47  ;;  %v14070_v47 = vld [vmem:[%s15246_s23 + $0x42c] sm:$0xf0]  ;;  %v13798_v38 = vld [vmem:[%s15246_s23 + $0x1e00] sm:$0xf] }
 0x77e   : > { %9080 = vmatpush.bf16.xpose.msrb.mxu0 %v13783_v3  ;;  %9093 = vmatpush.bf16.xpose.msrb.mxu1 %v13787_v4  ;;  %v17060_v40 = vadd.f32 %v8971_v37, %v8959_v35  ;;  %v11395_v3 = vor.u32 %v14295_v62, %v11392_v63  ;;  %v14219_v4 = vld [vmem:[%s15246_s23 + $0x8d4] sm:$0xf0]  ;;  %v10195_v35 = vor.u32 %v13995_v28, %v10192_v29  ;;  %v1606_v37 = vld [vmem:[#allocation1 + $0x36] sm:$0xff]  ;;  %v13208_v62 = vld [vmem:[%s15246_s23 + $0x1bb0] sm:$0xf0] }
 0x77f   : > { %9106 = vmatpush.bf16.xpose.msrb.mxu2 %v13791_v5  ;;  %9119 = vmatpush.bf16.xpose.msrb.mxu3 %v13795_v6  ;;  %v14144_v5 = vld [vmem:[%s15246_s23 + $0x684] sm:$0xf]  ;;  %v10784_v6 = vld [vmem:[%s15246_s23 + $0x8d8] sm:$0xf0]  ;;  %v10783_v11 = vor.u32 %v14219_v4, %v10782_v50  ;;  %v12000_v28 = vld [vmem:[%s15246_s23 + $0x1248] sm:$0xf0] }
 0x780   : > { %v10787_v12 = vor.u32 %v14144_v5, %v10784_v6  ;;  %v12598_v6 = vld [vmem:[%s15246_s23 + $0x14a0] sm:$0xf]  ;;  %v12006_v29 = vld [vmem:[%s15246_s23 + $0xff8] sm:$0xf] }
 0x783   : > { %v8960_v52 = vpop.f32.mrf.mxu2  ;;  %v8973_v53 = vpop.f32.mrf.mxu3 }
 0x784   : > { %v13807_v52 = vor.u32 %v14972_v45, %v13806_v27  ;;  %v13198_v53 = vld [vmem:[%s15246_s23 + $0x1950] sm:$0xf]  ;;  %v14372_v27 = vld [vmem:[%s15246_s23 + $0xd9c] sm:$0xf0]  ;;  %v14297_v45 = vld [vmem:[%s15246_s23 + $0xb4c] sm:$0xf] }
 0x785   : > { %v13199_v63 = vor.u32 %v14821_v13, %v13198_v53  ;;  %v10800_v53 = vld [vmem:[%s15246_s23 + $0x8e8] sm:$0xf0]  ;;  %v10806_v13 = vld [vmem:[%s15246_s23 + $0x698] sm:$0xf] }
 0x786   : > { %9081 = vmatpush.bf16.xpose.msrb.mxu0 %v13183_v16  ;;  %9094 = vmatpush.bf16.xpose.msrb.mxu1 %v13187_v39  ;;  %v1443_v16 = vld [vmem:[%s15246_s23 + $0x22b0] sm:$0xff]  ;;  %v1444_v39 = vld [vmem:[%s15246_s23 + $0x22b8] sm:$0xff] }
 0x787   : > { %9107 = vmatpush.bf16.xpose.msrb.mxu2 %v13191_v18  ;;  %9120 = vmatpush.bf16.xpose.msrb.mxu3 %v13195_v19  ;;  %v10182_v18 = vld [vmem:[%s15246_s23 + $0x1d0] sm:$0xf]  ;;  %v13994_v19 = vld [vmem:[%s15246_s23 + $0x1d4] sm:$0xf]  ;;  %v5141_v22 = vunpack.c.l.b16 %v1443_v16  ;;  %v5142_v24 = vunpack.c.h.b16 %v1443_v16  ;;  %v5143_v25 = vunpack.c.l.b16 %v1444_v39  ;;  %v5144_v30 = vunpack.c.h.b16 %v1444_v39 }
 0x788   : > { %v10183_v26 = vor.u32 %v14069_v44, %v10182_v18  ;;  %v10187_v31 = vor.u32 %v13994_v19, %v10184_v43  ;;  %v12603_v16 = vor.u32 %v14596_v7, %v12600_v8 }
 0x789   : > { %v6341_v33 = vpack.c.b16 %v5141_v22, %v5141_v22  ;;  %v11998_v22 = vld [vmem:[%s15246_s23 + $0xff0] sm:$0xf] }
 0x78e   : > { %9082 = vmatpush.bf16.xpose.msrb.mxu0 %v12583_v32  ;;  %9095 = vmatpush.bf16.xpose.msrb.mxu1 %v12587_v17  ;;  %v10191_v32 = vor.u32 %v14070_v47, %v10190_v21  ;;  %v6342_v17 = vpack.c.b16 %v5142_v24, %v5142_v24  ;;  %v329_v24 = vld [vmem:[%s15256_s19 + $0x78] sm:$0xff] }
 0x78f   : > { %9108 = vmatpush.bf16.xpose.msrb.mxu2 %v12591_v34  ;;  %9121 = vmatpush.bf16.xpose.msrb.mxu3 %v12595_v36  ;;  %v6343_v34 = vpack.c.b16 %v5143_v25, %v5143_v25  ;;  %v6344_v36 = vpack.c.b16 %v5144_v30, %v5144_v30  ;;  %v14521_v25 = vld [vmem:[%s15246_s23 + $0x1244] sm:$0xf0]  ;;  %v14522_v30 = vld [vmem:[%s15246_s23 + $0x124c] sm:$0xf0] }
 0x796   : > { %9083 = vmatpush.bf16.xpose.msrb.mxu0 %v11983_v10  ;;  %9096 = vmatpush.bf16.xpose.msrb.mxu1 %v11987_v49  ;;  %v13799_v10 = vor.u32 %v14971_v23, %v13798_v38  ;;  %v1607_v49 = vld [vmem:[#allocation1 + $0x3f] sm:$0xff]  ;;  %v14296_v23 = vld [vmem:[%s15246_s23 + $0xb44] sm:$0xf] }
 0x797   : > { %9109 = vmatpush.bf16.xpose.msrb.mxu2 %v11991_v9  ;;  %9122 = vmatpush.bf16.xpose.msrb.mxu3 %v11995_v14  ;;  %v13803_v9 = vor.u32 %v14896_v41, %v13800_v42  ;;  %v13811_v14 = vor.u32 %v14897_v51, %v13808_v48  ;;  %1609 = vst [vmem:[#allocation1] ss:$9 sm:$0xff] %v329_v24  ;;  %v14371_v38 = vld [vmem:[%s15246_s23 + $0xd94] sm:$0xf0]  ;;  %v11400_v41 = vld [vmem:[%s15246_s23 + $0xd98] sm:$0xf0] }
 0x798   : > { %v11406_v42 = vld [vmem:[%s15246_s23 + $0xb48] sm:$0xf]  ;;  %v11403_v48 = vor.u32 %v14296_v23, %v11400_v41  ;;  %v13216_v23 = vld [vmem:[%s15246_s23 + $0x1bb8] sm:$0xf0] }
 0x799   : > { %v14973_v24 = vld [vmem:[%s15246_s23 + $0x2064] sm:$0xf0] }
 0x79a   : > { %v13222_v41 = vld [vmem:[%s15246_s23 + $0x1968] sm:$0xf] }
 0x79e   : > { %9084 = vmatpush.bf16.xpose.msrb.mxu0 %v11383_v0  ;;  %9097 = vmatpush.bf16.xpose.msrb.mxu1 %v11387_v1  ;;  %v13203_v0 = vor.u32 %v14746_v55, %v13200_v56  ;;  %v13207_v1 = vor.u32 %v14822_v59, %v13206_v58  ;;  %v14222_v55 = vld [vmem:[%s15246_s23 + $0x8ec] sm:$0xf0]  ;;  %v14147_v56 = vld [vmem:[%s15246_s23 + $0x69c] sm:$0xf]  ;;  %v10808_v58 = vld [vmem:[%s15246_s23 + $0x8f0] sm:$0xf0] }
 0x79f   : > { %9110 = vmatpush.bf16.xpose.msrb.mxu2 %v11391_v2  ;;  %9123 = vmatpush.bf16.xpose.msrb.mxu3 %v11395_v3  ;;  %v13211_v3 = vor.u32 %v14747_v60, %v13208_v62  ;;  %v10807_v62 = vor.u32 %v14222_v55, %v10806_v13  ;;  %v14673_v13 = vld [vmem:[%s15246_s23 + $0x1704] sm:$0xf0]  ;;  %v14598_v55 = vld [vmem:[%s15246_s23 + $0x14b4] sm:$0xf] }
 0x7a6   : > { %9085 = vmatpush.bf16.xpose.msrb.mxu0 %v10783_v11  ;;  %9098 = vmatpush.bf16.xpose.msrb.mxu1 %v10787_v12  ;;  %v14672_v11 = vld [vmem:[%s15246_s23 + $0x16fc] sm:$0xf0]  ;;  %v14597_v12 = vld [vmem:[%s15246_s23 + $0x14ac] sm:$0xf] }
 0x7a7   : > { %9111 = vmatpush.bf16.xpose.msrb.mxu2 %v10791_v61  ;;  %9124 = vmatpush.bf16.xpose.msrb.mxu3 %v10795_v15  ;;  %v12608_v61 = vld [vmem:[%s15246_s23 + $0x1700] sm:$0xf0]  ;;  %v12599_v15 = vor.u32 %v14671_v54, %v12598_v6  ;;  %v12607_v39 = vor.u32 %v14672_v11, %v12606_v57  ;;  %v14072_v6 = vld [vmem:[%s15246_s23 + $0x43c] sm:$0xf0]  ;;  %v13997_v11 = vld [vmem:[%s15246_s23 + $0x1ec] sm:$0xf] }
 0x7a8   : > { %v12611_v44 = vor.u32 %v14597_v12, %v12608_v61  ;;  %v10208_v12 = vld [vmem:[%s15246_s23 + $0x440] sm:$0xf0] }
 0x7ae   : > { %9086 = vmatpush.bf16.xpose.msrb.mxu0 %v10183_v26  ;;  %9099 = vmatpush.bf16.xpose.msrb.mxu1 %v10187_v31  ;;  %v14446_v26 = vld [vmem:[%s15246_s23 + $0xff4] sm:$0xf]  ;;  %v14447_v31 = vld [vmem:[%s15246_s23 + $0xffc] sm:$0xf] }
 0x7af   : > { %9112 = vmatpush.bf16.xpose.msrb.mxu2 %v10191_v32  ;;  %9125 = vmatpush.bf16.xpose.msrb.mxu3 %v10195_v35  ;;  %v12008_v32 = vld [vmem:[%s15246_s23 + $0x1250] sm:$0xf0] }
 0x7b2   : > { %v8984_v2 = vpop.f32.mrf.mxu0  ;;  %v8997_v4 = vpop.f32.mrf.mxu1 }
 0x7b3   : > { %v8985_v50 = vadd.f32 %v8984_v2, %v17060_v40  ;;  %v10198_v2 = vld [vmem:[%s15246_s23 + $0x1e0] sm:$0xf] }
 0x7b5   : > { %9087 = vmatmul.bf16.vlgmr.msrb.gmra.mxu0 %v1604_v20  ;;  %9100 = vmatmul.bf16.vlgmr.msrb.gmra.mxu1 %v1605_v46  ;;  %v8998_v5 = vadd.f32 %v8997_v4, %v8985_v50  ;;  %v11408_v46 = vld [vmem:[%s15246_s23 + $0xda0] sm:$0xf0]  ;;  %v10200_v4 = vld [vmem:[%s15246_s23 + $0x438] sm:$0xf0] }
 0x7b6   : > { %9131 = vmatpush.bf16.xpose.msra.mxu0 %v6341_v33  ;;  %9144 = vmatpush.bf16.xpose.msra.mxu1 %v6342_v17  ;;  %v11999_v33 = vor.u32 %v14521_v25, %v11998_v22  ;;  %v12003_v17 = vor.u32 %v14446_v26, %v12000_v28  ;;  %v13996_v50 = vld [vmem:[%s15246_s23 + $0x1e4] sm:$0xf]  ;;  %v13814_v22 = vld [vmem:[%s15246_s23 + $0x1e10] sm:$0xf]  ;;  %v14898_v25 = vld [vmem:[%s15246_s23 + $0x1e14] sm:$0xf] }
 0x7b7   : > { %9157 = vmatpush.bf16.xpose.msra.mxu2 %v6343_v34  ;;  %9170 = vmatpush.bf16.xpose.msra.mxu3 %v6344_v36  ;;  %v12007_v34 = vor.u32 %v14522_v30, %v12006_v29  ;;  %v12011_v36 = vor.u32 %v14447_v31, %v12008_v32  ;;  %v13816_v26 = vld [vmem:[%s15246_s23 + $0x2068] sm:$0xf0]  ;;  %v13822_v28 = vld [vmem:[%s15246_s23 + $0x1e18] sm:$0xf]  ;;  %v14974_v29 = vld [vmem:[%s15246_s23 + $0x206c] sm:$0xf0] }
 0x7b8   : > { %9113 = vmatmul.bf16.vlgmr.msrb.gmra.mxu2 %v1606_v37  ;;  %9126 = vmatmul.bf16.vlgmr.msrb.gmra.mxu3 %v1607_v49  ;;  %v11398_v37 = vld [vmem:[%s15246_s23 + $0xb40] sm:$0xf]  ;;  %v11411_v49 = vor.u32 %v14297_v45, %v11408_v46  ;;  %v14899_v31 = vld [vmem:[%s15246_s23 + $0x1e1c] sm:$0xf]  ;;  %v13824_v32 = vld [vmem:[%s15246_s23 + $0x2070] sm:$0xf0] }
 0x7b9   : > { %v11399_v51 = vor.u32 %v14371_v38, %v11398_v37  ;;  %v1611_v30 = vld [vmem:[#allocation1 + $0x9] sm:$0xff] }
 0x7ba   : > { %v8986_v19 = vpop.f32.mrf.mxu0  ;;  %v8999_v21 = vpop.f32.mrf.mxu1  ;;  %v14823_v37 = vld [vmem:[%s15246_s23 + $0x1bb4] sm:$0xf0]  ;;  %v14748_v38 = vld [vmem:[%s15246_s23 + $0x1964] sm:$0xf] }
 0x7bb   : > { %v9010_v40 = vpop.f32.mrf.mxu2  ;;  %v9023_v43 = vpop.f32.mrf.mxu3  ;;  %v1612_v21 = vld [vmem:[#allocation1 + $0x12] sm:$0xff] }
 0x7bc   : > { %v9011_v18 = vadd.f32 %v9010_v40, %v8998_v5  ;;  %v10206_v5 = vld [vmem:[%s15246_s23 + $0x1e8] sm:$0xf]  ;;  %v13224_v45 = vld [vmem:[%s15246_s23 + $0x1bc0] sm:$0xf0] }
 0x7bd   : > { %v10207_v40 = vor.u32 %v14072_v6, %v10206_v5 }
 0x7be   : > { %9132 = vmatpush.bf16.xpose.msra.mxu0 %v13799_v10  ;;  %9145 = vmatpush.bf16.xpose.msra.mxu1 %v13803_v9  ;;  %v17121_v47 = vadd.f32 %v9023_v43, %v9011_v18  ;;  %v11407_v10 = vor.u32 %v14372_v27, %v11406_v42  ;;  %v10798_v9 = vld [vmem:[%s15246_s23 + $0x690] sm:$0xf]  ;;  %v14824_v42 = vld [vmem:[%s15246_s23 + $0x1bbc] sm:$0xf0]  ;;  %v14749_v27 = vld [vmem:[%s15246_s23 + $0x196c] sm:$0xf] }
 0x7bf   : > { %9158 = vmatpush.bf16.xpose.msra.mxu2 %v13807_v52  ;;  %9171 = vmatpush.bf16.xpose.msra.mxu3 %v13811_v14  ;;  %v14221_v52 = vld [vmem:[%s15246_s23 + $0x8e4] sm:$0xf0]  ;;  %v14146_v14 = vld [vmem:[%s15246_s23 + $0x694] sm:$0xf] }
 0x7c0   : > { %v10799_v59 = vor.u32 %v14221_v52, %v10798_v9  ;;  %v10803_v60 = vor.u32 %v14146_v14, %v10800_v53  ;;  %v1610_v43 = vld [vmem:[#allocation1] sm:$0xff] }
 0x7c1   : > { %v12614_v53 = vld [vmem:[%s15246_s23 + $0x14b0] sm:$0xf] }
 0x7c3   : > { %v9012_v35 = vpop.f32.mrf.mxu2  ;;  %v9025_v20 = vpop.f32.mrf.mxu3 }
 0x7c4   : > { %v13823_v35 = vor.u32 %v14974_v29, %v13822_v28  ;;  %v13214_v20 = vld [vmem:[%s15246_s23 + $0x1960] sm:$0xf]  ;;  %v14299_v28 = vld [vmem:[%s15246_s23 + $0xb5c] sm:$0xf]  ;;  %v11424_v29 = vld [vmem:[%s15246_s23 + $0xdb0] sm:$0xf0] }
 0x7c5   : > { %v13215_v46 = vor.u32 %v14823_v37, %v13214_v20  ;;  %v10822_v20 = vld [vmem:[%s15246_s23 + $0x6a8] sm:$0xf]  ;;  %v14224_v37 = vld [vmem:[%s15246_s23 + $0x8fc] sm:$0xf0] }
 0x7c6   : > { %9133 = vmatpush.bf16.xpose.msra.mxu0 %v13199_v63  ;;  %9146 = vmatpush.bf16.xpose.msra.mxu1 %v13203_v0  ;;  %v10811_v63 = vor.u32 %v14147_v56, %v10808_v58  ;;  %v1445_v0 = vld [vmem:[%s15246_s23 + $0x22c0] sm:$0xff]  ;;  %v12616_v56 = vld [vmem:[%s15246_s23 + $0x1708] sm:$0xf0]  ;;  %v12622_v58 = vld [vmem:[%s15246_s23 + $0x14b8] sm:$0xf] }
 0x7c7   : > { %9159 = vmatpush.bf16.xpose.msra.mxu2 %v13207_v1  ;;  %9172 = vmatpush.bf16.xpose.msra.mxu3 %v13211_v3  ;;  %v1446_v1 = vld [vmem:[%s15246_s23 + $0x22c8] sm:$0xff]  ;;  %v14071_v3 = vld [vmem:[%s15246_s23 + $0x434] sm:$0xf0]  ;;  %v5145_v54 = vunpack.c.l.b16 %v1445_v0  ;;  %v5146_v7 = vunpack.c.h.b16 %v1445_v0 }
 0x7c8   : > { %v5147_v8 = vunpack.c.l.b16 %v1446_v1  ;;  %v10199_v57 = vor.u32 %v14071_v3, %v10198_v2  ;;  %v5148_v61 = vunpack.c.h.b16 %v1446_v1 }
 0x7ca   : > { %v6347_v18 = vpack.c.b16 %v5147_v8, %v5147_v8  ;;  %v6348_v19 = vpack.c.b16 %v5148_v61, %v5148_v61  ;;  %v14448_v8 = vld [vmem:[%s15246_s23 + $0x1004] sm:$0xf]  ;;  %v14449_v61 = vld [vmem:[%s15246_s23 + $0x100c] sm:$0xf] }
 0x7ce   : > { %9134 = vmatpush.bf16.xpose.msra.mxu0 %v12599_v15  ;;  %9147 = vmatpush.bf16.xpose.msra.mxu1 %v12603_v16  ;;  %v10203_v15 = vor.u32 %v13996_v50, %v10200_v4  ;;  %v6345_v16 = vpack.c.b16 %v5145_v54, %v5145_v54  ;;  %v12014_v54 = vld [vmem:[%s15246_s23 + $0x1000] sm:$0xf] }
 0x7cf   : > { %9160 = vmatpush.bf16.xpose.msra.mxu2 %v12607_v39  ;;  %9173 = vmatpush.bf16.xpose.msra.mxu3 %v12611_v44  ;;  %v6346_v39 = vpack.c.b16 %v5146_v7, %v5146_v7  ;;  %v10211_v44 = vor.u32 %v13997_v11, %v10208_v12  ;;  %v14523_v7 = vld [vmem:[%s15246_s23 + $0x1254] sm:$0xf0]  ;;  %v12022_v11 = vld [vmem:[%s15246_s23 + $0x1008] sm:$0xf]  ;;  %v14524_v12 = vld [vmem:[%s15246_s23 + $0x125c] sm:$0xf0] }
 0x7d6   : > { %9135 = vmatpush.bf16.xpose.msra.mxu0 %v11999_v33  ;;  %9148 = vmatpush.bf16.xpose.msra.mxu1 %v12003_v17  ;;  %v13815_v33 = vor.u32 %v14973_v24, %v13814_v22  ;;  %v1613_v17 = vld [vmem:[#allocation1 + $0x1b] sm:$0xff] }
 0x7d7   : > { %9161 = vmatpush.bf16.xpose.msra.mxu2 %v12007_v34  ;;  %9174 = vmatpush.bf16.xpose.msra.mxu3 %v12011_v36  ;;  %v13819_v34 = vor.u32 %v14898_v25, %v13816_v26  ;;  %v13827_v36 = vor.u32 %v14899_v31, %v13824_v32  ;;  %v14298_v22 = vld [vmem:[%s15246_s23 + $0xb54] sm:$0xf]  ;;  %v11416_v24 = vld [vmem:[%s15246_s23 + $0xda8] sm:$0xf0]  ;;  %v11422_v25 = vld [vmem:[%s15246_s23 + $0xb58] sm:$0xf] }
 0x7d8   : > { %v14374_v26 = vld [vmem:[%s15246_s23 + $0xdac] sm:$0xf0]  ;;  %v11419_v31 = vor.u32 %v14298_v22, %v11416_v24  ;;  %v13232_v22 = vld [vmem:[%s15246_s23 + $0x1bc8] sm:$0xf0]  ;;  %v13238_v24 = vld [vmem:[%s15246_s23 + $0x1978] sm:$0xf] }
 0x7d9   : > { %v11423_v32 = vor.u32 %v14374_v26, %v11422_v25  ;;  %v14826_v25 = vld [vmem:[%s15246_s23 + $0x1bcc] sm:$0xf0]  ;;  %v14751_v26 = vld [vmem:[%s15246_s23 + $0x197c] sm:$0xf] }
 0x7de   : > { %9136 = vmatpush.bf16.xpose.msra.mxu0 %v11399_v51  ;;  %9149 = vmatpush.bf16.xpose.msra.mxu1 %v11403_v48  ;;  %v13219_v51 = vor.u32 %v14748_v38, %v13216_v23  ;;  %v13223_v48 = vor.u32 %v14824_v42, %v13222_v41  ;;  %v14149_v38 = vld [vmem:[%s15246_s23 + $0x6ac] sm:$0xf]  ;;  %v10824_v23 = vld [vmem:[%s15246_s23 + $0x900] sm:$0xf0] }
 0x7df   : > { %9162 = vmatpush.bf16.xpose.msra.mxu2 %v11407_v10  ;;  %9175 = vmatpush.bf16.xpose.msra.mxu3 %v11411_v49  ;;  %v13227_v49 = vor.u32 %v14749_v27, %v13224_v45  ;;  %v10823_v27 = vor.u32 %v14224_v37, %v10822_v20  ;;  %v10827_v45 = vor.u32 %v14149_v38, %v10824_v23  ;;  %v14675_v20 = vld [vmem:[%s15246_s23 + $0x1714] sm:$0xf0]  ;;  %v14600_v37 = vld [vmem:[%s15246_s23 + $0x14c4] sm:$0xf]  ;;  %v12632_v38 = vld [vmem:[%s15246_s23 + $0x1718] sm:$0xf0] }
 0x7e0   : > { %v12638_v23 = vld [vmem:[%s15246_s23 + $0x14c8] sm:$0xf] }
 0x7e6   : > { %9137 = vmatpush.bf16.xpose.msra.mxu0 %v10799_v59  ;;  %9150 = vmatpush.bf16.xpose.msra.mxu1 %v10803_v60  ;;  %v14674_v59 = vld [vmem:[%s15246_s23 + $0x170c] sm:$0xf0]  ;;  %v14599_v60 = vld [vmem:[%s15246_s23 + $0x14bc] sm:$0xf] }
 0x7e7   : > { %9163 = vmatpush.bf16.xpose.msra.mxu2 %v10807_v62  ;;  %9176 = vmatpush.bf16.xpose.msra.mxu3 %v10811_v63  ;;  %v12624_v62 = vld [vmem:[%s15246_s23 + $0x1710] sm:$0xf0]  ;;  %v12615_v63 = vor.u32 %v14673_v13, %v12614_v53  ;;  %v12623_v1 = vor.u32 %v14674_v59, %v12622_v58  ;;  %v13999_v58 = vld [vmem:[%s15246_s23 + $0x1fc] sm:$0xf] }
 0x7e8   : > { %v12627_v3 = vor.u32 %v14599_v60, %v12624_v62  ;;  %v10224_v59 = vld [vmem:[%s15246_s23 + $0x450] sm:$0xf0] }
 0x7ee   : > { %9138 = vmatpush.bf16.xpose.msra.mxu0 %v10199_v57  ;;  %9151 = vmatpush.bf16.xpose.msra.mxu1 %v10203_v15  ;;  %v12016_v57 = vld [vmem:[%s15246_s23 + $0x1258] sm:$0xf0]  ;;  %v12024_v15 = vld [vmem:[%s15246_s23 + $0x1260] sm:$0xf0] }
 0x7ef   : > { %9164 = vmatpush.bf16.xpose.msra.mxu2 %v10207_v40  ;;  %9177 = vmatpush.bf16.xpose.msra.mxu3 %v10211_v44  ;;  %v12015_v40 = vor.u32 %v14523_v7, %v12014_v54  ;;  %v12027_v44 = vor.u32 %v14449_v61, %v12024_v15  ;;  %v14975_v54 = vld [vmem:[%s15246_s23 + $0x2074] sm:$0xf0]  ;;  %v14900_v7 = vld [vmem:[%s15246_s23 + $0x1e24] sm:$0xf]  ;;  %v14901_v61 = vld [vmem:[%s15246_s23 + $0x1e2c] sm:$0xf] }
 0x7f0   : > { %v13840_v15 = vld [vmem:[%s15246_s23 + $0x2080] sm:$0xf0] }
 0x7f2   : > { %v9036_v10 = vpop.f32.mrf.mxu0  ;;  %v9049_v52 = vpop.f32.mrf.mxu1 }
 0x7f3   : > { %v9037_v9 = vadd.f32 %v9036_v10, %v17121_v47  ;;  %v12619_v47 = vor.u32 %v14598_v55, %v12616_v56  ;;  %v14073_v10 = vld [vmem:[%s15246_s23 + $0x444] sm:$0xf0] }
 0x7f5   : > { %9139 = vmatmul.bf16.vlgmr.msra.gmra.mxu0 %v1610_v43  ;;  %9152 = vmatmul.bf16.vlgmr.msra.gmra.mxu1 %v1611_v30  ;;  %v9050_v14 = vadd.f32 %v9049_v52, %v9037_v9  ;;  %v11414_v43 = vld [vmem:[%s15246_s23 + $0xb50] sm:$0xf]  ;;  %v10216_v9 = vld [vmem:[%s15246_s23 + $0x448] sm:$0xf0]  ;;  %v10222_v52 = vld [vmem:[%s15246_s23 + $0x1f8] sm:$0xf] }
 0x7f6   : > { %9183 = vmatpush.bf16.xpose.msrb.mxu0 %v6345_v16  ;;  %9196 = vmatpush.bf16.xpose.msrb.mxu1 %v6346_v39  ;;  %v12019_v16 = vor.u32 %v14448_v8, %v12016_v57  ;;  %v12023_v39 = vor.u32 %v14524_v12, %v12022_v11  ;;  %v13832_v8 = vld [vmem:[%s15246_s23 + $0x2078] sm:$0xf0]  ;;  %v13838_v57 = vld [vmem:[%s15246_s23 + $0x1e28] sm:$0xf]  ;;  %v14976_v11 = vld [vmem:[%s15246_s23 + $0x207c] sm:$0xf0] }
 0x7f7   : > { %9209 = vmatpush.bf16.xpose.msrb.mxu2 %v6347_v18  ;;  %9222 = vmatpush.bf16.xpose.msrb.mxu3 %v6348_v19  ;;  %v1615_v12 = vld [vmem:[#allocation1 + $0x2d] sm:$0xff] }
 0x7f8   : > { %9165 = vmatmul.bf16.vlgmr.msra.gmra.mxu2 %v1612_v21  ;;  %9178 = vmatmul.bf16.vlgmr.msra.gmra.mxu3 %v1613_v17  ;;  %v14373_v21 = vld [vmem:[%s15246_s23 + $0xda4] sm:$0xf0]  ;;  %v10814_v17 = vld [vmem:[%s15246_s23 + $0x6a0] sm:$0xf] }
 0x7f9   : > { %v11415_v30 = vor.u32 %v14373_v21, %v11414_v43  ;;  %v14825_v43 = vld [vmem:[%s15246_s23 + $0x1bc4] sm:$0xf0]  ;;  %v14750_v21 = vld [vmem:[%s15246_s23 + $0x1974] sm:$0xf] }
 0x7fa   : > { %v9038_v50 = vpop.f32.mrf.mxu0  ;;  %v9051_v5 = vpop.f32.mrf.mxu1 }
 0x7fb   : > { %v9062_v0 = vpop.f32.mrf.mxu2  ;;  %v9075_v4 = vpop.f32.mrf.mxu3  ;;  %v1614_v50 = vld [vmem:[#allocation1 + $0x24] sm:$0xff] }
 0x7fc   : > { %v9063_v2 = vadd.f32 %v9062_v0, %v9050_v14  ;;  %v14074_v14 = vld [vmem:[%s15246_s23 + $0x44c] sm:$0xf0]  ;;  %v13830_v5 = vld [vmem:[%s15246_s23 + $0x1e20] sm:$0xf] }
 0x7fe   : > { %9184 = vmatpush.bf16.xpose.msrb.mxu0 %v13815_v33  ;;  %9197 = vmatpush.bf16.xpose.msrb.mxu1 %v13819_v34  ;;  %v17183_v6 = vadd.f32 %v9075_v4, %v9063_v2  ;;  %v11427_v33 = vor.u32 %v14299_v28, %v11424_v29  ;;  %v14223_v34 = vld [vmem:[%s15246_s23 + $0x8f4] sm:$0xf0]  ;;  %v10227_v2 = vor.u32 %v13999_v58, %v10224_v59  ;;  %v1616_v4 = vld [vmem:[#allocation1 + $0x36] sm:$0xff]  ;;  %v13240_v28 = vld [vmem:[%s15246_s23 + $0x1bd0] sm:$0xf0] }
 0x7ff   : > { %9210 = vmatpush.bf16.xpose.msrb.mxu2 %v13823_v35  ;;  %9223 = vmatpush.bf16.xpose.msrb.mxu3 %v13827_v36  ;;  %v14148_v35 = vld [vmem:[%s15246_s23 + $0x6a4] sm:$0xf]  ;;  %v10816_v36 = vld [vmem:[%s15246_s23 + $0x8f8] sm:$0xf0]  ;;  %v10815_v41 = vor.u32 %v14223_v34, %v10814_v17  ;;  %v12032_v58 = vld [vmem:[%s15246_s23 + $0x1268] sm:$0xf0] }
 0x800   : > { %v10819_v42 = vor.u32 %v14148_v35, %v10816_v36  ;;  %v12630_v36 = vld [vmem:[%s15246_s23 + $0x14c0] sm:$0xf]  ;;  %v12038_v59 = vld [vmem:[%s15246_s23 + $0x1018] sm:$0xf] }
 0x803   : > { %v9064_v18 = vpop.f32.mrf.mxu2  ;;  %v9077_v19 = vpop.f32.mrf.mxu3 }
 0x804   : > { %v13839_v18 = vor.u32 %v14976_v11, %v13838_v57  ;;  %v13230_v19 = vld [vmem:[%s15246_s23 + $0x1970] sm:$0xf]  ;;  %v14376_v57 = vld [vmem:[%s15246_s23 + $0xdbc] sm:$0xf0]  ;;  %v14301_v11 = vld [vmem:[%s15246_s23 + $0xb6c] sm:$0xf] }
 0x805   : > { %v13231_v29 = vor.u32 %v14825_v43, %v13230_v19  ;;  %v10832_v19 = vld [vmem:[%s15246_s23 + $0x908] sm:$0xf0]  ;;  %v10838_v43 = vld [vmem:[%s15246_s23 + $0x6b8] sm:$0xf] }
 0x806   : > { %9185 = vmatpush.bf16.xpose.msrb.mxu0 %v13215_v46  ;;  %9198 = vmatpush.bf16.xpose.msrb.mxu1 %v13219_v51  ;;  %v1447_v46 = vld [vmem:[%s15246_s23 + $0x22d0] sm:$0xff]  ;;  %v1448_v51 = vld [vmem:[%s15246_s23 + $0x22d8] sm:$0xff] }
 0x807   : > { %9211 = vmatpush.bf16.xpose.msrb.mxu2 %v13223_v48  ;;  %9224 = vmatpush.bf16.xpose.msrb.mxu3 %v13227_v49  ;;  %v10214_v48 = vld [vmem:[%s15246_s23 + $0x1f0] sm:$0xf]  ;;  %v13998_v49 = vld [vmem:[%s15246_s23 + $0x1f4] sm:$0xf]  ;;  %v5149_v53 = vunpack.c.l.b16 %v1447_v46  ;;  %v5150_v13 = vunpack.c.h.b16 %v1447_v46  ;;  %v5151_v55 = vunpack.c.l.b16 %v1448_v51  ;;  %v5152_v60 = vunpack.c.h.b16 %v1448_v51 }
 0x808   : > { %v10215_v56 = vor.u32 %v14073_v10, %v10214_v48  ;;  %v10219_v62 = vor.u32 %v13998_v49, %v10216_v9  ;;  %v12635_v46 = vor.u32 %v14600_v37, %v12632_v38 }
 0x809   : > { %v6349_v0 = vpack.c.b16 %v5149_v53, %v5149_v53  ;;  %v12030_v53 = vld [vmem:[%s15246_s23 + $0x1010] sm:$0xf] }
 0x80e   : > { %9186 = vmatpush.bf16.xpose.msrb.mxu0 %v12615_v63  ;;  %9199 = vmatpush.bf16.xpose.msrb.mxu1 %v12619_v47  ;;  %v10223_v63 = vor.u32 %v14074_v14, %v10222_v52  ;;  %v6350_v47 = vpack.c.b16 %v5150_v13, %v5150_v13  ;;  %v330_v13 = vld [vmem:[%s15256_s19 + $0x80] sm:$0xff] }
 0x80f   : > { %9212 = vmatpush.bf16.xpose.msrb.mxu2 %v12623_v1  ;;  %9225 = vmatpush.bf16.xpose.msrb.mxu3 %v12627_v3  ;;  %v6351_v1 = vpack.c.b16 %v5151_v55, %v5151_v55  ;;  %v6352_v3 = vpack.c.b16 %v5152_v60, %v5152_v60  ;;  %v14525_v55 = vld [vmem:[%s15246_s23 + $0x1264] sm:$0xf0]  ;;  %v14526_v60 = vld [vmem:[%s15246_s23 + $0x126c] sm:$0xf0] }
 0x816   : > { %9187 = vmatpush.bf16.xpose.msrb.mxu0 %v12015_v40  ;;  %9200 = vmatpush.bf16.xpose.msrb.mxu1 %v12019_v16  ;;  %v13831_v40 = vor.u32 %v14975_v54, %v13830_v5  ;;  %v1617_v16 = vld [vmem:[#allocation1 + $0x3f] sm:$0xff]  ;;  %v14300_v54 = vld [vmem:[%s15246_s23 + $0xb64] sm:$0xf] }
 0x817   : > { %9213 = vmatpush.bf16.xpose.msrb.mxu2 %v12023_v39  ;;  %9226 = vmatpush.bf16.xpose.msrb.mxu3 %v12027_v44  ;;  %v13835_v39 = vor.u32 %v14900_v7, %v13832_v8  ;;  %v13843_v44 = vor.u32 %v14901_v61, %v13840_v15  ;;  %1619 = vst [vmem:[#allocation1] ss:$9 sm:$0xff] %v330_v13  ;;  %v14375_v5 = vld [vmem:[%s15246_s23 + $0xdb4] sm:$0xf0]  ;;  %v11432_v7 = vld [vmem:[%s15246_s23 + $0xdb8] sm:$0xf0] }
 0x818   : > { %v11438_v8 = vld [vmem:[%s15246_s23 + $0xb68] sm:$0xf]  ;;  %v11435_v15 = vor.u32 %v14300_v54, %v11432_v7  ;;  %v13248_v54 = vld [vmem:[%s15246_s23 + $0x1bd8] sm:$0xf0] }
 0x819   : > { %v14977_v13 = vld [vmem:[%s15246_s23 + $0x2084] sm:$0xf0] }
 0x81a   : > { %v13254_v7 = vld [vmem:[%s15246_s23 + $0x1988] sm:$0xf] }
 0x81e   : > { %9188 = vmatpush.bf16.xpose.msrb.mxu0 %v11415_v30  ;;  %9201 = vmatpush.bf16.xpose.msrb.mxu1 %v11419_v31  ;;  %v13235_v30 = vor.u32 %v14750_v21, %v13232_v22  ;;  %v13239_v31 = vor.u32 %v14826_v25, %v13238_v24  ;;  %v14226_v21 = vld [vmem:[%s15246_s23 + $0x90c] sm:$0xf0]  ;;  %v14151_v22 = vld [vmem:[%s15246_s23 + $0x6bc] sm:$0xf]  ;;  %v10840_v24 = vld [vmem:[%s15246_s23 + $0x910] sm:$0xf0] }
 0x81f   : > { %9214 = vmatpush.bf16.xpose.msrb.mxu2 %v11423_v32  ;;  %9227 = vmatpush.bf16.xpose.msrb.mxu3 %v11427_v33  ;;  %v13243_v33 = vor.u32 %v14751_v26, %v13240_v28  ;;  %v10839_v28 = vor.u32 %v14226_v21, %v10838_v43  ;;  %v14677_v43 = vld [vmem:[%s15246_s23 + $0x1724] sm:$0xf0]  ;;  %v14602_v21 = vld [vmem:[%s15246_s23 + $0x14d4] sm:$0xf] }
 0x826   : > { %9189 = vmatpush.bf16.xpose.msrb.mxu0 %v10815_v41  ;;  %9202 = vmatpush.bf16.xpose.msrb.mxu1 %v10819_v42  ;;  %v14676_v41 = vld [vmem:[%s15246_s23 + $0x171c] sm:$0xf0]  ;;  %v14601_v42 = vld [vmem:[%s15246_s23 + $0x14cc] sm:$0xf] }
 0x827   : > { %9215 = vmatpush.bf16.xpose.msrb.mxu2 %v10823_v27  ;;  %9228 = vmatpush.bf16.xpose.msrb.mxu3 %v10827_v45  ;;  %v12640_v27 = vld [vmem:[%s15246_s23 + $0x1720] sm:$0xf0]  ;;  %v12631_v45 = vor.u32 %v14675_v20, %v12630_v36  ;;  %v12639_v51 = vor.u32 %v14676_v41, %v12638_v23  ;;  %v14076_v36 = vld [vmem:[%s15246_s23 + $0x45c] sm:$0xf0]  ;;  %v14001_v41 = vld [vmem:[%s15246_s23 + $0x20c] sm:$0xf] }
 0x828   : > { %v12643_v10 = vor.u32 %v14601_v42, %v12640_v27  ;;  %v10240_v42 = vld [vmem:[%s15246_s23 + $0x460] sm:$0xf0] }
 0x82e   : > { %9190 = vmatpush.bf16.xpose.msrb.mxu0 %v10215_v56  ;;  %9203 = vmatpush.bf16.xpose.msrb.mxu1 %v10219_v62  ;;  %v14450_v56 = vld [vmem:[%s15246_s23 + $0x1014] sm:$0xf]  ;;  %v14451_v62 = vld [vmem:[%s15246_s23 + $0x101c] sm:$0xf] }
 0x82f   : > { %9216 = vmatpush.bf16.xpose.msrb.mxu2 %v10223_v63  ;;  %9229 = vmatpush.bf16.xpose.msrb.mxu3 %v10227_v2  ;;  %v12040_v63 = vld [vmem:[%s15246_s23 + $0x1270] sm:$0xf0] }
 0x832   : > { %v9088_v32 = vpop.f32.mrf.mxu0  ;;  %v9101_v34 = vpop.f32.mrf.mxu1 }
 0x833   : > { %v9089_v17 = vadd.f32 %v9088_v32, %v17183_v6  ;;  %v10230_v32 = vld [vmem:[%s15246_s23 + $0x200] sm:$0xf] }
 0x835   : > { %9191 = vmatmul.bf16.vlgmr.msrb.gmra.mxu0 %v1614_v50  ;;  %9204 = vmatmul.bf16.vlgmr.msrb.gmra.mxu1 %v1615_v12  ;;  %v9102_v35 = vadd.f32 %v9101_v34, %v9089_v17  ;;  %v11440_v12 = vld [vmem:[%s15246_s23 + $0xdc0] sm:$0xf0]  ;;  %v10232_v34 = vld [vmem:[%s15246_s23 + $0x458] sm:$0xf0] }
 0x836   : > { %9235 = vmatpush.bf16.xpose.msra.mxu0 %v6349_v0  ;;  %9248 = vmatpush.bf16.xpose.msra.mxu1 %v6350_v47  ;;  %v12031_v0 = vor.u32 %v14525_v55, %v12030_v53  ;;  %v12035_v47 = vor.u32 %v14450_v56, %v12032_v58  ;;  %v14000_v17 = vld [vmem:[%s15246_s23 + $0x204] sm:$0xf]  ;;  %v13846_v53 = vld [vmem:[%s15246_s23 + $0x1e30] sm:$0xf]  ;;  %v14902_v55 = vld [vmem:[%s15246_s23 + $0x1e34] sm:$0xf] }
 0x837   : > { %9261 = vmatpush.bf16.xpose.msra.mxu2 %v6351_v1  ;;  %9274 = vmatpush.bf16.xpose.msra.mxu3 %v6352_v3  ;;  %v12039_v1 = vor.u32 %v14526_v60, %v12038_v59  ;;  %v12043_v3 = vor.u32 %v14451_v62, %v12040_v63  ;;  %v13848_v56 = vld [vmem:[%s15246_s23 + $0x2088] sm:$0xf0]  ;;  %v13854_v58 = vld [vmem:[%s15246_s23 + $0x1e38] sm:$0xf]  ;;  %v14978_v59 = vld [vmem:[%s15246_s23 + $0x208c] sm:$0xf0] }
 0x838   : > { %9217 = vmatmul.bf16.vlgmr.msrb.gmra.mxu2 %v1616_v4  ;;  %9230 = vmatmul.bf16.vlgmr.msrb.gmra.mxu3 %v1617_v16  ;;  %v11430_v4 = vld [vmem:[%s15246_s23 + $0xb60] sm:$0xf]  ;;  %v11443_v16 = vor.u32 %v14301_v11, %v11440_v12  ;;  %v14903_v62 = vld [vmem:[%s15246_s23 + $0x1e3c] sm:$0xf]  ;;  %v13856_v63 = vld [vmem:[%s15246_s23 + $0x2090] sm:$0xf0] }
 0x839   : > { %v11431_v61 = vor.u32 %v14375_v5, %v11430_v4  ;;  %v1621_v60 = vld [vmem:[#allocation1 + $0x9] sm:$0xff] }
 0x83a   : > { %v9090_v49 = vpop.f32.mrf.mxu0  ;;  %v9103_v52 = vpop.f32.mrf.mxu1  ;;  %v14827_v4 = vld [vmem:[%s15246_s23 + $0x1bd4] sm:$0xf0]  ;;  %v14752_v5 = vld [vmem:[%s15246_s23 + $0x1984] sm:$0xf] }
 0x83b   : > { %v9114_v6 = vpop.f32.mrf.mxu2  ;;  %v9127_v9 = vpop.f32.mrf.mxu3  ;;  %v1622_v52 = vld [vmem:[#allocation1 + $0x12] sm:$0xff] }
 0x83c   : > { %v9115_v48 = vadd.f32 %v9114_v6, %v9102_v35  ;;  %v10238_v35 = vld [vmem:[%s15246_s23 + $0x208] sm:$0xf]  ;;  %v13256_v11 = vld [vmem:[%s15246_s23 + $0x1be0] sm:$0xf0] }
 0x83d   : > { %v10239_v6 = vor.u32 %v14076_v36, %v10238_v35 }
 0x83e   : > { %9236 = vmatpush.bf16.xpose.msra.mxu0 %v13831_v40  ;;  %9249 = vmatpush.bf16.xpose.msra.mxu1 %v13835_v39  ;;  %v17244_v14 = vadd.f32 %v9127_v9, %v9115_v48  ;;  %v11439_v40 = vor.u32 %v14376_v57, %v11438_v8  ;;  %v10830_v39 = vld [vmem:[%s15246_s23 + $0x6b0] sm:$0xf]  ;;  %v14828_v8 = vld [vmem:[%s15246_s23 + $0x1bdc] sm:$0xf0]  ;;  %v14753_v57 = vld [vmem:[%s15246_s23 + $0x198c] sm:$0xf] }
 0x83f   : > { %9262 = vmatpush.bf16.xpose.msra.mxu2 %v13839_v18  ;;  %9275 = vmatpush.bf16.xpose.msra.mxu3 %v13843_v44  ;;  %v14225_v18 = vld [vmem:[%s15246_s23 + $0x904] sm:$0xf0]  ;;  %v14150_v44 = vld [vmem:[%s15246_s23 + $0x6b4] sm:$0xf] }
 0x840   : > { %v10831_v25 = vor.u32 %v14225_v18, %v10830_v39  ;;  %v10835_v26 = vor.u32 %v14150_v44, %v10832_v19  ;;  %v1620_v9 = vld [vmem:[#allocation1] sm:$0xff] }
 0x841   : > { %v12646_v19 = vld [vmem:[%s15246_s23 + $0x14d0] sm:$0xf] }
 0x843   : > { %v9116_v2 = vpop.f32.mrf.mxu2  ;;  %v9129_v50 = vpop.f32.mrf.mxu3 }
 0x844   : > { %v13855_v2 = vor.u32 %v14978_v59, %v13854_v58  ;;  %v13246_v50 = vld [vmem:[%s15246_s23 + $0x1980] sm:$0xf]  ;;  %v14303_v58 = vld [vmem:[%s15246_s23 + $0xb7c] sm:$0xf]  ;;  %v11456_v59 = vld [vmem:[%s15246_s23 + $0xdd0] sm:$0xf0] }
 0x845   : > { %v13247_v12 = vor.u32 %v14827_v4, %v13246_v50  ;;  %v10854_v50 = vld [vmem:[%s15246_s23 + $0x6c8] sm:$0xf]  ;;  %v14228_v4 = vld [vmem:[%s15246_s23 + $0x91c] sm:$0xf0] }
 0x846   : > { %9237 = vmatpush.bf16.xpose.msra.mxu0 %v13231_v29  ;;  %9250 = vmatpush.bf16.xpose.msra.mxu1 %v13235_v30  ;;  %v10843_v29 = vor.u32 %v14151_v22, %v10840_v24  ;;  %v1449_v30 = vld [vmem:[%s15246_s23 + $0x22e0] sm:$0xff]  ;;  %v12648_v22 = vld [vmem:[%s15246_s23 + $0x1728] sm:$0xf0]  ;;  %v12654_v24 = vld [vmem:[%s15246_s23 + $0x14d8] sm:$0xf] }
 0x847   : > { %9263 = vmatpush.bf16.xpose.msra.mxu2 %v13239_v31  ;;  %9276 = vmatpush.bf16.xpose.msra.mxu3 %v13243_v33  ;;  %v1450_v31 = vld [vmem:[%s15246_s23 + $0x22e8] sm:$0xff]  ;;  %v14075_v33 = vld [vmem:[%s15246_s23 + $0x454] sm:$0xf0]  ;;  %v5153_v20 = vunpack.c.l.b16 %v1449_v30  ;;  %v5154_v37 = vunpack.c.h.b16 %v1449_v30 }
 0x848   : > { %v5155_v38 = vunpack.c.l.b16 %v1450_v31  ;;  %v10231_v23 = vor.u32 %v14075_v33, %v10230_v32  ;;  %v5156_v27 = vunpack.c.h.b16 %v1450_v31 }
 0x84a   : > { %v6355_v48 = vpack.c.b16 %v5155_v38, %v5155_v38  ;;  %v6356_v49 = vpack.c.b16 %v5156_v27, %v5156_v27  ;;  %v14452_v38 = vld [vmem:[%s15246_s23 + $0x1024] sm:$0xf]  ;;  %v14453_v27 = vld [vmem:[%s15246_s23 + $0x102c] sm:$0xf] }
 0x84e   : > { %9238 = vmatpush.bf16.xpose.msra.mxu0 %v12631_v45  ;;  %9251 = vmatpush.bf16.xpose.msra.mxu1 %v12635_v46  ;;  %v10235_v45 = vor.u32 %v14000_v17, %v10232_v34  ;;  %v6353_v46 = vpack.c.b16 %v5153_v20, %v5153_v20  ;;  %v12046_v20 = vld [vmem:[%s15246_s23 + $0x1020] sm:$0xf] }
 0x84f   : > { %9264 = vmatpush.bf16.xpose.msra.mxu2 %v12639_v51  ;;  %9277 = vmatpush.bf16.xpose.msra.mxu3 %v12643_v10  ;;  %v6354_v51 = vpack.c.b16 %v5154_v37, %v5154_v37  ;;  %v10243_v10 = vor.u32 %v14001_v41, %v10240_v42  ;;  %v14527_v37 = vld [vmem:[%s15246_s23 + $0x1274] sm:$0xf0]  ;;  %v12054_v41 = vld [vmem:[%s15246_s23 + $0x1028] sm:$0xf]  ;;  %v14528_v42 = vld [vmem:[%s15246_s23 + $0x127c] sm:$0xf0] }
 0x856   : > { %9239 = vmatpush.bf16.xpose.msra.mxu0 %v12031_v0  ;;  %9252 = vmatpush.bf16.xpose.msra.mxu1 %v12035_v47  ;;  %v13847_v0 = vor.u32 %v14977_v13, %v13846_v53  ;;  %v1623_v47 = vld [vmem:[#allocation1 + $0x1b] sm:$0xff] }
 0x857   : > { %9265 = vmatpush.bf16.xpose.msra.mxu2 %v12039_v1  ;;  %9278 = vmatpush.bf16.xpose.msra.mxu3 %v12043_v3  ;;  %v13851_v1 = vor.u32 %v14902_v55, %v13848_v56  ;;  %v13859_v3 = vor.u32 %v14903_v62, %v13856_v63  ;;  %v14302_v53 = vld [vmem:[%s15246_s23 + $0xb74] sm:$0xf]  ;;  %v11448_v13 = vld [vmem:[%s15246_s23 + $0xdc8] sm:$0xf0]  ;;  %v11454_v55 = vld [vmem:[%s15246_s23 + $0xb78] sm:$0xf] }
 0x858   : > { %v14378_v56 = vld [vmem:[%s15246_s23 + $0xdcc] sm:$0xf0]  ;;  %v11451_v62 = vor.u32 %v14302_v53, %v11448_v13  ;;  %v13264_v53 = vld [vmem:[%s15246_s23 + $0x1be8] sm:$0xf0]  ;;  %v13270_v13 = vld [vmem:[%s15246_s23 + $0x1998] sm:$0xf] }
 0x859   : > { %v11455_v63 = vor.u32 %v14378_v56, %v11454_v55  ;;  %v14830_v55 = vld [vmem:[%s15246_s23 + $0x1bec] sm:$0xf0]  ;;  %v14755_v56 = vld [vmem:[%s15246_s23 + $0x199c] sm:$0xf] }
 0x85e   : > { %9240 = vmatpush.bf16.xpose.msra.mxu0 %v11431_v61  ;;  %9253 = vmatpush.bf16.xpose.msra.mxu1 %v11435_v15  ;;  %v13251_v61 = vor.u32 %v14752_v5, %v13248_v54  ;;  %v13255_v15 = vor.u32 %v14828_v8, %v13254_v7  ;;  %v14153_v5 = vld [vmem:[%s15246_s23 + $0x6cc] sm:$0xf]  ;;  %v10856_v54 = vld [vmem:[%s15246_s23 + $0x920] sm:$0xf0] }
 0x85f   : > { %9266 = vmatpush.bf16.xpose.msra.mxu2 %v11439_v40  ;;  %9279 = vmatpush.bf16.xpose.msra.mxu3 %v11443_v16  ;;  %v13259_v16 = vor.u32 %v14753_v57, %v13256_v11  ;;  %v10855_v57 = vor.u32 %v14228_v4, %v10854_v50  ;;  %v10859_v11 = vor.u32 %v14153_v5, %v10856_v54  ;;  %v14679_v50 = vld [vmem:[%s15246_s23 + $0x1734] sm:$0xf0]  ;;  %v14604_v4 = vld [vmem:[%s15246_s23 + $0x14e4] sm:$0xf]  ;;  %v12664_v5 = vld [vmem:[%s15246_s23 + $0x1738] sm:$0xf0] }
 0x860   : > { %v12670_v54 = vld [vmem:[%s15246_s23 + $0x14e8] sm:$0xf] }
 0x866   : > { %9241 = vmatpush.bf16.xpose.msra.mxu0 %v10831_v25  ;;  %9254 = vmatpush.bf16.xpose.msra.mxu1 %v10835_v26  ;;  %v14678_v25 = vld [vmem:[%s15246_s23 + $0x172c] sm:$0xf0]  ;;  %v14603_v26 = vld [vmem:[%s15246_s23 + $0x14dc] sm:$0xf] }
 0x867   : > { %9267 = vmatpush.bf16.xpose.msra.mxu2 %v10839_v28  ;;  %9280 = vmatpush.bf16.xpose.msra.mxu3 %v10843_v29  ;;  %v12656_v28 = vld [vmem:[%s15246_s23 + $0x1730] sm:$0xf0]  ;;  %v12647_v29 = vor.u32 %v14677_v43, %v12646_v19  ;;  %v12655_v31 = vor.u32 %v14678_v25, %v12654_v24  ;;  %v14003_v24 = vld [vmem:[%s15246_s23 + $0x21c] sm:$0xf] }
 0x868   : > { %v12659_v33 = vor.u32 %v14603_v26, %v12656_v28  ;;  %v10256_v25 = vld [vmem:[%s15246_s23 + $0x470] sm:$0xf0] }
 0x86e   : > { %9242 = vmatpush.bf16.xpose.msra.mxu0 %v10231_v23  ;;  %9255 = vmatpush.bf16.xpose.msra.mxu1 %v10235_v45  ;;  %v12048_v23 = vld [vmem:[%s15246_s23 + $0x1278] sm:$0xf0]  ;;  %v12056_v45 = vld [vmem:[%s15246_s23 + $0x1280] sm:$0xf0] }
 0x86f   : > { %9268 = vmatpush.bf16.xpose.msra.mxu2 %v10239_v6  ;;  %9281 = vmatpush.bf16.xpose.msra.mxu3 %v10243_v10  ;;  %v12047_v6 = vor.u32 %v14527_v37, %v12046_v20  ;;  %v12059_v10 = vor.u32 %v14453_v27, %v12056_v45  ;;  %v14979_v20 = vld [vmem:[%s15246_s23 + $0x2094] sm:$0xf0]  ;;  %v14904_v37 = vld [vmem:[%s15246_s23 + $0x1e44] sm:$0xf]  ;;  %v14905_v27 = vld [vmem:[%s15246_s23 + $0x1e4c] sm:$0xf] }
 0x870   : > { %v13872_v45 = vld [vmem:[%s15246_s23 + $0x20a0] sm:$0xf0] }
 0x872   : > { %v9140_v40 = vpop.f32.mrf.mxu0  ;;  %v9153_v18 = vpop.f32.mrf.mxu1 }
 0x873   : > { %v9141_v39 = vadd.f32 %v9140_v40, %v17244_v14  ;;  %v12651_v14 = vor.u32 %v14602_v21, %v12648_v22  ;;  %v14077_v40 = vld [vmem:[%s15246_s23 + $0x464] sm:$0xf0] }
 0x875   : > { %9243 = vmatmul.bf16.vlgmr.msra.gmra.mxu0 %v1620_v9  ;;  %9256 = vmatmul.bf16.vlgmr.msra.gmra.mxu1 %v1621_v60  ;;  %v9154_v44 = vadd.f32 %v9153_v18, %v9141_v39  ;;  %v11446_v9 = vld [vmem:[%s15246_s23 + $0xb70] sm:$0xf]  ;;  %v10248_v39 = vld [vmem:[%s15246_s23 + $0x468] sm:$0xf0]  ;;  %v10254_v18 = vld [vmem:[%s15246_s23 + $0x218] sm:$0xf] }
 0x876   : > { %9287 = vmatpush.bf16.xpose.msrb.mxu0 %v6353_v46  ;;  %9300 = vmatpush.bf16.xpose.msrb.mxu1 %v6354_v51  ;;  %v12051_v46 = vor.u32 %v14452_v38, %v12048_v23  ;;  %v12055_v51 = vor.u32 %v14528_v42, %v12054_v41  ;;  %v13864_v38 = vld [vmem:[%s15246_s23 + $0x2098] sm:$0xf0]  ;;  %v13870_v23 = vld [vmem:[%s15246_s23 + $0x1e48] sm:$0xf]  ;;  %v14980_v41 = vld [vmem:[%s15246_s23 + $0x209c] sm:$0xf0] }
 0x877   : > { %9313 = vmatpush.bf16.xpose.msrb.mxu2 %v6355_v48  ;;  %9326 = vmatpush.bf16.xpose.msrb.mxu3 %v6356_v49  ;;  %v1625_v42 = vld [vmem:[#allocation1 + $0x2d] sm:$0xff] }
 0x878   : > { %9269 = vmatmul.bf16.vlgmr.msra.gmra.mxu2 %v1622_v52  ;;  %9282 = vmatmul.bf16.vlgmr.msra.gmra.mxu3 %v1623_v47  ;;  %v14377_v52 = vld [vmem:[%s15246_s23 + $0xdc4] sm:$0xf0]  ;;  %v10846_v47 = vld [vmem:[%s15246_s23 + $0x6c0] sm:$0xf] }
 0x879   : > { %v11447_v60 = vor.u32 %v14377_v52, %v11446_v9  ;;  %v14829_v9 = vld [vmem:[%s15246_s23 + $0x1be4] sm:$0xf0]  ;;  %v14754_v52 = vld [vmem:[%s15246_s23 + $0x1994] sm:$0xf] }
 0x87a   : > { %v9142_v17 = vpop.f32.mrf.mxu0  ;;  %v9155_v35 = vpop.f32.mrf.mxu1 }
 0x87b   : > { %v9166_v30 = vpop.f32.mrf.mxu2  ;;  %v9179_v34 = vpop.f32.mrf.mxu3  ;;  %v1624_v17 = vld [vmem:[#allocation1 + $0x24] sm:$0xff] }
 0x87c   : > { %v9167_v32 = vadd.f32 %v9166_v30, %v9154_v44  ;;  %v14078_v44 = vld [vmem:[%s15246_s23 + $0x46c] sm:$0xf0]  ;;  %v13862_v35 = vld [vmem:[%s15246_s23 + $0x1e40] sm:$0xf] }
 0x87e   : > { %9288 = vmatpush.bf16.xpose.msrb.mxu0 %v13847_v0  ;;  %9301 = vmatpush.bf16.xpose.msrb.mxu1 %v13851_v1  ;;  %v17306_v36 = vadd.f32 %v9179_v34, %v9167_v32  ;;  %v11459_v0 = vor.u32 %v14303_v58, %v11456_v59  ;;  %v14227_v1 = vld [vmem:[%s15246_s23 + $0x914] sm:$0xf0]  ;;  %v10259_v32 = vor.u32 %v14003_v24, %v10256_v25  ;;  %v1626_v34 = vld [vmem:[#allocation1 + $0x36] sm:$0xff]  ;;  %v13272_v58 = vld [vmem:[%s15246_s23 + $0x1bf0] sm:$0xf0] }
 0x87f   : > { %9314 = vmatpush.bf16.xpose.msrb.mxu2 %v13855_v2  ;;  %9327 = vmatpush.bf16.xpose.msrb.mxu3 %v13859_v3  ;;  %v14152_v2 = vld [vmem:[%s15246_s23 + $0x6c4] sm:$0xf]  ;;  %v10848_v3 = vld [vmem:[%s15246_s23 + $0x918] sm:$0xf0]  ;;  %v10847_v7 = vor.u32 %v14227_v1, %v10846_v47  ;;  %v12064_v24 = vld [vmem:[%s15246_s23 + $0x1288] sm:$0xf0] }
 0x880   : > { %v10851_v8 = vor.u32 %v14152_v2, %v10848_v3  ;;  %v12662_v3 = vld [vmem:[%s15246_s23 + $0x14e0] sm:$0xf]  ;;  %v12070_v25 = vld [vmem:[%s15246_s23 + $0x1038] sm:$0xf] }
 0x883   : > { %v9168_v48 = vpop.f32.mrf.mxu2  ;;  %v9181_v49 = vpop.f32.mrf.mxu3 }
 0x884   : > { %v13871_v48 = vor.u32 %v14980_v41, %v13870_v23  ;;  %v13262_v49 = vld [vmem:[%s15246_s23 + $0x1990] sm:$0xf]  ;;  %v14380_v23 = vld [vmem:[%s15246_s23 + $0xddc] sm:$0xf0]  ;;  %v14305_v41 = vld [vmem:[%s15246_s23 + $0xb8c] sm:$0xf] }
 0x885   : > { %v13263_v59 = vor.u32 %v14829_v9, %v13262_v49  ;;  %v10864_v49 = vld [vmem:[%s15246_s23 + $0x928] sm:$0xf0]  ;;  %v10870_v9 = vld [vmem:[%s15246_s23 + $0x6d8] sm:$0xf] }
 0x886   : > { %9289 = vmatpush.bf16.xpose.msrb.mxu0 %v13247_v12  ;;  %9302 = vmatpush.bf16.xpose.msrb.mxu1 %v13251_v61  ;;  %v1451_v12 = vld [vmem:[%s15246_s23 + $0x22f0] sm:$0xff]  ;;  %v1452_v61 = vld [vmem:[%s15246_s23 + $0x22f8] sm:$0xff] }
 0x887   : > { %9315 = vmatpush.bf16.xpose.msrb.mxu2 %v13255_v15  ;;  %9328 = vmatpush.bf16.xpose.msrb.mxu3 %v13259_v16  ;;  %v10246_v15 = vld [vmem:[%s15246_s23 + $0x210] sm:$0xf]  ;;  %v14002_v16 = vld [vmem:[%s15246_s23 + $0x214] sm:$0xf]  ;;  %v5157_v19 = vunpack.c.l.b16 %v1451_v12  ;;  %v5158_v43 = vunpack.c.h.b16 %v1451_v12  ;;  %v5159_v21 = vunpack.c.l.b16 %v1452_v61  ;;  %v5160_v26 = vunpack.c.h.b16 %v1452_v61 }
 0x888   : > { %v10247_v22 = vor.u32 %v14077_v40, %v10246_v15  ;;  %v10251_v28 = vor.u32 %v14002_v16, %v10248_v39  ;;  %v12667_v12 = vor.u32 %v14604_v4, %v12664_v5 }
 0x889   : > { %v6357_v30 = vpack.c.b16 %v5157_v19, %v5157_v19  ;;  %v12062_v19 = vld [vmem:[%s15246_s23 + $0x1030] sm:$0xf] }
 0x88e   : > { %9290 = vmatpush.bf16.xpose.msrb.mxu0 %v12647_v29  ;;  %9303 = vmatpush.bf16.xpose.msrb.mxu1 %v12651_v14  ;;  %v10255_v29 = vor.u32 %v14078_v44, %v10254_v18  ;;  %v6358_v14 = vpack.c.b16 %v5158_v43, %v5158_v43  ;;  %v331_v43 = vld [vmem:[%s15256_s19 + $0x88] sm:$0xff] }
 0x88f   : > { %9316 = vmatpush.bf16.xpose.msrb.mxu2 %v12655_v31  ;;  %9329 = vmatpush.bf16.xpose.msrb.mxu3 %v12659_v33  ;;  %v6359_v31 = vpack.c.b16 %v5159_v21, %v5159_v21  ;;  %v6360_v33 = vpack.c.b16 %v5160_v26, %v5160_v26  ;;  %v14529_v21 = vld [vmem:[%s15246_s23 + $0x1284] sm:$0xf0]  ;;  %v14530_v26 = vld [vmem:[%s15246_s23 + $0x128c] sm:$0xf0] }
 0x896   : > { %9291 = vmatpush.bf16.xpose.msrb.mxu0 %v12047_v6  ;;  %9304 = vmatpush.bf16.xpose.msrb.mxu1 %v12051_v46  ;;  %v13863_v6 = vor.u32 %v14979_v20, %v13862_v35  ;;  %v1627_v46 = vld [vmem:[#allocation1 + $0x3f] sm:$0xff]  ;;  %v14304_v20 = vld [vmem:[%s15246_s23 + $0xb84] sm:$0xf] }
 0x897   : > { %9317 = vmatpush.bf16.xpose.msrb.mxu2 %v12055_v51  ;;  %9330 = vmatpush.bf16.xpose.msrb.mxu3 %v12059_v10  ;;  %v13867_v51 = vor.u32 %v14904_v37, %v13864_v38  ;;  %v13875_v10 = vor.u32 %v14905_v27, %v13872_v45  ;;  %1629 = vst [vmem:[#allocation1] ss:$9 sm:$0xff] %v331_v43  ;;  %v14379_v35 = vld [vmem:[%s15246_s23 + $0xdd4] sm:$0xf0]  ;;  %v11464_v37 = vld [vmem:[%s15246_s23 + $0xdd8] sm:$0xf0] }
 0x898   : > { %v11470_v38 = vld [vmem:[%s15246_s23 + $0xb88] sm:$0xf]  ;;  %v11467_v45 = vor.u32 %v14304_v20, %v11464_v37  ;;  %v13280_v20 = vld [vmem:[%s15246_s23 + $0x1bf8] sm:$0xf0] }
 0x899   : > { %v14981_v43 = vld [vmem:[%s15246_s23 + $0x20a4] sm:$0xf0] }
 0x89a   : > { %v13286_v37 = vld [vmem:[%s15246_s23 + $0x19a8] sm:$0xf] }
 0x89e   : > { %9292 = vmatpush.bf16.xpose.msrb.mxu0 %v11447_v60  ;;  %9305 = vmatpush.bf16.xpose.msrb.mxu1 %v11451_v62  ;;  %v13267_v60 = vor.u32 %v14754_v52, %v13264_v53  ;;  %v13271_v62 = vor.u32 %v14830_v55, %v13270_v13  ;;  %v14230_v52 = vld [vmem:[%s15246_s23 + $0x92c] sm:$0xf0]  ;;  %v14155_v53 = vld [vmem:[%s15246_s23 + $0x6dc] sm:$0xf]  ;;  %v10872_v13 = vld [vmem:[%s15246_s23 + $0x930] sm:$0xf0] }
 0x89f   : > { %9318 = vmatpush.bf16.xpose.msrb.mxu2 %v11455_v63  ;;  %9331 = vmatpush.bf16.xpose.msrb.mxu3 %v11459_v0  ;;  %v13275_v0 = vor.u32 %v14755_v56, %v13272_v58  ;;  %v10871_v58 = vor.u32 %v14230_v52, %v10870_v9  ;;  %v14681_v9 = vld [vmem:[%s15246_s23 + $0x1744] sm:$0xf0]  ;;  %v14606_v52 = vld [vmem:[%s15246_s23 + $0x14f4] sm:$0xf] }
 0x8a6   : > { %9293 = vmatpush.bf16.xpose.msrb.mxu0 %v10847_v7  ;;  %9306 = vmatpush.bf16.xpose.msrb.mxu1 %v10851_v8  ;;  %v14680_v7 = vld [vmem:[%s15246_s23 + $0x173c] sm:$0xf0]  ;;  %v14605_v8 = vld [vmem:[%s15246_s23 + $0x14ec] sm:$0xf] }
 0x8a7   : > { %9319 = vmatpush.bf16.xpose.msrb.mxu2 %v10855_v57  ;;  %9332 = vmatpush.bf16.xpose.msrb.mxu3 %v10859_v11  ;;  %v12672_v57 = vld [vmem:[%s15246_s23 + $0x1740] sm:$0xf0]  ;;  %v12663_v11 = vor.u32 %v14679_v50, %v12662_v3  ;;  %v12671_v61 = vor.u32 %v14680_v7, %v12670_v54  ;;  %v14080_v3 = vld [vmem:[%s15246_s23 + $0x47c] sm:$0xf0]  ;;  %v14005_v7 = vld [vmem:[%s15246_s23 + $0x22c] sm:$0xf] }
 0x8a8   : > { %v12675_v40 = vor.u32 %v14605_v8, %v12672_v57  ;;  %v10272_v8 = vld [vmem:[%s15246_s23 + $0x480] sm:$0xf0] }
 0x8ae   : > { %9294 = vmatpush.bf16.xpose.msrb.mxu0 %v10247_v22  ;;  %9307 = vmatpush.bf16.xpose.msrb.mxu1 %v10251_v28  ;;  %v14454_v22 = vld [vmem:[%s15246_s23 + $0x1034] sm:$0xf]  ;;  %v14455_v28 = vld [vmem:[%s15246_s23 + $0x103c] sm:$0xf] }
 0x8af   : > { %9320 = vmatpush.bf16.xpose.msrb.mxu2 %v10255_v29  ;;  %9333 = vmatpush.bf16.xpose.msrb.mxu3 %v10259_v32  ;;  %v12072_v29 = vld [vmem:[%s15246_s23 + $0x1290] sm:$0xf0] }
 0x8b2   : > { %v9192_v63 = vpop.f32.mrf.mxu0  ;;  %v9205_v1 = vpop.f32.mrf.mxu1 }
 0x8b3   : > { %v9193_v47 = vadd.f32 %v9192_v63, %v17306_v36  ;;  %v10262_v63 = vld [vmem:[%s15246_s23 + $0x220] sm:$0xf] }
 0x8b5   : > { %9295 = vmatmul.bf16.vlgmr.msrb.gmra.mxu0 %v1624_v17  ;;  %9308 = vmatmul.bf16.vlgmr.msrb.gmra.mxu1 %v1625_v42  ;;  %v9206_v2 = vadd.f32 %v9205_v1, %v9193_v47  ;;  %v11472_v42 = vld [vmem:[%s15246_s23 + $0xde0] sm:$0xf0]  ;;  %v10264_v1 = vld [vmem:[%s15246_s23 + $0x478] sm:$0xf0] }
 0x8b6   : > { %9339 = vmatpush.bf16.xpose.msra.mxu0 %v6357_v30  ;;  %9352 = vmatpush.bf16.xpose.msra.mxu1 %v6358_v14  ;;  %v12063_v30 = vor.u32 %v14529_v21, %v12062_v19  ;;  %v12067_v14 = vor.u32 %v14454_v22, %v12064_v24  ;;  %v14004_v47 = vld [vmem:[%s15246_s23 + $0x224] sm:$0xf]  ;;  %v13878_v19 = vld [vmem:[%s15246_s23 + $0x1e50] sm:$0xf]  ;;  %v14906_v21 = vld [vmem:[%s15246_s23 + $0x1e54] sm:$0xf] }
 0x8b7   : > { %9365 = vmatpush.bf16.xpose.msra.mxu2 %v6359_v31  ;;  %9378 = vmatpush.bf16.xpose.msra.mxu3 %v6360_v33  ;;  %v12071_v31 = vor.u32 %v14530_v26, %v12070_v25  ;;  %v12075_v33 = vor.u32 %v14455_v28, %v12072_v29  ;;  %v13880_v22 = vld [vmem:[%s15246_s23 + $0x20a8] sm:$0xf0]  ;;  %v13886_v24 = vld [vmem:[%s15246_s23 + $0x1e58] sm:$0xf]  ;;  %v14982_v25 = vld [vmem:[%s15246_s23 + $0x20ac] sm:$0xf0] }
 0x8b8   : > { %9321 = vmatmul.bf16.vlgmr.msrb.gmra.mxu2 %v1626_v34  ;;  %9334 = vmatmul.bf16.vlgmr.msrb.gmra.mxu3 %v1627_v46  ;;  %v11462_v34 = vld [vmem:[%s15246_s23 + $0xb80] sm:$0xf]  ;;  %v11475_v46 = vor.u32 %v14305_v41, %v11472_v42  ;;  %v14907_v28 = vld [vmem:[%s15246_s23 + $0x1e5c] sm:$0xf]  ;;  %v13888_v29 = vld [vmem:[%s15246_s23 + $0x20b0] sm:$0xf0] }
 0x8b9   : > { %v11463_v27 = vor.u32 %v14379_v35, %v11462_v34  ;;  %v1631_v26 = vld [vmem:[#allocation1 + $0x9] sm:$0xff] }
 0x8ba   : > { %v9194_v16 = vpop.f32.mrf.mxu0  ;;  %v9207_v18 = vpop.f32.mrf.mxu1  ;;  %v14831_v34 = vld [vmem:[%s15246_s23 + $0x1bf4] sm:$0xf0]  ;;  %v14756_v35 = vld [vmem:[%s15246_s23 + $0x19a4] sm:$0xf] }
 0x8bb   : > { %v9218_v36 = vpop.f32.mrf.mxu2  ;;  %v9231_v39 = vpop.f32.mrf.mxu3  ;;  %v1632_v18 = vld [vmem:[#allocation1 + $0x12] sm:$0xff] }
 0x8bc   : > { %v9219_v15 = vadd.f32 %v9218_v36, %v9206_v2  ;;  %v10270_v2 = vld [vmem:[%s15246_s23 + $0x228] sm:$0xf]  ;;  %v13288_v41 = vld [vmem:[%s15246_s23 + $0x1c00] sm:$0xf0] }
 0x8bd   : > { %v10271_v36 = vor.u32 %v14080_v3, %v10270_v2 }
 0x8be   : > { %9340 = vmatpush.bf16.xpose.msra.mxu0 %v13863_v6  ;;  %9353 = vmatpush.bf16.xpose.msra.mxu1 %v13867_v51  ;;  %v17367_v44 = vadd.f32 %v9231_v39, %v9219_v15  ;;  %v11471_v6 = vor.u32 %v14380_v23, %v11470_v38  ;;  %v10862_v51 = vld [vmem:[%s15246_s23 + $0x6d0] sm:$0xf]  ;;  %v14832_v38 = vld [vmem:[%s15246_s23 + $0x1bfc] sm:$0xf0]  ;;  %v14757_v23 = vld [vmem:[%s15246_s23 + $0x19ac] sm:$0xf] }
 0x8bf   : > { %9366 = vmatpush.bf16.xpose.msra.mxu2 %v13871_v48  ;;  %9379 = vmatpush.bf16.xpose.msra.mxu3 %v13875_v10  ;;  %v14229_v48 = vld [vmem:[%s15246_s23 + $0x924] sm:$0xf0]  ;;  %v14154_v10 = vld [vmem:[%s15246_s23 + $0x6d4] sm:$0xf] }
 0x8c0   : > { %v10863_v55 = vor.u32 %v14229_v48, %v10862_v51  ;;  %v10867_v56 = vor.u32 %v14154_v10, %v10864_v49  ;;  %v1630_v39 = vld [vmem:[#allocation1] sm:$0xff] }
 0x8c1   : > { %v12678_v49 = vld [vmem:[%s15246_s23 + $0x14f0] sm:$0xf] }
 0x8c3   : > { %v9220_v32 = vpop.f32.mrf.mxu2  ;;  %v9233_v17 = vpop.f32.mrf.mxu3 }
 0x8c4   : > { %v13887_v32 = vor.u32 %v14982_v25, %v13886_v24  ;;  %v13278_v17 = vld [vmem:[%s15246_s23 + $0x19a0] sm:$0xf]  ;;  %v14307_v24 = vld [vmem:[%s15246_s23 + $0xb9c] sm:$0xf]  ;;  %v11488_v25 = vld [vmem:[%s15246_s23 + $0xdf0] sm:$0xf0] }
 0x8c5   : > { %v13279_v42 = vor.u32 %v14831_v34, %v13278_v17  ;;  %v10886_v17 = vld [vmem:[%s15246_s23 + $0x6e8] sm:$0xf]  ;;  %v14232_v34 = vld [vmem:[%s15246_s23 + $0x93c] sm:$0xf0] }
 0x8c6   : > { %9341 = vmatpush.bf16.xpose.msra.mxu0 %v13263_v59  ;;  %9354 = vmatpush.bf16.xpose.msra.mxu1 %v13267_v60  ;;  %v10875_v59 = vor.u32 %v14155_v53, %v10872_v13  ;;  %v1453_v60 = vld [vmem:[%s15246_s23 + $0x2300] sm:$0xff]  ;;  %v12680_v53 = vld [vmem:[%s15246_s23 + $0x1748] sm:$0xf0]  ;;  %v12686_v13 = vld [vmem:[%s15246_s23 + $0x14f8] sm:$0xf] }
 0x8c7   : > { %9367 = vmatpush.bf16.xpose.msra.mxu2 %v13271_v62  ;;  %9380 = vmatpush.bf16.xpose.msra.mxu3 %v13275_v0  ;;  %v1454_v62 = vld [vmem:[%s15246_s23 + $0x2308] sm:$0xff]  ;;  %v14079_v0 = vld [vmem:[%s15246_s23 + $0x474] sm:$0xf0]  ;;  %v5161_v50 = vunpack.c.l.b16 %v1453_v60  ;;  %v5162_v4 = vunpack.c.h.b16 %v1453_v60 }
 0x8c8   : > { %v5163_v5 = vunpack.c.l.b16 %v1454_v62  ;;  %v10263_v54 = vor.u32 %v14079_v0, %v10262_v63  ;;  %v5164_v57 = vunpack.c.h.b16 %v1454_v62 }
 0x8ca   : > { %v6363_v15 = vpack.c.b16 %v5163_v5, %v5163_v5  ;;  %v6364_v16 = vpack.c.b16 %v5164_v57, %v5164_v57  ;;  %v14456_v5 = vld [vmem:[%s15246_s23 + $0x1044] sm:$0xf]  ;;  %v14457_v57 = vld [vmem:[%s15246_s23 + $0x104c] sm:$0xf] }
 0x8ce   : > { %9342 = vmatpush.bf16.xpose.msra.mxu0 %v12663_v11  ;;  %9355 = vmatpush.bf16.xpose.msra.mxu1 %v12667_v12  ;;  %v10267_v11 = vor.u32 %v14004_v47, %v10264_v1  ;;  %v6361_v12 = vpack.c.b16 %v5161_v50, %v5161_v50  ;;  %v12078_v50 = vld [vmem:[%s15246_s23 + $0x1040] sm:$0xf] }
 0x8cf   : > { %9368 = vmatpush.bf16.xpose.msra.mxu2 %v12671_v61  ;;  %9381 = vmatpush.bf16.xpose.msra.mxu3 %v12675_v40  ;;  %v6362_v61 = vpack.c.b16 %v5162_v4, %v5162_v4  ;;  %v10275_v40 = vor.u32 %v14005_v7, %v10272_v8  ;;  %v14531_v4 = vld [vmem:[%s15246_s23 + $0x1294] sm:$0xf0]  ;;  %v12086_v7 = vld [vmem:[%s15246_s23 + $0x1048] sm:$0xf]  ;;  %v14532_v8 = vld [vmem:[%s15246_s23 + $0x129c] sm:$0xf0] }
 0x8d6   : > { %9343 = vmatpush.bf16.xpose.msra.mxu0 %v12063_v30  ;;  %9356 = vmatpush.bf16.xpose.msra.mxu1 %v12067_v14  ;;  %v13879_v30 = vor.u32 %v14981_v43, %v13878_v19  ;;  %v1633_v14 = vld [vmem:[#allocation1 + $0x1b] sm:$0xff] }
 0x8d7   : > { %9369 = vmatpush.bf16.xpose.msra.mxu2 %v12071_v31  ;;  %9382 = vmatpush.bf16.xpose.msra.mxu3 %v12075_v33  ;;  %v13883_v31 = vor.u32 %v14906_v21, %v13880_v22  ;;  %v13891_v33 = vor.u32 %v14907_v28, %v13888_v29  ;;  %v14306_v19 = vld [vmem:[%s15246_s23 + $0xb94] sm:$0xf]  ;;  %v11480_v43 = vld [vmem:[%s15246_s23 + $0xde8] sm:$0xf0]  ;;  %v11486_v21 = vld [vmem:[%s15246_s23 + $0xb98] sm:$0xf] }
 0x8d8   : > { %v14382_v22 = vld [vmem:[%s15246_s23 + $0xdec] sm:$0xf0]  ;;  %v11483_v28 = vor.u32 %v14306_v19, %v11480_v43  ;;  %v13296_v19 = vld [vmem:[%s15246_s23 + $0x1c08] sm:$0xf0]  ;;  %v13302_v43 = vld [vmem:[%s15246_s23 + $0x19b8] sm:$0xf] }
 0x8d9   : > { %v11487_v29 = vor.u32 %v14382_v22, %v11486_v21  ;;  %v14834_v21 = vld [vmem:[%s15246_s23 + $0x1c0c] sm:$0xf0]  ;;  %v14759_v22 = vld [vmem:[%s15246_s23 + $0x19bc] sm:$0xf] }
 0x8de   : > { %9344 = vmatpush.bf16.xpose.msra.mxu0 %v11463_v27  ;;  %9357 = vmatpush.bf16.xpose.msra.mxu1 %v11467_v45  ;;  %v13283_v27 = vor.u32 %v14756_v35, %v13280_v20  ;;  %v13287_v45 = vor.u32 %v14832_v38, %v13286_v37  ;;  %v14157_v35 = vld [vmem:[%s15246_s23 + $0x6ec] sm:$0xf]  ;;  %v10888_v20 = vld [vmem:[%s15246_s23 + $0x940] sm:$0xf0] }
 0x8df   : > { %9370 = vmatpush.bf16.xpose.msra.mxu2 %v11471_v6  ;;  %9383 = vmatpush.bf16.xpose.msra.mxu3 %v11475_v46  ;;  %v13291_v46 = vor.u32 %v14757_v23, %v13288_v41  ;;  %v10887_v23 = vor.u32 %v14232_v34, %v10886_v17  ;;  %v10891_v41 = vor.u32 %v14157_v35, %v10888_v20  ;;  %v14683_v17 = vld [vmem:[%s15246_s23 + $0x1754] sm:$0xf0]  ;;  %v14608_v34 = vld [vmem:[%s15246_s23 + $0x1504] sm:$0xf]  ;;  %v12696_v35 = vld [vmem:[%s15246_s23 + $0x1758] sm:$0xf0] }
 0x8e0   : > { %v12702_v20 = vld [vmem:[%s15246_s23 + $0x1508] sm:$0xf] }
 0x8e6   : > { %9345 = vmatpush.bf16.xpose.msra.mxu0 %v10863_v55  ;;  %9358 = vmatpush.bf16.xpose.msra.mxu1 %v10867_v56  ;;  %v14682_v55 = vld [vmem:[%s15246_s23 + $0x174c] sm:$0xf0]  ;;  %v14607_v56 = vld [vmem:[%s15246_s23 + $0x14fc] sm:$0xf] }
 0x8e7   : > { %9371 = vmatpush.bf16.xpose.msra.mxu2 %v10871_v58  ;;  %9384 = vmatpush.bf16.xpose.msra.mxu3 %v10875_v59  ;;  %v12688_v58 = vld [vmem:[%s15246_s23 + $0x1750] sm:$0xf0]  ;;  %v12679_v59 = vor.u32 %v14681_v9, %v12678_v49  ;;  %v12687_v62 = vor.u32 %v14682_v55, %v12686_v13  ;;  %v14007_v13 = vld [vmem:[%s15246_s23 + $0x23c] sm:$0xf] }
 0x8e8   : > { %v12691_v0 = vor.u32 %v14607_v56, %v12688_v58  ;;  %v10288_v55 = vld [vmem:[%s15246_s23 + $0x490] sm:$0xf0] }
 0x8ee   : > { %9346 = vmatpush.bf16.xpose.msra.mxu0 %v10263_v54  ;;  %9359 = vmatpush.bf16.xpose.msra.mxu1 %v10267_v11  ;;  %v12080_v54 = vld [vmem:[%s15246_s23 + $0x1298] sm:$0xf0]  ;;  %v12088_v11 = vld [vmem:[%s15246_s23 + $0x12a0] sm:$0xf0] }
 0x8ef   : > { %9372 = vmatpush.bf16.xpose.msra.mxu2 %v10271_v36  ;;  %9385 = vmatpush.bf16.xpose.msra.mxu3 %v10275_v40  ;;  %v12079_v36 = vor.u32 %v14531_v4, %v12078_v50  ;;  %v12091_v40 = vor.u32 %v14457_v57, %v12088_v11  ;;  %v14983_v50 = vld [vmem:[%s15246_s23 + $0x20b4] sm:$0xf0]  ;;  %v14908_v4 = vld [vmem:[%s15246_s23 + $0x1e64] sm:$0xf]  ;;  %v14909_v57 = vld [vmem:[%s15246_s23 + $0x1e6c] sm:$0xf] }
 0x8f0   : > { %v13904_v11 = vld [vmem:[%s15246_s23 + $0x20c0] sm:$0xf0] }
 0x8f2   : > { %v9244_v6 = vpop.f32.mrf.mxu0  ;;  %v9257_v48 = vpop.f32.mrf.mxu1 }
 0x8f3   : > { %v9245_v51 = vadd.f32 %v9244_v6, %v17367_v44  ;;  %v12683_v44 = vor.u32 %v14606_v52, %v12680_v53  ;;  %v14081_v6 = vld [vmem:[%s15246_s23 + $0x484] sm:$0xf0] }
 0x8f5   : > { %9347 = vmatmul.bf16.vlgmr.msra.gmra.mxu0 %v1630_v39  ;;  %9360 = vmatmul.bf16.vlgmr.msra.gmra.mxu1 %v1631_v26  ;;  %v9258_v10 = vadd.f32 %v9257_v48, %v9245_v51  ;;  %v11478_v39 = vld [vmem:[%s15246_s23 + $0xb90] sm:$0xf]  ;;  %v10280_v51 = vld [vmem:[%s15246_s23 + $0x488] sm:$0xf0]  ;;  %v10286_v48 = vld [vmem:[%s15246_s23 + $0x238] sm:$0xf] }
 0x8f6   : > { %9391 = vmatpush.bf16.xpose.msrb.mxu0 %v6361_v12  ;;  %9404 = vmatpush.bf16.xpose.msrb.mxu1 %v6362_v61  ;;  %v12083_v12 = vor.u32 %v14456_v5, %v12080_v54  ;;  %v12087_v61 = vor.u32 %v14532_v8, %v12086_v7  ;;  %v13896_v5 = vld [vmem:[%s15246_s23 + $0x20b8] sm:$0xf0]  ;;  %v13902_v54 = vld [vmem:[%s15246_s23 + $0x1e68] sm:$0xf]  ;;  %v14984_v7 = vld [vmem:[%s15246_s23 + $0x20bc] sm:$0xf0] }
 0x8f7   : > { %9417 = vmatpush.bf16.xpose.msrb.mxu2 %v6363_v15  ;;  %9430 = vmatpush.bf16.xpose.msrb.mxu3 %v6364_v16  ;;  %v1635_v8 = vld [vmem:[#allocation1 + $0x2d] sm:$0xff] }
 0x8f8   : > { %9373 = vmatmul.bf16.vlgmr.msra.gmra.mxu2 %v1632_v18  ;;  %9386 = vmatmul.bf16.vlgmr.msra.gmra.mxu3 %v1633_v14  ;;  %v14381_v18 = vld [vmem:[%s15246_s23 + $0xde4] sm:$0xf0]  ;;  %v10878_v14 = vld [vmem:[%s15246_s23 + $0x6e0] sm:$0xf] }
 0x8f9   : > { %v11479_v26 = vor.u32 %v14381_v18, %v11478_v39  ;;  %v14833_v39 = vld [vmem:[%s15246_s23 + $0x1c04] sm:$0xf0]  ;;  %v14758_v18 = vld [vmem:[%s15246_s23 + $0x19b4] sm:$0xf] }
 0x8fa   : > { %v9246_v47 = vpop.f32.mrf.mxu0  ;;  %v9259_v2 = vpop.f32.mrf.mxu1 }
 0x8fb   : > { %v9270_v60 = vpop.f32.mrf.mxu2  ;;  %v9283_v1 = vpop.f32.mrf.mxu3  ;;  %v1634_v47 = vld [vmem:[#allocation1 + $0x24] sm:$0xff] }
 0x8fc   : > { %v9271_v63 = vadd.f32 %v9270_v60, %v9258_v10  ;;  %v14082_v10 = vld [vmem:[%s15246_s23 + $0x48c] sm:$0xf0]  ;;  %v13894_v2 = vld [vmem:[%s15246_s23 + $0x1e60] sm:$0xf] }
 0x8fe   : > { %9392 = vmatpush.bf16.xpose.msrb.mxu0 %v13879_v30  ;;  %9405 = vmatpush.bf16.xpose.msrb.mxu1 %v13883_v31  ;;  %v17429_v3 = vadd.f32 %v9283_v1, %v9271_v63  ;;  %v11491_v30 = vor.u32 %v14307_v24, %v11488_v25  ;;  %v14231_v31 = vld [vmem:[%s15246_s23 + $0x934] sm:$0xf0]  ;;  %v10291_v63 = vor.u32 %v14007_v13, %v10288_v55  ;;  %v1636_v1 = vld [vmem:[#allocation1 + $0x36] sm:$0xff]  ;;  %v13304_v24 = vld [vmem:[%s15246_s23 + $0x1c10] sm:$0xf0] }
 0x8ff   : > { %9418 = vmatpush.bf16.xpose.msrb.mxu2 %v13887_v32  ;;  %9431 = vmatpush.bf16.xpose.msrb.mxu3 %v13891_v33  ;;  %v14156_v32 = vld [vmem:[%s15246_s23 + $0x6e4] sm:$0xf]  ;;  %v10880_v33 = vld [vmem:[%s15246_s23 + $0x938] sm:$0xf0]  ;;  %v10879_v37 = vor.u32 %v14231_v31, %v10878_v14  ;;  %v12096_v13 = vld [vmem:[%s15246_s23 + $0x12a8] sm:$0xf0] }
 0x900   : > { %v10883_v38 = vor.u32 %v14156_v32, %v10880_v33  ;;  %v12694_v33 = vld [vmem:[%s15246_s23 + $0x1500] sm:$0xf]  ;;  %v12102_v55 = vld [vmem:[%s15246_s23 + $0x1058] sm:$0xf] }
 0x903   : > { %v9272_v15 = vpop.f32.mrf.mxu2  ;;  %v9285_v16 = vpop.f32.mrf.mxu3 }
 0x904   : > { %v13903_v15 = vor.u32 %v14984_v7, %v13902_v54  ;;  %v13294_v16 = vld [vmem:[%s15246_s23 + $0x19b0] sm:$0xf]  ;;  %v14384_v54 = vld [vmem:[%s15246_s23 + $0xdfc] sm:$0xf0]  ;;  %v14309_v7 = vld [vmem:[%s15246_s23 + $0xbac] sm:$0xf] }
 0x905   : > { %v13295_v25 = vor.u32 %v14833_v39, %v13294_v16  ;;  %v10896_v16 = vld [vmem:[%s15246_s23 + $0x948] sm:$0xf0]  ;;  %v10902_v39 = vld [vmem:[%s15246_s23 + $0x6f8] sm:$0xf] }
 0x906   : > { %9393 = vmatpush.bf16.xpose.msrb.mxu0 %v13279_v42  ;;  %9406 = vmatpush.bf16.xpose.msrb.mxu1 %v13283_v27  ;;  %v1455_v42 = vld [vmem:[%s15246_s23 + $0x2310] sm:$0xff]  ;;  %v1456_v27 = vld [vmem:[%s15246_s23 + $0x2318] sm:$0xff] }
 0x907   : > { %9419 = vmatpush.bf16.xpose.msrb.mxu2 %v13287_v45  ;;  %9432 = vmatpush.bf16.xpose.msrb.mxu3 %v13291_v46  ;;  %v10278_v45 = vld [vmem:[%s15246_s23 + $0x230] sm:$0xf]  ;;  %v14006_v46 = vld [vmem:[%s15246_s23 + $0x234] sm:$0xf]  ;;  %v5165_v49 = vunpack.c.l.b16 %v1455_v42  ;;  %v5166_v9 = vunpack.c.h.b16 %v1455_v42  ;;  %v5167_v52 = vunpack.c.l.b16 %v1456_v27  ;;  %v5168_v56 = vunpack.c.h.b16 %v1456_v27 }
 0x908   : > { %v10279_v53 = vor.u32 %v14081_v6, %v10278_v45  ;;  %v10283_v58 = vor.u32 %v14006_v46, %v10280_v51  ;;  %v12699_v42 = vor.u32 %v14608_v34, %v12696_v35  ;;  %v14009_v35 = vld [vmem:[%s15246_s23 + $0x24c] sm:$0xf] }
 0x909   : > { %v6365_v60 = vpack.c.b16 %v5165_v49, %v5165_v49 }
 0x90e   : > { %9394 = vmatpush.bf16.xpose.msrb.mxu0 %v12679_v59  ;;  %9407 = vmatpush.bf16.xpose.msrb.mxu1 %v12683_v44  ;;  %v10287_v59 = vor.u32 %v14082_v10, %v10286_v48  ;;  %v6366_v44 = vpack.c.b16 %v5166_v9, %v5166_v9  ;;  %v332_v48 = vld [vmem:[%s15256_s19 + $0x90] sm:$0x3f]  ;;  %v12094_v9 = vld [vmem:[%s15246_s23 + $0x1050] sm:$0xf] }
 0x90f   : > { %9420 = vmatpush.bf16.xpose.msrb.mxu2 %v12687_v62  ;;  %9433 = vmatpush.bf16.xpose.msrb.mxu3 %v12691_v0  ;;  %v6367_v62 = vpack.c.b16 %v5167_v52, %v5167_v52  ;;  %v6368_v0 = vpack.c.b16 %v5168_v56, %v5168_v56  ;;  %v14533_v52 = vld [vmem:[%s15246_s23 + $0x12a4] sm:$0xf0]  ;;  %v14534_v56 = vld [vmem:[%s15246_s23 + $0x12ac] sm:$0xf0] }
 0x916   : > { %9395 = vmatpush.bf16.xpose.msrb.mxu0 %v12079_v36  ;;  %9408 = vmatpush.bf16.xpose.msrb.mxu1 %v12083_v12  ;;  %v13895_v36 = vor.u32 %v14983_v50, %v13894_v2  ;;  %v1637_v12 = vld [vmem:[#allocation1 + $0x3f] sm:$0xff]  ;;  %v14308_v50 = vld [vmem:[%s15246_s23 + $0xba4] sm:$0xf] }
 0x917   : > { %9421 = vmatpush.bf16.xpose.msrb.mxu2 %v12087_v61  ;;  %9434 = vmatpush.bf16.xpose.msrb.mxu3 %v12091_v40  ;;  %v13899_v61 = vor.u32 %v14908_v4, %v13896_v5  ;;  %v13907_v40 = vor.u32 %v14909_v57, %v13904_v11  ;;  %1639 = vst [vmem:[#allocation1] ss:$9 sm:$0xff] %v332_v48  ;;  %v14383_v2 = vld [vmem:[%s15246_s23 + $0xdf4] sm:$0xf0]  ;;  %v11496_v4 = vld [vmem:[%s15246_s23 + $0xdf8] sm:$0xf0] }
 0x918   : > { %v11502_v5 = vld [vmem:[%s15246_s23 + $0xba8] sm:$0xf]  ;;  %v11499_v11 = vor.u32 %v14308_v50, %v11496_v4 }
 0x91e   : > { %9396 = vmatpush.bf16.xpose.msrb.mxu0 %v11479_v26  ;;  %9409 = vmatpush.bf16.xpose.msrb.mxu1 %v11483_v28  ;;  %v13299_v26 = vor.u32 %v14758_v18, %v13296_v19  ;;  %v13303_v28 = vor.u32 %v14834_v21, %v13302_v43  ;;  %v14234_v18 = vld [vmem:[%s15246_s23 + $0x94c] sm:$0xf0]  ;;  %v14159_v19 = vld [vmem:[%s15246_s23 + $0x6fc] sm:$0xf]  ;;  %v10904_v43 = vld [vmem:[%s15246_s23 + $0x950] sm:$0xf0] }
 0x91f   : > { %9422 = vmatpush.bf16.xpose.msrb.mxu2 %v11487_v29  ;;  %9435 = vmatpush.bf16.xpose.msrb.mxu3 %v11491_v30  ;;  %v13307_v30 = vor.u32 %v14759_v22, %v13304_v24  ;;  %v10903_v24 = vor.u32 %v14234_v18, %v10902_v39  ;;  %v1641_v48 = vld [vmem:[#allocation1 + $0x9] sm:$0xff]  ;;  %v11510_v18 = vld [vmem:[%s15246_s23 + $0xbb0] sm:$0xf] }
 0x926   : > { %9397 = vmatpush.bf16.xpose.msrb.mxu0 %v10879_v37  ;;  %9410 = vmatpush.bf16.xpose.msrb.mxu1 %v10883_v38  ;;  %v14684_v37 = vld [vmem:[%s15246_s23 + $0x175c] sm:$0xf0]  ;;  %v14609_v38 = vld [vmem:[%s15246_s23 + $0x150c] sm:$0xf] }
 0x927   : > { %9423 = vmatpush.bf16.xpose.msrb.mxu2 %v10887_v23  ;;  %9436 = vmatpush.bf16.xpose.msrb.mxu3 %v10891_v41  ;;  %v12704_v23 = vld [vmem:[%s15246_s23 + $0x1760] sm:$0xf0]  ;;  %v12695_v41 = vor.u32 %v14683_v17, %v12694_v33  ;;  %v12703_v27 = vor.u32 %v14684_v37, %v12702_v20 }
 0x928   : > { %v12707_v6 = vor.u32 %v14609_v38, %v12704_v23  ;;  %v10304_v20 = vld [vmem:[%s15246_s23 + $0x4a0] sm:$0xf0] }
 0x92e   : > { %9398 = vmatpush.bf16.xpose.msrb.mxu0 %v10279_v53  ;;  %9411 = vmatpush.bf16.xpose.msrb.mxu1 %v10283_v58  ;;  %v14458_v53 = vld [vmem:[%s15246_s23 + $0x1054] sm:$0xf]  ;;  %v14459_v58 = vld [vmem:[%s15246_s23 + $0x105c] sm:$0xf] }
 0x92f   : > { %9424 = vmatpush.bf16.xpose.msrb.mxu2 %v10287_v59  ;;  %9437 = vmatpush.bf16.xpose.msrb.mxu3 %v10291_v63  ;;  %v12104_v59 = vld [vmem:[%s15246_s23 + $0x12b0] sm:$0xf0] }
 0x932   : > { %v9296_v29 = vpop.f32.mrf.mxu0  ;;  %v9309_v31 = vpop.f32.mrf.mxu1 }
 0x933   : > { %v9297_v14 = vadd.f32 %v9296_v29, %v17429_v3  ;;  %v14083_v29 = vld [vmem:[%s15246_s23 + $0x494] sm:$0xf0] }
 0x935   : > { %9399 = vmatmul.bf16.vlgmr.msrb.gmra.mxu0 %v1634_v47  ;;  %9412 = vmatmul.bf16.vlgmr.msrb.gmra.mxu1 %v1635_v8  ;;  %v9310_v32 = vadd.f32 %v9309_v31, %v9297_v14  ;;  %v11504_v8 = vld [vmem:[%s15246_s23 + $0xe00] sm:$0xf0]  ;;  %v10296_v14 = vld [vmem:[%s15246_s23 + $0x498] sm:$0xf0]  ;;  %v10302_v31 = vld [vmem:[%s15246_s23 + $0x248] sm:$0xf] }
 0x936   : > { %9443 = vmatpush.bf16.xpose.msra.mxu0 %v6365_v60  ;;  %9456 = vmatpush.bf16.xpose.msra.mxu1 %v6366_v44  ;;  %v12095_v60 = vor.u32 %v14533_v52, %v12094_v9  ;;  %v12099_v44 = vor.u32 %v14458_v53, %v12096_v13  ;;  %v1643_v9 = vld [vmem:[#allocation1 + $0x1b] sm:$0xff]  ;;  %v13310_v53 = vld [vmem:[%s15246_s23 + $0x19c0] sm:$0xf] }
 0x937   : > { %9469 = vmatpush.bf16.xpose.msra.mxu2 %v6367_v62  ;;  %9482 = vmatpush.bf16.xpose.msra.mxu3 %v6368_v0  ;;  %v12103_v62 = vor.u32 %v14534_v56, %v12102_v55  ;;  %v12107_v0 = vor.u32 %v14459_v58, %v12104_v59  ;;  %v14835_v13 = vld [vmem:[%s15246_s23 + $0x1c14] sm:$0xf0]  ;;  %v14760_v55 = vld [vmem:[%s15246_s23 + $0x19c4] sm:$0xf]  ;;  %v13312_v56 = vld [vmem:[%s15246_s23 + $0x1c18] sm:$0xf0] }
 0x938   : > { %9425 = vmatmul.bf16.vlgmr.msrb.gmra.mxu2 %v1636_v1  ;;  %9438 = vmatmul.bf16.vlgmr.msrb.gmra.mxu3 %v1637_v12  ;;  %v11494_v1 = vld [vmem:[%s15246_s23 + $0xba0] sm:$0xf]  ;;  %v11507_v12 = vor.u32 %v14309_v7, %v11504_v8  ;;  %v13311_v58 = vor.u32 %v14835_v13, %v13310_v53  ;;  %v13315_v59 = vor.u32 %v14760_v55, %v13312_v56 }
 0x939   : > { %v11495_v57 = vor.u32 %v14383_v2, %v11494_v1  ;;  %v14610_v1 = vld [vmem:[%s15246_s23 + $0x1514] sm:$0xf]  ;;  %v12712_v2 = vld [vmem:[%s15246_s23 + $0x1768] sm:$0xf0] }
 0x93a   : > { %v9298_v46 = vpop.f32.mrf.mxu0  ;;  %v9311_v10 = vpop.f32.mrf.mxu1 }
 0x93b   : > { %v9322_v3 = vpop.f32.mrf.mxu2  ;;  %v9335_v51 = vpop.f32.mrf.mxu3  ;;  %v13912_v46 = vld [vmem:[%s15246_s23 + $0x20c8] sm:$0xf0] }
 0x93c   : > { %v9323_v45 = vadd.f32 %v9322_v3, %v9310_v32  ;;  %v14084_v32 = vld [vmem:[%s15246_s23 + $0x49c] sm:$0xf0]  ;;  %v10307_v3 = vor.u32 %v14009_v35, %v10304_v20 }
 0x93d   : > { %v10303_v38 = vor.u32 %v14084_v32, %v10302_v31  ;;  %v10310_v31 = vld [vmem:[%s15246_s23 + $0x250] sm:$0xf]  ;;  %v14085_v32 = vld [vmem:[%s15246_s23 + $0x4a4] sm:$0xf0] }
 0x93e   : > { %9444 = vmatpush.bf16.xpose.msra.mxu0 %v13895_v36  ;;  %9457 = vmatpush.bf16.xpose.msra.mxu1 %v13899_v61  ;;  %v17491_v49 = vadd.f32 %v9335_v51, %v9323_v45  ;;  %v11503_v36 = vor.u32 %v14384_v54, %v11502_v5  ;;  %v10894_v61 = vld [vmem:[%s15246_s23 + $0x6f0] sm:$0xf]  ;;  %v1642_v51 = vld [vmem:[#allocation1 + $0x12] sm:$0xff]  ;;  %v12715_v5 = vor.u32 %v14610_v1, %v12712_v2  ;;  %v313_v2 = vld [vmem:[#allocation2] sm:$0x3] }
 0x93f   : > { %9470 = vmatpush.bf16.xpose.msra.mxu2 %v13903_v15  ;;  %9483 = vmatpush.bf16.xpose.msra.mxu3 %v13907_v40  ;;  %v14233_v15 = vld [vmem:[%s15246_s23 + $0x944] sm:$0xf0]  ;;  %v14158_v40 = vld [vmem:[%s15246_s23 + $0x6f4] sm:$0xf] }
 0x940   : > { %v10895_v21 = vor.u32 %v14233_v15, %v10894_v61  ;;  %v10899_v22 = vor.u32 %v14158_v40, %v10896_v16  ;;  %v1640_v45 = vld [vmem:[#allocation1] sm:$0xff] }
 0x941   : > { %v12112_v61 = vld [vmem:[%s15246_s23 + $0x12b8] sm:$0xf0] }
 0x942   : > { %v1644_v20 = vld [vmem:[#allocation1 + $0x24] sm:$0xff] }
 0x943   : > { %v9324_v63 = vpop.f32.mrf.mxu2  ;;  %v9337_v47 = vpop.f32.mrf.mxu3 }
 0x944   : > { %v14685_v47 = vld [vmem:[%s15246_s23 + $0x1764] sm:$0xf0] }
 0x946   : > { %9445 = vmatpush.bf16.xpose.msra.mxu0 %v13295_v25  ;;  %9458 = vmatpush.bf16.xpose.msra.mxu1 %v13299_v26  ;;  %v10907_v25 = vor.u32 %v14159_v19, %v10904_v43  ;;  %v1457_v26 = vld [vmem:[%s15246_s23 + $0x2320] sm:$0xff]  ;;  %v14385_v19 = vld [vmem:[%s15246_s23 + $0xe04] sm:$0xf0]  ;;  %v14310_v43 = vld [vmem:[%s15246_s23 + $0xbb4] sm:$0xf] }
 0x947   : > { %9471 = vmatpush.bf16.xpose.msra.mxu2 %v13303_v28  ;;  %9484 = vmatpush.bf16.xpose.msra.mxu3 %v13307_v30  ;;  %v10294_v28 = vld [vmem:[%s15246_s23 + $0x240] sm:$0xf]  ;;  %v14008_v30 = vld [vmem:[%s15246_s23 + $0x244] sm:$0xf]  ;;  %v5169_v33 = vunpack.c.l.b16 %v1457_v26  ;;  %v5170_v17 = vunpack.c.h.b16 %v1457_v26  ;;  %v14235_v26 = vld [vmem:[%s15246_s23 + $0x954] sm:$0xf0] }
 0x948   : > { %v10295_v34 = vor.u32 %v14083_v29, %v10294_v28  ;;  %v10299_v37 = vor.u32 %v14008_v30, %v10296_v14  ;;  %v14160_v28 = vld [vmem:[%s15246_s23 + $0x704] sm:$0xf]  ;;  %v10912_v29 = vld [vmem:[%s15246_s23 + $0x958] sm:$0xf0] }
 0x949   : > { %v6369_v23 = vpack.c.b16 %v5169_v33, %v5169_v33  ;;  %v10915_v14 = vor.u32 %v14160_v28, %v10912_v29  ;;  %v14010_v33 = vld [vmem:[%s15246_s23 + $0x254] sm:$0xf] }
 0x94e   : > { %9446 = vmatpush.bf16.xpose.msra.mxu0 %v12695_v41  ;;  %9459 = vmatpush.bf16.xpose.msra.mxu1 %v12699_v42  ;;  %v6370_v41 = vpack.c.b16 %v5170_v17, %v5170_v17  ;;  %v13910_v42 = vld [vmem:[%s15246_s23 + $0x1e70] sm:$0xf]  ;;  %v10312_v17 = vld [vmem:[%s15246_s23 + $0x4a8] sm:$0xf0] }
 0x94f   : > { %9472 = vmatpush.bf16.xpose.msra.mxu2 %v12703_v27  ;;  %9485 = vmatpush.bf16.xpose.msra.mxu3 %v12707_v6  ;;  %v14985_v27 = vld [vmem:[%s15246_s23 + $0x20c4] sm:$0xf0]  ;;  %v14910_v6 = vld [vmem:[%s15246_s23 + $0x1e74] sm:$0xf]  ;;  %v10315_v35 = vor.u32 %v14010_v33, %v10312_v17 }
 0x950   : > { %v13911_v10 = vor.u32 %v14985_v27, %v13910_v42  ;;  %v13915_v52 = vor.u32 %v14910_v6, %v13912_v46 }
 0x956   : > { %9447 = vmatpush.bf16.xpose.msra.mxu0 %v12095_v60  ;;  %9460 = vmatpush.bf16.xpose.msra.mxu1 %v12099_v44 }
 0x957   : > { %9473 = vmatpush.bf16.xpose.msra.mxu2 %v12103_v62  ;;  %9486 = vmatpush.bf16.xpose.msra.mxu3 %v12107_v0  ;;  %v12710_v0 = vld [vmem:[%s15246_s23 + $0x1510] sm:$0xf] }
 0x958   : > { %v12711_v50 = vor.u32 %v14685_v47, %v12710_v0 }
 0x95e   : > { %9448 = vmatpush.bf16.xpose.msra.mxu0 %v11495_v57  ;;  %9461 = vmatpush.bf16.xpose.msra.mxu1 %v11499_v11  ;;  %v12110_v11 = vld [vmem:[%s15246_s23 + $0x1060] sm:$0xf] }
 0x95f   : > { %9474 = vmatpush.bf16.xpose.msra.mxu2 %v11503_v36  ;;  %9487 = vmatpush.bf16.xpose.msra.mxu3 %v11507_v12  ;;  %v14535_v36 = vld [vmem:[%s15246_s23 + $0x12b4] sm:$0xf0]  ;;  %v14460_v12 = vld [vmem:[%s15246_s23 + $0x1064] sm:$0xf] }
 0x960   : > { %v12111_v15 = vor.u32 %v14535_v36, %v12110_v11  ;;  %v12115_v40 = vor.u32 %v14460_v12, %v12112_v61 }
 0x966   : > { %9449 = vmatpush.bf16.xpose.msra.mxu0 %v10895_v21  ;;  %9462 = vmatpush.bf16.xpose.msra.mxu1 %v10899_v22  ;;  %v11512_v21 = vld [vmem:[%s15246_s23 + $0xe08] sm:$0xf0]  ;;  %v11511_v22 = vor.u32 %v14385_v19, %v11510_v18 }
 0x967   : > { %9475 = vmatpush.bf16.xpose.msra.mxu2 %v10903_v24  ;;  %9488 = vmatpush.bf16.xpose.msra.mxu3 %v10907_v25  ;;  %v11515_v24 = vor.u32 %v14310_v43, %v11512_v21  ;;  %v10910_v25 = vld [vmem:[%s15246_s23 + $0x700] sm:$0xf] }
 0x968   : > { %v10911_v30 = vor.u32 %v14235_v26, %v10910_v25 }
 0x96e   : > { %9450 = vmatpush.bf16.xpose.msra.mxu0 %v10295_v34  ;;  %9463 = vmatpush.bf16.xpose.msra.mxu1 %v10299_v37  ;;  %v10311_v34 = vor.u32 %v14085_v32, %v10310_v31  ;;  %v1645_v37 = vld [vmem:[#allocation1 + $0x2d] sm:$0xff] }
 0x96f   : > { %9476 = vmatpush.bf16.xpose.msra.mxu2 %v10303_v38  ;;  %9489 = vmatpush.bf16.xpose.msra.mxu3 %v10307_v3 }
 0x972   : > { %v9348_v60 = vpop.f32.mrf.mxu0  ;;  %v9361_v62 = vpop.f32.mrf.mxu1 }
 0x973   : > { %v9349_v44 = vadd.f32 %v9348_v60, %v17491_v49 }
 0x975   : > { %9451 = vmatmul.bf16.vlgmr.msra.gmra.mxu0 %v1640_v45  ;;  %9464 = vmatmul.bf16.vlgmr.msra.gmra.mxu1 %v1641_v48  ;;  %v9362_v63 = vadd.f32 %v9361_v62, %v9349_v44 }
 0x976   : > { %9495 = vmatpush.bf16.xpose.msrb.mxu0 %v6369_v23  ;;  %9508 = vmatpush.bf16.xpose.msrb.mxu1 %v6370_v41 }
 0x977   : > { %9477 = vmatmul.bf16.vlgmr.msra.gmra.mxu2 %v1642_v51  ;;  %9490 = vmatmul.bf16.vlgmr.msra.gmra.mxu3 %v1643_v9 }
 0x97a   : > { %v9350_v7 = vpop.f32.mrf.mxu0  ;;  %v9363_v49 = vpop.f32.mrf.mxu1 }
 0x97b   : > { %v9374_v4 = vpop.f32.mrf.mxu2  ;;  %v9387_v8 = vpop.f32.mrf.mxu3 }
 0x97c   : > { %v9375_v54 = vadd.f32 %v9374_v4, %v9362_v63 }
 0x97e   : > { %9496 = vmatpush.bf16.xpose.msrb.mxu0 %v13911_v10  ;;  %9509 = vmatpush.bf16.xpose.msrb.mxu1 %v13915_v52  ;;  %v9388_v57 = vadd.f32 %v9387_v8, %v9375_v54 }
 0x983   : > { %v9376_v16 = vpop.f32.mrf.mxu2  ;;  %v9389_v39 = vpop.f32.mrf.mxu3 }
 0x986   : > { %9497 = vmatpush.bf16.xpose.msrb.mxu0 %v13311_v58  ;;  %9510 = vmatpush.bf16.xpose.msrb.mxu1 %v13315_v59 }
 0x98e   : > { %9498 = vmatpush.bf16.xpose.msrb.mxu0 %v12711_v50  ;;  %9511 = vmatpush.bf16.xpose.msrb.mxu1 %v12715_v5 }
 0x996   : > { %9499 = vmatpush.bf16.xpose.msrb.mxu0 %v12111_v15  ;;  %9512 = vmatpush.bf16.xpose.msrb.mxu1 %v12115_v40 }
 0x99e   : > { %9500 = vmatpush.bf16.xpose.msrb.mxu0 %v11511_v22  ;;  %9513 = vmatpush.bf16.xpose.msrb.mxu1 %v11515_v24 }
 0x9a6   : > { %9501 = vmatpush.bf16.xpose.msrb.mxu0 %v10911_v30  ;;  %9514 = vmatpush.bf16.xpose.msrb.mxu1 %v10915_v14 }
 0x9ae   : > { %9502 = vmatpush.bf16.xpose.msrb.mxu0 %v10311_v34  ;;  %9515 = vmatpush.bf16.xpose.msrb.mxu1 %v10315_v35 }
 0x9b2   : > { %v9400_v38 = vpop.f32.mrf.mxu0  ;;  %v9413_v41 = vpop.f32.mrf.mxu1 }
 0x9b3   : > { %v9401_v23 = vadd.f32 %v9400_v38, %v9388_v57 }
 0x9b5   : > { %9503 = vmatmul.bf16.vlgmr.msrb.gmra.mxu0 %v1644_v20  ;;  %9516 = vmatmul.bf16.vlgmr.msrb.gmra.mxu1 %v1645_v37  ;;  %v9414_v3 = vadd.f32 %v9413_v41, %v9401_v23 }
 0x9ba   : > { %v9402_v45 = vpop.f32.mrf.mxu0  ;;  %v9415_v46 = vpop.f32.mrf.mxu1 }
 0x9bb   : > { %v9426_v42 = vpop.f32.mrf.mxu2  ;;  %v9439_v6 = vpop.f32.mrf.mxu3 }
 0x9bc   : > { %v9427_v27 = vadd.f32 %v9426_v42, %v9414_v3 }
 0x9be   : > { %v9440_v51 = vadd.f32 %v9439_v6, %v9427_v27 }
 0x9c3   : > { %v9428_v48 = vpop.f32.mrf.mxu2  ;;  %v9441_v10 = vpop.f32.mrf.mxu3 }
 0x9f2   : > { %v9452_v9 = vpop.f32.mrf.mxu0  ;;  %v9465_v52 = vpop.f32.mrf.mxu1 }
 0x9f3   : > { %v9453_v60 = vadd.f32 %v9452_v9, %v9440_v51 }
 0x9f5   : > { %v9466_v44 = vadd.f32 %v9465_v52, %v9453_v60 }
 0x9fa   : > { %v9478_v53 = vpop.f32.mrf.mxu2  ;;  %v9454_v13 = vpop.f32.mrf.mxu0 }
 0x9fb   : > { %v9491_v55 = vpop.f32.mrf.mxu3  ;;  %v9467_v56 = vpop.f32.mrf.mxu1  ;;  %v9479_v62 = vadd.f32 %v9478_v53, %v9466_v44 }
 0x9fd   : > { %v9492_v63 = vadd.f32 %v9491_v55, %v9479_v62 }
 0xa02   : > { %v9480_v58 = vpop.f32.mrf.mxu2 }
 0xa03   : > { %v9493_v59 = vpop.f32.mrf.mxu3 }
 0xa32   : > { %v9504_v0 = vpop.f32.mrf.mxu0  ;;  %v9517_v1 = vpop.f32.mrf.mxu1 }
 0xa33   : > { %v9505_v47 = vadd.f32 %v9504_v0, %v9492_v63 }
 0xa35   : > { %v9518_v50 = vadd.f32 %v9517_v1, %v9505_v47 }
 0xa36   : > { %9527 = sbr.rel (%p13916_p7) target bundleno = 2922 (0xb6a), region = 60 }
 0xa37   : > { %v9521_v4 = vadd.f32 %v9518_v50, %v313_v2 }
 0xa39   : > { %9523 = vst.msk [vmem:[#allocation2] sm:$0x3] %vm9522_vm1, %v9521_v4 }
 0xa3a   : > { %v9506_v5 = vpop.f32.mrf.mxu0  ;;  %v9519_v54 = vpop.f32.mrf.mxu1 }
 0xa3b   : > { %v9545_v7 = vld [vmem:[%s17633_s3 + $0x50] sm:$0xf]  ;;  %vm9550_vm2 = vcmask 982016   ;;  %v9544_v8 = vld [vmem:[%s17633_s3 + $0x48] sm:$0xff]  ;;  %v9543_v49 = vld [vmem:[%s17633_s3 + $0x40] sm:$0xff]  ;;  %vm9613_vm3 = vcmask 687104  }
 0xa3c   : > { %13917 = vmatpush.xpose.msk.msra.mxu0 %vm9550_vm2, %v9545_v7  ;;  %v9542_v57 = vld [vmem:[%s17633_s3 + $0x38] sm:$0xff]  ;;  %v9541_v11 = vld [vmem:[%s17633_s3 + $0x30] sm:$0xff]  ;;  %v9540_v36 = vld [vmem:[%s17633_s3 + $0x28] sm:$0xff]  ;;  %vm9640_vm4 = vcmask 33792  }
 0xa3d   : > { %v9539_v12 = vld [vmem:[%s17633_s3 + $0x20] sm:$0xff]  ;;  %v9538_v61 = vld [vmem:[%s17633_s3 + $0x18] sm:$0xff]  ;;  %v9537_v15 = vld [vmem:[%s17633_s3 + $0x10] sm:$0xff] }
 0xa3e   : > { %v15038_v40 = vld [vmem:[%s17632_s2] ss:$0 sm:$0xff]  ;;  %v9536_v39 = vld [vmem:[%s17633_s3 + $0x8] sm:$0xff] }
 0xa3f   : > { %v9535_v19 = vld [vmem:[%s17633_s3] sm:$0xff] }
 0xa40   : > { %13918 = vmatpush.xpose.msk.msra.mxu0 %vm9550_vm2, %v9544_v8  ;;  %v9528_v16 = vld [vmem:[#allocation2] sm:$0x3]  ;;  %v9608_v21 = vld [vmem:[%s17635_s5] sm:$0x1f] }
 0xa41   : > { %v9533_v18 = vadd.f32 %v15038_v40, %v9528_v16  ;;  %13929 = vmatpush.xpose.msk.msra.mxu1 %vm9613_vm3, %v9608_v21  ;;  %v15039_v22 = vld [vmem:[%s17634_s4] ss:$0 sm:$0xff] }
 0xa42   : > { %v15040_v28 = vld [vmem:[%s17636_s6] ss:$0 sm:$0xff] }
 0xa43   : > { %v9534_v43 = vmax.f32 %v9533_v18, 0.0 }
 0xa44   : > { %13919 = vmatpush.xpose.msk.msra.mxu0 %vm9550_vm2, %v9543_v49 }
 0xa48   : > { %13920 = vmatpush.xpose.msk.msra.mxu0 %vm9550_vm2, %v9542_v57 }
 0xa4c   : > { %13921 = vmatpush.xpose.msk.msra.mxu0 %vm9550_vm2, %v9541_v11 }
 0xa50   : > { %13922 = vmatpush.xpose.msk.msra.mxu0 %vm9550_vm2, %v9540_v36 }
 0xa54   : > { %13923 = vmatpush.xpose.msk.msra.mxu0 %vm9550_vm2, %v9539_v12 }
 0xa58   : > { %13924 = vmatpush.xpose.msk.msra.mxu0 %vm9550_vm2, %v9538_v61 }
 0xa5c   : > { %13925 = vmatpush.xpose.msk.msra.mxu0 %vm9550_vm2, %v9537_v15 }
 0xa60   : > { %13926 = vmatpush.xpose.msk.msra.mxu0 %vm9550_vm2, %v9536_v39 }
 0xa64   : > { %13927 = vmatpush.xpose.msk.msra.mxu0 %vm9550_vm2, %v9535_v19 }
 0xa67   : > { %13928 = vmatmul.msk.f32.vlgmr.msra.gmra.mxu0 %vm9550_vm2, %v9534_v43 }
 0xae4   : > { %v9604_v24 = vpop.f32.mrf.mxu0 }
 0xae5   : > { %v9605_v25 = vadd.f32 %v15039_v22, %v9604_v24 }
 0xae7   : > { %v9607_v26 = vmax.f32 %v9605_v25, 0.0 }
 0xae9   : > { %13930 = vmatmul.msk.f32.vlgmr.msra.gmra.mxu1 %vm9613_vm3, %v9607_v26 }
 0xb66   : > { %v9637_v29 = vpop.f32.mrf.mxu1 }
 0xb67   : > { %v9638_v30 = vadd.f32 %v15040_v28, %v9637_v29 }
 0xb69   : > { %9641 = vst.msk [vmem:[#allocation6] sm:$0x3] %vm9640_vm4, %v9638_v30 }
 0xb6a PF: > { %p14999_p9 = scmp.eq.s32.totalorder %s15203_s28, 2  ;;  %s15143_s22 = smov [#allocation6]  }
 0xb6b   : > { %s9648_s23 = sshll.u32 %s15143_s22, 4  ;;  %s9650_s27 = sshll.u32 %s17637_s7, 4  ;;  %s9649_s23 = int_to_ptr.vmem [resolvable:$true] %s9648_s23  ;;  %s9651_s27 = int_to_ptr.hbm [resolvable:$true] %s9650_s27 }
 0xb6c   : > { %14991 = dma.vmem_to_hbm [thread:$0]  (%p14999_p9), %s9649_s23, 32, %s9651_s27, [#allocation5]  }
 0xb6d   : > { %15120 = dma.done.wait (%p14999_p9), [#allocation5], 32  }
 0xb6e   : > { %15122 = vsyncadd (%p14999_p9), [#allocation5], 4294967264 }
 0xb6f PF: > { %p18_p10 = scmp.ge.s32.totalorder %s15206_s29, 5   ;;  %s17640_s24 = smov %s15129_s25 }
 0xb70   : > { %s17641_s25 = smov %s15133_s26  ;;  %s17642_s26 = smov %s15216_s9 }
 0xb71   : > { %s17643_s27 = smov %s15206_s29  ;;  %20 = sbr.rel (!%p18_p10) target bundleno = 4 (0x4), region = 96 }
 0xb76   :  { %9664 = vsyncpa [#allocation4], 1 }
 0xb77   :  { %9666 = vsyncpa [#allocation4 + $0x1], 1 }
 0xb78   :  { %9667 = vsyncpa [#allocation5], 1 }
 0xb79   :  { %9669 = vsyncpa [#allocation5 + $0x1], 1 }

</bundles_post_ra>
